<compile_context>
chip_gen: v7x
topology: tpu7x:2x2x1
jax: 0.10.0
libtpu: 0.0.40
codegen_flags: <defaults>
</compile_context>

<pallas_src>
import numpy as np
import jax
import jax.numpy as jnp
from jax import lax
from jax.experimental import pallas as pl
from jax.experimental.pallas import tpu as pltpu

# Tile caps (multiples of 128 -> legal sublane/lane tiles on all generations; small
# enough that double-buffered blocks stay far below v5e's 16 MiB scoped VMEM and v7x's
# 64 MiB physical VMEM).
_BM = 256          # output row (sublane) tile cap
_BN = 256          # output column (lane) tile cap
_BK = 256          # contraction tile cap (multiple of 128: ok for v5e 4x128^2 MXU too)
_SEL_BM = 128      # selection kernel row tile
_SEL_BN = 512      # selection kernel column tile
_VMEM_LIMIT = 32 * 1024 * 1024   # headroom below physical VMEM on every generation

_NEG_BIG = -3.0e38  # python float -> jaxpr literal (NOT a captured jax Array)


def _cparams(sem):
    return pltpu.CompilerParams(dimension_semantics=sem,
                                vmem_limit_bytes=_VMEM_LIMIT)


def _tile(dim, cap):
    """Largest multiple-of-128 tile <= cap that divides dim, else the full dim.

    Never produces ragged blocks, so K-accumulation stays exact."""
    if dim <= cap:
        return dim
    t = (cap // 128) * 128
    while t >= 128:
        if dim % t == 0:
            return t
        t -= 128
    return dim


# ----------------------------------------------------------------------------
# Raw Pallas matmul kernels with K-axis accumulators: nn = A@B, nt = A@B^T, tn = A^T@B.
# Transposes are expressed via dot_general dimension_numbers (in-VMEM / MXU), never as
# an HBM transpose copy.
# ----------------------------------------------------------------------------
def _mm_nn_kernel(a_ref, b_ref, o_ref, acc_ref):
    @pl.when(pl.program_id(2) == 0)
    def _():
        acc_ref[...] = jnp.zeros_like(acc_ref)
    acc_ref[...] += jnp.dot(a_ref[...], b_ref[...],
                            preferred_element_type=jnp.float32)

    @pl.when(pl.program_id(2) == pl.num_programs(2) - 1)
    def _():
        o_ref[...] = acc_ref[...]


def _mm_nt_kernel(a_ref, b_ref, o_ref, acc_ref):
    @pl.when(pl.program_id(2) == 0)
    def _():
        acc_ref[...] = jnp.zeros_like(acc_ref)
    acc_ref[...] += lax.dot_general(a_ref[...], b_ref[...],
                                    dimension_numbers=(((1,), (1,)), ((), ())),
                                    preferred_element_type=jnp.float32)

    @pl.when(pl.program_id(2) == pl.num_programs(2) - 1)
    def _():
        o_ref[...] = acc_ref[...]


def _mm_tn_kernel(a_ref, b_ref, o_ref, acc_ref):
    @pl.when(pl.program_id(2) == 0)
    def _():
        acc_ref[...] = jnp.zeros_like(acc_ref)
    acc_ref[...] += lax.dot_general(a_ref[...], b_ref[...],
                                    dimension_numbers=(((0,), (0,)), ((), ())),
                                    preferred_element_type=jnp.float32)

    @pl.when(pl.program_id(2) == pl.num_programs(2) - 1)
    def _():
        o_ref[...] = acc_ref[...]


def mm_nn_raw(a, b):
    # a [M,K], b [K,N] -> a @ b [M,N]
    a = a.astype(jnp.float32)
    b = b.astype(jnp.float32)
    M, K = a.shape
    _, N = b.shape
    bm, bn, bk = _tile(M, _BM), _tile(N, _BN), _tile(K, _BK)
    return pl.pallas_call(
        _mm_nn_kernel,
        out_shape=jax.ShapeDtypeStruct((M, N), jnp.float32),
        grid=(M // bm, N // bn, K // bk),
        in_specs=[pl.BlockSpec((bm, bk), lambda i, j, k: (i, k)),
                  pl.BlockSpec((bk, bn), lambda i, j, k: (k, j))],
        out_specs=pl.BlockSpec((bm, bn), lambda i, j, k: (i, j)),
        scratch_shapes=[pltpu.VMEM((bm, bn), jnp.float32)],
        compiler_params=_cparams(("parallel", "parallel", "arbitrary")),
    )(a, b)


def mm_nt_raw(a, b):
    # a [M,K], b [N,K] -> a @ b^T [M,N]
    a = a.astype(jnp.float32)
    b = b.astype(jnp.float32)
    M, K = a.shape
    N, _ = b.shape
    bm, bn, bk = _tile(M, _BM), _tile(N, _BN), _tile(K, _BK)
    return pl.pallas_call(
        _mm_nt_kernel,
        out_shape=jax.ShapeDtypeStruct((M, N), jnp.float32),
        grid=(M // bm, N // bn, K // bk),
        in_specs=[pl.BlockSpec((bm, bk), lambda i, j, k: (i, k)),
                  pl.BlockSpec((bn, bk), lambda i, j, k: (j, k))],
        out_specs=pl.BlockSpec((bm, bn), lambda i, j, k: (i, j)),
        scratch_shapes=[pltpu.VMEM((bm, bn), jnp.float32)],
        compiler_params=_cparams(("parallel", "parallel", "arbitrary")),
    )(a, b)


def mm_tn_raw(a, b):
    # a [K,M], b [K,N] -> a^T @ b [M,N]
    a = a.astype(jnp.float32)
    b = b.astype(jnp.float32)
    K, M = a.shape
    _, N = b.shape
    bm, bn, bk = _tile(M, _BM), _tile(N, _BN), _tile(K, _BK)
    return pl.pallas_call(
        _mm_tn_kernel,
        out_shape=jax.ShapeDtypeStruct((M, N), jnp.float32),
        grid=(M // bm, N // bn, K // bk),
        in_specs=[pl.BlockSpec((bk, bm), lambda i, j, k: (k, i)),
                  pl.BlockSpec((bk, bn), lambda i, j, k: (k, j))],
        out_specs=pl.BlockSpec((bm, bn), lambda i, j, k: (i, j)),
        scratch_shapes=[pltpu.VMEM((bm, bn), jnp.float32)],
        compiler_params=_cparams(("parallel", "parallel", "arbitrary")),
    )(a, b)


# ----------------------------------------------------------------------------
# Differentiable matmul wrappers (custom_vjp closed under {nn, nt, tn}: no .T anywhere)
# ----------------------------------------------------------------------------
@jax.custom_vjp
def mm_nt(a, b):                      # a @ b^T
    return mm_nt_raw(a, b)


def _mm_nt_fwd(a, b):
    return mm_nt_raw(a, b), (a, b)


def _mm_nt_bwd(res, g):
    a, b = res
    return mm_nn_raw(g, b), mm_tn_raw(g, a)


mm_nt.defvjp(_mm_nt_fwd, _mm_nt_bwd)


@jax.custom_vjp
def mm_tn(a, b):                      # a^T @ b
    return mm_tn_raw(a, b)


def _mm_tn_fwd(a, b):
    return mm_tn_raw(a, b), (a, b)


def _mm_tn_bwd(res, g):
    a, b = res
    return mm_nt_raw(b, g), mm_nn_raw(a, g)


mm_tn.defvjp(_mm_tn_fwd, _mm_tn_bwd)


@jax.custom_vjp
def mm_sym(a, x):                     # a @ x with a == a^T (adj_norm); VJP uses symmetry
    return mm_nn_raw(a, x)


def _mm_sym_fwd(a, x):
    return mm_nn_raw(a, x), (a, x)


def _mm_sym_bwd(res, g):
    a, x = res
    # dA = g x^T ; dX = a^T g = a g (symmetry) -> row-tiled contiguous DMA only
    return mm_nt_raw(g, x), mm_nn_raw(a, g)


mm_sym.defvjp(_mm_sym_fwd, _mm_sym_bwd)


# ----------------------------------------------------------------------------
# Fused GCN layer: (adj_norm @ H) @ W in one pallas_call, K-tiled over the node axis;
# the (bm, F) intermediate accumulates in VMEM and never touches HBM.
# ----------------------------------------------------------------------------
def _gcn_layer_kernel(a_ref, h_ref, w_ref, o_ref, acc_ref):
    k = pl.program_id(1)

    @pl.when(k == 0)
    def _():
        acc_ref[...] = jnp.zeros_like(acc_ref)

    acc_ref[...] += jnp.dot(a_ref[...], h_ref[...],
                            preferred_element_type=jnp.float32)

    @pl.when(k == pl.num_programs(1) - 1)
    def _():
        o_ref[...] = jnp.dot(acc_ref[...], w_ref[...],
                             preferred_element_type=jnp.float32)


def gcn_layer_raw(adj, h, w):
    adj = adj.astype(jnp.float32)
    h = h.astype(jnp.float32)
    w = w.astype(jnp.float32)
    n = adj.shape[0]
    f = h.shape[1]
    fo = w.shape[1]
    bm, bk = _tile(n, _BM), _tile(n, _BK)
    return pl.pallas_call(
        _gcn_layer_kernel,
        out_shape=jax.ShapeDtypeStruct((n, fo), jnp.float32),
        grid=(n // bm, n // bk),
        in_specs=[pl.BlockSpec((bm, bk), lambda i, k: (i, k)),
                  pl.BlockSpec((bk, f), lambda i, k: (k, 0)),
                  pl.BlockSpec((f, fo), lambda i, k: (0, 0))],
        out_specs=pl.BlockSpec((bm, fo), lambda i, k: (i, 0)),
        scratch_shapes=[pltpu.VMEM((bm, f), jnp.float32)],
        compiler_params=_cparams(("parallel", "arbitrary")),
    )(adj, h, w)


@jax.custom_vjp
def gcn_layer_sym(adj, h, w):
    """out = (adj @ h) @ w ; VJP assumes adj == adj^T (true for adj_norm here)."""
    return gcn_layer_raw(adj, h, w)


def _gcn_layer_fwd(adj, h, w):
    return gcn_layer_raw(adj, h, w), (adj, h, w)


def _gcn_layer_bwd(res, g):
    adj, h, w = res
    f = h.shape[1]
    t = mm_nt_raw(g, w)                       # g @ w^T                      [N, F]
    d_adj = mm_nt_raw(t, h)                   # t @ h^T                      [N, N]
    # stream the N x N adjacency ONCE for both d_h and the d_w contraction input
    tg = jnp.concatenate([t, g.astype(jnp.float32)], axis=1)      # [N, F + Fo]
    atg = mm_nn_raw(adj, tg)                  # adj @ [t | g]
    d_h = atg[:, :f]                          # adj^T t = adj t              [N, F]
    d_w = mm_tn_raw(h, atg[:, f:])            # h^T (adj g)                  [F, Fo]
    return d_adj, d_h, d_w


gcn_layer_sym.defvjp(_gcn_layer_fwd, _gcn_layer_bwd)


# ----------------------------------------------------------------------------
# Single-pass tiled edge-selection kernel (the torch.no_grad() block of GraD.forward)
#
#   directed = adj_grad * (-2*A + 1); the torch reference then subtracts its global min,
#   zeroes the diagonal, multiplies by the singleton mask and takes argmax.  Because the
#   shifted off-diagonal values are >= 0, the argmax is the argmax of `directed` over
#   the ALLOWED set (off-diagonal, mask == 1); the shift only matters in the degenerate
#   case where every allowed entry equals the global min, which we ignore (documented).
#   Tie-breaking is first-occurrence in tile-scan order (row-major within a tile).
# ----------------------------------------------------------------------------
def _make_select_kernel(n_total, bm, bn):
    def kernel(grad_ref, adj_ref, d1r_ref, d1c_ref, out_ref, best_sc, row_sc, col_sc):
        i = pl.program_id(0)
        j = pl.program_id(1)
        rows, cols = grad_ref.shape          # static block shape (bm, bn)
        g = grad_ref[...]
        a = adj_ref[...]
        d = g * (-2.0 * a + 1.0)             # directed gradient
        lrow = lax.broadcasted_iota(jnp.int32, (rows, cols), 0)
        lcol = lax.broadcasted_iota(jnp.int32, (rows, cols), 1)
        row = lrow + i * bm
        col = lcol + j * bn
        # filter_potential_singletons, symmetric broadcast form (no transpose):
        #   mask[i,j] = 1 - a[i,j] * (deg1[i] + deg1[j])   in {1, 0, -1}
        mask = 1.0 - a * (d1r_ref[...] + d1c_ref[...])
        allowed = ((row < n_total) & (col < n_total) & (row != col) & (mask > 0.5))
        val = jnp.where(allowed, d, np.float32(_NEG_BIG))

        @pl.when((i == 0) & (j == 0))
        def _():
            best_sc[0] = np.float32(_NEG_BIG)
            row_sc[0] = np.int32(0)
            col_sc[0] = np.int32(0)

        tmax = jnp.max(val)
        # first occurrence within the tile; LOCAL flat index (bm*bn) avoids the int32
        # overflow of a global N*N flat index on large graphs
        lflat = lrow * cols + lcol
        tflat = jnp.min(jnp.where(val == tmax, lflat, rows * cols))
        better = tmax > best_sc[0]           # strict > keeps the earliest tile on ties
        best_sc[0] = jnp.where(better, tmax, best_sc[0])
        row_sc[0] = jnp.where(better, i * bm + tflat // cols, row_sc[0])
        col_sc[0] = jnp.where(better, j * bn + tflat % cols, col_sc[0])

        @pl.when((i == pl.num_programs(0) - 1) & (j == pl.num_programs(1) - 1))
        def _():
            out_ref[0] = row_sc[0]
            out_ref[1] = col_sc[0]

    return kernel


def pallas_select_edge(adj_grad, modified_adj):
    n = adj_grad.shape[0]
    adj_grad = adj_grad.astype(jnp.float32)
    modified_adj = modified_adj.astype(jnp.float32)
    deg1 = (jnp.sum(modified_adj, axis=0) == 1.0).astype(jnp.float32)
    bm = min(n, _SEL_BM)
    bn = min(n, _SEL_BN)
    rc = pl.pallas_call(
        _make_select_kernel(n, bm, bn),
        out_shape=jax.ShapeDtypeStruct((2,), jnp.int32),
        grid=(pl.cdiv(n, bm), pl.cdiv(n, bn)),
        in_specs=[pl.BlockSpec((bm, bn), lambda i, j: (i, j)),
                  pl.BlockSpec((bm, bn), lambda i, j: (i, j)),
                  pl.BlockSpec((bm, 1), lambda i, j: (i, 0)),
                  pl.BlockSpec((1, bn), lambda i, j: (0, j))],
        out_specs=pl.BlockSpec(memory_space=pltpu.MemorySpace.SMEM),
        scratch_shapes=[pltpu.SMEM((1,), jnp.float32),   # running best value
                        pltpu.SMEM((1,), jnp.int32),     # running best row
                        pltpu.SMEM((1,), jnp.int32)],    # running best col
        compiler_params=_cparams(("arbitrary", "arbitrary")),
    )(adj_grad, modified_adj, deg1.reshape(n, 1), deg1.reshape(1, n))
    row = rc[0]
    col = rc[1]
    upd = -2.0 * modified_adj[row, col] + 1.0            # scalar lookup outside the kernel
    return row, col, upd


# ----------------------------------------------------------------------------
# GCN / inner training (glue in jnp, all matmuls in Pallas)
# ----------------------------------------------------------------------------
def normalize_adj(adj):
    # utils.normalize_adj_tensor (dense): D^{-1/2} (A + I) D^{-1/2}, NaN-safe
    n = adj.shape[0]
    mx = adj + jnp.eye(n, dtype=adj.dtype)
    rowsum = jnp.sum(mx, axis=1)
    safe = jnp.where(rowsum > 0, rowsum, 1.0)
    r_inv = jnp.where(rowsum > 0, safe ** -0.5, 0.0)
    return r_inv[:, None] * mx * r_inv[None, :]


def gcn_forward(features, adj_norm, weights):
    # hidden = adj_norm @ hidden @ w   (with_bias=False, with_relu=False), fused per layer
    h = features
    layer_inputs = []
    for w in weights:
        layer_inputs.append(h)
        h = gcn_layer_sym(adj_norm, h, w)
    return h, layer_inputs


def inner_train(features, adj_norm, labels, idx_train, weights, velocities,
                momentum, lr, train_iters, nclass):
    # Momentum "SGD" on the linear GCN; weight gradients of
    # nll_loss(log_softmax(Z)[idx_train], labels[idx_train]) in closed form (identical to
    # torch autograd), expressed with transpose-free Pallas matmuls so the whole
    # trajectory stays differentiable w.r.t. adj_norm (create_graph=True analogue).
    n_nodes = features.shape[0]
    n_train = idx_train.shape[0]
    y_onehot = jax.nn.one_hot(labels, nclass, dtype=jnp.float32)
    train_mask = jnp.zeros((n_nodes, 1), jnp.float32).at[idx_train].set(1.0)
    weights = list(weights)
    velocities = list(velocities)
    for _ in range(train_iters):
        z, layer_inputs = gcn_forward(features, adj_norm, weights)
        p = jax.nn.softmax(z, axis=1)
        g = train_mask * (p - y_onehot) / n_train          # dLoss/dZ
        grads = [None] * len(weights)
        for l in range(len(weights) - 1, -1, -1):
            u = mm_sym(adj_norm, g)                         # adj_norm^T g == adj_norm g
            grads[l] = mm_tn(layer_inputs[l], u)            # H_l^T u  == (A H_l)^T g
            if l > 0:
                g = mm_nt(u, weights[l])                    # u W_l^T == A^T (g W_l^T)
        velocities = [momentum * v + gr for v, gr in zip(velocities, grads)]
        weights = [w - lr * v for w, v in zip(weights, velocities)]
    return tuple(weights), tuple(velocities)


def _self_training(features, ori_adj, labels, idx_train, init_w, init_v,
                   momentum, lr, train_iters, nclass):
    adj_norm = normalize_adj(ori_adj)
    weights, velocities = inner_train(features, adj_norm, labels, idx_train,
                                      init_w, init_v, momentum, lr, train_iters, nclass)
    hidden, _ = gcn_forward(features, adj_norm, weights)
    output = jax.nn.log_softmax(hidden, axis=1)
    labels_st = jnp.argmax(output, axis=1)
    labels_st = labels_st.at[idx_train].set(labels[idx_train])
    return labels_st, velocities


def _attack_objective(adj_changes, ori_adj, features, labels, idx_train,
                      idx_unlabeled, labels_self_training, init_w, init_v,
                      momentum, lr, train_iters, nclass):
    sq = adj_changes - jnp.diag(jnp.diag(adj_changes))
    symm = jnp.clip(sq + sq.T, -1.0, 1.0)
    modified_adj = symm + ori_adj
    adj_norm = normalize_adj(modified_adj)
    weights, velocities = inner_train(features, adj_norm, labels, idx_train,
                                      init_w, init_v, momentum, lr, train_iters, nclass)
    hidden, _ = gcn_forward(features, adj_norm, weights)
    output = jax.nn.softmax(hidden, axis=1)
    obj = -jnp.mean(output[idx_unlabeled, labels_self_training[idx_unlabeled]])
    return obj, (modified_adj, velocities)


# ----------------------------------------------------------------------------
# GraD module
# ----------------------------------------------------------------------------
def _pad_lane(d):
    return ((d + 127) // 128) * 128


class GraDPallas:
    def __init__(self, nfeat, hidden_sizes, nclass, nnodes,
                 train_iters=3, lr=0.1, momentum=0.9, seed=0):
        # TODO(synk): biases exist in the torch module but with_bias=False so they never
        # enter forward(); sparse-feature spmm, train_surrogate and
        # log_likelihood_constraint are not part of forward() and are omitted.
        self.nfeat = nfeat
        self.hidden_sizes = list(hidden_sizes)
        self.nclass = nclass
        self.nnodes = nnodes
        self.train_iters = train_iters
        self.lr = lr
        self.momentum = momentum          # args.dataset == 'cora' -> 0.9

        # physical (lane-padded) and logical layer dims; padded region stays exactly 0
        self.layer_dims = []
        self.logical_dims = []
        prev_l, prev_p = nfeat, nfeat
        for nhid in self.hidden_sizes:
            nhid_p = _pad_lane(nhid)
            self.layer_dims.append((prev_p, nhid_p))
            self.logical_dims.append((prev_l, nhid))
            prev_l, prev_p = nhid, nhid_p
        self.layer_dims.append((prev_p, nclass))
        self.logical_dims.append((prev_l, nclass))

        self.base_key = jax.random.PRNGKey(seed)
        self._init_counter = 0
        self.velocities = tuple(jnp.zeros(d, jnp.float32) for d in self.layer_dims)
        self.adj_changes = jnp.zeros((nnodes, nnodes), jnp.float32)

        mom, lr_, ti, nc = momentum, lr, train_iters, nclass
        self._self_training_fn = jax.jit(
            lambda feats, adj, lab, itr, w, v: _self_training(
                feats, adj, lab, itr, w, v, mom, lr_, ti, nc))
        self._grad_fn = jax.jit(
            jax.grad(lambda ac, *args: _attack_objective(ac, *args, mom, lr_, ti, nc),
                     has_aux=True))
        self._select_fn = jax.jit(pallas_select_edge)

    def _initialize(self):
        # matches torch _initialize: uniform(-stdv, stdv), stdv = 1/sqrt(w.size(1)),
        # computed from the LOGICAL fan-out; the lane-padded block is zero-filled.
        key = jax.random.fold_in(self.base_key, self._init_counter)
        self._init_counter += 1
        ws = []
        for (din_p, dout_p), (din_l, dout_l) in zip(self.layer_dims, self.logical_dims):
            stdv = 1.0 / (dout_l ** 0.5)
            key, sub = jax.random.split(key)
            w = jax.random.uniform(sub, (din_l, dout_l), jnp.float32, -stdv, stdv)
            w = jnp.pad(w, ((0, din_p - din_l), (0, dout_p - dout_l)))
            ws.append(w)
        return tuple(ws)

    def forward(self, features, ori_adj, labels, idx_train, idx_unlabeled, perturbations):
        # --- self-training labels from the clean graph ---
        init_w = self._initialize()
        labels_st, self.velocities = self._self_training_fn(
            features, ori_adj, labels, idx_train, init_w, self.velocities)

        # --- greedy perturbation loop ---
        for _ in range(perturbations):
            init_w = self._initialize()
            adj_grad, (modified_adj, self.velocities) = self._grad_fn(
                self.adj_changes, ori_adj, features, labels, idx_train,
                idx_unlabeled, labels_st, init_w, self.velocities)
            row, col, upd = self._select_fn(adj_grad, modified_adj)
            self.adj_changes = (self.adj_changes
                                .at[row, col].add(upd)
                                .at[col, row].add(upd))
        return self.adj_changes + ori_adj


# ----------------------------------------------------------------------------
# Demo
# ----------------------------------------------------------------------------
if __name__ == "__main__":
    # small but multi-tile: exercises the M / N / K grid tiling (512 / 256 = 2 blocks)
    N, F, NHID, C = 512, 128, 32, 8
    key = jax.random.PRNGKey(0)
    k1, k2, k3 = jax.random.split(key, 3)

    features = jax.random.normal(k1, (N, F), jnp.float32)
    labels = jax.random.randint(k2, (N,), 0, C)

    # symmetric 0/1 adjacency, zero diagonal, ring guarantees min degree >= 2
    upper = jnp.triu(jax.random.bernoulli(k3, 0.02, (N, N)).astype(jnp.float32), k=1)
    rand_adj = upper + upper.T
    idx = jnp.arange(N)
    ring = jnp.zeros((N, N), jnp.float32).at[idx, (idx + 1) % N].set(1.0)
    ring = ring + ring.T
    ori_adj = jnp.clip(rand_adj + ring, 0.0, 1.0) * (1.0 - jnp.eye(N, dtype=jnp.float32))

    idx_train = jnp.arange(128)
    idx_unlabeled = jnp.arange(128, N)

    model = GraDPallas(nfeat=F, hidden_sizes=[NHID], nclass=C, nnodes=N,
                       train_iters=3, lr=0.1, momentum=0.9, seed=0)
    out = model.forward(features, ori_adj, labels, idx_train, idx_unlabeled,
                        perturbations=2)
    out = jax.block_until_ready(out)
    assert out.shape == (N, N)
    assert bool(jnp.all(jnp.isfinite(out)))
    print("KERNEL_OK")
</pallas_src>

<mosaic_0001>
module attributes {stable_mosaic.version = 11 : i64} {
  func.func @_gcn_layer_kernel(%arg0: i32, %arg1: i32, %arg2: memref<256x256xf32, #tpu.memory_space<vmem>>, %arg3: memref<256x128xf32, #tpu.memory_space<vmem>>, %arg4: memref<128x128xf32, #tpu.memory_space<vmem>>, %arg5: memref<256x128xf32, #tpu.memory_space<vmem>>, %arg6: memref<256x128xf32, #tpu.memory_space<vmem>>) attributes {dimension_semantics = [#tpu.dimension_semantics<parallel>, #tpu.dimension_semantics<arbitrary>], iteration_bounds = array<i64: 2, 2>, scalar_prefetch = 0 : i64, scratch_operands = 1 : i64, tpu.core_type = #tpu.core_type<tc>, window_params = [{transform_indices = @transform_0, window_bounds = array<i64: 256, 256>}, {transform_indices = @transform_1, window_bounds = array<i64: 256, 128>}, {pipeline_mode = #tpu.pipeline_mode<synchronous>, transform_indices = @transform_2, window_bounds = array<i64: 128, 128>}, {transform_indices = @transform_3, window_bounds = array<i64: 256, 128>}]} {
    %c0_i32 = arith.constant 0 : i32
    %0 = arith.cmpi eq, %arg1, %c0_i32 : i32
    %1 = arith.extui %0 : i1 to i32
    %c0_i32_0 = arith.constant 0 : i32
    %2 = arith.cmpi ne, %1, %c0_i32_0 : i32
    scf.if %2 {
      %cst_9 = arith.constant 0.000000e+00 : f32
      %12 = vector.broadcast %cst_9 : f32 to vector<256x128xf32>
      %c0_10 = arith.constant 0 : index
      %c0_11 = arith.constant 0 : index
      %13 = vector.load %arg6[%c0_10, %c0_11] : memref<256x128xf32, #tpu.memory_space<vmem>>, vector<256x128xf32>
      tpu.vector_store %arg6[%c0_10, %c0_11], %12 {strides = array<i32>} : memref<256x128xf32, #tpu.memory_space<vmem>>, vector<256x128xf32>,
    } else {
    }
    %c0 = arith.constant 0 : index
    %c0_1 = arith.constant 0 : index
    %3 = vector.load %arg6[%c0, %c0_1] : memref<256x128xf32, #tpu.memory_space<vmem>>, vector<256x128xf32>
    %c0_2 = arith.constant 0 : index
    %c0_3 = arith.constant 0 : index
    %4 = vector.load %arg2[%c0_2, %c0_3] : memref<256x256xf32, #tpu.memory_space<vmem>>, vector<256x256xf32>
    %c0_4 = arith.constant 0 : index
    %c0_5 = arith.constant 0 : index
    %5 = vector.load %arg3[%c0_4, %c0_5] : memref<256x128xf32, #tpu.memory_space<vmem>>, vector<256x128xf32>
    %cst = arith.constant dense<0.000000e+00> : vector<256x128xf32>
    %6 = tpu.matmul %4, %5, %cst {dimension_numbers = #tpu.dot_dimension_numbers<[1], [0], [0], [1], [0, 0, 1, 1], [], []>} : vector<256x256xf32>, vector<256x128xf32>, vector<256x128xf32> -> vector<256x128xf32>
    %7 = arith.addf %3, %6 : vector<256x128xf32>
    %c0_6 = arith.constant 0 : index
    %c0_7 = arith.constant 0 : index
    %8 = vector.load %arg6[%c0_6, %c0_7] : memref<256x128xf32, #tpu.memory_space<vmem>>, vector<256x128xf32>
    tpu.vector_store %arg6[%c0_6, %c0_7], %7 {strides = array<i32>} : memref<256x128xf32, #tpu.memory_space<vmem>>, vector<256x128xf32>,
    %c1_i32 = arith.constant 1 : i32
    %9 = arith.cmpi eq, %arg1, %c1_i32 : i32
    %10 = arith.extui %9 : i1 to i32
    %c0_i32_8 = arith.constant 0 : i32
    %11 = arith.cmpi ne, %10, %c0_i32_8 : i32
    scf.if %11 {
      %c0_9 = arith.constant 0 : index
      %c0_10 = arith.constant 0 : index
      %12 = vector.load %arg6[%c0_9, %c0_10] : memref<256x128xf32, #tpu.memory_space<vmem>>, vector<256x128xf32>
      %c0_11 = arith.constant 0 : index
      %c0_12 = arith.constant 0 : index
      %13 = vector.load %arg4[%c0_11, %c0_12] : memref<128x128xf32, #tpu.memory_space<vmem>>, vector<128x128xf32>
      %cst_13 = arith.constant dense<0.000000e+00> : vector<256x128xf32>
      %14 = tpu.matmul %12, %13, %cst_13 {dimension_numbers = #tpu.dot_dimension_numbers<[1], [0], [0], [1], [0, 0, 1, 1], [], []>} : vector<256x128xf32>, vector<128x128xf32>, vector<256x128xf32> -> vector<256x128xf32>
      %c0_14 = arith.constant 0 : index
      %c0_15 = arith.constant 0 : index
      %15 = vector.load %arg5[%c0_14, %c0_15] : memref<256x128xf32, #tpu.memory_space<vmem>>, vector<256x128xf32>
      tpu.vector_store %arg5[%c0_14, %c0_15], %14 {strides = array<i32>} : memref<256x128xf32, #tpu.memory_space<vmem>>, vector<256x128xf32>,
    } else {
    }
    return
  }
  func.func @transform_0(%arg0: i32, %arg1: i32) -> (i32, i32) {
    %c0_i32 = arith.constant 0 : i32
    return %arg0, %arg1 : i32, i32
  }
  func.func @transform_1(%arg0: i32, %arg1: i32) -> (i32, i32) {
    %c0_i32 = arith.constant 0 : i32
    %c0_i32_0 = arith.constant 0 : i32
    return %arg1, %c0_i32 : i32, i32
  }
  func.func @transform_2(%arg0: i32, %arg1: i32) -> (i32, i32) {
    %c0_i32 = arith.constant 0 : i32
    %c0_i32_0 = arith.constant 0 : i32
    %c0_i32_1 = arith.constant 0 : i32
    return %c0_i32, %c0_i32_0 : i32, i32
  }
  func.func @transform_3(%arg0: i32, %arg1: i32) -> (i32, i32) {
    %c0_i32 = arith.constant 0 : i32
    %c0_i32_0 = arith.constant 0 : i32
    return %arg0, %c0_i32 : i32, i32
  }
}

module attributes {stable_mosaic.version = 11 : i64} {
  func.func @_gcn_layer_kernel(%arg0: i32, %arg1: i32, %arg2: memref<256x256xf32, #tpu.memory_space<vmem>>, %arg3: memref<256x128xf32, #tpu.memory_space<vmem>>, %arg4: memref<128x8xf32, #tpu.memory_space<vmem>>, %arg5: memref<256x8xf32, #tpu.memory_space<vmem>>, %arg6: memref<256x128xf32, #tpu.memory_space<vmem>>) attributes {dimension_semantics = [#tpu.dimension_semantics<parallel>, #tpu.dimension_semantics<arbitrary>], iteration_bounds = array<i64: 2, 2>, scalar_prefetch = 0 : i64, scratch_operands = 1 : i64, tpu.core_type = #tpu.core_type<tc>, window_params = [{transform_indices = @transform_0, window_bounds = array<i64: 256, 256>}, {transform_indices = @transform_1, window_bounds = array<i64: 256, 128>}, {pipeline_mode = #tpu.pipeline_mode<synchronous>, transform_indices = @transform_2, window_bounds = array<i64: 128, 8>}, {transform_indices = @transform_3, window_bounds = array<i64: 256, 8>}]} {
    %c0_i32 = arith.constant 0 : i32
    %0 = arith.cmpi eq, %arg1, %c0_i32 : i32
    %1 = arith.extui %0 : i1 to i32
    %c0_i32_0 = arith.constant 0 : i32
    %2 = arith.cmpi ne, %1, %c0_i32_0 : i32
    scf.if %2 {
      %cst_9 = arith.constant 0.000000e+00 : f32
      %12 = vector.broadcast %cst_9 : f32 to vector<256x128xf32>
      %c0_10 = arith.constant 0 : index
      %c0_11 = arith.constant 0 : index
      %13 = vector.load %arg6[%c0_10, %c0_11] : memref<256x128xf32, #tpu.memory_space<vmem>>, vector<256x128xf32>
      tpu.vector_store %arg6[%c0_10, %c0_11], %12 {strides = array<i32>} : memref<256x128xf32, #tpu.memory_space<vmem>>, vector<256x128xf32>,
    } else {
    }
    %c0 = arith.constant 0 : index
    %c0_1 = arith.constant 0 : index
    %3 = vector.load %arg6[%c0, %c0_1] : memref<256x128xf32, #tpu.memory_space<vmem>>, vector<256x128xf32>
    %c0_2 = arith.constant 0 : index
    %c0_3 = arith.constant 0 : index
    %4 = vector.load %arg2[%c0_2, %c0_3] : memref<256x256xf32, #tpu.memory_space<vmem>>, vector<256x256xf32>
    %c0_4 = arith.constant 0 : index
    %c0_5 = arith.constant 0 : index
    %5 = vector.load %arg3[%c0_4, %c0_5] : memref<256x128xf32, #tpu.memory_space<vmem>>, vector<256x128xf32>
    %cst = arith.constant dense<0.000000e+00> : vector<256x128xf32>
    %6 = tpu.matmul %4, %5, %cst {dimension_numbers = #tpu.dot_dimension_numbers<[1], [0], [0], [1], [0, 0, 1, 1], [], []>} : vector<256x256xf32>, vector<256x128xf32>, vector<256x128xf32> -> vector<256x128xf32>
    %7 = arith.addf %3, %6 : vector<256x128xf32>
    %c0_6 = arith.constant 0 : index
    %c0_7 = arith.constant 0 : index
    %8 = vector.load %arg6[%c0_6, %c0_7] : memref<256x128xf32, #tpu.memory_space<vmem>>, vector<256x128xf32>
    tpu.vector_store %arg6[%c0_6, %c0_7], %7 {strides = array<i32>} : memref<256x128xf32, #tpu.memory_space<vmem>>, vector<256x128xf32>,
    %c1_i32 = arith.constant 1 : i32
    %9 = arith.cmpi eq, %arg1, %c1_i32 : i32
    %10 = arith.extui %9 : i1 to i32
    %c0_i32_8 = arith.constant 0 : i32
    %11 = arith.cmpi ne, %10, %c0_i32_8 : i32
    scf.if %11 {
      %c0_9 = arith.constant 0 : index
      %c0_10 = arith.constant 0 : index
      %12 = vector.load %arg6[%c0_9, %c0_10] : memref<256x128xf32, #tpu.memory_space<vmem>>, vector<256x128xf32>
      %c0_11 = arith.constant 0 : index
      %c0_12 = arith.constant 0 : index
      %13 = vector.load %arg4[%c0_11, %c0_12] : memref<128x8xf32, #tpu.memory_space<vmem>>, vector<128x8xf32>
      %cst_13 = arith.constant dense<0.000000e+00> : vector<256x8xf32>
      %14 = tpu.matmul %12, %13, %cst_13 {dimension_numbers = #tpu.dot_dimension_numbers<[1], [0], [0], [1], [0, 0, 1, 1], [], []>} : vector<256x128xf32>, vector<128x8xf32>, vector<256x8xf32> -> vector<256x8xf32>
      %c0_14 = arith.constant 0 : index
      %c0_15 = arith.constant 0 : index
      %15 = vector.load %arg5[%c0_14, %c0_15] : memref<256x8xf32, #tpu.memory_space<vmem>>, vector<256x8xf32>
      tpu.vector_store %arg5[%c0_14, %c0_15], %14 {strides = array<i32>} : memref<256x8xf32, #tpu.memory_space<vmem>>, vector<256x8xf32>,
    } else {
    }
    return
  }
  func.func @transform_0(%arg0: i32, %arg1: i32) -> (i32, i32) {
    %c0_i32 = arith.constant 0 : i32
    return %arg0, %arg1 : i32, i32
  }
  func.func @transform_1(%arg0: i32, %arg1: i32) -> (i32, i32) {
    %c0_i32 = arith.constant 0 : i32
    %c0_i32_0 = arith.constant 0 : i32
    return %arg1, %c0_i32 : i32, i32
  }
  func.func @transform_2(%arg0: i32, %arg1: i32) -> (i32, i32) {
    %c0_i32 = arith.constant 0 : i32
    %c0_i32_0 = arith.constant 0 : i32
    %c0_i32_1 = arith.constant 0 : i32
    return %c0_i32, %c0_i32_0 : i32, i32
  }
  func.func @transform_3(%arg0: i32, %arg1: i32) -> (i32, i32) {
    %c0_i32 = arith.constant 0 : i32
    %c0_i32_0 = arith.constant 0 : i32
    return %arg0, %c0_i32 : i32, i32
  }
}

module attributes {stable_mosaic.version = 11 : i64} {
  func.func @_mm_tn_kernel(%arg0: i32, %arg1: i32, %arg2: i32, %arg3: memref<256x128xf32, #tpu.memory_space<vmem>>, %arg4: memref<256x8xf32, #tpu.memory_space<vmem>>, %arg5: memref<128x8xf32, #tpu.memory_space<vmem>>, %arg6: memref<128x8xf32, #tpu.memory_space<vmem>>) attributes {dimension_semantics = [#tpu.dimension_semantics<parallel>, #tpu.dimension_semantics<parallel>, #tpu.dimension_semantics<arbitrary>], iteration_bounds = array<i64: 1, 1, 2>, scalar_prefetch = 0 : i64, scratch_operands = 1 : i64, tpu.core_type = #tpu.core_type<tc>, window_params = [{transform_indices = @transform_0, window_bounds = array<i64: 256, 128>}, {transform_indices = @transform_1, window_bounds = array<i64: 256, 8>}, {transform_indices = @transform_2, window_bounds = array<i64: 128, 8>}]} {
    %c0_i32 = arith.constant 0 : i32
    %0 = arith.cmpi eq, %arg2, %c0_i32 : i32
    %1 = arith.extui %0 : i1 to i32
    %c0_i32_0 = arith.constant 0 : i32
    %2 = arith.cmpi ne, %1, %c0_i32_0 : i32
    scf.if %2 {
      %cst_9 = arith.constant 0.000000e+00 : f32
      %12 = vector.broadcast %cst_9 : f32 to vector<128x8xf32>
      %c0_10 = arith.constant 0 : index
      %c0_11 = arith.constant 0 : index
      %13 = vector.load %arg6[%c0_10, %c0_11] : memref<128x8xf32, #tpu.memory_space<vmem>>, vector<128x8xf32>
      tpu.vector_store %arg6[%c0_10, %c0_11], %12 {strides = array<i32>} : memref<128x8xf32, #tpu.memory_space<vmem>>, vector<128x8xf32>,
    } else {
    }
    %c0 = arith.constant 0 : index
    %c0_1 = arith.constant 0 : index
    %3 = vector.load %arg6[%c0, %c0_1] : memref<128x8xf32, #tpu.memory_space<vmem>>, vector<128x8xf32>
    %c0_2 = arith.constant 0 : index
    %c0_3 = arith.constant 0 : index
    %4 = vector.load %arg3[%c0_2, %c0_3] : memref<256x128xf32, #tpu.memory_space<vmem>>, vector<256x128xf32>
    %c0_4 = arith.constant 0 : index
    %c0_5 = arith.constant 0 : index
    %5 = vector.load %arg4[%c0_4, %c0_5] : memref<256x8xf32, #tpu.memory_space<vmem>>, vector<256x8xf32>
    %cst = arith.constant dense<0.000000e+00> : vector<128x8xf32>
    %6 = tpu.matmul %4, %5, %cst {dimension_numbers = #tpu.dot_dimension_numbers<[0], [0], [1], [1], [0, 1, 1, 1], [], []>} : vector<256x128xf32>, vector<256x8xf32>, vector<128x8xf32> -> vector<128x8xf32>
    %7 = arith.addf %3, %6 : vector<128x8xf32>
    %c0_6 = arith.constant 0 : index
    %c0_7 = arith.constant 0 : index
    %8 = vector.load %arg6[%c0_6, %c0_7] : memref<128x8xf32, #tpu.memory_space<vmem>>, vector<128x8xf32>
    tpu.vector_store %arg6[%c0_6, %c0_7], %7 {strides = array<i32>} : memref<128x8xf32, #tpu.memory_space<vmem>>, vector<128x8xf32>,
    %c1_i32 = arith.constant 1 : i32
    %9 = arith.cmpi eq, %arg2, %c1_i32 : i32
    %10 = arith.extui %9 : i1 to i32
    %c0_i32_8 = arith.constant 0 : i32
    %11 = arith.cmpi ne, %10, %c0_i32_8 : i32
    scf.if %11 {
      %c0_9 = arith.constant 0 : index
      %c0_10 = arith.constant 0 : index
      %12 = vector.load %arg6[%c0_9, %c0_10] : memref<128x8xf32, #tpu.memory_space<vmem>>, vector<128x8xf32>
      %c0_11 = arith.constant 0 : index
      %c0_12 = arith.constant 0 : index
      %13 = vector.load %arg5[%c0_11, %c0_12] : memref<128x8xf32, #tpu.memory_space<vmem>>, vector<128x8xf32>
      tpu.vector_store %arg5[%c0_11, %c0_12], %12 {strides = array<i32>} : memref<128x8xf32, #tpu.memory_space<vmem>>, vector<128x8xf32>,
    } else {
    }
    return
  }
  func.func @transform_0(%arg0: i32, %arg1: i32, %arg2: i32) -> (i32, i32) {
    %c0_i32 = arith.constant 0 : i32
    return %arg2, %arg0 : i32, i32
  }
  func.func @transform_1(%arg0: i32, %arg1: i32, %arg2: i32) -> (i32, i32) {
    %c0_i32 = arith.constant 0 : i32
    return %arg2, %arg1 : i32, i32
  }
  func.func @transform_2(%arg0: i32, %arg1: i32, %arg2: i32) -> (i32, i32) {
    %c0_i32 = arith.constant 0 : i32
    return %arg0, %arg1 : i32, i32
  }
}

module attributes {stable_mosaic.version = 11 : i64} {
  func.func @_mm_nn_kernel(%arg0: i32, %arg1: i32, %arg2: i32, %arg3: memref<256x256xf32, #tpu.memory_space<vmem>>, %arg4: memref<256x8xf32, #tpu.memory_space<vmem>>, %arg5: memref<256x8xf32, #tpu.memory_space<vmem>>, %arg6: memref<256x8xf32, #tpu.memory_space<vmem>>) attributes {dimension_semantics = [#tpu.dimension_semantics<parallel>, #tpu.dimension_semantics<parallel>, #tpu.dimension_semantics<arbitrary>], iteration_bounds = array<i64: 2, 1, 2>, scalar_prefetch = 0 : i64, scratch_operands = 1 : i64, tpu.core_type = #tpu.core_type<tc>, window_params = [{transform_indices = @transform_0, window_bounds = array<i64: 256, 256>}, {transform_indices = @transform_1, window_bounds = array<i64: 256, 8>}, {transform_indices = @transform_2, window_bounds = array<i64: 256, 8>}]} {
    %c0_i32 = arith.constant 0 : i32
    %0 = arith.cmpi eq, %arg2, %c0_i32 : i32
    %1 = arith.extui %0 : i1 to i32
    %c0_i32_0 = arith.constant 0 : i32
    %2 = arith.cmpi ne, %1, %c0_i32_0 : i32
    scf.if %2 {
      %cst_9 = arith.constant 0.000000e+00 : f32
      %12 = vector.broadcast %cst_9 : f32 to vector<256x8xf32>
      %c0_10 = arith.constant 0 : index
      %c0_11 = arith.constant 0 : index
      %13 = vector.load %arg6[%c0_10, %c0_11] : memref<256x8xf32, #tpu.memory_space<vmem>>, vector<256x8xf32>
      tpu.vector_store %arg6[%c0_10, %c0_11], %12 {strides = array<i32>} : memref<256x8xf32, #tpu.memory_space<vmem>>, vector<256x8xf32>,
    } else {
    }
    %c0 = arith.constant 0 : index
    %c0_1 = arith.constant 0 : index
    %3 = vector.load %arg6[%c0, %c0_1] : memref<256x8xf32, #tpu.memory_space<vmem>>, vector<256x8xf32>
    %c0_2 = arith.constant 0 : index
    %c0_3 = arith.constant 0 : index
    %4 = vector.load %arg3[%c0_2, %c0_3] : memref<256x256xf32, #tpu.memory_space<vmem>>, vector<256x256xf32>
    %c0_4 = arith.constant 0 : index
    %c0_5 = arith.constant 0 : index
    %5 = vector.load %arg4[%c0_4, %c0_5] : memref<256x8xf32, #tpu.memory_space<vmem>>, vector<256x8xf32>
    %cst = arith.constant dense<0.000000e+00> : vector<256x8xf32>
    %6 = tpu.matmul %4, %5, %cst {dimension_numbers = #tpu.dot_dimension_numbers<[1], [0], [0], [1], [0, 0, 1, 1], [], []>} : vector<256x256xf32>, vector<256x8xf32>, vector<256x8xf32> -> vector<256x8xf32>
    %7 = arith.addf %3, %6 : vector<256x8xf32>
    %c0_6 = arith.constant 0 : index
    %c0_7 = arith.constant 0 : index
    %8 = vector.load %arg6[%c0_6, %c0_7] : memref<256x8xf32, #tpu.memory_space<vmem>>, vector<256x8xf32>
    tpu.vector_store %arg6[%c0_6, %c0_7], %7 {strides = array<i32>} : memref<256x8xf32, #tpu.memory_space<vmem>>, vector<256x8xf32>,
    %c1_i32 = arith.constant 1 : i32
    %9 = arith.cmpi eq, %arg2, %c1_i32 : i32
    %10 = arith.extui %9 : i1 to i32
    %c0_i32_8 = arith.constant 0 : i32
    %11 = arith.cmpi ne, %10, %c0_i32_8 : i32
    scf.if %11 {
      %c0_9 = arith.constant 0 : index
      %c0_10 = arith.constant 0 : index
      %12 = vector.load %arg6[%c0_9, %c0_10] : memref<256x8xf32, #tpu.memory_space<vmem>>, vector<256x8xf32>
      %c0_11 = arith.constant 0 : index
      %c0_12 = arith.constant 0 : index
      %13 = vector.load %arg5[%c0_11, %c0_12] : memref<256x8xf32, #tpu.memory_space<vmem>>, vector<256x8xf32>
      tpu.vector_store %arg5[%c0_11, %c0_12], %12 {strides = array<i32>} : memref<256x8xf32, #tpu.memory_space<vmem>>, vector<256x8xf32>,
    } else {
    }
    return
  }
  func.func @transform_0(%arg0: i32, %arg1: i32, %arg2: i32) -> (i32, i32) {
    %c0_i32 = arith.constant 0 : i32
    return %arg0, %arg2 : i32, i32
  }
  func.func @transform_1(%arg0: i32, %arg1: i32, %arg2: i32) -> (i32, i32) {
    %c0_i32 = arith.constant 0 : i32
    return %arg2, %arg1 : i32, i32
  }
  func.func @transform_2(%arg0: i32, %arg1: i32, %arg2: i32) -> (i32, i32) {
    %c0_i32 = arith.constant 0 : i32
    return %arg0, %arg1 : i32, i32
  }
}

module attributes {stable_mosaic.version = 11 : i64} {
  func.func @_mm_nt_kernel(%arg0: i32, %arg1: i32, %arg2: i32, %arg3: memref<256x8xf32, #tpu.memory_space<vmem>>, %arg4: memref<128x8xf32, #tpu.memory_space<vmem>>, %arg5: memref<256x128xf32, #tpu.memory_space<vmem>>, %arg6: memref<256x128xf32, #tpu.memory_space<vmem>>) attributes {dimension_semantics = [#tpu.dimension_semantics<parallel>, #tpu.dimension_semantics<parallel>, #tpu.dimension_semantics<arbitrary>], iteration_bounds = array<i64: 2, 1, 1>, scalar_prefetch = 0 : i64, scratch_operands = 1 : i64, tpu.core_type = #tpu.core_type<tc>, window_params = [{transform_indices = @transform_0, window_bounds = array<i64: 256, 8>}, {transform_indices = @transform_1, window_bounds = array<i64: 128, 8>}, {transform_indices = @transform_2, window_bounds = array<i64: 256, 128>}]} {
    %c0_i32 = arith.constant 0 : i32
    %0 = arith.cmpi eq, %arg2, %c0_i32 : i32
    %1 = arith.extui %0 : i1 to i32
    %c0_i32_0 = arith.constant 0 : i32
    %2 = arith.cmpi ne, %1, %c0_i32_0 : i32
    scf.if %2 {
      %cst_10 = arith.constant 0.000000e+00 : f32
      %12 = vector.broadcast %cst_10 : f32 to vector<256x128xf32>
      %c0_11 = arith.constant 0 : index
      %c0_12 = arith.constant 0 : index
      %13 = vector.load %arg6[%c0_11, %c0_12] : memref<256x128xf32, #tpu.memory_space<vmem>>, vector<256x128xf32>
      tpu.vector_store %arg6[%c0_11, %c0_12], %12 {strides = array<i32>} : memref<256x128xf32, #tpu.memory_space<vmem>>, vector<256x128xf32>,
    } else {
    }
    %c0 = arith.constant 0 : index
    %c0_1 = arith.constant 0 : index
    %3 = vector.load %arg6[%c0, %c0_1] : memref<256x128xf32, #tpu.memory_space<vmem>>, vector<256x128xf32>
    %c0_2 = arith.constant 0 : index
    %c0_3 = arith.constant 0 : index
    %4 = vector.load %arg3[%c0_2, %c0_3] : memref<256x8xf32, #tpu.memory_space<vmem>>, vector<256x8xf32>
    %c0_4 = arith.constant 0 : index
    %c0_5 = arith.constant 0 : index
    %5 = vector.load %arg4[%c0_4, %c0_5] : memref<128x8xf32, #tpu.memory_space<vmem>>, vector<128x8xf32>
    %cst = arith.constant dense<0.000000e+00> : vector<256x128xf32>
    %6 = tpu.matmul %4, %5, %cst {dimension_numbers = #tpu.dot_dimension_numbers<[1], [1], [0], [0], [0, 0, 1, 0], [], []>} : vector<256x8xf32>, vector<128x8xf32>, vector<256x128xf32> -> vector<256x128xf32>
    %7 = arith.addf %3, %6 : vector<256x128xf32>
    %c0_6 = arith.constant 0 : index
    %c0_7 = arith.constant 0 : index
    %8 = vector.load %arg6[%c0_6, %c0_7] : memref<256x128xf32, #tpu.memory_space<vmem>>, vector<256x128xf32>
    tpu.vector_store %arg6[%c0_6, %c0_7], %7 {strides = array<i32>} : memref<256x128xf32, #tpu.memory_space<vmem>>, vector<256x128xf32>,
    %c0_i32_8 = arith.constant 0 : i32
    %9 = arith.cmpi eq, %arg2, %c0_i32_8 : i32
    %10 = arith.extui %9 : i1 to i32
    %c0_i32_9 = arith.constant 0 : i32
    %11 = arith.cmpi ne, %10, %c0_i32_9 : i32
    scf.if %11 {
      %c0_10 = arith.constant 0 : index
      %c0_11 = arith.constant 0 : index
      %12 = vector.load %arg6[%c0_10, %c0_11] : memref<256x128xf32, #tpu.memory_space<vmem>>, vector<256x128xf32>
      %c0_12 = arith.constant 0 : index
      %c0_13 = arith.constant 0 : index
      %13 = vector.load %arg5[%c0_12, %c0_13] : memref<256x128xf32, #tpu.memory_space<vmem>>, vector<256x128xf32>
      tpu.vector_store %arg5[%c0_12, %c0_13], %12 {strides = array<i32>} : memref<256x128xf32, #tpu.memory_space<vmem>>, vector<256x128xf32>,
    } else {
    }
    return
  }
  func.func @transform_0(%arg0: i32, %arg1: i32, %arg2: i32) -> (i32, i32) {
    %c0_i32 = arith.constant 0 : i32
    return %arg0, %arg2 : i32, i32
  }
  func.func @transform_1(%arg0: i32, %arg1: i32, %arg2: i32) -> (i32, i32) {
    %c0_i32 = arith.constant 0 : i32
    return %arg1, %arg2 : i32, i32
  }
  func.func @transform_2(%arg0: i32, %arg1: i32, %arg2: i32) -> (i32, i32) {
    %c0_i32 = arith.constant 0 : i32
    return %arg0, %arg1 : i32, i32
  }
}

module attributes {stable_mosaic.version = 11 : i64} {
  func.func @_mm_nn_kernel(%arg0: i32, %arg1: i32, %arg2: i32, %arg3: memref<256x256xf32, #tpu.memory_space<vmem>>, %arg4: memref<256x128xf32, #tpu.memory_space<vmem>>, %arg5: memref<256x128xf32, #tpu.memory_space<vmem>>, %arg6: memref<256x128xf32, #tpu.memory_space<vmem>>) attributes {dimension_semantics = [#tpu.dimension_semantics<parallel>, #tpu.dimension_semantics<parallel>, #tpu.dimension_semantics<arbitrary>], iteration_bounds = array<i64: 2, 1, 2>, scalar_prefetch = 0 : i64, scratch_operands = 1 : i64, tpu.core_type = #tpu.core_type<tc>, window_params = [{transform_indices = @transform_0, window_bounds = array<i64: 256, 256>}, {transform_indices = @transform_1, window_bounds = array<i64: 256, 128>}, {transform_indices = @transform_2, window_bounds = array<i64: 256, 128>}]} {
    %c0_i32 = arith.constant 0 : i32
    %0 = arith.cmpi eq, %arg2, %c0_i32 : i32
    %1 = arith.extui %0 : i1 to i32
    %c0_i32_0 = arith.constant 0 : i32
    %2 = arith.cmpi ne, %1, %c0_i32_0 : i32
    scf.if %2 {
      %cst_9 = arith.constant 0.000000e+00 : f32
      %12 = vector.broadcast %cst_9 : f32 to vector<256x128xf32>
      %c0_10 = arith.constant 0 : index
      %c0_11 = arith.constant 0 : index
      %13 = vector.load %arg6[%c0_10, %c0_11] : memref<256x128xf32, #tpu.memory_space<vmem>>, vector<256x128xf32>
      tpu.vector_store %arg6[%c0_10, %c0_11], %12 {strides = array<i32>} : memref<256x128xf32, #tpu.memory_space<vmem>>, vector<256x128xf32>,
    } else {
    }
    %c0 = arith.constant 0 : index
    %c0_1 = arith.constant 0 : index
    %3 = vector.load %arg6[%c0, %c0_1] : memref<256x128xf32, #tpu.memory_space<vmem>>, vector<256x128xf32>
    %c0_2 = arith.constant 0 : index
    %c0_3 = arith.constant 0 : index
    %4 = vector.load %arg3[%c0_2, %c0_3] : memref<256x256xf32, #tpu.memory_space<vmem>>, vector<256x256xf32>
    %c0_4 = arith.constant 0 : index
    %c0_5 = arith.constant 0 : index
    %5 = vector.load %arg4[%c0_4, %c0_5] : memref<256x128xf32, #tpu.memory_space<vmem>>, vector<256x128xf32>
    %cst = arith.constant dense<0.000000e+00> : vector<256x128xf32>
    %6 = tpu.matmul %4, %5, %cst {dimension_numbers = #tpu.dot_dimension_numbers<[1], [0], [0], [1], [0, 0, 1, 1], [], []>} : vector<256x256xf32>, vector<256x128xf32>, vector<256x128xf32> -> vector<256x128xf32>
    %7 = arith.addf %3, %6 : vector<256x128xf32>
    %c0_6 = arith.constant 0 : index
    %c0_7 = arith.constant 0 : index
    %8 = vector.load %arg6[%c0_6, %c0_7] : memref<256x128xf32, #tpu.memory_space<vmem>>, vector<256x128xf32>
    tpu.vector_store %arg6[%c0_6, %c0_7], %7 {strides = array<i32>} : memref<256x128xf32, #tpu.memory_space<vmem>>, vector<256x128xf32>,
    %c1_i32 = arith.constant 1 : i32
    %9 = arith.cmpi eq, %arg2, %c1_i32 : i32
    %10 = arith.extui %9 : i1 to i32
    %c0_i32_8 = arith.constant 0 : i32
    %11 = arith.cmpi ne, %10, %c0_i32_8 : i32
    scf.if %11 {
      %c0_9 = arith.constant 0 : index
      %c0_10 = arith.constant 0 : index
      %12 = vector.load %arg6[%c0_9, %c0_10] : memref<256x128xf32, #tpu.memory_space<vmem>>, vector<256x128xf32>
      %c0_11 = arith.constant 0 : index
      %c0_12 = arith.constant 0 : index
      %13 = vector.load %arg5[%c0_11, %c0_12] : memref<256x128xf32, #tpu.memory_space<vmem>>, vector<256x128xf32>
      tpu.vector_store %arg5[%c0_11, %c0_12], %12 {strides = array<i32>} : memref<256x128xf32, #tpu.memory_space<vmem>>, vector<256x128xf32>,
    } else {
    }
    return
  }
  func.func @transform_0(%arg0: i32, %arg1: i32, %arg2: i32) -> (i32, i32) {
    %c0_i32 = arith.constant 0 : i32
    return %arg0, %arg2 : i32, i32
  }
  func.func @transform_1(%arg0: i32, %arg1: i32, %arg2: i32) -> (i32, i32) {
    %c0_i32 = arith.constant 0 : i32
    return %arg2, %arg1 : i32, i32
  }
  func.func @transform_2(%arg0: i32, %arg1: i32, %arg2: i32) -> (i32, i32) {
    %c0_i32 = arith.constant 0 : i32
    return %arg0, %arg1 : i32, i32
  }
}

module attributes {stable_mosaic.version = 11 : i64} {
  func.func @_mm_tn_kernel(%arg0: i32, %arg1: i32, %arg2: i32, %arg3: memref<256x128xf32, #tpu.memory_space<vmem>>, %arg4: memref<256x128xf32, #tpu.memory_space<vmem>>, %arg5: memref<128x128xf32, #tpu.memory_space<vmem>>, %arg6: memref<128x128xf32, #tpu.memory_space<vmem>>) attributes {dimension_semantics = [#tpu.dimension_semantics<parallel>, #tpu.dimension_semantics<parallel>, #tpu.dimension_semantics<arbitrary>], iteration_bounds = array<i64: 1, 1, 2>, scalar_prefetch = 0 : i64, scratch_operands = 1 : i64, tpu.core_type = #tpu.core_type<tc>, window_params = [{transform_indices = @transform_0, window_bounds = array<i64: 256, 128>}, {transform_indices = @transform_1, window_bounds = array<i64: 256, 128>}, {transform_indices = @transform_2, window_bounds = array<i64: 128, 128>}]} {
    %c0_i32 = arith.constant 0 : i32
    %0 = arith.cmpi eq, %arg2, %c0_i32 : i32
    %1 = arith.extui %0 : i1 to i32
    %c0_i32_0 = arith.constant 0 : i32
    %2 = arith.cmpi ne, %1, %c0_i32_0 : i32
    scf.if %2 {
      %cst_9 = arith.constant 0.000000e+00 : f32
      %12 = vector.broadcast %cst_9 : f32 to vector<128x128xf32>
      %c0_10 = arith.constant 0 : index
      %c0_11 = arith.constant 0 : index
      %13 = vector.load %arg6[%c0_10, %c0_11] : memref<128x128xf32, #tpu.memory_space<vmem>>, vector<128x128xf32>
      tpu.vector_store %arg6[%c0_10, %c0_11], %12 {strides = array<i32>} : memref<128x128xf32, #tpu.memory_space<vmem>>, vector<128x128xf32>,
    } else {
    }
    %c0 = arith.constant 0 : index
    %c0_1 = arith.constant 0 : index
    %3 = vector.load %arg6[%c0, %c0_1] : memref<128x128xf32, #tpu.memory_space<vmem>>, vector<128x128xf32>
    %c0_2 = arith.constant 0 : index
    %c0_3 = arith.constant 0 : index
    %4 = vector.load %arg3[%c0_2, %c0_3] : memref<256x128xf32, #tpu.memory_space<vmem>>, vector<256x128xf32>
    %c0_4 = arith.constant 0 : index
    %c0_5 = arith.constant 0 : index
    %5 = vector.load %arg4[%c0_4, %c0_5] : memref<256x128xf32, #tpu.memory_space<vmem>>, vector<256x128xf32>
    %cst = arith.constant dense<0.000000e+00> : vector<128x128xf32>
    %6 = tpu.matmul %4, %5, %cst {dimension_numbers = #tpu.dot_dimension_numbers<[0], [0], [1], [1], [0, 1, 1, 1], [], []>} : vector<256x128xf32>, vector<256x128xf32>, vector<128x128xf32> -> vector<128x128xf32>
    %7 = arith.addf %3, %6 : vector<128x128xf32>
    %c0_6 = arith.constant 0 : index
    %c0_7 = arith.constant 0 : index
    %8 = vector.load %arg6[%c0_6, %c0_7] : memref<128x128xf32, #tpu.memory_space<vmem>>, vector<128x128xf32>
    tpu.vector_store %arg6[%c0_6, %c0_7], %7 {strides = array<i32>} : memref<128x128xf32, #tpu.memory_space<vmem>>, vector<128x128xf32>,
    %c1_i32 = arith.constant 1 : i32
    %9 = arith.cmpi eq, %arg2, %c1_i32 : i32
    %10 = arith.extui %9 : i1 to i32
    %c0_i32_8 = arith.constant 0 : i32
    %11 = arith.cmpi ne, %10, %c0_i32_8 : i32
    scf.if %11 {
      %c0_9 = arith.constant 0 : index
      %c0_10 = arith.constant 0 : index
      %12 = vector.load %arg6[%c0_9, %c0_10] : memref<128x128xf32, #tpu.memory_space<vmem>>, vector<128x128xf32>
      %c0_11 = arith.constant 0 : index
      %c0_12 = arith.constant 0 : index
      %13 = vector.load %arg5[%c0_11, %c0_12] : memref<128x128xf32, #tpu.memory_space<vmem>>, vector<128x128xf32>
      tpu.vector_store %arg5[%c0_11, %c0_12], %12 {strides = array<i32>} : memref<128x128xf32, #tpu.memory_space<vmem>>, vector<128x128xf32>,
    } else {
    }
    return
  }
  func.func @transform_0(%arg0: i32, %arg1: i32, %arg2: i32) -> (i32, i32) {
    %c0_i32 = arith.constant 0 : i32
    return %arg2, %arg0 : i32, i32
  }
  func.func @transform_1(%arg0: i32, %arg1: i32, %arg2: i32) -> (i32, i32) {
    %c0_i32 = arith.constant 0 : i32
    return %arg2, %arg1 : i32, i32
  }
  func.func @transform_2(%arg0: i32, %arg1: i32, %arg2: i32) -> (i32, i32) {
    %c0_i32 = arith.constant 0 : i32
    return %arg0, %arg1 : i32, i32
  }
}

</mosaic_0001>

<bundles_post_ra>
// kernel: _lambda_.23
= control target key start
LH: loop header
LB: loop body
LE: loop exit
PB: predicated region body
PF: predicated region fallthrough
CT: control target
= control target key end

     0   :  { %s1622_s12 = smov 0   ;;  %s1624_s13 = smov 0   ;;  %s2062_s0 = inlined_call_operand.vmem [shape: f32[512,512], index: 0, kind: input, shape index: {}]   ;;  %s2063_s1 = inlined_call_operand.vmem [shape: f32[512,128], index: 1, kind: input, shape index: {}]   ;;  %s2064_s2 = inlined_call_operand.vmem [shape: f32[128,128], index: 2, kind: input, shape index: {}]   ;;  %s2065_s3 = inlined_call_operand.vmem [shape: f32[512,128], index: 3, kind: output, shape index: {}]  }
   0x1   :  { %s1626_s14 = smov 0   ;;  %s1628_s15 = smov 0  }
   0x2   :  { %s1630_s16 = smov 0   ;;  %s1632_s17 = smov 0  }
   0x3   :  { %s1634_s18 = smov 0  }
   0x4 LB: > { %s22_s19 = sadd.s32 1, %s1590_s16  ;;  %s25_s20 = sadd.s32 1, %s1594_s17  ;;  %s1598_s18 = sphi %s1634_s18, %s13_s18   ;;  %s1594_s17 = sphi %s1632_s17, %s2071_s17   ;;  %s1590_s16 = sphi %s1630_s16, %s2070_s16   ;;  %s1586_s15 = sphi %s1628_s15, %s2069_s15   ;;  %s1582_s14 = sphi %s1626_s14, %s2068_s14   ;;  %s1578_s13 = sphi %s1624_s13, %s2067_s13   ;;  %s1574_s12 = sphi %s1622_s12, %s2066_s12  }
   0x5   : > { %p23_p0 = scmp.ge.s32.totalorder %s22_s19, 2  ;;  %p41_p1 = scmp.ne.s32.totalorder %s1578_s13, %s1574_s12 }
   0x6   : > { %p42_p2 = scmp.eq.s32.totalorder %s1598_s18, 0  ;;  %s34_s24 = sadd.s32 1, %s1578_s13 }
   0x7   : > { %s2073_s19 = smov (%p23_p0, %s22_s19), 0  ;;  %s2075_s20 = smov (!%p23_p0, %s25_s20), %s1594_s17 }
   0x8   : > { %p43_p3 = por %p42_p2, %p41_p1  ;;  %p27_p4 = scmp.ge.s32.totalorder %s2075_s20, 2 }
   0x9   : > { %s30_s21 = ssub.s32 %s1590_s16, %s2073_s19  ;;  %p1213_p6 = scmp.ge.s32.totalorder %s1598_s18, 4 }
   0xa   : > { %s2077_s20 = smov (%p27_p4, %s2075_s20), 0 }
   0xb   : > { %s29_s22 = ssub.s32 %s1594_s17, %s2077_s20  ;;  %143 = sbr.rel (%p1213_p6) target bundleno = 57 (0x39), region = 20 }
   0xc   : > { %s31_s23 = sor.u32 %s30_s21, %s29_s22 }
   0xd   : > { %p32_p5 = scmp.eq.s32.totalorder %s31_s23, 0 }
   0xf   : > { %s1673_s25 = scalar_select %p32_p5, %s1578_s13, %s34_s24  }
  0x12   : > { %146 = sbr.rel (!%p43_p3) target bundleno = 57 (0x39), region = 24  ;;  %s148_s26 = sand.u32 (%p43_p3), 1, %s1578_s13  }
  0x13   : > { %s1216_s27 = sshll.u32 (%p43_p3), %s1590_s16, 1  ;;  %s1214_s28 = sshll.u32 (%p43_p3), %s148_s26, 9 }
  0x14   : > { %s1229_s29 = sshll.u32 (%p43_p3), %s1594_s17, 7  ;;  %s1687_s8 = scalar_lea.vmem (%p43_p3), [#allocation3], %s1214_s28 }
  0x15   : > { %s154_s30 = sadd.s32 (%p43_p3), %s1229_s29, %s1216_s27 }
  0x16   : > { %s1218_s4 = sshll.u32 (%p43_p3), %s154_s30, 3 }
  0x17   : > { %s1682_s7 = scalar_lea.vmem (%p43_p3), %s2062_s0, %s1218_s4 }
  0x18   : > { %v169_v0 = vld [vmem:[%s1682_s7] sm:$0xff] (%p43_p3)  ;;  %v171_v1 = vld [vmem:[%s1682_s7 + $0x8] sm:$0xff] (%p43_p3) }
  0x19   : > { %v173_v2 = vld [vmem:[%s1682_s7 + $0x20] sm:$0xff]  ;;  %170 = vst [vmem:[%s1687_s8] sm:$0xff] %v169_v0  ;;  %172 = vst [vmem:[%s1687_s8 + $0x8] sm:$0xff] %v171_v1  ;;  %v175_v3 = vld [vmem:[%s1682_s7 + $0x28] sm:$0xff] }
  0x1a   : > { %174 = vst [vmem:[%s1687_s8 + $0x10] sm:$0xff] %v173_v2  ;;  %v177_v4 = vld [vmem:[%s1682_s7 + $0x40] sm:$0xff]  ;;  %v179_v5 = vld [vmem:[%s1682_s7 + $0x48] sm:$0xff]  ;;  %176 = vst [vmem:[%s1687_s8 + $0x18] sm:$0xff] %v175_v3 }
  0x1b   : > { %178 = vst [vmem:[%s1687_s8 + $0x20] sm:$0xff] %v177_v4  ;;  %180 = vst [vmem:[%s1687_s8 + $0x28] sm:$0xff] %v179_v5  ;;  %v181_v6 = vld [vmem:[%s1682_s7 + $0x60] sm:$0xff]  ;;  %v183_v7 = vld [vmem:[%s1682_s7 + $0x68] sm:$0xff] }
  0x1c   : > { %v185_v8 = vld [vmem:[%s1682_s7 + $0x80] sm:$0xff]  ;;  %182 = vst [vmem:[%s1687_s8 + $0x30] sm:$0xff] %v181_v6  ;;  %184 = vst [vmem:[%s1687_s8 + $0x38] sm:$0xff] %v183_v7  ;;  %v187_v9 = vld [vmem:[%s1682_s7 + $0x88] sm:$0xff] }
  0x1d   : > { %186 = vst [vmem:[%s1687_s8 + $0x40] sm:$0xff] %v185_v8  ;;  %v189_v10 = vld [vmem:[%s1682_s7 + $0xa0] sm:$0xff]  ;;  %v191_v11 = vld [vmem:[%s1682_s7 + $0xa8] sm:$0xff]  ;;  %188 = vst [vmem:[%s1687_s8 + $0x48] sm:$0xff] %v187_v9 }
  0x1e   : > { %190 = vst [vmem:[%s1687_s8 + $0x50] sm:$0xff] %v189_v10  ;;  %192 = vst [vmem:[%s1687_s8 + $0x58] sm:$0xff] %v191_v11  ;;  %v193_v12 = vld [vmem:[%s1682_s7 + $0xc0] sm:$0xff]  ;;  %v195_v13 = vld [vmem:[%s1682_s7 + $0xc8] sm:$0xff] }
  0x1f   : > { %v197_v14 = vld [vmem:[%s1682_s7 + $0xe0] sm:$0xff]  ;;  %194 = vst [vmem:[%s1687_s8 + $0x60] sm:$0xff] %v193_v12  ;;  %196 = vst [vmem:[%s1687_s8 + $0x68] sm:$0xff] %v195_v13  ;;  %v199_v15 = vld [vmem:[%s1682_s7 + $0xe8] sm:$0xff] }
  0x20   : > { %198 = vst [vmem:[%s1687_s8 + $0x70] sm:$0xff] %v197_v14  ;;  %v201_v16 = vld [vmem:[%s1682_s7 + $0x100] sm:$0xff]  ;;  %v203_v17 = vld [vmem:[%s1682_s7 + $0x108] sm:$0xff]  ;;  %200 = vst [vmem:[%s1687_s8 + $0x78] sm:$0xff] %v199_v15 }
  0x21   : > { %202 = vst [vmem:[%s1687_s8 + $0x80] sm:$0xff] %v201_v16  ;;  %204 = vst [vmem:[%s1687_s8 + $0x88] sm:$0xff] %v203_v17  ;;  %v205_v18 = vld [vmem:[%s1682_s7 + $0x120] sm:$0xff]  ;;  %v207_v19 = vld [vmem:[%s1682_s7 + $0x128] sm:$0xff] }
  0x22   : > { %v209_v20 = vld [vmem:[%s1682_s7 + $0x140] sm:$0xff]  ;;  %206 = vst [vmem:[%s1687_s8 + $0x90] sm:$0xff] %v205_v18  ;;  %208 = vst [vmem:[%s1687_s8 + $0x98] sm:$0xff] %v207_v19  ;;  %v211_v21 = vld [vmem:[%s1682_s7 + $0x148] sm:$0xff] }
  0x23   : > { %210 = vst [vmem:[%s1687_s8 + $0xa0] sm:$0xff] %v209_v20  ;;  %v213_v22 = vld [vmem:[%s1682_s7 + $0x160] sm:$0xff]  ;;  %v215_v23 = vld [vmem:[%s1682_s7 + $0x168] sm:$0xff]  ;;  %212 = vst [vmem:[%s1687_s8 + $0xa8] sm:$0xff] %v211_v21 }
  0x24   : > { %214 = vst [vmem:[%s1687_s8 + $0xb0] sm:$0xff] %v213_v22  ;;  %216 = vst [vmem:[%s1687_s8 + $0xb8] sm:$0xff] %v215_v23  ;;  %v217_v24 = vld [vmem:[%s1682_s7 + $0x180] sm:$0xff]  ;;  %v219_v25 = vld [vmem:[%s1682_s7 + $0x188] sm:$0xff] }
  0x25   : > { %v221_v26 = vld [vmem:[%s1682_s7 + $0x1a0] sm:$0xff]  ;;  %218 = vst [vmem:[%s1687_s8 + $0xc0] sm:$0xff] %v217_v24  ;;  %220 = vst [vmem:[%s1687_s8 + $0xc8] sm:$0xff] %v219_v25  ;;  %v223_v27 = vld [vmem:[%s1682_s7 + $0x1a8] sm:$0xff] }
  0x26   : > { %222 = vst [vmem:[%s1687_s8 + $0xd0] sm:$0xff] %v221_v26  ;;  %v225_v28 = vld [vmem:[%s1682_s7 + $0x1c0] sm:$0xff]  ;;  %v227_v29 = vld [vmem:[%s1682_s7 + $0x1c8] sm:$0xff]  ;;  %224 = vst [vmem:[%s1687_s8 + $0xd8] sm:$0xff] %v223_v27 }
  0x27   : > { %226 = vst [vmem:[%s1687_s8 + $0xe0] sm:$0xff] %v225_v28  ;;  %228 = vst [vmem:[%s1687_s8 + $0xe8] sm:$0xff] %v227_v29  ;;  %v229_v30 = vld [vmem:[%s1682_s7 + $0x1e0] sm:$0xff]  ;;  %v231_v31 = vld [vmem:[%s1682_s7 + $0x1e8] sm:$0xff] }
  0x28   : > { %v233_v32 = vld [vmem:[%s1682_s7 + $0x200] sm:$0xff]  ;;  %230 = vst [vmem:[%s1687_s8 + $0xf0] sm:$0xff] %v229_v30  ;;  %232 = vst [vmem:[%s1687_s8 + $0xf8] sm:$0xff] %v231_v31  ;;  %v235_v33 = vld [vmem:[%s1682_s7 + $0x208] sm:$0xff] }
  0x29   : > { %234 = vst [vmem:[%s1687_s8 + $0x100] sm:$0xff] %v233_v32  ;;  %v237_v34 = vld [vmem:[%s1682_s7 + $0x220] sm:$0xff]  ;;  %v239_v35 = vld [vmem:[%s1682_s7 + $0x228] sm:$0xff]  ;;  %236 = vst [vmem:[%s1687_s8 + $0x108] sm:$0xff] %v235_v33 }
  0x2a   : > { %238 = vst [vmem:[%s1687_s8 + $0x110] sm:$0xff] %v237_v34  ;;  %240 = vst [vmem:[%s1687_s8 + $0x118] sm:$0xff] %v239_v35  ;;  %v241_v36 = vld [vmem:[%s1682_s7 + $0x240] sm:$0xff]  ;;  %v243_v37 = vld [vmem:[%s1682_s7 + $0x248] sm:$0xff] }
  0x2b   : > { %v245_v38 = vld [vmem:[%s1682_s7 + $0x260] sm:$0xff]  ;;  %242 = vst [vmem:[%s1687_s8 + $0x120] sm:$0xff] %v241_v36  ;;  %244 = vst [vmem:[%s1687_s8 + $0x128] sm:$0xff] %v243_v37  ;;  %v247_v39 = vld [vmem:[%s1682_s7 + $0x268] sm:$0xff] }
  0x2c   : > { %246 = vst [vmem:[%s1687_s8 + $0x130] sm:$0xff] %v245_v38  ;;  %v249_v40 = vld [vmem:[%s1682_s7 + $0x280] sm:$0xff]  ;;  %v251_v41 = vld [vmem:[%s1682_s7 + $0x288] sm:$0xff]  ;;  %248 = vst [vmem:[%s1687_s8 + $0x138] sm:$0xff] %v247_v39 }
  0x2d   : > { %250 = vst [vmem:[%s1687_s8 + $0x140] sm:$0xff] %v249_v40  ;;  %252 = vst [vmem:[%s1687_s8 + $0x148] sm:$0xff] %v251_v41  ;;  %v253_v42 = vld [vmem:[%s1682_s7 + $0x2a0] sm:$0xff]  ;;  %v255_v43 = vld [vmem:[%s1682_s7 + $0x2a8] sm:$0xff] }
  0x2e   : > { %v257_v44 = vld [vmem:[%s1682_s7 + $0x2c0] sm:$0xff]  ;;  %254 = vst [vmem:[%s1687_s8 + $0x150] sm:$0xff] %v253_v42  ;;  %256 = vst [vmem:[%s1687_s8 + $0x158] sm:$0xff] %v255_v43  ;;  %v259_v45 = vld [vmem:[%s1682_s7 + $0x2c8] sm:$0xff] }
  0x2f   : > { %258 = vst [vmem:[%s1687_s8 + $0x160] sm:$0xff] %v257_v44  ;;  %v261_v46 = vld [vmem:[%s1682_s7 + $0x2e0] sm:$0xff]  ;;  %v263_v47 = vld [vmem:[%s1682_s7 + $0x2e8] sm:$0xff]  ;;  %260 = vst [vmem:[%s1687_s8 + $0x168] sm:$0xff] %v259_v45 }
  0x30   : > { %262 = vst [vmem:[%s1687_s8 + $0x170] sm:$0xff] %v261_v46  ;;  %264 = vst [vmem:[%s1687_s8 + $0x178] sm:$0xff] %v263_v47  ;;  %v265_v48 = vld [vmem:[%s1682_s7 + $0x300] sm:$0xff]  ;;  %v267_v49 = vld [vmem:[%s1682_s7 + $0x308] sm:$0xff] }
  0x31   : > { %v269_v50 = vld [vmem:[%s1682_s7 + $0x320] sm:$0xff]  ;;  %266 = vst [vmem:[%s1687_s8 + $0x180] sm:$0xff] %v265_v48  ;;  %268 = vst [vmem:[%s1687_s8 + $0x188] sm:$0xff] %v267_v49  ;;  %v271_v51 = vld [vmem:[%s1682_s7 + $0x328] sm:$0xff] }
  0x32   : > { %270 = vst [vmem:[%s1687_s8 + $0x190] sm:$0xff] %v269_v50  ;;  %v273_v52 = vld [vmem:[%s1682_s7 + $0x340] sm:$0xff]  ;;  %v275_v53 = vld [vmem:[%s1682_s7 + $0x348] sm:$0xff]  ;;  %272 = vst [vmem:[%s1687_s8 + $0x198] sm:$0xff] %v271_v51 }
  0x33   : > { %274 = vst [vmem:[%s1687_s8 + $0x1a0] sm:$0xff] %v273_v52  ;;  %276 = vst [vmem:[%s1687_s8 + $0x1a8] sm:$0xff] %v275_v53  ;;  %v277_v54 = vld [vmem:[%s1682_s7 + $0x360] sm:$0xff]  ;;  %v279_v55 = vld [vmem:[%s1682_s7 + $0x368] sm:$0xff] }
  0x34   : > { %v281_v56 = vld [vmem:[%s1682_s7 + $0x380] sm:$0xff]  ;;  %278 = vst [vmem:[%s1687_s8 + $0x1b0] sm:$0xff] %v277_v54  ;;  %280 = vst [vmem:[%s1687_s8 + $0x1b8] sm:$0xff] %v279_v55  ;;  %v283_v57 = vld [vmem:[%s1682_s7 + $0x388] sm:$0xff] }
  0x35   : > { %282 = vst [vmem:[%s1687_s8 + $0x1c0] sm:$0xff] %v281_v56  ;;  %v285_v58 = vld [vmem:[%s1682_s7 + $0x3a0] sm:$0xff]  ;;  %v287_v59 = vld [vmem:[%s1682_s7 + $0x3a8] sm:$0xff]  ;;  %284 = vst [vmem:[%s1687_s8 + $0x1c8] sm:$0xff] %v283_v57 }
  0x36   : > { %286 = vst [vmem:[%s1687_s8 + $0x1d0] sm:$0xff] %v285_v58  ;;  %288 = vst [vmem:[%s1687_s8 + $0x1d8] sm:$0xff] %v287_v59  ;;  %v289_v60 = vld [vmem:[%s1682_s7 + $0x3c0] sm:$0xff]  ;;  %v291_v61 = vld [vmem:[%s1682_s7 + $0x3c8] sm:$0xff] }
  0x37   : > { %v293_v62 = vld [vmem:[%s1682_s7 + $0x3e0] sm:$0xff]  ;;  %290 = vst [vmem:[%s1687_s8 + $0x1e0] sm:$0xff] %v289_v60  ;;  %292 = vst [vmem:[%s1687_s8 + $0x1e8] sm:$0xff] %v291_v61  ;;  %v295_v63 = vld [vmem:[%s1682_s7 + $0x3e8] sm:$0xff] }
  0x38   : > { %294 = vst [vmem:[%s1687_s8 + $0x1f0] sm:$0xff] %v293_v62  ;;  %296 = vst [vmem:[%s1687_s8 + $0x1f8] sm:$0xff] %v295_v63 }
  0x39 PF: > { %p1219_p7 = scmp.ge.s32.totalorder %s1598_s18, 1  ;;  %p310_p8 = scmp.lt.s32.totalorder %s1598_s18, 5 }
  0x3b   : > { %p311_p9 = pnand %p1219_p7, %p310_p8 }
  0x3c   : > { %s317_s9 = sand.u32 (!%p311_p9), 1, %s1574_s12   ;;  %s1221_s10 = sshll.u32 (!%p311_p9), %s1582_s14, 5 }
  0x3d   : > { %314 = sbr.rel (%p311_p9) target bundleno = 673 (0x2a1), region = 51  ;;  %s1220_s11 = sshll.u32 (!%p311_p9), %s317_s9, 9 }
  0x3e   : > { %p348_p10 = scmp.lt.s32.totalorder (!%p311_p9), %s1221_s10, 63  ;;  %s1223_s21 = sshll.u32 (!%p311_p9), %s1586_s15, 5 }
  0x3f   : > { %p354_p11 = scmp.lt.s32.totalorder (!%p311_p9), %s1223_s21, 63  ;;  %s1829_s12 = scalar_lea.vmem (!%p311_p9), [#allocation3], %s1220_s11 }
  0x40   : > { %p1225_p12 = scmp.ne.s32.totalorder (!%p311_p9), %s1582_s14, 0 }
  0x44   : > { %s2079_s10 = smov (!%p348_p10, %s1221_s10), 63  ;;  %s2081_s21 = smov (!%p354_p11, %s1223_s21), 63 }
  0x45   : > { %s1222_s22 = sshll.u32 %s2079_s10, 3  ;;  %s1224_s27 = sshll.u32 %s2081_s21, 3  ;;  %v1600_v0 = vmov (!%p1225_p12), 0.0  }
  0x46   : > { %s1822_s26 = scalar_lea.vmem %s2063_s1, %s1222_s22  ;;  %s1827_s30 = scalar_lea.vmem %s2065_s3, %s1224_s27  ;;  %363 = vst [vmem:[#allocation2] sm:$0xff] (!%p1225_p12), %v1600_v0  ;;  %364 = vst [vmem:[#allocation2 + $0x8] sm:$0xff] (!%p1225_p12), %v1600_v0 }
  0x47   : > { %362 = sbr.rel (%p1225_p12) target bundleno = 86 (0x56), region = 59  ;;  %365 = vst [vmem:[#allocation2 + $0x10] sm:$0xff] (!%p1225_p12), %v1600_v0  ;;  %366 = vst [vmem:[#allocation2 + $0x18] sm:$0xff] (!%p1225_p12), %v1600_v0 }
  0x48   : > { %367 = vst [vmem:[#allocation2 + $0x20] sm:$0xff] (!%p1225_p12), %v1600_v0  ;;  %368 = vst [vmem:[#allocation2 + $0x28] sm:$0xff] (!%p1225_p12), %v1600_v0 }
  0x49   : > { %369 = vst [vmem:[#allocation2 + $0x30] sm:$0xff] (!%p1225_p12), %v1600_v0  ;;  %370 = vst [vmem:[#allocation2 + $0x38] sm:$0xff] (!%p1225_p12), %v1600_v0 }
  0x4a   : > { %371 = vst [vmem:[#allocation2 + $0x40] sm:$0xff] (!%p1225_p12), %v1600_v0  ;;  %372 = vst [vmem:[#allocation2 + $0x48] sm:$0xff] (!%p1225_p12), %v1600_v0 }
  0x4b   : > { %373 = vst [vmem:[#allocation2 + $0x50] sm:$0xff] (!%p1225_p12), %v1600_v0  ;;  %374 = vst [vmem:[#allocation2 + $0x58] sm:$0xff] (!%p1225_p12), %v1600_v0 }
  0x4c   : > { %375 = vst [vmem:[#allocation2 + $0x60] sm:$0xff] (!%p1225_p12), %v1600_v0  ;;  %376 = vst [vmem:[#allocation2 + $0x68] sm:$0xff] (!%p1225_p12), %v1600_v0 }
  0x4d   : > { %377 = vst [vmem:[#allocation2 + $0x70] sm:$0xff] (!%p1225_p12), %v1600_v0  ;;  %378 = vst [vmem:[#allocation2 + $0x78] sm:$0xff] (!%p1225_p12), %v1600_v0 }
  0x4e   : > { %379 = vst [vmem:[#allocation2 + $0x80] sm:$0xff] %v1600_v0  ;;  %380 = vst [vmem:[#allocation2 + $0x88] sm:$0xff] %v1600_v0 }
  0x4f   : > { %381 = vst [vmem:[#allocation2 + $0x90] sm:$0xff] %v1600_v0  ;;  %382 = vst [vmem:[#allocation2 + $0x98] sm:$0xff] %v1600_v0 }
  0x50   : > { %383 = vst [vmem:[#allocation2 + $0xa0] sm:$0xff] %v1600_v0  ;;  %384 = vst [vmem:[#allocation2 + $0xa8] sm:$0xff] %v1600_v0 }
  0x51   : > { %385 = vst [vmem:[#allocation2 + $0xb0] sm:$0xff] %v1600_v0  ;;  %386 = vst [vmem:[#allocation2 + $0xb8] sm:$0xff] %v1600_v0 }
  0x52   : > { %387 = vst [vmem:[#allocation2 + $0xc0] sm:$0xff] %v1600_v0  ;;  %388 = vst [vmem:[#allocation2 + $0xc8] sm:$0xff] %v1600_v0 }
  0x53   : > { %389 = vst [vmem:[#allocation2 + $0xd0] sm:$0xff] %v1600_v0  ;;  %390 = vst [vmem:[#allocation2 + $0xd8] sm:$0xff] %v1600_v0 }
  0x54   : > { %391 = vst [vmem:[#allocation2 + $0xe0] sm:$0xff] %v1600_v0  ;;  %392 = vst [vmem:[#allocation2 + $0xe8] sm:$0xff] %v1600_v0 }
  0x55   : > { %393 = vst [vmem:[#allocation2 + $0xf0] sm:$0xff] %v1600_v0  ;;  %394 = vst [vmem:[#allocation2 + $0xf8] sm:$0xff] %v1600_v0 }
  0x56 PF: > { %v491_v1 = vld [vmem:[%s1822_s26] sm:$0xff]  ;;  %v492_v2 = vld [vmem:[%s1822_s26 + $0x8] sm:$0xff]  ;;  %v493_v3 = vld [vmem:[%s1822_s26 + $0x10] sm:$0xff]  ;;  %v1601_v4 = vmov 0.0|0.0   ;;  %p1226_p13 = scmp.ne.s32.totalorder %s1582_s14, 1 }
  0x57   : > { %1358 = vmatprep.subr.bf16.mxu0 %v1601_v4  ;;  %1438 = vmatprep.subr.bf16.mxu1 %v1601_v4  ;;  %v1359_v5 = vpack.c.bf16 %v492_v2, %v491_v1  ;;  %v494_v6 = vld [vmem:[%s1822_s26 + $0x18] sm:$0xff]  ;;  %v495_v8 = vld [vmem:[%s1822_s26 + $0x20] sm:$0xff]  ;;  %v496_v9 = vld [vmem:[%s1822_s26 + $0x28] sm:$0xff] }
  0x58   : > { %v1362_v7 = vpack.c.bf16 %v494_v6, %v493_v3  ;;  %v1365_v10 = vpack.c.bf16 %v496_v9, %v495_v8  ;;  %v497_v11 = vld [vmem:[%s1822_s26 + $0x30] sm:$0xff]  ;;  %v498_v12 = vld [vmem:[%s1822_s26 + $0x38] sm:$0xff]  ;;  %v428_v13 = vld [vmem:[%s1829_s12 + $0x8] sm:$0xff] }
  0x59   : > { %1360 = vmatpush1.bf16.msra.mxu0 %v1359_v5  ;;  %1454 = vmatpush1.bf16.msra.mxu1 %v1359_v5  ;;  %v1368_v14 = vpack.c.bf16 %v498_v12, %v497_v11  ;;  %v460_v15 = vld [vmem:[%s1829_s12 + $0x108] sm:$0xff]  ;;  %v499_v16 = vld [vmem:[%s1822_s26 + $0x40] sm:$0xff]  ;;  %v501_v19 = vld [vmem:[%s1822_s26 + $0x50] sm:$0xff] }
  0x5a   : > { %1361 = vmatprep.subr.bf16.mxu0 %v1601_v4  ;;  %1439 = vmatprep.subr.bf16.mxu1 %v1601_v4  ;;  %v500_v17 = vld [vmem:[%s1822_s26 + $0x48] sm:$0xff]  ;;  %v502_v20 = vld [vmem:[%s1822_s26 + $0x58] sm:$0xff]  ;;  %v503_v22 = vld [vmem:[%s1822_s26 + $0x60] sm:$0xff] }
  0x5b   : > { %587 = vmatprep.mubr.f32.mxu0 %v428_v13  ;;  %667 = vmatprep.mubr.f32.mxu1 %v460_v15  ;;  %v1371_v18 = vpack.c.bf16 %v500_v17, %v499_v16  ;;  %v1374_v21 = vpack.c.bf16 %v502_v20, %v501_v19  ;;  %v504_v23 = vld [vmem:[%s1822_s26 + $0x68] sm:$0xff]  ;;  %v505_v25 = vld [vmem:[%s1822_s26 + $0x70] sm:$0xff]  ;;  %v506_v26 = vld [vmem:[%s1822_s26 + $0x78] sm:$0xff] }
  0x5c   : > { %v1377_v24 = vpack.c.bf16 %v504_v23, %v503_v22  ;;  %v1380_v27 = vpack.c.bf16 %v506_v26, %v505_v25  ;;  %v507_v28 = vld [vmem:[%s1822_s26 + $0x80] sm:$0xff]  ;;  %v508_v29 = vld [vmem:[%s1822_s26 + $0x88] sm:$0xff]  ;;  %v509_v31 = vld [vmem:[%s1822_s26 + $0x90] sm:$0xff] }
  0x5d   : > { %1363 = vmatpush1.bf16.msra.mxu0 %v1362_v7  ;;  %1455 = vmatpush1.bf16.msra.mxu1 %v1362_v7  ;;  %v1383_v30 = vpack.c.bf16 %v508_v29, %v507_v28  ;;  %v510_v32 = vld [vmem:[%s1822_s26 + $0x98] sm:$0xff]  ;;  %v511_v34 = vld [vmem:[%s1822_s26 + $0xa0] sm:$0xff]  ;;  %v512_v35 = vld [vmem:[%s1822_s26 + $0xa8] sm:$0xff] }
  0x5e   : > { %1364 = vmatprep.subr.bf16.mxu0 %v1601_v4  ;;  %1440 = vmatprep.subr.bf16.mxu1 %v1601_v4  ;;  %v1386_v33 = vpack.c.bf16 %v510_v32, %v509_v31  ;;  %v1389_v36 = vpack.c.bf16 %v512_v35, %v511_v34  ;;  %v513_v37 = vld [vmem:[%s1822_s26 + $0xb0] sm:$0xff]  ;;  %v514_v38 = vld [vmem:[%s1822_s26 + $0xb8] sm:$0xff]  ;;  %v515_v40 = vld [vmem:[%s1822_s26 + $0xc0] sm:$0xff] }
  0x5f   : > { %v1392_v39 = vpack.c.bf16 %v514_v38, %v513_v37  ;;  %v516_v41 = vld [vmem:[%s1822_s26 + $0xc8] sm:$0xff]  ;;  %v517_v43 = vld [vmem:[%s1822_s26 + $0xd0] sm:$0xff]  ;;  %v518_v44 = vld [vmem:[%s1822_s26 + $0xd8] sm:$0xff] }
  0x60   : > { %v1395_v42 = vpack.c.bf16 %v516_v41, %v515_v40  ;;  %v1398_v45 = vpack.c.bf16 %v518_v44, %v517_v43  ;;  %v519_v46 = vld [vmem:[%s1822_s26 + $0xe0] sm:$0xff]  ;;  %v520_v47 = vld [vmem:[%s1822_s26 + $0xe8] sm:$0xff]  ;;  %v521_v49 = vld [vmem:[%s1822_s26 + $0xf0] sm:$0xff] }
  0x61   : > { %1366 = vmatpush1.bf16.msra.mxu0 %v1365_v10  ;;  %1456 = vmatpush1.bf16.msra.mxu1 %v1365_v10  ;;  %v1401_v48 = vpack.c.bf16 %v520_v47, %v519_v46  ;;  %v522_v50 = vld [vmem:[%s1822_s26 + $0xf8] sm:$0xff]  ;;  %v427_v52 = vld [vmem:[%s1829_s12] sm:$0xff]  ;;  %v429_v56 = vld [vmem:[%s1829_s12 + $0x10] sm:$0xff] }
  0x62   : > { %1367 = vmatprep.subr.bf16.mxu0 %v1601_v4  ;;  %1441 = vmatprep.subr.bf16.mxu1 %v1601_v4  ;;  %v1404_v51 = vpack.c.bf16 %v522_v50, %v521_v49  ;;  %v459_v53 = vld [vmem:[%s1829_s12 + $0x100] sm:$0xff]  ;;  %v430_v54 = vld [vmem:[%s1829_s12 + $0x18] sm:$0xff]  ;;  %v461_v57 = vld [vmem:[%s1829_s12 + $0x110] sm:$0xff] }
  0x63   : > { %v462_v55 = vld [vmem:[%s1829_s12 + $0x118] sm:$0xff]  ;;  %v432_v58 = vld [vmem:[%s1829_s12 + $0x28] sm:$0xff]  ;;  %v431_v60 = vld [vmem:[%s1829_s12 + $0x20] sm:$0xff] }
  0x64   : > { %v464_v59 = vld [vmem:[%s1829_s12 + $0x128] sm:$0xff]  ;;  %v463_v61 = vld [vmem:[%s1829_s12 + $0x120] sm:$0xff]  ;;  %v434_v62 = vld [vmem:[%s1829_s12 + $0x38] sm:$0xff] }
  0x65   : > { %1369 = vmatpush1.bf16.msra.mxu0 %v1368_v14  ;;  %1457 = vmatpush1.bf16.msra.mxu1 %v1368_v14  ;;  %v466_v63 = vld [vmem:[%s1829_s12 + $0x138] sm:$0xff]  ;;  %v433_v0 = vld [vmem:[%s1829_s12 + $0x30] sm:$0xff]  ;;  %v436_v2 = vld [vmem:[%s1829_s12 + $0x48] sm:$0xff] }
  0x66   : > { %1370 = vmatprep.subr.bf16.mxu0 %v1601_v4  ;;  %1442 = vmatprep.subr.bf16.mxu1 %v1601_v4  ;;  %v465_v1 = vld [vmem:[%s1829_s12 + $0x130] sm:$0xff]  ;;  %v468_v3 = vld [vmem:[%s1829_s12 + $0x148] sm:$0xff]  ;;  %v467_v5 = vld [vmem:[%s1829_s12 + $0x140] sm:$0xff] }
  0x67   : > { %v438_v6 = vld [vmem:[%s1829_s12 + $0x58] sm:$0xff]  ;;  %v437_v8 = vld [vmem:[%s1829_s12 + $0x50] sm:$0xff]  ;;  %v440_v10 = vld [vmem:[%s1829_s12 + $0x68] sm:$0xff] }
  0x68   : > { %v470_v7 = vld [vmem:[%s1829_s12 + $0x158] sm:$0xff]  ;;  %v469_v9 = vld [vmem:[%s1829_s12 + $0x150] sm:$0xff]  ;;  %v472_v11 = vld [vmem:[%s1829_s12 + $0x168] sm:$0xff] }
  0x69   : > { %1372 = vmatpush1.bf16.msra.mxu0 %v1371_v18  ;;  %1458 = vmatpush1.bf16.msra.mxu1 %v1371_v18  ;;  %v439_v12 = vld [vmem:[%s1829_s12 + $0x60] sm:$0xff]  ;;  %v442_v14 = vld [vmem:[%s1829_s12 + $0x78] sm:$0xff]  ;;  %v441_v16 = vld [vmem:[%s1829_s12 + $0x70] sm:$0xff] }
  0x6a   : > { %1373 = vmatprep.subr.bf16.mxu0 %v1601_v4  ;;  %1443 = vmatprep.subr.bf16.mxu1 %v1601_v4  ;;  %v471_v13 = vld [vmem:[%s1829_s12 + $0x160] sm:$0xff]  ;;  %v474_v15 = vld [vmem:[%s1829_s12 + $0x178] sm:$0xff]  ;;  %v473_v17 = vld [vmem:[%s1829_s12 + $0x170] sm:$0xff] }
  0x6b   : > { %v444_v18 = vld [vmem:[%s1829_s12 + $0x88] sm:$0xff]  ;;  %v443_v20 = vld [vmem:[%s1829_s12 + $0x80] sm:$0xff]  ;;  %v446_v22 = vld [vmem:[%s1829_s12 + $0x98] sm:$0xff] }
  0x6c   : > { %v476_v19 = vld [vmem:[%s1829_s12 + $0x188] sm:$0xff]  ;;  %v478_v23 = vld [vmem:[%s1829_s12 + $0x198] sm:$0xff]  ;;  %v477_v25 = vld [vmem:[%s1829_s12 + $0x190] sm:$0xff] }
  0x6d   : > { %1375 = vmatpush1.bf16.msra.mxu0 %v1374_v21  ;;  %1459 = vmatpush1.bf16.msra.mxu1 %v1374_v21  ;;  %v475_v21 = vld [vmem:[%s1829_s12 + $0x180] sm:$0xff]  ;;  %v448_v26 = vld [vmem:[%s1829_s12 + $0xa8] sm:$0xff]  ;;  %v482_v31 = vld [vmem:[%s1829_s12 + $0x1b8] sm:$0xff] }
  0x6e   : > { %1376 = vmatprep.subr.bf16.mxu0 %v1601_v4  ;;  %1444 = vmatprep.subr.bf16.mxu1 %v1601_v4  ;;  %v447_v28 = vld [vmem:[%s1829_s12 + $0xa0] sm:$0xff]  ;;  %v449_v32 = vld [vmem:[%s1829_s12 + $0xb0] sm:$0xff]  ;;  %v452_v34 = vld [vmem:[%s1829_s12 + $0xc8] sm:$0xff] }
  0x6f   : > { %v479_v29 = vld [vmem:[%s1829_s12 + $0x1a0] sm:$0xff]  ;;  %v484_v35 = vld [vmem:[%s1829_s12 + $0x1c8] sm:$0xff]  ;;  %v454_v38 = vld [vmem:[%s1829_s12 + $0xd8] sm:$0xff] }
  0x70   : > { %v483_v37 = vld [vmem:[%s1829_s12 + $0x1c0] sm:$0xff]  ;;  %v453_v40 = vld [vmem:[%s1829_s12 + $0xd0] sm:$0xff]  ;;  %v488_v43 = vld [vmem:[%s1829_s12 + $0x1e8] sm:$0xff] }
  0x71   : > { %1378 = vmatpush1.bf16.msra.mxu0 %v1377_v24  ;;  %1460 = vmatpush1.bf16.msra.mxu1 %v1377_v24  ;;  %v445_v24 = vld [vmem:[%s1829_s12 + $0x90] sm:$0xff]  ;;  %v455_v44 = vld [vmem:[%s1829_s12 + $0xe0] sm:$0xff]  ;;  %v458_v46 = vld [vmem:[%s1829_s12 + $0xf8] sm:$0xff] }
  0x72   : > { %1379 = vmatprep.subr.bf16.mxu0 %v1601_v4  ;;  %1445 = vmatprep.subr.bf16.mxu1 %v1601_v4  ;;  %v485_v41 = vld [vmem:[%s1829_s12 + $0x1d0] sm:$0xff]  ;;  %v490_v47 = vld [vmem:[%s1829_s12 + $0x1f8] sm:$0xff]  ;;  %v395_v50 = vld [vmem:[#allocation2] sm:$0xff] }
  0x73   : > { %v489_v49 = vld [vmem:[%s1829_s12 + $0x1f0] sm:$0xff] }
  0x75   : > { %1381 = vmatpush1.bf16.msra.mxu0 %v1380_v27  ;;  %1461 = vmatpush1.bf16.msra.mxu1 %v1380_v27  ;;  %v480_v27 = vld [vmem:[%s1829_s12 + $0x1a8] sm:$0xff] }
  0x76   : > { %1382 = vmatprep.subr.bf16.mxu0 %v1601_v4  ;;  %1446 = vmatprep.subr.bf16.mxu1 %v1601_v4 }
  0x79   : > { %1384 = vmatpush1.bf16.msra.mxu0 %v1383_v30  ;;  %1462 = vmatpush1.bf16.msra.mxu1 %v1383_v30  ;;  %v450_v30 = vld [vmem:[%s1829_s12 + $0xb8] sm:$0xff] }
  0x7a   : > { %1385 = vmatprep.subr.bf16.mxu0 %v1601_v4  ;;  %1447 = vmatprep.subr.bf16.mxu1 %v1601_v4 }
  0x7d   : > { %1387 = vmatpush1.bf16.msra.mxu0 %v1386_v33  ;;  %1463 = vmatpush1.bf16.msra.mxu1 %v1386_v33  ;;  %v481_v33 = vld [vmem:[%s1829_s12 + $0x1b0] sm:$0xff] }
  0x7e   : > { %1388 = vmatprep.subr.bf16.mxu0 %v1601_v4  ;;  %1448 = vmatprep.subr.bf16.mxu1 %v1601_v4 }
  0x81   : > { %1390 = vmatpush1.bf16.msra.mxu0 %v1389_v36  ;;  %1464 = vmatpush1.bf16.msra.mxu1 %v1389_v36  ;;  %v451_v36 = vld [vmem:[%s1829_s12 + $0xc0] sm:$0xff] }
  0x82   : > { %1391 = vmatprep.subr.bf16.mxu0 %v1601_v4  ;;  %1449 = vmatprep.subr.bf16.mxu1 %v1601_v4 }
  0x85   : > { %1393 = vmatpush1.bf16.msra.mxu0 %v1392_v39  ;;  %1465 = vmatpush1.bf16.msra.mxu1 %v1392_v39  ;;  %v486_v39 = vld [vmem:[%s1829_s12 + $0x1d8] sm:$0xff] }
  0x86   : > { %1394 = vmatprep.subr.bf16.mxu0 %v1601_v4  ;;  %1450 = vmatprep.subr.bf16.mxu1 %v1601_v4 }
  0x89   : > { %1396 = vmatpush1.bf16.msra.mxu0 %v1395_v42  ;;  %1466 = vmatpush1.bf16.msra.mxu1 %v1395_v42  ;;  %v456_v42 = vld [vmem:[%s1829_s12 + $0xe8] sm:$0xff] }
  0x8a   : > { %1397 = vmatprep.subr.bf16.mxu0 %v1601_v4  ;;  %1451 = vmatprep.subr.bf16.mxu1 %v1601_v4 }
  0x8d   : > { %1399 = vmatpush1.bf16.msra.mxu0 %v1398_v45  ;;  %1467 = vmatpush1.bf16.msra.mxu1 %v1398_v45  ;;  %v487_v45 = vld [vmem:[%s1829_s12 + $0x1e0] sm:$0xff] }
  0x8e   : > { %1400 = vmatprep.subr.bf16.mxu0 %v1601_v4  ;;  %1452 = vmatprep.subr.bf16.mxu1 %v1601_v4 }
  0x91   : > { %1402 = vmatpush1.bf16.msra.mxu0 %v1401_v48  ;;  %1468 = vmatpush1.bf16.msra.mxu1 %v1401_v48  ;;  %v457_v48 = vld [vmem:[%s1829_s12 + $0xf0] sm:$0xff] }
  0x92   : > { %1403 = vmatprep.subr.bf16.mxu0 %v1601_v4  ;;  %1453 = vmatprep.subr.bf16.mxu1 %v1601_v4  ;;  %v435_v4 = vld [vmem:[%s1829_s12 + $0x40] sm:$0xff] }
  0x95   : > { %1405 = vmatpush1.bf16.msra.mxu0 %v1404_v51  ;;  %1469 = vmatpush1.bf16.msra.mxu1 %v1404_v51  ;;  %v411_v51 = vld [vmem:[#allocation2 + $0x80] sm:$0xff] }
  0x98   : > { %588 = vmatmul.mubr.f32.vlgmr.msra.gmra.mrb[0].mxu0 %v427_v52  ;;  %668 = vmatmul.mubr.f32.vlgmr.msra.gmra.mrb[0].mxu1 %v459_v53 }
  0x99   : > { %592 = vmatprep.mubr.f32.mxu0 %v430_v54  ;;  %672 = vmatprep.mubr.f32.mxu1 %v462_v55 }
  0x9c   : > { %593 = vmatmul.mubr.f32.gmra.mrb[2].mxu0 %v429_v56  ;;  %673 = vmatmul.mubr.f32.gmra.mrb[2].mxu1 %v461_v57 }
  0x9d   : > { %597 = vmatprep.mubr.f32.mxu0 %v432_v58  ;;  %677 = vmatprep.mubr.f32.mxu1 %v464_v59  ;;  %v396_v58 = vld [vmem:[#allocation2 + $0x8] sm:$0xff] }
  0x9e   : > { %v412_v59 = vld [vmem:[#allocation2 + $0x88] sm:$0xff] }
  0xa0   : > { %598 = vmatmul.mubr.f32.gmra.mrb[4].mxu0 %v431_v60  ;;  %678 = vmatmul.mubr.f32.gmra.mrb[4].mxu1 %v463_v61 }
  0xa1   : > { %602 = vmatprep.mubr.f32.mxu0 %v434_v62  ;;  %682 = vmatprep.mubr.f32.mxu1 %v466_v63 }
  0xa4   : > { %603 = vmatmul.mubr.f32.gmra.mrb[6].mxu0 %v433_v0  ;;  %683 = vmatmul.mubr.f32.gmra.mrb[6].mxu1 %v465_v1 }
  0xa5   : > { %607 = vmatprep.mubr.f32.mxu0 %v436_v2  ;;  %687 = vmatprep.mubr.f32.mxu1 %v468_v3  ;;  %v397_v2 = vld [vmem:[#allocation2 + $0x10] sm:$0xff] }
  0xa6   : > { %v413_v3 = vld [vmem:[#allocation2 + $0x90] sm:$0xff] }
  0xa8   : > { %608 = vmatmul.mubr.f32.gmra.mrb[8].mxu0 %v435_v4  ;;  %688 = vmatmul.mubr.f32.gmra.mrb[8].mxu1 %v467_v5 }
  0xa9   : > { %612 = vmatprep.mubr.f32.mxu0 %v438_v6  ;;  %692 = vmatprep.mubr.f32.mxu1 %v470_v7 }
  0xac   : > { %613 = vmatmul.mubr.f32.gmra.mrb[10].mxu0 %v437_v8  ;;  %693 = vmatmul.mubr.f32.gmra.mrb[10].mxu1 %v469_v9 }
  0xad   : > { %617 = vmatprep.mubr.f32.mxu0 %v440_v10  ;;  %697 = vmatprep.mubr.f32.mxu1 %v472_v11  ;;  %v398_v10 = vld [vmem:[#allocation2 + $0x18] sm:$0xff] }
  0xae   : > { %v414_v11 = vld [vmem:[#allocation2 + $0x98] sm:$0xff] }
  0xb0   : > { %618 = vmatmul.mubr.f32.gmra.mrb[12].mxu0 %v439_v12  ;;  %698 = vmatmul.mubr.f32.gmra.mrb[12].mxu1 %v471_v13 }
  0xb1   : > { %622 = vmatprep.mubr.f32.mxu0 %v442_v14  ;;  %702 = vmatprep.mubr.f32.mxu1 %v474_v15 }
  0xb4   : > { %623 = vmatmul.mubr.f32.gmra.mrb[14].mxu0 %v441_v16  ;;  %703 = vmatmul.mubr.f32.gmra.mrb[14].mxu1 %v473_v17 }
  0xb5   : > { %627 = vmatprep.mubr.f32.mxu0 %v444_v18  ;;  %707 = vmatprep.mubr.f32.mxu1 %v476_v19  ;;  %v399_v18 = vld [vmem:[#allocation2 + $0x20] sm:$0xff] }
  0xb6   : > { %v415_v19 = vld [vmem:[#allocation2 + $0xa0] sm:$0xff] }
  0xb8   : > { %628 = vmatmul.mubr.f32.gmra.mrb[16].mxu0 %v443_v20  ;;  %708 = vmatmul.mubr.f32.gmra.mrb[16].mxu1 %v475_v21 }
  0xb9   : > { %632 = vmatprep.mubr.f32.mxu0 %v446_v22  ;;  %712 = vmatprep.mubr.f32.mxu1 %v478_v23 }
  0xbc   : > { %633 = vmatmul.mubr.f32.gmra.mrb[18].mxu0 %v445_v24  ;;  %713 = vmatmul.mubr.f32.gmra.mrb[18].mxu1 %v477_v25 }
  0xbd   : > { %637 = vmatprep.mubr.f32.mxu0 %v448_v26  ;;  %717 = vmatprep.mubr.f32.mxu1 %v480_v27  ;;  %v400_v26 = vld [vmem:[#allocation2 + $0x28] sm:$0xff] }
  0xbe   : > { %v416_v27 = vld [vmem:[#allocation2 + $0xa8] sm:$0xff] }
  0xc0   : > { %638 = vmatmul.mubr.f32.gmra.mrb[20].mxu0 %v447_v28  ;;  %718 = vmatmul.mubr.f32.gmra.mrb[20].mxu1 %v479_v29 }
  0xc1   : > { %642 = vmatprep.mubr.f32.mxu0 %v450_v30  ;;  %722 = vmatprep.mubr.f32.mxu1 %v482_v31 }
  0xc4   : > { %643 = vmatmul.mubr.f32.gmra.mrb[22].mxu0 %v449_v32  ;;  %723 = vmatmul.mubr.f32.gmra.mrb[22].mxu1 %v481_v33 }
  0xc5   : > { %647 = vmatprep.mubr.f32.mxu0 %v452_v34  ;;  %727 = vmatprep.mubr.f32.mxu1 %v484_v35  ;;  %v401_v34 = vld [vmem:[#allocation2 + $0x30] sm:$0xff] }
  0xc6   : > { %v417_v35 = vld [vmem:[#allocation2 + $0xb0] sm:$0xff] }
  0xc8   : > { %648 = vmatmul.mubr.f32.gmra.mrb[24].mxu0 %v451_v36  ;;  %728 = vmatmul.mubr.f32.gmra.mrb[24].mxu1 %v483_v37 }
  0xc9   : > { %652 = vmatprep.mubr.f32.mxu0 %v454_v38  ;;  %732 = vmatprep.mubr.f32.mxu1 %v486_v39 }
  0xcc   : > { %653 = vmatmul.mubr.f32.gmra.mrb[26].mxu0 %v453_v40  ;;  %733 = vmatmul.mubr.f32.gmra.mrb[26].mxu1 %v485_v41 }
  0xcd   : > { %657 = vmatprep.mubr.f32.mxu0 %v456_v42  ;;  %737 = vmatprep.mubr.f32.mxu1 %v488_v43  ;;  %v402_v42 = vld [vmem:[#allocation2 + $0x38] sm:$0xff] }
  0xce   : > { %v418_v43 = vld [vmem:[#allocation2 + $0xb8] sm:$0xff] }
  0xd0   : > { %658 = vmatmul.mubr.f32.gmra.mrb[28].mxu0 %v455_v44  ;;  %738 = vmatmul.mubr.f32.gmra.mrb[28].mxu1 %v487_v45 }
  0xd1   : > { %662 = vmatprep.mubr.f32.mxu0 %v458_v46  ;;  %742 = vmatprep.mubr.f32.mxu1 %v490_v47 }
  0xd4   : > { %663 = vmatmul.mubr.f32.gmra.mrb[30].mxu0 %v457_v48  ;;  %743 = vmatmul.mubr.f32.gmra.mrb[30].mxu1 %v489_v49 }
 0x16b   : > { %v589_v52 = vpop.f32.mrb[0].mxu0  ;;  %v669_v53 = vpop.f32.mrb[0].mxu1 }
 0x16c   : > { %v748_v54 = vadd.f32 %v589_v52, %v395_v50  ;;  %v764_v55 = vadd.f32 %v669_v53, %v411_v51  ;;  %v591_v56 = vpop.f32.mrb[1].mxu0  ;;  %v671_v57 = vpop.f32.mrb[1].mxu1  ;;  %v403_v50 = vld [vmem:[#allocation2 + $0x40] sm:$0xff] }
 0x16d   : > { %v419_v51 = vld [vmem:[#allocation2 + $0xc0] sm:$0xff] }
 0x16e   : > { %780 = vst [vmem:[#allocation2] sm:$0xff] %v748_v54  ;;  %796 = vst [vmem:[#allocation2 + $0x80] sm:$0xff] %v764_v55 }
 0x16f   : > { %v594_v60 = vpop.f32.mrb[2].mxu0  ;;  %v674_v61 = vpop.f32.mrb[2].mxu1 }
 0x170   : > { %v749_v62 = vadd.f32 %v594_v60, %v396_v58  ;;  %v765_v63 = vadd.f32 %v674_v61, %v412_v59  ;;  %v596_v0 = vpop.f32.mrb[3].mxu0  ;;  %v676_v1 = vpop.f32.mrb[3].mxu1  ;;  %v404_v58 = vld [vmem:[#allocation2 + $0x48] sm:$0xff] }
 0x171   : > { %v420_v59 = vld [vmem:[#allocation2 + $0xc8] sm:$0xff] }
 0x172   : > { %781 = vst [vmem:[#allocation2 + $0x8] sm:$0xff] %v749_v62  ;;  %797 = vst [vmem:[#allocation2 + $0x88] sm:$0xff] %v765_v63 }
 0x173   : > { %v599_v4 = vpop.f32.mrb[4].mxu0  ;;  %v679_v5 = vpop.f32.mrb[4].mxu1 }
 0x174   : > { %v750_v6 = vadd.f32 %v599_v4, %v397_v2  ;;  %v766_v7 = vadd.f32 %v679_v5, %v413_v3  ;;  %v601_v8 = vpop.f32.mrb[5].mxu0  ;;  %v681_v9 = vpop.f32.mrb[5].mxu1  ;;  %v405_v2 = vld [vmem:[#allocation2 + $0x50] sm:$0xff] }
 0x175   : > { %v421_v3 = vld [vmem:[#allocation2 + $0xd0] sm:$0xff] }
 0x176   : > { %782 = vst [vmem:[#allocation2 + $0x10] sm:$0xff] %v750_v6  ;;  %798 = vst [vmem:[#allocation2 + $0x90] sm:$0xff] %v766_v7 }
 0x177   : > { %v604_v12 = vpop.f32.mrb[6].mxu0  ;;  %v684_v13 = vpop.f32.mrb[6].mxu1 }
 0x178   : > { %v751_v14 = vadd.f32 %v604_v12, %v398_v10  ;;  %v767_v15 = vadd.f32 %v684_v13, %v414_v11  ;;  %v606_v16 = vpop.f32.mrb[7].mxu0  ;;  %v686_v17 = vpop.f32.mrb[7].mxu1  ;;  %v406_v10 = vld [vmem:[#allocation2 + $0x58] sm:$0xff] }
 0x179   : > { %v422_v11 = vld [vmem:[#allocation2 + $0xd8] sm:$0xff] }
 0x17a   : > { %783 = vst [vmem:[#allocation2 + $0x18] sm:$0xff] %v751_v14  ;;  %799 = vst [vmem:[#allocation2 + $0x98] sm:$0xff] %v767_v15 }
 0x17b   : > { %v609_v20 = vpop.f32.mrb[8].mxu0  ;;  %v689_v21 = vpop.f32.mrb[8].mxu1 }
 0x17c   : > { %v752_v22 = vadd.f32 %v609_v20, %v399_v18  ;;  %v768_v23 = vadd.f32 %v689_v21, %v415_v19  ;;  %v611_v24 = vpop.f32.mrb[9].mxu0  ;;  %v691_v25 = vpop.f32.mrb[9].mxu1  ;;  %v407_v18 = vld [vmem:[#allocation2 + $0x60] sm:$0xff] }
 0x17d   : > { %v423_v19 = vld [vmem:[#allocation2 + $0xe0] sm:$0xff] }
 0x17e   : > { %784 = vst [vmem:[#allocation2 + $0x20] sm:$0xff] %v752_v22  ;;  %800 = vst [vmem:[#allocation2 + $0xa0] sm:$0xff] %v768_v23 }
 0x17f   : > { %v614_v28 = vpop.f32.mrb[10].mxu0  ;;  %v694_v29 = vpop.f32.mrb[10].mxu1 }
 0x180   : > { %v753_v30 = vadd.f32 %v614_v28, %v400_v26  ;;  %v769_v31 = vadd.f32 %v694_v29, %v416_v27  ;;  %v616_v32 = vpop.f32.mrb[11].mxu0  ;;  %v696_v33 = vpop.f32.mrb[11].mxu1  ;;  %v408_v26 = vld [vmem:[#allocation2 + $0x68] sm:$0xff] }
 0x181   : > { %v424_v27 = vld [vmem:[#allocation2 + $0xe8] sm:$0xff] }
 0x182   : > { %785 = vst [vmem:[#allocation2 + $0x28] sm:$0xff] %v753_v30  ;;  %801 = vst [vmem:[#allocation2 + $0xa8] sm:$0xff] %v769_v31 }
 0x183   : > { %v619_v36 = vpop.f32.mrb[12].mxu0  ;;  %v699_v37 = vpop.f32.mrb[12].mxu1 }
 0x184   : > { %v754_v38 = vadd.f32 %v619_v36, %v401_v34  ;;  %v770_v39 = vadd.f32 %v699_v37, %v417_v35  ;;  %v621_v40 = vpop.f32.mrb[13].mxu0  ;;  %v701_v41 = vpop.f32.mrb[13].mxu1  ;;  %v409_v34 = vld [vmem:[#allocation2 + $0x70] sm:$0xff] }
 0x185   : > { %v425_v35 = vld [vmem:[#allocation2 + $0xf0] sm:$0xff] }
 0x186   : > { %786 = vst [vmem:[#allocation2 + $0x30] sm:$0xff] %v754_v38  ;;  %802 = vst [vmem:[#allocation2 + $0xb0] sm:$0xff] %v770_v39 }
 0x187   : > { %v624_v44 = vpop.f32.mrb[14].mxu0  ;;  %v704_v45 = vpop.f32.mrb[14].mxu1 }
 0x188   : > { %v755_v46 = vadd.f32 %v624_v44, %v402_v42  ;;  %v771_v47 = vadd.f32 %v704_v45, %v418_v43  ;;  %v626_v48 = vpop.f32.mrb[15].mxu0  ;;  %v706_v49 = vpop.f32.mrb[15].mxu1  ;;  %v410_v42 = vld [vmem:[#allocation2 + $0x78] sm:$0xff] }
 0x189   : > { %v426_v43 = vld [vmem:[#allocation2 + $0xf8] sm:$0xff] }
 0x18a   : > { %787 = vst [vmem:[#allocation2 + $0x38] sm:$0xff] %v755_v46  ;;  %803 = vst [vmem:[#allocation2 + $0xb8] sm:$0xff] %v771_v47 }
 0x18b   : > { %v629_v52 = vpop.f32.mrb[16].mxu0  ;;  %v709_v53 = vpop.f32.mrb[16].mxu1 }
 0x18c   : > { %v756_v54 = vadd.f32 %v629_v52, %v403_v50  ;;  %v772_v55 = vadd.f32 %v709_v53, %v419_v51  ;;  %v631_v56 = vpop.f32.mrb[17].mxu0  ;;  %v711_v57 = vpop.f32.mrb[17].mxu1  ;;  %v848_v50 = vld [vmem:[%s2064_s2] sm:$0xff] (!%p1226_p13)  ;;  %v849_v51 = vld [vmem:[%s2064_s2 + $0x8] sm:$0xff] (!%p1226_p13)  ;;  %v850_v52 = vld [vmem:[%s2064_s2 + $0x10] sm:$0xff] (!%p1226_p13) }
 0x18d   : > { %v1406_v53 = vpack.c.bf16 (!%p1226_p13), %v849_v51, %v848_v50  ;;  %v852_v56 = vld [vmem:[%s2064_s2 + $0x20] sm:$0xff] (!%p1226_p13)  ;;  %v853_v57 = vld [vmem:[%s2064_s2 + $0x28] sm:$0xff] (!%p1226_p13) }
 0x18e   : > { %788 = vst [vmem:[#allocation2 + $0x40] sm:$0xff] %v756_v54  ;;  %804 = vst [vmem:[#allocation2 + $0xc0] sm:$0xff] %v772_v55  ;;  %v851_v54 = vld [vmem:[%s2064_s2 + $0x18] sm:$0xff] (!%p1226_p13) }
 0x18f   : > { %v634_v60 = vpop.f32.mrb[18].mxu0  ;;  %v714_v61 = vpop.f32.mrb[18].mxu1  ;;  %v1410_v55 = vpack.c.bf16 (!%p1226_p13), %v851_v54, %v850_v52  ;;  %1407 = vmatprep.subr.bf16.mxu0 (!%p1226_p13), %v1406_v53  ;;  %1470 = vmatprep.subr.bf16.mxu1 (!%p1226_p13), %v1406_v53 }
 0x190   : > { %v757_v62 = vadd.f32 %v634_v60, %v404_v58  ;;  %v773_v63 = vadd.f32 %v714_v61, %v420_v59  ;;  %v636_v0 = vpop.f32.mrb[19].mxu0  ;;  %v716_v1 = vpop.f32.mrb[19].mxu1  ;;  %1409 = vmatpush3.bf16.msra.mxu0 (!%p1226_p13), %v1406_v53  ;;  %1478 = vmatpush3.bf16.msra.mxu1 (!%p1226_p13), %v1406_v53  ;;  %v1414_v58 = vpack.c.bf16 (!%p1226_p13), %v853_v57, %v852_v56  ;;  %v816_v59 = vld [vmem:[#allocation2] sm:$0xff] (!%p1226_p13)  ;;  %v854_v61 = vld [vmem:[%s2064_s2 + $0x30] sm:$0xff] (!%p1226_p13) }
 0x191   : > { %1411 = vmatprep.subr.bf16.mxu0 (!%p1226_p13), %v1410_v55  ;;  %1471 = vmatprep.subr.bf16.mxu1 (!%p1226_p13), %v1410_v55  ;;  %v832_v60 = vld [vmem:[#allocation2 + $0x80] sm:$0xff] (!%p1226_p13)  ;;  %v857_v1 = vld [vmem:[%s2064_s2 + $0x48] sm:$0xff] (!%p1226_p13) }
 0x192   : > { %789 = vst [vmem:[#allocation2 + $0x48] sm:$0xff] %v757_v62  ;;  %805 = vst [vmem:[#allocation2 + $0xc8] sm:$0xff] %v773_v63  ;;  %v855_v62 = vld [vmem:[%s2064_s2 + $0x38] sm:$0xff] (!%p1226_p13)  ;;  %1310 = vmatprep.mubr.f32.mxu0 (!%p1226_p13), %v816_v59  ;;  %1334 = vmatprep.mubr.f32.mxu1 (!%p1226_p13), %v832_v60  ;;  %v856_v0 = vld [vmem:[%s2064_s2 + $0x40] sm:$0xff] (!%p1226_p13) }
 0x193   : > { %v639_v4 = vpop.f32.mrb[20].mxu0  ;;  %v719_v5 = vpop.f32.mrb[20].mxu1  ;;  %v1418_v63 = vpack.c.bf16 (!%p1226_p13), %v855_v62, %v854_v61 }
 0x194   : > { %v758_v6 = vadd.f32 %v639_v4, %v405_v2  ;;  %v774_v7 = vadd.f32 %v719_v5, %v421_v3  ;;  %v641_v8 = vpop.f32.mrb[21].mxu0  ;;  %v721_v9 = vpop.f32.mrb[21].mxu1  ;;  %1413 = vmatpush3.bf16.msra.mxu0 (!%p1226_p13), %v1410_v55  ;;  %1479 = vmatpush3.bf16.msra.mxu1 (!%p1226_p13), %v1410_v55  ;;  %v1422_v2 = vpack.c.bf16 (!%p1226_p13), %v857_v1, %v856_v0  ;;  %v858_v3 = vld [vmem:[%s2064_s2 + $0x50] sm:$0xff] (!%p1226_p13)  ;;  %v859_v4 = vld [vmem:[%s2064_s2 + $0x58] sm:$0xff] (!%p1226_p13) }
 0x195   : > { %1415 = vmatprep.subr.bf16.mxu0 (!%p1226_p13), %v1414_v58  ;;  %1472 = vmatprep.subr.bf16.mxu1 (!%p1226_p13), %v1414_v58  ;;  %v1426_v5 = vpack.c.bf16 (!%p1226_p13), %v859_v4, %v858_v3  ;;  %v862_v9 = vld [vmem:[%s2064_s2 + $0x70] sm:$0xff] (!%p1226_p13) }
 0x196   : > { %790 = vst [vmem:[#allocation2 + $0x50] sm:$0xff] %v758_v6  ;;  %806 = vst [vmem:[#allocation2 + $0xd0] sm:$0xff] %v774_v7  ;;  %v860_v6 = vld [vmem:[%s2064_s2 + $0x60] sm:$0xff] (!%p1226_p13)  ;;  %v861_v7 = vld [vmem:[%s2064_s2 + $0x68] sm:$0xff] (!%p1226_p13) }
 0x197   : > { %v644_v12 = vpop.f32.mrb[22].mxu0  ;;  %v724_v13 = vpop.f32.mrb[22].mxu1  ;;  %v1430_v8 = vpack.c.bf16 (!%p1226_p13), %v861_v7, %v860_v6 }
 0x198   : > { %v759_v14 = vadd.f32 %v644_v12, %v406_v10  ;;  %v775_v15 = vadd.f32 %v724_v13, %v422_v11  ;;  %v646_v16 = vpop.f32.mrb[23].mxu0  ;;  %v726_v17 = vpop.f32.mrb[23].mxu1  ;;  %1417 = vmatpush3.bf16.msra.mxu0 (!%p1226_p13), %v1414_v58  ;;  %1480 = vmatpush3.bf16.msra.mxu1 (!%p1226_p13), %v1414_v58  ;;  %v863_v10 = vld [vmem:[%s2064_s2 + $0x78] sm:$0xff] (!%p1226_p13)  ;;  %v817_v12 = vld [vmem:[#allocation2 + $0x8] sm:$0xff] (!%p1226_p13) }
 0x199   : > { %1419 = vmatprep.subr.bf16.mxu0 (!%p1226_p13), %v1418_v63  ;;  %1473 = vmatprep.subr.bf16.mxu1 (!%p1226_p13), %v1418_v63  ;;  %v1434_v11 = vpack.c.bf16 (!%p1226_p13), %v863_v10, %v862_v9  ;;  %v833_v13 = vld [vmem:[#allocation2 + $0x88] sm:$0xff] (!%p1226_p13)  ;;  %v819_v16 = vld [vmem:[#allocation2 + $0x18] sm:$0xff] (!%p1226_p13) }
 0x19a   : > { %791 = vst [vmem:[#allocation2 + $0x58] sm:$0xff] %v759_v14  ;;  %807 = vst [vmem:[#allocation2 + $0xd8] sm:$0xff] %v775_v15  ;;  %v818_v14 = vld [vmem:[#allocation2 + $0x10] sm:$0xff] (!%p1226_p13)  ;;  %v835_v17 = vld [vmem:[#allocation2 + $0x98] sm:$0xff] (!%p1226_p13) }
 0x19b   : > { %v649_v20 = vpop.f32.mrb[24].mxu0  ;;  %v729_v21 = vpop.f32.mrb[24].mxu1  ;;  %v834_v15 = vld [vmem:[#allocation2 + $0x90] sm:$0xff] (!%p1226_p13) }
 0x19c   : > { %v760_v22 = vadd.f32 %v649_v20, %v407_v18  ;;  %v776_v23 = vadd.f32 %v729_v21, %v423_v19  ;;  %v651_v24 = vpop.f32.mrb[25].mxu0  ;;  %v731_v25 = vpop.f32.mrb[25].mxu1  ;;  %1421 = vmatpush3.bf16.msra.mxu0 (!%p1226_p13), %v1418_v63  ;;  %1481 = vmatpush3.bf16.msra.mxu1 (!%p1226_p13), %v1418_v63  ;;  %v820_v18 = vld [vmem:[#allocation2 + $0x20] sm:$0xff] (!%p1226_p13)  ;;  %v821_v20 = vld [vmem:[#allocation2 + $0x28] sm:$0xff] (!%p1226_p13) }
 0x19d   : > { %1423 = vmatprep.subr.bf16.mxu0 (!%p1226_p13), %v1422_v2  ;;  %1474 = vmatprep.subr.bf16.mxu1 (!%p1226_p13), %v1422_v2  ;;  %v836_v19 = vld [vmem:[#allocation2 + $0xa0] sm:$0xff] (!%p1226_p13)  ;;  %v837_v21 = vld [vmem:[#allocation2 + $0xa8] sm:$0xff] (!%p1226_p13)  ;;  %v823_v24 = vld [vmem:[#allocation2 + $0x38] sm:$0xff] (!%p1226_p13) }
 0x19e   : > { %792 = vst [vmem:[#allocation2 + $0x60] sm:$0xff] %v760_v22  ;;  %808 = vst [vmem:[#allocation2 + $0xe0] sm:$0xff] %v776_v23  ;;  %v822_v22 = vld [vmem:[#allocation2 + $0x30] sm:$0xff] (!%p1226_p13)  ;;  %v839_v25 = vld [vmem:[#allocation2 + $0xb8] sm:$0xff] (!%p1226_p13) }
 0x19f   : > { %v654_v28 = vpop.f32.mrb[26].mxu0  ;;  %v734_v29 = vpop.f32.mrb[26].mxu1  ;;  %v838_v23 = vld [vmem:[#allocation2 + $0xb0] sm:$0xff] (!%p1226_p13) }
 0x1a0   : > { %v761_v30 = vadd.f32 %v654_v28, %v408_v26  ;;  %v777_v31 = vadd.f32 %v734_v29, %v424_v27  ;;  %v656_v32 = vpop.f32.mrb[27].mxu0  ;;  %v736_v33 = vpop.f32.mrb[27].mxu1  ;;  %1425 = vmatpush3.bf16.msra.mxu0 (!%p1226_p13), %v1422_v2  ;;  %1482 = vmatpush3.bf16.msra.mxu1 (!%p1226_p13), %v1422_v2  ;;  %v824_v26 = vld [vmem:[#allocation2 + $0x40] sm:$0xff] (!%p1226_p13)  ;;  %v825_v28 = vld [vmem:[#allocation2 + $0x48] sm:$0xff] (!%p1226_p13) }
 0x1a1   : > { %1427 = vmatprep.subr.bf16.mxu0 (!%p1226_p13), %v1426_v5  ;;  %1475 = vmatprep.subr.bf16.mxu1 (!%p1226_p13), %v1426_v5  ;;  %v840_v27 = vld [vmem:[#allocation2 + $0xc0] sm:$0xff] (!%p1226_p13)  ;;  %v841_v29 = vld [vmem:[#allocation2 + $0xc8] sm:$0xff] (!%p1226_p13)  ;;  %v827_v32 = vld [vmem:[#allocation2 + $0x58] sm:$0xff] (!%p1226_p13) }
 0x1a2   : > { %793 = vst [vmem:[#allocation2 + $0x68] sm:$0xff] %v761_v30  ;;  %809 = vst [vmem:[#allocation2 + $0xe8] sm:$0xff] %v777_v31  ;;  %v826_v30 = vld [vmem:[#allocation2 + $0x50] sm:$0xff] (!%p1226_p13)  ;;  %v843_v33 = vld [vmem:[#allocation2 + $0xd8] sm:$0xff] (!%p1226_p13) }
 0x1a3   : > { %v659_v36 = vpop.f32.mrb[28].mxu0  ;;  %v739_v37 = vpop.f32.mrb[28].mxu1  ;;  %v842_v31 = vld [vmem:[#allocation2 + $0xd0] sm:$0xff] (!%p1226_p13) }
 0x1a4   : > { %v762_v38 = vadd.f32 %v659_v36, %v409_v34  ;;  %v778_v39 = vadd.f32 %v739_v37, %v425_v35  ;;  %v661_v40 = vpop.f32.mrb[29].mxu0  ;;  %v741_v41 = vpop.f32.mrb[29].mxu1  ;;  %815 = sbr.rel (%p1226_p13) target bundleno = 673 (0x2a1), region = 63  ;;  %1429 = vmatpush3.bf16.msra.mxu0 (!%p1226_p13), %v1426_v5  ;;  %1483 = vmatpush3.bf16.msra.mxu1 (!%p1226_p13), %v1426_v5 }
 0x1a5   : > { %1431 = vmatprep.subr.bf16.mxu0 (!%p1226_p13), %v1430_v8  ;;  %1476 = vmatprep.subr.bf16.mxu1 (!%p1226_p13), %v1430_v8  ;;  %v828_v34 = vld [vmem:[#allocation2 + $0x60] sm:$0xff] (!%p1226_p13) }
 0x1a6   : > { %794 = vst [vmem:[#allocation2 + $0x70] sm:$0xff] %v762_v38  ;;  %810 = vst [vmem:[#allocation2 + $0xf0] sm:$0xff] %v778_v39  ;;  %v844_v35 = vld [vmem:[#allocation2 + $0xe0] sm:$0xff] (!%p1226_p13) }
 0x1a7   : > { %v664_v44 = vpop.f32.mrb[30].mxu0  ;;  %v744_v45 = vpop.f32.mrb[30].mxu1 }
 0x1a8   : > { %v763_v46 = vadd.f32 %v664_v44, %v410_v42  ;;  %v779_v47 = vadd.f32 %v744_v45, %v426_v43  ;;  %v666_v48 = vpop.f32.mrb[31].mxu0  ;;  %v746_v49 = vpop.f32.mrb[31].mxu1  ;;  %1433 = vmatpush3.bf16.msra.mxu0 (!%p1226_p13), %v1430_v8  ;;  %1484 = vmatpush3.bf16.msra.mxu1 (!%p1226_p13), %v1430_v8 }
 0x1a9   : > { %1435 = vmatprep.subr.bf16.mxu0 (!%p1226_p13), %v1434_v11  ;;  %1477 = vmatprep.subr.bf16.mxu1 (!%p1226_p13), %v1434_v11  ;;  %v829_v36 = vld [vmem:[#allocation2 + $0x68] sm:$0xff] (!%p1226_p13) }
 0x1aa   : > { %795 = vst [vmem:[#allocation2 + $0x78] sm:$0xff] %v763_v46  ;;  %811 = vst [vmem:[#allocation2 + $0xf8] sm:$0xff] %v779_v47  ;;  %v845_v37 = vld [vmem:[#allocation2 + $0xe8] sm:$0xff] (!%p1226_p13) }
 0x1ac   : > { %1437 = vmatpush3.bf16.msra.mxu0 %v1434_v11  ;;  %1485 = vmatpush3.bf16.msra.mxu1 %v1434_v11 }
 0x1ad   : > { %v830_v38 = vld [vmem:[#allocation2 + $0x70] sm:$0xff] }
 0x1ae   : > { %v846_v39 = vld [vmem:[#allocation2 + $0xf0] sm:$0xff] }
 0x1af   : > { %1311 = vmatmul.mubr.f32.vlgmr.msra.gmra.mrb[0].mxu0 %v817_v12  ;;  %1335 = vmatmul.mubr.f32.vlgmr.msra.gmra.mrb[0].mxu1 %v833_v13 }
 0x1b0   : > { %1313 = vmatprep.mubr.f32.mxu0 %v818_v14  ;;  %1337 = vmatprep.mubr.f32.mxu1 %v834_v15 }
 0x1b1   : > { %v831_v40 = vld [vmem:[#allocation2 + $0x78] sm:$0xff] }
 0x1b2   : > { %v847_v41 = vld [vmem:[#allocation2 + $0xf8] sm:$0xff] }
 0x1b3   : > { %1314 = vmatmul.mubr.f32.gmra.mrb[2].mxu0 %v819_v16  ;;  %1338 = vmatmul.mubr.f32.gmra.mrb[2].mxu1 %v835_v17 }
 0x1b4   : > { %1316 = vmatprep.mubr.f32.mxu0 %v820_v18  ;;  %1340 = vmatprep.mubr.f32.mxu1 %v836_v19 }
 0x1b7   : > { %1317 = vmatmul.mubr.f32.gmra.mrb[4].mxu0 %v821_v20  ;;  %1341 = vmatmul.mubr.f32.gmra.mrb[4].mxu1 %v837_v21 }
 0x1b8   : > { %1319 = vmatprep.mubr.f32.mxu0 %v822_v22  ;;  %1343 = vmatprep.mubr.f32.mxu1 %v838_v23 }
 0x1bb   : > { %1320 = vmatmul.mubr.f32.gmra.mrb[6].mxu0 %v823_v24  ;;  %1344 = vmatmul.mubr.f32.gmra.mrb[6].mxu1 %v839_v25 }
 0x1bc   : > { %1322 = vmatprep.mubr.f32.mxu0 %v824_v26  ;;  %1346 = vmatprep.mubr.f32.mxu1 %v840_v27 }
 0x1bf   : > { %1323 = vmatmul.mubr.f32.gmra.mrb[8].mxu0 %v825_v28  ;;  %1347 = vmatmul.mubr.f32.gmra.mrb[8].mxu1 %v841_v29 }
 0x1c0   : > { %1325 = vmatprep.mubr.f32.mxu0 %v826_v30  ;;  %1349 = vmatprep.mubr.f32.mxu1 %v842_v31 }
 0x1c3   : > { %1326 = vmatmul.mubr.f32.gmra.mrb[10].mxu0 %v827_v32  ;;  %1350 = vmatmul.mubr.f32.gmra.mrb[10].mxu1 %v843_v33 }
 0x1c4   : > { %1328 = vmatprep.mubr.f32.mxu0 %v828_v34  ;;  %1352 = vmatprep.mubr.f32.mxu1 %v844_v35 }
 0x1c7   : > { %1329 = vmatmul.mubr.f32.gmra.mrb[12].mxu0 %v829_v36  ;;  %1353 = vmatmul.mubr.f32.gmra.mrb[12].mxu1 %v845_v37 }
 0x1c8   : > { %1331 = vmatprep.mubr.f32.mxu0 %v830_v38  ;;  %1355 = vmatprep.mubr.f32.mxu1 %v846_v39 }
 0x1cb   : > { %1332 = vmatmul.mubr.f32.gmra.mrb[14].mxu0 %v831_v40  ;;  %1356 = vmatmul.mubr.f32.gmra.mrb[14].mxu1 %v847_v41 }
 0x282   : > { %v1312_v42 = vpop.f32.mrb[0].mxu0  ;;  %v1336_v43 = vpop.f32.mrb[0].mxu1 }
 0x283   : > { %1090 = vst [vmem:[%s1827_s30 + $0x8] sm:$0xff] %v1312_v42  ;;  %1106 = vst [vmem:[%s1827_s30 + $0x88] sm:$0xff] %v1336_v43  ;;  %v930_v44 = vpop.f32.mrb[1].mxu0  ;;  %v1010_v45 = vpop.f32.mrb[1].mxu1 }
 0x284   : > { %1089 = vst [vmem:[%s1827_s30] sm:$0xff] %v930_v44  ;;  %1105 = vst [vmem:[%s1827_s30 + $0x80] sm:$0xff] %v1010_v45 }
 0x286   : > { %v1315_v46 = vpop.f32.mrb[2].mxu0  ;;  %v1339_v47 = vpop.f32.mrb[2].mxu1 }
 0x287   : > { %1092 = vst [vmem:[%s1827_s30 + $0x18] sm:$0xff] %v1315_v46  ;;  %1108 = vst [vmem:[%s1827_s30 + $0x98] sm:$0xff] %v1339_v47  ;;  %v940_v48 = vpop.f32.mrb[3].mxu0  ;;  %v1020_v49 = vpop.f32.mrb[3].mxu1 }
 0x288   : > { %1091 = vst [vmem:[%s1827_s30 + $0x10] sm:$0xff] %v940_v48  ;;  %1107 = vst [vmem:[%s1827_s30 + $0x90] sm:$0xff] %v1020_v49 }
 0x28a   : > { %v1318_v50 = vpop.f32.mrb[4].mxu0  ;;  %v1342_v51 = vpop.f32.mrb[4].mxu1 }
 0x28b   : > { %1094 = vst [vmem:[%s1827_s30 + $0x28] sm:$0xff] %v1318_v50  ;;  %1110 = vst [vmem:[%s1827_s30 + $0xa8] sm:$0xff] %v1342_v51  ;;  %v950_v52 = vpop.f32.mrb[5].mxu0  ;;  %v1030_v53 = vpop.f32.mrb[5].mxu1 }
 0x28c   : > { %1093 = vst [vmem:[%s1827_s30 + $0x20] sm:$0xff] %v950_v52  ;;  %1109 = vst [vmem:[%s1827_s30 + $0xa0] sm:$0xff] %v1030_v53 }
 0x28e   : > { %v1321_v54 = vpop.f32.mrb[6].mxu0  ;;  %v1345_v55 = vpop.f32.mrb[6].mxu1 }
 0x28f   : > { %1096 = vst [vmem:[%s1827_s30 + $0x38] sm:$0xff] %v1321_v54  ;;  %1112 = vst [vmem:[%s1827_s30 + $0xb8] sm:$0xff] %v1345_v55  ;;  %v960_v56 = vpop.f32.mrb[7].mxu0  ;;  %v1040_v57 = vpop.f32.mrb[7].mxu1 }
 0x290   : > { %1095 = vst [vmem:[%s1827_s30 + $0x30] sm:$0xff] %v960_v56  ;;  %1111 = vst [vmem:[%s1827_s30 + $0xb0] sm:$0xff] %v1040_v57 }
 0x292   : > { %v1324_v58 = vpop.f32.mrb[8].mxu0  ;;  %v1348_v59 = vpop.f32.mrb[8].mxu1 }
 0x293   : > { %1098 = vst [vmem:[%s1827_s30 + $0x48] sm:$0xff] %v1324_v58  ;;  %1114 = vst [vmem:[%s1827_s30 + $0xc8] sm:$0xff] %v1348_v59  ;;  %v970_v60 = vpop.f32.mrb[9].mxu0  ;;  %v1050_v61 = vpop.f32.mrb[9].mxu1 }
 0x294   : > { %1097 = vst [vmem:[%s1827_s30 + $0x40] sm:$0xff] %v970_v60  ;;  %1113 = vst [vmem:[%s1827_s30 + $0xc0] sm:$0xff] %v1050_v61 }
 0x296   : > { %v1327_v62 = vpop.f32.mrb[10].mxu0  ;;  %v1351_v63 = vpop.f32.mrb[10].mxu1 }
 0x297   : > { %1100 = vst [vmem:[%s1827_s30 + $0x58] sm:$0xff] %v1327_v62  ;;  %1116 = vst [vmem:[%s1827_s30 + $0xd8] sm:$0xff] %v1351_v63  ;;  %v980_v0 = vpop.f32.mrb[11].mxu0  ;;  %v1060_v1 = vpop.f32.mrb[11].mxu1 }
 0x298   : > { %1099 = vst [vmem:[%s1827_s30 + $0x50] sm:$0xff] %v980_v0  ;;  %1115 = vst [vmem:[%s1827_s30 + $0xd0] sm:$0xff] %v1060_v1 }
 0x29a   : > { %v1330_v2 = vpop.f32.mrb[12].mxu0  ;;  %v1354_v3 = vpop.f32.mrb[12].mxu1 }
 0x29b   : > { %1102 = vst [vmem:[%s1827_s30 + $0x68] sm:$0xff] %v1330_v2  ;;  %1118 = vst [vmem:[%s1827_s30 + $0xe8] sm:$0xff] %v1354_v3  ;;  %v990_v4 = vpop.f32.mrb[13].mxu0  ;;  %v1070_v5 = vpop.f32.mrb[13].mxu1 }
 0x29c   : > { %1101 = vst [vmem:[%s1827_s30 + $0x60] sm:$0xff] %v990_v4  ;;  %1117 = vst [vmem:[%s1827_s30 + $0xe0] sm:$0xff] %v1070_v5 }
 0x29e   : > { %v1333_v6 = vpop.f32.mrb[14].mxu0  ;;  %v1357_v7 = vpop.f32.mrb[14].mxu1 }
 0x29f   : > { %1104 = vst [vmem:[%s1827_s30 + $0x78] sm:$0xff] %v1333_v6  ;;  %1120 = vst [vmem:[%s1827_s30 + $0xf8] sm:$0xff] %v1357_v7  ;;  %v1000_v8 = vpop.f32.mrb[15].mxu0  ;;  %v1080_v9 = vpop.f32.mrb[15].mxu1 }
 0x2a0   : > { %1103 = vst [vmem:[%s1827_s30 + $0x70] sm:$0xff] %v1000_v8  ;;  %1119 = vst [vmem:[%s1827_s30 + $0xf0] sm:$0xff] %v1080_v9 }
 0x2a1 PF: > { %s13_s18 = sadd.s32 1, %s1598_s18   ;;  %s2066_s12 = smov %s1578_s13 }
 0x2a2   : > { %p10_p0 = scmp.ge.s32.totalorder %s13_s18, 6   ;;  %s2067_s13 = smov %s1673_s25 }
 0x2a3   : > { %s2068_s14 = smov %s1590_s16  ;;  %s2069_s15 = smov %s1594_s17 }
 0x2a4   : > { %s2070_s16 = smov %s2073_s19  ;;  %s2071_s17 = smov %s2077_s20 }
 0x2a5   :  { %12 = sbr.rel (!%p10_p0) target bundleno = 4 (0x4), region = 101 }

// kernel: _lambda_.24
= control target key start
LH: loop header
LB: loop body
LE: loop exit
PB: predicated region body
PF: predicated region fallthrough
CT: control target
= control target key end

     0   :  { %s1623_s12 = smov 0   ;;  %s1625_s13 = smov 0   ;;  %s2095_s0 = inlined_call_operand.vmem [shape: f32[512,512], index: 0, kind: input, shape index: {}]   ;;  %s2096_s1 = inlined_call_operand.vmem [shape: f32[512,128], index: 1, kind: input, shape index: {}]   ;;  %s2097_s2 = inlined_call_operand.vmem [shape: f32[128,8], index: 2, kind: input, shape index: {}]   ;;  %s2098_s3 = inlined_call_operand.vmem [shape: f32[512,8], index: 3, kind: output, shape index: {}]  }
   0x1   :  { %s1627_s14 = smov 0   ;;  %s1629_s15 = smov 0  }
   0x2   :  { %s1631_s16 = smov 0   ;;  %s1633_s17 = smov 0  }
   0x3   :  { %s1635_s18 = smov 0  }
   0x4 LB: > { %s22_s19 = sadd.s32 1, %s1591_s16  ;;  %s25_s20 = sadd.s32 1, %s1595_s17  ;;  %s1599_s18 = sphi %s1635_s18, %s13_s18   ;;  %s1595_s17 = sphi %s1633_s17, %s2104_s17   ;;  %s1591_s16 = sphi %s1631_s16, %s2103_s16   ;;  %s1587_s15 = sphi %s1629_s15, %s2102_s15   ;;  %s1583_s14 = sphi %s1627_s14, %s2101_s14   ;;  %s1579_s13 = sphi %s1625_s13, %s2100_s13   ;;  %s1575_s12 = sphi %s1623_s12, %s2099_s12  }
   0x5   : > { %p23_p0 = scmp.ge.s32.totalorder %s22_s19, 2  ;;  %p41_p1 = scmp.ne.s32.totalorder %s1579_s13, %s1575_s12 }
   0x6   : > { %p42_p2 = scmp.eq.s32.totalorder %s1599_s18, 0  ;;  %s34_s24 = sadd.s32 1, %s1579_s13 }
   0x7   : > { %s2106_s19 = smov (%p23_p0, %s22_s19), 0  ;;  %s2108_s20 = smov (!%p23_p0, %s25_s20), %s1595_s17 }
   0x8   : > { %p43_p3 = por %p42_p2, %p41_p1  ;;  %p27_p4 = scmp.ge.s32.totalorder %s2108_s20, 2 }
   0x9   : > { %s30_s21 = ssub.s32 %s1591_s16, %s2106_s19  ;;  %p1214_p6 = scmp.ge.s32.totalorder %s1599_s18, 4 }
   0xa   : > { %s2110_s20 = smov (%p27_p4, %s2108_s20), 0 }
   0xb   : > { %s29_s22 = ssub.s32 %s1595_s17, %s2110_s20  ;;  %143 = sbr.rel (%p1214_p6) target bundleno = 57 (0x39), region = 20 }
   0xc   : > { %s31_s23 = sor.u32 %s30_s21, %s29_s22 }
   0xd   : > { %p32_p5 = scmp.eq.s32.totalorder %s31_s23, 0 }
   0xf   : > { %s1674_s25 = scalar_select %p32_p5, %s1579_s13, %s34_s24  }
  0x12   : > { %146 = sbr.rel (!%p43_p3) target bundleno = 57 (0x39), region = 24  ;;  %s148_s26 = sand.u32 (%p43_p3), 1, %s1579_s13  }
  0x13   : > { %s1217_s27 = sshll.u32 (%p43_p3), %s1591_s16, 1  ;;  %s1215_s28 = sshll.u32 (%p43_p3), %s148_s26, 9 }
  0x14   : > { %s1230_s29 = sshll.u32 (%p43_p3), %s1595_s17, 7  ;;  %s1688_s8 = scalar_lea.vmem (%p43_p3), [#allocation3], %s1215_s28 }
  0x15   : > { %s154_s30 = sadd.s32 (%p43_p3), %s1230_s29, %s1217_s27 }
  0x16   : > { %s1219_s4 = sshll.u32 (%p43_p3), %s154_s30, 3 }
  0x17   : > { %s1683_s7 = scalar_lea.vmem (%p43_p3), %s2095_s0, %s1219_s4 }
  0x18   : > { %v169_v0 = vld [vmem:[%s1683_s7] sm:$0xff] (%p43_p3)  ;;  %v171_v1 = vld [vmem:[%s1683_s7 + $0x8] sm:$0xff] (%p43_p3) }
  0x19   : > { %v173_v2 = vld [vmem:[%s1683_s7 + $0x20] sm:$0xff]  ;;  %170 = vst [vmem:[%s1688_s8] sm:$0xff] %v169_v0  ;;  %172 = vst [vmem:[%s1688_s8 + $0x8] sm:$0xff] %v171_v1  ;;  %v175_v3 = vld [vmem:[%s1683_s7 + $0x28] sm:$0xff] }
  0x1a   : > { %174 = vst [vmem:[%s1688_s8 + $0x10] sm:$0xff] %v173_v2  ;;  %v177_v4 = vld [vmem:[%s1683_s7 + $0x40] sm:$0xff]  ;;  %v179_v5 = vld [vmem:[%s1683_s7 + $0x48] sm:$0xff]  ;;  %176 = vst [vmem:[%s1688_s8 + $0x18] sm:$0xff] %v175_v3 }
  0x1b   : > { %178 = vst [vmem:[%s1688_s8 + $0x20] sm:$0xff] %v177_v4  ;;  %180 = vst [vmem:[%s1688_s8 + $0x28] sm:$0xff] %v179_v5  ;;  %v181_v6 = vld [vmem:[%s1683_s7 + $0x60] sm:$0xff]  ;;  %v183_v7 = vld [vmem:[%s1683_s7 + $0x68] sm:$0xff] }
  0x1c   : > { %v185_v8 = vld [vmem:[%s1683_s7 + $0x80] sm:$0xff]  ;;  %182 = vst [vmem:[%s1688_s8 + $0x30] sm:$0xff] %v181_v6  ;;  %184 = vst [vmem:[%s1688_s8 + $0x38] sm:$0xff] %v183_v7  ;;  %v187_v9 = vld [vmem:[%s1683_s7 + $0x88] sm:$0xff] }
  0x1d   : > { %186 = vst [vmem:[%s1688_s8 + $0x40] sm:$0xff] %v185_v8  ;;  %v189_v10 = vld [vmem:[%s1683_s7 + $0xa0] sm:$0xff]  ;;  %v191_v11 = vld [vmem:[%s1683_s7 + $0xa8] sm:$0xff]  ;;  %188 = vst [vmem:[%s1688_s8 + $0x48] sm:$0xff] %v187_v9 }
  0x1e   : > { %190 = vst [vmem:[%s1688_s8 + $0x50] sm:$0xff] %v189_v10  ;;  %192 = vst [vmem:[%s1688_s8 + $0x58] sm:$0xff] %v191_v11  ;;  %v193_v12 = vld [vmem:[%s1683_s7 + $0xc0] sm:$0xff]  ;;  %v195_v13 = vld [vmem:[%s1683_s7 + $0xc8] sm:$0xff] }
  0x1f   : > { %v197_v14 = vld [vmem:[%s1683_s7 + $0xe0] sm:$0xff]  ;;  %194 = vst [vmem:[%s1688_s8 + $0x60] sm:$0xff] %v193_v12  ;;  %196 = vst [vmem:[%s1688_s8 + $0x68] sm:$0xff] %v195_v13  ;;  %v199_v15 = vld [vmem:[%s1683_s7 + $0xe8] sm:$0xff] }
  0x20   : > { %198 = vst [vmem:[%s1688_s8 + $0x70] sm:$0xff] %v197_v14  ;;  %v201_v16 = vld [vmem:[%s1683_s7 + $0x100] sm:$0xff]  ;;  %v203_v17 = vld [vmem:[%s1683_s7 + $0x108] sm:$0xff]  ;;  %200 = vst [vmem:[%s1688_s8 + $0x78] sm:$0xff] %v199_v15 }
  0x21   : > { %202 = vst [vmem:[%s1688_s8 + $0x80] sm:$0xff] %v201_v16  ;;  %204 = vst [vmem:[%s1688_s8 + $0x88] sm:$0xff] %v203_v17  ;;  %v205_v18 = vld [vmem:[%s1683_s7 + $0x120] sm:$0xff]  ;;  %v207_v19 = vld [vmem:[%s1683_s7 + $0x128] sm:$0xff] }
  0x22   : > { %v209_v20 = vld [vmem:[%s1683_s7 + $0x140] sm:$0xff]  ;;  %206 = vst [vmem:[%s1688_s8 + $0x90] sm:$0xff] %v205_v18  ;;  %208 = vst [vmem:[%s1688_s8 + $0x98] sm:$0xff] %v207_v19  ;;  %v211_v21 = vld [vmem:[%s1683_s7 + $0x148] sm:$0xff] }
  0x23   : > { %210 = vst [vmem:[%s1688_s8 + $0xa0] sm:$0xff] %v209_v20  ;;  %v213_v22 = vld [vmem:[%s1683_s7 + $0x160] sm:$0xff]  ;;  %v215_v23 = vld [vmem:[%s1683_s7 + $0x168] sm:$0xff]  ;;  %212 = vst [vmem:[%s1688_s8 + $0xa8] sm:$0xff] %v211_v21 }
  0x24   : > { %214 = vst [vmem:[%s1688_s8 + $0xb0] sm:$0xff] %v213_v22  ;;  %216 = vst [vmem:[%s1688_s8 + $0xb8] sm:$0xff] %v215_v23  ;;  %v217_v24 = vld [vmem:[%s1683_s7 + $0x180] sm:$0xff]  ;;  %v219_v25 = vld [vmem:[%s1683_s7 + $0x188] sm:$0xff] }
  0x25   : > { %v221_v26 = vld [vmem:[%s1683_s7 + $0x1a0] sm:$0xff]  ;;  %218 = vst [vmem:[%s1688_s8 + $0xc0] sm:$0xff] %v217_v24  ;;  %220 = vst [vmem:[%s1688_s8 + $0xc8] sm:$0xff] %v219_v25  ;;  %v223_v27 = vld [vmem:[%s1683_s7 + $0x1a8] sm:$0xff] }
  0x26   : > { %222 = vst [vmem:[%s1688_s8 + $0xd0] sm:$0xff] %v221_v26  ;;  %v225_v28 = vld [vmem:[%s1683_s7 + $0x1c0] sm:$0xff]  ;;  %v227_v29 = vld [vmem:[%s1683_s7 + $0x1c8] sm:$0xff]  ;;  %224 = vst [vmem:[%s1688_s8 + $0xd8] sm:$0xff] %v223_v27 }
  0x27   : > { %226 = vst [vmem:[%s1688_s8 + $0xe0] sm:$0xff] %v225_v28  ;;  %228 = vst [vmem:[%s1688_s8 + $0xe8] sm:$0xff] %v227_v29  ;;  %v229_v30 = vld [vmem:[%s1683_s7 + $0x1e0] sm:$0xff]  ;;  %v231_v31 = vld [vmem:[%s1683_s7 + $0x1e8] sm:$0xff] }
  0x28   : > { %v233_v32 = vld [vmem:[%s1683_s7 + $0x200] sm:$0xff]  ;;  %230 = vst [vmem:[%s1688_s8 + $0xf0] sm:$0xff] %v229_v30  ;;  %232 = vst [vmem:[%s1688_s8 + $0xf8] sm:$0xff] %v231_v31  ;;  %v235_v33 = vld [vmem:[%s1683_s7 + $0x208] sm:$0xff] }
  0x29   : > { %234 = vst [vmem:[%s1688_s8 + $0x100] sm:$0xff] %v233_v32  ;;  %v237_v34 = vld [vmem:[%s1683_s7 + $0x220] sm:$0xff]  ;;  %v239_v35 = vld [vmem:[%s1683_s7 + $0x228] sm:$0xff]  ;;  %236 = vst [vmem:[%s1688_s8 + $0x108] sm:$0xff] %v235_v33 }
  0x2a   : > { %238 = vst [vmem:[%s1688_s8 + $0x110] sm:$0xff] %v237_v34  ;;  %240 = vst [vmem:[%s1688_s8 + $0x118] sm:$0xff] %v239_v35  ;;  %v241_v36 = vld [vmem:[%s1683_s7 + $0x240] sm:$0xff]  ;;  %v243_v37 = vld [vmem:[%s1683_s7 + $0x248] sm:$0xff] }
  0x2b   : > { %v245_v38 = vld [vmem:[%s1683_s7 + $0x260] sm:$0xff]  ;;  %242 = vst [vmem:[%s1688_s8 + $0x120] sm:$0xff] %v241_v36  ;;  %244 = vst [vmem:[%s1688_s8 + $0x128] sm:$0xff] %v243_v37  ;;  %v247_v39 = vld [vmem:[%s1683_s7 + $0x268] sm:$0xff] }
  0x2c   : > { %246 = vst [vmem:[%s1688_s8 + $0x130] sm:$0xff] %v245_v38  ;;  %v249_v40 = vld [vmem:[%s1683_s7 + $0x280] sm:$0xff]  ;;  %v251_v41 = vld [vmem:[%s1683_s7 + $0x288] sm:$0xff]  ;;  %248 = vst [vmem:[%s1688_s8 + $0x138] sm:$0xff] %v247_v39 }
  0x2d   : > { %250 = vst [vmem:[%s1688_s8 + $0x140] sm:$0xff] %v249_v40  ;;  %252 = vst [vmem:[%s1688_s8 + $0x148] sm:$0xff] %v251_v41  ;;  %v253_v42 = vld [vmem:[%s1683_s7 + $0x2a0] sm:$0xff]  ;;  %v255_v43 = vld [vmem:[%s1683_s7 + $0x2a8] sm:$0xff] }
  0x2e   : > { %v257_v44 = vld [vmem:[%s1683_s7 + $0x2c0] sm:$0xff]  ;;  %254 = vst [vmem:[%s1688_s8 + $0x150] sm:$0xff] %v253_v42  ;;  %256 = vst [vmem:[%s1688_s8 + $0x158] sm:$0xff] %v255_v43  ;;  %v259_v45 = vld [vmem:[%s1683_s7 + $0x2c8] sm:$0xff] }
  0x2f   : > { %258 = vst [vmem:[%s1688_s8 + $0x160] sm:$0xff] %v257_v44  ;;  %v261_v46 = vld [vmem:[%s1683_s7 + $0x2e0] sm:$0xff]  ;;  %v263_v47 = vld [vmem:[%s1683_s7 + $0x2e8] sm:$0xff]  ;;  %260 = vst [vmem:[%s1688_s8 + $0x168] sm:$0xff] %v259_v45 }
  0x30   : > { %262 = vst [vmem:[%s1688_s8 + $0x170] sm:$0xff] %v261_v46  ;;  %264 = vst [vmem:[%s1688_s8 + $0x178] sm:$0xff] %v263_v47  ;;  %v265_v48 = vld [vmem:[%s1683_s7 + $0x300] sm:$0xff]  ;;  %v267_v49 = vld [vmem:[%s1683_s7 + $0x308] sm:$0xff] }
  0x31   : > { %v269_v50 = vld [vmem:[%s1683_s7 + $0x320] sm:$0xff]  ;;  %266 = vst [vmem:[%s1688_s8 + $0x180] sm:$0xff] %v265_v48  ;;  %268 = vst [vmem:[%s1688_s8 + $0x188] sm:$0xff] %v267_v49  ;;  %v271_v51 = vld [vmem:[%s1683_s7 + $0x328] sm:$0xff] }
  0x32   : > { %270 = vst [vmem:[%s1688_s8 + $0x190] sm:$0xff] %v269_v50  ;;  %v273_v52 = vld [vmem:[%s1683_s7 + $0x340] sm:$0xff]  ;;  %v275_v53 = vld [vmem:[%s1683_s7 + $0x348] sm:$0xff]  ;;  %272 = vst [vmem:[%s1688_s8 + $0x198] sm:$0xff] %v271_v51 }
  0x33   : > { %274 = vst [vmem:[%s1688_s8 + $0x1a0] sm:$0xff] %v273_v52  ;;  %276 = vst [vmem:[%s1688_s8 + $0x1a8] sm:$0xff] %v275_v53  ;;  %v277_v54 = vld [vmem:[%s1683_s7 + $0x360] sm:$0xff]  ;;  %v279_v55 = vld [vmem:[%s1683_s7 + $0x368] sm:$0xff] }
  0x34   : > { %v281_v56 = vld [vmem:[%s1683_s7 + $0x380] sm:$0xff]  ;;  %278 = vst [vmem:[%s1688_s8 + $0x1b0] sm:$0xff] %v277_v54  ;;  %280 = vst [vmem:[%s1688_s8 + $0x1b8] sm:$0xff] %v279_v55  ;;  %v283_v57 = vld [vmem:[%s1683_s7 + $0x388] sm:$0xff] }
  0x35   : > { %282 = vst [vmem:[%s1688_s8 + $0x1c0] sm:$0xff] %v281_v56  ;;  %v285_v58 = vld [vmem:[%s1683_s7 + $0x3a0] sm:$0xff]  ;;  %v287_v59 = vld [vmem:[%s1683_s7 + $0x3a8] sm:$0xff]  ;;  %284 = vst [vmem:[%s1688_s8 + $0x1c8] sm:$0xff] %v283_v57 }
  0x36   : > { %286 = vst [vmem:[%s1688_s8 + $0x1d0] sm:$0xff] %v285_v58  ;;  %288 = vst [vmem:[%s1688_s8 + $0x1d8] sm:$0xff] %v287_v59  ;;  %v289_v60 = vld [vmem:[%s1683_s7 + $0x3c0] sm:$0xff]  ;;  %v291_v61 = vld [vmem:[%s1683_s7 + $0x3c8] sm:$0xff] }
  0x37   : > { %v293_v62 = vld [vmem:[%s1683_s7 + $0x3e0] sm:$0xff]  ;;  %290 = vst [vmem:[%s1688_s8 + $0x1e0] sm:$0xff] %v289_v60  ;;  %292 = vst [vmem:[%s1688_s8 + $0x1e8] sm:$0xff] %v291_v61  ;;  %v295_v63 = vld [vmem:[%s1683_s7 + $0x3e8] sm:$0xff] }
  0x38   : > { %294 = vst [vmem:[%s1688_s8 + $0x1f0] sm:$0xff] %v293_v62  ;;  %296 = vst [vmem:[%s1688_s8 + $0x1f8] sm:$0xff] %v295_v63 }
  0x39 PF: > { %p1220_p7 = scmp.ge.s32.totalorder %s1599_s18, 1  ;;  %p310_p8 = scmp.lt.s32.totalorder %s1599_s18, 5 }
  0x3b   : > { %p311_p9 = pnand %p1220_p7, %p310_p8 }
  0x3c   : > { %s317_s9 = sand.u32 (!%p311_p9), 1, %s1575_s12   ;;  %s1222_s10 = sshll.u32 (!%p311_p9), %s1583_s14, 5 }
  0x3d   : > { %314 = sbr.rel (%p311_p9) target bundleno = 673 (0x2a1), region = 51  ;;  %s1221_s11 = sshll.u32 (!%p311_p9), %s317_s9, 9 }
  0x3e   : > { %p348_p10 = scmp.lt.s32.totalorder (!%p311_p9), %s1222_s10, 63  ;;  %s1224_s21 = sshll.u32 (!%p311_p9), %s1587_s15, 5 }
  0x3f   : > { %p354_p11 = scmp.lt.s32.totalorder (!%p311_p9), %s1224_s21, 63  ;;  %s1830_s12 = scalar_lea.vmem (!%p311_p9), [#allocation3], %s1221_s11 }
  0x40   : > { %p1226_p12 = scmp.ne.s32.totalorder (!%p311_p9), %s1583_s14, 0 }
  0x44   : > { %s2112_s10 = smov (!%p348_p10, %s1222_s10), 63  ;;  %s2114_s21 = smov (!%p354_p11, %s1224_s21), 63 }
  0x45   : > { %s1223_s22 = sshll.u32 %s2112_s10, 3  ;;  %s1225_s27 = sshll.u32 %s2114_s21, 3  ;;  %v1601_v0 = vmov (!%p1226_p12), 0.0  }
  0x46   : > { %s1823_s26 = scalar_lea.vmem %s2096_s1, %s1223_s22  ;;  %s1828_s30 = scalar_lea.vmem %s2098_s3, %s1225_s27  ;;  %363 = vst [vmem:[#allocation2] sm:$0xff] (!%p1226_p12), %v1601_v0  ;;  %364 = vst [vmem:[#allocation2 + $0x8] sm:$0xff] (!%p1226_p12), %v1601_v0 }
  0x47   : > { %362 = sbr.rel (%p1226_p12) target bundleno = 86 (0x56), region = 59  ;;  %365 = vst [vmem:[#allocation2 + $0x10] sm:$0xff] (!%p1226_p12), %v1601_v0  ;;  %366 = vst [vmem:[#allocation2 + $0x18] sm:$0xff] (!%p1226_p12), %v1601_v0 }
  0x48   : > { %367 = vst [vmem:[#allocation2 + $0x20] sm:$0xff] (!%p1226_p12), %v1601_v0  ;;  %368 = vst [vmem:[#allocation2 + $0x28] sm:$0xff] (!%p1226_p12), %v1601_v0 }
  0x49   : > { %369 = vst [vmem:[#allocation2 + $0x30] sm:$0xff] (!%p1226_p12), %v1601_v0  ;;  %370 = vst [vmem:[#allocation2 + $0x38] sm:$0xff] (!%p1226_p12), %v1601_v0 }
  0x4a   : > { %371 = vst [vmem:[#allocation2 + $0x40] sm:$0xff] (!%p1226_p12), %v1601_v0  ;;  %372 = vst [vmem:[#allocation2 + $0x48] sm:$0xff] (!%p1226_p12), %v1601_v0 }
  0x4b   : > { %373 = vst [vmem:[#allocation2 + $0x50] sm:$0xff] (!%p1226_p12), %v1601_v0  ;;  %374 = vst [vmem:[#allocation2 + $0x58] sm:$0xff] (!%p1226_p12), %v1601_v0 }
  0x4c   : > { %375 = vst [vmem:[#allocation2 + $0x60] sm:$0xff] (!%p1226_p12), %v1601_v0  ;;  %376 = vst [vmem:[#allocation2 + $0x68] sm:$0xff] (!%p1226_p12), %v1601_v0 }
  0x4d   : > { %377 = vst [vmem:[#allocation2 + $0x70] sm:$0xff] (!%p1226_p12), %v1601_v0  ;;  %378 = vst [vmem:[#allocation2 + $0x78] sm:$0xff] (!%p1226_p12), %v1601_v0 }
  0x4e   : > { %379 = vst [vmem:[#allocation2 + $0x80] sm:$0xff] %v1601_v0  ;;  %380 = vst [vmem:[#allocation2 + $0x88] sm:$0xff] %v1601_v0 }
  0x4f   : > { %381 = vst [vmem:[#allocation2 + $0x90] sm:$0xff] %v1601_v0  ;;  %382 = vst [vmem:[#allocation2 + $0x98] sm:$0xff] %v1601_v0 }
  0x50   : > { %383 = vst [vmem:[#allocation2 + $0xa0] sm:$0xff] %v1601_v0  ;;  %384 = vst [vmem:[#allocation2 + $0xa8] sm:$0xff] %v1601_v0 }
  0x51   : > { %385 = vst [vmem:[#allocation2 + $0xb0] sm:$0xff] %v1601_v0  ;;  %386 = vst [vmem:[#allocation2 + $0xb8] sm:$0xff] %v1601_v0 }
  0x52   : > { %387 = vst [vmem:[#allocation2 + $0xc0] sm:$0xff] %v1601_v0  ;;  %388 = vst [vmem:[#allocation2 + $0xc8] sm:$0xff] %v1601_v0 }
  0x53   : > { %389 = vst [vmem:[#allocation2 + $0xd0] sm:$0xff] %v1601_v0  ;;  %390 = vst [vmem:[#allocation2 + $0xd8] sm:$0xff] %v1601_v0 }
  0x54   : > { %391 = vst [vmem:[#allocation2 + $0xe0] sm:$0xff] %v1601_v0  ;;  %392 = vst [vmem:[#allocation2 + $0xe8] sm:$0xff] %v1601_v0 }
  0x55   : > { %393 = vst [vmem:[#allocation2 + $0xf0] sm:$0xff] %v1601_v0  ;;  %394 = vst [vmem:[#allocation2 + $0xf8] sm:$0xff] %v1601_v0 }
  0x56 PF: > { %v491_v1 = vld [vmem:[%s1823_s26] sm:$0xff]  ;;  %v492_v2 = vld [vmem:[%s1823_s26 + $0x8] sm:$0xff]  ;;  %v493_v3 = vld [vmem:[%s1823_s26 + $0x10] sm:$0xff]  ;;  %v1602_v4 = vmov 0.0|0.0   ;;  %p1227_p13 = scmp.ne.s32.totalorder %s1583_s14, 1 }
  0x57   : > { %1359 = vmatprep.subr.bf16.mxu0 %v1602_v4  ;;  %1439 = vmatprep.subr.bf16.mxu1 %v1602_v4  ;;  %v1360_v5 = vpack.c.bf16 %v492_v2, %v491_v1  ;;  %v494_v6 = vld [vmem:[%s1823_s26 + $0x18] sm:$0xff]  ;;  %v495_v8 = vld [vmem:[%s1823_s26 + $0x20] sm:$0xff]  ;;  %v496_v9 = vld [vmem:[%s1823_s26 + $0x28] sm:$0xff]  ;;  %vm1089_vm0 = vcmask (!%p1227_p13), 64512  }
  0x58   : > { %v1363_v7 = vpack.c.bf16 %v494_v6, %v493_v3  ;;  %v1366_v10 = vpack.c.bf16 %v496_v9, %v495_v8  ;;  %v497_v11 = vld [vmem:[%s1823_s26 + $0x30] sm:$0xff]  ;;  %v498_v12 = vld [vmem:[%s1823_s26 + $0x38] sm:$0xff]  ;;  %v428_v13 = vld [vmem:[%s1830_s12 + $0x8] sm:$0xff] }
  0x59   : > { %1361 = vmatpush1.bf16.msra.mxu0 %v1360_v5  ;;  %1455 = vmatpush1.bf16.msra.mxu1 %v1360_v5  ;;  %v1369_v14 = vpack.c.bf16 %v498_v12, %v497_v11  ;;  %v460_v15 = vld [vmem:[%s1830_s12 + $0x108] sm:$0xff]  ;;  %v499_v16 = vld [vmem:[%s1823_s26 + $0x40] sm:$0xff]  ;;  %v501_v19 = vld [vmem:[%s1823_s26 + $0x50] sm:$0xff] }
  0x5a   : > { %1362 = vmatprep.subr.bf16.mxu0 %v1602_v4  ;;  %1440 = vmatprep.subr.bf16.mxu1 %v1602_v4  ;;  %v500_v17 = vld [vmem:[%s1823_s26 + $0x48] sm:$0xff]  ;;  %v502_v20 = vld [vmem:[%s1823_s26 + $0x58] sm:$0xff]  ;;  %v503_v22 = vld [vmem:[%s1823_s26 + $0x60] sm:$0xff] }
  0x5b   : > { %587 = vmatprep.mubr.f32.mxu0 %v428_v13  ;;  %667 = vmatprep.mubr.f32.mxu1 %v460_v15  ;;  %v1372_v18 = vpack.c.bf16 %v500_v17, %v499_v16  ;;  %v1375_v21 = vpack.c.bf16 %v502_v20, %v501_v19  ;;  %v504_v23 = vld [vmem:[%s1823_s26 + $0x68] sm:$0xff]  ;;  %v505_v25 = vld [vmem:[%s1823_s26 + $0x70] sm:$0xff]  ;;  %v506_v26 = vld [vmem:[%s1823_s26 + $0x78] sm:$0xff] }
  0x5c   : > { %v1378_v24 = vpack.c.bf16 %v504_v23, %v503_v22  ;;  %v1381_v27 = vpack.c.bf16 %v506_v26, %v505_v25  ;;  %v507_v28 = vld [vmem:[%s1823_s26 + $0x80] sm:$0xff]  ;;  %v508_v29 = vld [vmem:[%s1823_s26 + $0x88] sm:$0xff]  ;;  %v509_v31 = vld [vmem:[%s1823_s26 + $0x90] sm:$0xff] }
  0x5d   : > { %1364 = vmatpush1.bf16.msra.mxu0 %v1363_v7  ;;  %1456 = vmatpush1.bf16.msra.mxu1 %v1363_v7  ;;  %v1384_v30 = vpack.c.bf16 %v508_v29, %v507_v28  ;;  %v510_v32 = vld [vmem:[%s1823_s26 + $0x98] sm:$0xff]  ;;  %v511_v34 = vld [vmem:[%s1823_s26 + $0xa0] sm:$0xff]  ;;  %v512_v35 = vld [vmem:[%s1823_s26 + $0xa8] sm:$0xff] }
  0x5e   : > { %1365 = vmatprep.subr.bf16.mxu0 %v1602_v4  ;;  %1441 = vmatprep.subr.bf16.mxu1 %v1602_v4  ;;  %v1387_v33 = vpack.c.bf16 %v510_v32, %v509_v31  ;;  %v1390_v36 = vpack.c.bf16 %v512_v35, %v511_v34  ;;  %v513_v37 = vld [vmem:[%s1823_s26 + $0xb0] sm:$0xff]  ;;  %v514_v38 = vld [vmem:[%s1823_s26 + $0xb8] sm:$0xff]  ;;  %v515_v40 = vld [vmem:[%s1823_s26 + $0xc0] sm:$0xff] }
  0x5f   : > { %v1393_v39 = vpack.c.bf16 %v514_v38, %v513_v37  ;;  %v516_v41 = vld [vmem:[%s1823_s26 + $0xc8] sm:$0xff]  ;;  %v517_v43 = vld [vmem:[%s1823_s26 + $0xd0] sm:$0xff]  ;;  %v518_v44 = vld [vmem:[%s1823_s26 + $0xd8] sm:$0xff] }
  0x60   : > { %v1396_v42 = vpack.c.bf16 %v516_v41, %v515_v40  ;;  %v1399_v45 = vpack.c.bf16 %v518_v44, %v517_v43  ;;  %v519_v46 = vld [vmem:[%s1823_s26 + $0xe0] sm:$0xff]  ;;  %v520_v47 = vld [vmem:[%s1823_s26 + $0xe8] sm:$0xff]  ;;  %v521_v49 = vld [vmem:[%s1823_s26 + $0xf0] sm:$0xff] }
  0x61   : > { %1367 = vmatpush1.bf16.msra.mxu0 %v1366_v10  ;;  %1457 = vmatpush1.bf16.msra.mxu1 %v1366_v10  ;;  %v1402_v48 = vpack.c.bf16 %v520_v47, %v519_v46  ;;  %v522_v50 = vld [vmem:[%s1823_s26 + $0xf8] sm:$0xff]  ;;  %v427_v52 = vld [vmem:[%s1830_s12] sm:$0xff]  ;;  %v429_v56 = vld [vmem:[%s1830_s12 + $0x10] sm:$0xff] }
  0x62   : > { %1368 = vmatprep.subr.bf16.mxu0 %v1602_v4  ;;  %1442 = vmatprep.subr.bf16.mxu1 %v1602_v4  ;;  %v1405_v51 = vpack.c.bf16 %v522_v50, %v521_v49  ;;  %v459_v53 = vld [vmem:[%s1830_s12 + $0x100] sm:$0xff]  ;;  %v430_v54 = vld [vmem:[%s1830_s12 + $0x18] sm:$0xff]  ;;  %v461_v57 = vld [vmem:[%s1830_s12 + $0x110] sm:$0xff] }
  0x63   : > { %v462_v55 = vld [vmem:[%s1830_s12 + $0x118] sm:$0xff]  ;;  %v432_v58 = vld [vmem:[%s1830_s12 + $0x28] sm:$0xff]  ;;  %v431_v60 = vld [vmem:[%s1830_s12 + $0x20] sm:$0xff] }
  0x64   : > { %v464_v59 = vld [vmem:[%s1830_s12 + $0x128] sm:$0xff]  ;;  %v463_v61 = vld [vmem:[%s1830_s12 + $0x120] sm:$0xff]  ;;  %v434_v62 = vld [vmem:[%s1830_s12 + $0x38] sm:$0xff] }
  0x65   : > { %1370 = vmatpush1.bf16.msra.mxu0 %v1369_v14  ;;  %1458 = vmatpush1.bf16.msra.mxu1 %v1369_v14  ;;  %v466_v63 = vld [vmem:[%s1830_s12 + $0x138] sm:$0xff]  ;;  %v433_v0 = vld [vmem:[%s1830_s12 + $0x30] sm:$0xff]  ;;  %v436_v2 = vld [vmem:[%s1830_s12 + $0x48] sm:$0xff] }
  0x66   : > { %1371 = vmatprep.subr.bf16.mxu0 %v1602_v4  ;;  %1443 = vmatprep.subr.bf16.mxu1 %v1602_v4  ;;  %v465_v1 = vld [vmem:[%s1830_s12 + $0x130] sm:$0xff]  ;;  %v468_v3 = vld [vmem:[%s1830_s12 + $0x148] sm:$0xff]  ;;  %v467_v5 = vld [vmem:[%s1830_s12 + $0x140] sm:$0xff] }
  0x67   : > { %v438_v6 = vld [vmem:[%s1830_s12 + $0x58] sm:$0xff]  ;;  %v437_v8 = vld [vmem:[%s1830_s12 + $0x50] sm:$0xff]  ;;  %v440_v10 = vld [vmem:[%s1830_s12 + $0x68] sm:$0xff] }
  0x68   : > { %v470_v7 = vld [vmem:[%s1830_s12 + $0x158] sm:$0xff]  ;;  %v469_v9 = vld [vmem:[%s1830_s12 + $0x150] sm:$0xff]  ;;  %v472_v11 = vld [vmem:[%s1830_s12 + $0x168] sm:$0xff] }
  0x69   : > { %1373 = vmatpush1.bf16.msra.mxu0 %v1372_v18  ;;  %1459 = vmatpush1.bf16.msra.mxu1 %v1372_v18  ;;  %v439_v12 = vld [vmem:[%s1830_s12 + $0x60] sm:$0xff]  ;;  %v442_v14 = vld [vmem:[%s1830_s12 + $0x78] sm:$0xff]  ;;  %v441_v16 = vld [vmem:[%s1830_s12 + $0x70] sm:$0xff] }
  0x6a   : > { %1374 = vmatprep.subr.bf16.mxu0 %v1602_v4  ;;  %1444 = vmatprep.subr.bf16.mxu1 %v1602_v4  ;;  %v471_v13 = vld [vmem:[%s1830_s12 + $0x160] sm:$0xff]  ;;  %v474_v15 = vld [vmem:[%s1830_s12 + $0x178] sm:$0xff]  ;;  %v473_v17 = vld [vmem:[%s1830_s12 + $0x170] sm:$0xff] }
  0x6b   : > { %v444_v18 = vld [vmem:[%s1830_s12 + $0x88] sm:$0xff]  ;;  %v443_v20 = vld [vmem:[%s1830_s12 + $0x80] sm:$0xff]  ;;  %v446_v22 = vld [vmem:[%s1830_s12 + $0x98] sm:$0xff] }
  0x6c   : > { %v476_v19 = vld [vmem:[%s1830_s12 + $0x188] sm:$0xff]  ;;  %v478_v23 = vld [vmem:[%s1830_s12 + $0x198] sm:$0xff]  ;;  %v477_v25 = vld [vmem:[%s1830_s12 + $0x190] sm:$0xff] }
  0x6d   : > { %1376 = vmatpush1.bf16.msra.mxu0 %v1375_v21  ;;  %1460 = vmatpush1.bf16.msra.mxu1 %v1375_v21  ;;  %v475_v21 = vld [vmem:[%s1830_s12 + $0x180] sm:$0xff]  ;;  %v448_v26 = vld [vmem:[%s1830_s12 + $0xa8] sm:$0xff]  ;;  %v482_v31 = vld [vmem:[%s1830_s12 + $0x1b8] sm:$0xff] }
  0x6e   : > { %1377 = vmatprep.subr.bf16.mxu0 %v1602_v4  ;;  %1445 = vmatprep.subr.bf16.mxu1 %v1602_v4  ;;  %v447_v28 = vld [vmem:[%s1830_s12 + $0xa0] sm:$0xff]  ;;  %v449_v32 = vld [vmem:[%s1830_s12 + $0xb0] sm:$0xff]  ;;  %v452_v34 = vld [vmem:[%s1830_s12 + $0xc8] sm:$0xff] }
  0x6f   : > { %v479_v29 = vld [vmem:[%s1830_s12 + $0x1a0] sm:$0xff]  ;;  %v484_v35 = vld [vmem:[%s1830_s12 + $0x1c8] sm:$0xff]  ;;  %v454_v38 = vld [vmem:[%s1830_s12 + $0xd8] sm:$0xff] }
  0x70   : > { %v483_v37 = vld [vmem:[%s1830_s12 + $0x1c0] sm:$0xff]  ;;  %v453_v40 = vld [vmem:[%s1830_s12 + $0xd0] sm:$0xff]  ;;  %v488_v43 = vld [vmem:[%s1830_s12 + $0x1e8] sm:$0xff] }
  0x71   : > { %1379 = vmatpush1.bf16.msra.mxu0 %v1378_v24  ;;  %1461 = vmatpush1.bf16.msra.mxu1 %v1378_v24  ;;  %v445_v24 = vld [vmem:[%s1830_s12 + $0x90] sm:$0xff]  ;;  %v455_v44 = vld [vmem:[%s1830_s12 + $0xe0] sm:$0xff]  ;;  %v458_v46 = vld [vmem:[%s1830_s12 + $0xf8] sm:$0xff] }
  0x72   : > { %1380 = vmatprep.subr.bf16.mxu0 %v1602_v4  ;;  %1446 = vmatprep.subr.bf16.mxu1 %v1602_v4  ;;  %v485_v41 = vld [vmem:[%s1830_s12 + $0x1d0] sm:$0xff]  ;;  %v490_v47 = vld [vmem:[%s1830_s12 + $0x1f8] sm:$0xff]  ;;  %v395_v50 = vld [vmem:[#allocation2] sm:$0xff] }
  0x73   : > { %v489_v49 = vld [vmem:[%s1830_s12 + $0x1f0] sm:$0xff] }
  0x75   : > { %1382 = vmatpush1.bf16.msra.mxu0 %v1381_v27  ;;  %1462 = vmatpush1.bf16.msra.mxu1 %v1381_v27  ;;  %v480_v27 = vld [vmem:[%s1830_s12 + $0x1a8] sm:$0xff] }
  0x76   : > { %1383 = vmatprep.subr.bf16.mxu0 %v1602_v4  ;;  %1447 = vmatprep.subr.bf16.mxu1 %v1602_v4 }
  0x79   : > { %1385 = vmatpush1.bf16.msra.mxu0 %v1384_v30  ;;  %1463 = vmatpush1.bf16.msra.mxu1 %v1384_v30  ;;  %v450_v30 = vld [vmem:[%s1830_s12 + $0xb8] sm:$0xff] }
  0x7a   : > { %1386 = vmatprep.subr.bf16.mxu0 %v1602_v4  ;;  %1448 = vmatprep.subr.bf16.mxu1 %v1602_v4 }
  0x7d   : > { %1388 = vmatpush1.bf16.msra.mxu0 %v1387_v33  ;;  %1464 = vmatpush1.bf16.msra.mxu1 %v1387_v33  ;;  %v481_v33 = vld [vmem:[%s1830_s12 + $0x1b0] sm:$0xff] }
  0x7e   : > { %1389 = vmatprep.subr.bf16.mxu0 %v1602_v4  ;;  %1449 = vmatprep.subr.bf16.mxu1 %v1602_v4 }
  0x81   : > { %1391 = vmatpush1.bf16.msra.mxu0 %v1390_v36  ;;  %1465 = vmatpush1.bf16.msra.mxu1 %v1390_v36  ;;  %v451_v36 = vld [vmem:[%s1830_s12 + $0xc0] sm:$0xff] }
  0x82   : > { %1392 = vmatprep.subr.bf16.mxu0 %v1602_v4  ;;  %1450 = vmatprep.subr.bf16.mxu1 %v1602_v4 }
  0x85   : > { %1394 = vmatpush1.bf16.msra.mxu0 %v1393_v39  ;;  %1466 = vmatpush1.bf16.msra.mxu1 %v1393_v39  ;;  %v486_v39 = vld [vmem:[%s1830_s12 + $0x1d8] sm:$0xff] }
  0x86   : > { %1395 = vmatprep.subr.bf16.mxu0 %v1602_v4  ;;  %1451 = vmatprep.subr.bf16.mxu1 %v1602_v4 }
  0x89   : > { %1397 = vmatpush1.bf16.msra.mxu0 %v1396_v42  ;;  %1467 = vmatpush1.bf16.msra.mxu1 %v1396_v42  ;;  %v456_v42 = vld [vmem:[%s1830_s12 + $0xe8] sm:$0xff] }
  0x8a   : > { %1398 = vmatprep.subr.bf16.mxu0 %v1602_v4  ;;  %1452 = vmatprep.subr.bf16.mxu1 %v1602_v4 }
  0x8d   : > { %1400 = vmatpush1.bf16.msra.mxu0 %v1399_v45  ;;  %1468 = vmatpush1.bf16.msra.mxu1 %v1399_v45  ;;  %v487_v45 = vld [vmem:[%s1830_s12 + $0x1e0] sm:$0xff] }
  0x8e   : > { %1401 = vmatprep.subr.bf16.mxu0 %v1602_v4  ;;  %1453 = vmatprep.subr.bf16.mxu1 %v1602_v4 }
  0x91   : > { %1403 = vmatpush1.bf16.msra.mxu0 %v1402_v48  ;;  %1469 = vmatpush1.bf16.msra.mxu1 %v1402_v48  ;;  %v457_v48 = vld [vmem:[%s1830_s12 + $0xf0] sm:$0xff] }
  0x92   : > { %1404 = vmatprep.subr.bf16.mxu0 %v1602_v4  ;;  %1454 = vmatprep.subr.bf16.mxu1 %v1602_v4  ;;  %v435_v4 = vld [vmem:[%s1830_s12 + $0x40] sm:$0xff] }
  0x95   : > { %1406 = vmatpush1.bf16.msra.mxu0 %v1405_v51  ;;  %1470 = vmatpush1.bf16.msra.mxu1 %v1405_v51  ;;  %v411_v51 = vld [vmem:[#allocation2 + $0x80] sm:$0xff] }
  0x98   : > { %588 = vmatmul.mubr.f32.vlgmr.msra.gmra.mrb[0].mxu0 %v427_v52  ;;  %668 = vmatmul.mubr.f32.vlgmr.msra.gmra.mrb[0].mxu1 %v459_v53 }
  0x99   : > { %592 = vmatprep.mubr.f32.mxu0 %v430_v54  ;;  %672 = vmatprep.mubr.f32.mxu1 %v462_v55 }
  0x9c   : > { %593 = vmatmul.mubr.f32.gmra.mrb[2].mxu0 %v429_v56  ;;  %673 = vmatmul.mubr.f32.gmra.mrb[2].mxu1 %v461_v57 }
  0x9d   : > { %597 = vmatprep.mubr.f32.mxu0 %v432_v58  ;;  %677 = vmatprep.mubr.f32.mxu1 %v464_v59  ;;  %v396_v58 = vld [vmem:[#allocation2 + $0x8] sm:$0xff] }
  0x9e   : > { %v412_v59 = vld [vmem:[#allocation2 + $0x88] sm:$0xff] }
  0xa0   : > { %598 = vmatmul.mubr.f32.gmra.mrb[4].mxu0 %v431_v60  ;;  %678 = vmatmul.mubr.f32.gmra.mrb[4].mxu1 %v463_v61 }
  0xa1   : > { %602 = vmatprep.mubr.f32.mxu0 %v434_v62  ;;  %682 = vmatprep.mubr.f32.mxu1 %v466_v63 }
  0xa4   : > { %603 = vmatmul.mubr.f32.gmra.mrb[6].mxu0 %v433_v0  ;;  %683 = vmatmul.mubr.f32.gmra.mrb[6].mxu1 %v465_v1 }
  0xa5   : > { %607 = vmatprep.mubr.f32.mxu0 %v436_v2  ;;  %687 = vmatprep.mubr.f32.mxu1 %v468_v3  ;;  %v397_v2 = vld [vmem:[#allocation2 + $0x10] sm:$0xff] }
  0xa6   : > { %v413_v3 = vld [vmem:[#allocation2 + $0x90] sm:$0xff] }
  0xa8   : > { %608 = vmatmul.mubr.f32.gmra.mrb[8].mxu0 %v435_v4  ;;  %688 = vmatmul.mubr.f32.gmra.mrb[8].mxu1 %v467_v5 }
  0xa9   : > { %612 = vmatprep.mubr.f32.mxu0 %v438_v6  ;;  %692 = vmatprep.mubr.f32.mxu1 %v470_v7 }
  0xac   : > { %613 = vmatmul.mubr.f32.gmra.mrb[10].mxu0 %v437_v8  ;;  %693 = vmatmul.mubr.f32.gmra.mrb[10].mxu1 %v469_v9 }
  0xad   : > { %617 = vmatprep.mubr.f32.mxu0 %v440_v10  ;;  %697 = vmatprep.mubr.f32.mxu1 %v472_v11  ;;  %v398_v10 = vld [vmem:[#allocation2 + $0x18] sm:$0xff] }
  0xae   : > { %v414_v11 = vld [vmem:[#allocation2 + $0x98] sm:$0xff] }
  0xb0   : > { %618 = vmatmul.mubr.f32.gmra.mrb[12].mxu0 %v439_v12  ;;  %698 = vmatmul.mubr.f32.gmra.mrb[12].mxu1 %v471_v13 }
  0xb1   : > { %622 = vmatprep.mubr.f32.mxu0 %v442_v14  ;;  %702 = vmatprep.mubr.f32.mxu1 %v474_v15 }
  0xb4   : > { %623 = vmatmul.mubr.f32.gmra.mrb[14].mxu0 %v441_v16  ;;  %703 = vmatmul.mubr.f32.gmra.mrb[14].mxu1 %v473_v17 }
  0xb5   : > { %627 = vmatprep.mubr.f32.mxu0 %v444_v18  ;;  %707 = vmatprep.mubr.f32.mxu1 %v476_v19  ;;  %v399_v18 = vld [vmem:[#allocation2 + $0x20] sm:$0xff] }
  0xb6   : > { %v415_v19 = vld [vmem:[#allocation2 + $0xa0] sm:$0xff] }
  0xb8   : > { %628 = vmatmul.mubr.f32.gmra.mrb[16].mxu0 %v443_v20  ;;  %708 = vmatmul.mubr.f32.gmra.mrb[16].mxu1 %v475_v21 }
  0xb9   : > { %632 = vmatprep.mubr.f32.mxu0 %v446_v22  ;;  %712 = vmatprep.mubr.f32.mxu1 %v478_v23 }
  0xbc   : > { %633 = vmatmul.mubr.f32.gmra.mrb[18].mxu0 %v445_v24  ;;  %713 = vmatmul.mubr.f32.gmra.mrb[18].mxu1 %v477_v25 }
  0xbd   : > { %637 = vmatprep.mubr.f32.mxu0 %v448_v26  ;;  %717 = vmatprep.mubr.f32.mxu1 %v480_v27  ;;  %v400_v26 = vld [vmem:[#allocation2 + $0x28] sm:$0xff] }
  0xbe   : > { %v416_v27 = vld [vmem:[#allocation2 + $0xa8] sm:$0xff] }
  0xc0   : > { %638 = vmatmul.mubr.f32.gmra.mrb[20].mxu0 %v447_v28  ;;  %718 = vmatmul.mubr.f32.gmra.mrb[20].mxu1 %v479_v29 }
  0xc1   : > { %642 = vmatprep.mubr.f32.mxu0 %v450_v30  ;;  %722 = vmatprep.mubr.f32.mxu1 %v482_v31 }
  0xc4   : > { %643 = vmatmul.mubr.f32.gmra.mrb[22].mxu0 %v449_v32  ;;  %723 = vmatmul.mubr.f32.gmra.mrb[22].mxu1 %v481_v33 }
  0xc5   : > { %647 = vmatprep.mubr.f32.mxu0 %v452_v34  ;;  %727 = vmatprep.mubr.f32.mxu1 %v484_v35  ;;  %v401_v34 = vld [vmem:[#allocation2 + $0x30] sm:$0xff] }
  0xc6   : > { %v417_v35 = vld [vmem:[#allocation2 + $0xb0] sm:$0xff] }
  0xc8   : > { %648 = vmatmul.mubr.f32.gmra.mrb[24].mxu0 %v451_v36  ;;  %728 = vmatmul.mubr.f32.gmra.mrb[24].mxu1 %v483_v37 }
  0xc9   : > { %652 = vmatprep.mubr.f32.mxu0 %v454_v38  ;;  %732 = vmatprep.mubr.f32.mxu1 %v486_v39 }
  0xcc   : > { %653 = vmatmul.mubr.f32.gmra.mrb[26].mxu0 %v453_v40  ;;  %733 = vmatmul.mubr.f32.gmra.mrb[26].mxu1 %v485_v41 }
  0xcd   : > { %657 = vmatprep.mubr.f32.mxu0 %v456_v42  ;;  %737 = vmatprep.mubr.f32.mxu1 %v488_v43  ;;  %v402_v42 = vld [vmem:[#allocation2 + $0x38] sm:$0xff] }
  0xce   : > { %v418_v43 = vld [vmem:[#allocation2 + $0xb8] sm:$0xff] }
  0xd0   : > { %658 = vmatmul.mubr.f32.gmra.mrb[28].mxu0 %v455_v44  ;;  %738 = vmatmul.mubr.f32.gmra.mrb[28].mxu1 %v487_v45 }
  0xd1   : > { %662 = vmatprep.mubr.f32.mxu0 %v458_v46  ;;  %742 = vmatprep.mubr.f32.mxu1 %v490_v47 }
  0xd4   : > { %663 = vmatmul.mubr.f32.gmra.mrb[30].mxu0 %v457_v48  ;;  %743 = vmatmul.mubr.f32.gmra.mrb[30].mxu1 %v489_v49 }
 0x16b   : > { %v589_v52 = vpop.f32.mrb[0].mxu0  ;;  %v669_v53 = vpop.f32.mrb[0].mxu1 }
 0x16c   : > { %v748_v54 = vadd.f32 %v589_v52, %v395_v50  ;;  %v764_v55 = vadd.f32 %v669_v53, %v411_v51  ;;  %v591_v56 = vpop.f32.mrb[1].mxu0  ;;  %v671_v57 = vpop.f32.mrb[1].mxu1  ;;  %v403_v50 = vld [vmem:[#allocation2 + $0x40] sm:$0xff] }
 0x16d   : > { %v419_v51 = vld [vmem:[#allocation2 + $0xc0] sm:$0xff] }
 0x16e   : > { %780 = vst [vmem:[#allocation2] sm:$0xff] %v748_v54  ;;  %796 = vst [vmem:[#allocation2 + $0x80] sm:$0xff] %v764_v55 }
 0x16f   : > { %v594_v60 = vpop.f32.mrb[2].mxu0  ;;  %v674_v61 = vpop.f32.mrb[2].mxu1 }
 0x170   : > { %v749_v62 = vadd.f32 %v594_v60, %v396_v58  ;;  %v765_v63 = vadd.f32 %v674_v61, %v412_v59  ;;  %v596_v0 = vpop.f32.mrb[3].mxu0  ;;  %v676_v1 = vpop.f32.mrb[3].mxu1  ;;  %v404_v58 = vld [vmem:[#allocation2 + $0x48] sm:$0xff] }
 0x171   : > { %v420_v59 = vld [vmem:[#allocation2 + $0xc8] sm:$0xff] }
 0x172   : > { %781 = vst [vmem:[#allocation2 + $0x8] sm:$0xff] %v749_v62  ;;  %797 = vst [vmem:[#allocation2 + $0x88] sm:$0xff] %v765_v63 }
 0x173   : > { %v599_v4 = vpop.f32.mrb[4].mxu0  ;;  %v679_v5 = vpop.f32.mrb[4].mxu1 }
 0x174   : > { %v750_v6 = vadd.f32 %v599_v4, %v397_v2  ;;  %v766_v7 = vadd.f32 %v679_v5, %v413_v3  ;;  %v601_v8 = vpop.f32.mrb[5].mxu0  ;;  %v681_v9 = vpop.f32.mrb[5].mxu1  ;;  %v405_v2 = vld [vmem:[#allocation2 + $0x50] sm:$0xff] }
 0x175   : > { %v421_v3 = vld [vmem:[#allocation2 + $0xd0] sm:$0xff] }
 0x176   : > { %782 = vst [vmem:[#allocation2 + $0x10] sm:$0xff] %v750_v6  ;;  %798 = vst [vmem:[#allocation2 + $0x90] sm:$0xff] %v766_v7 }
 0x177   : > { %v604_v12 = vpop.f32.mrb[6].mxu0  ;;  %v684_v13 = vpop.f32.mrb[6].mxu1 }
 0x178   : > { %v751_v14 = vadd.f32 %v604_v12, %v398_v10  ;;  %v767_v15 = vadd.f32 %v684_v13, %v414_v11  ;;  %v606_v16 = vpop.f32.mrb[7].mxu0  ;;  %v686_v17 = vpop.f32.mrb[7].mxu1  ;;  %v406_v10 = vld [vmem:[#allocation2 + $0x58] sm:$0xff] }
 0x179   : > { %v422_v11 = vld [vmem:[#allocation2 + $0xd8] sm:$0xff] }
 0x17a   : > { %783 = vst [vmem:[#allocation2 + $0x18] sm:$0xff] %v751_v14  ;;  %799 = vst [vmem:[#allocation2 + $0x98] sm:$0xff] %v767_v15 }
 0x17b   : > { %v609_v20 = vpop.f32.mrb[8].mxu0  ;;  %v689_v21 = vpop.f32.mrb[8].mxu1 }
 0x17c   : > { %v752_v22 = vadd.f32 %v609_v20, %v399_v18  ;;  %v768_v23 = vadd.f32 %v689_v21, %v415_v19  ;;  %v611_v24 = vpop.f32.mrb[9].mxu0  ;;  %v691_v25 = vpop.f32.mrb[9].mxu1  ;;  %v407_v18 = vld [vmem:[#allocation2 + $0x60] sm:$0xff] }
 0x17d   : > { %v423_v19 = vld [vmem:[#allocation2 + $0xe0] sm:$0xff] }
 0x17e   : > { %784 = vst [vmem:[#allocation2 + $0x20] sm:$0xff] %v752_v22  ;;  %800 = vst [vmem:[#allocation2 + $0xa0] sm:$0xff] %v768_v23 }
 0x17f   : > { %v614_v28 = vpop.f32.mrb[10].mxu0  ;;  %v694_v29 = vpop.f32.mrb[10].mxu1 }
 0x180   : > { %v753_v30 = vadd.f32 %v614_v28, %v400_v26  ;;  %v769_v31 = vadd.f32 %v694_v29, %v416_v27  ;;  %v616_v32 = vpop.f32.mrb[11].mxu0  ;;  %v696_v33 = vpop.f32.mrb[11].mxu1  ;;  %v408_v26 = vld [vmem:[#allocation2 + $0x68] sm:$0xff] }
 0x181   : > { %v424_v27 = vld [vmem:[#allocation2 + $0xe8] sm:$0xff] }
 0x182   : > { %785 = vst [vmem:[#allocation2 + $0x28] sm:$0xff] %v753_v30  ;;  %801 = vst [vmem:[#allocation2 + $0xa8] sm:$0xff] %v769_v31 }
 0x183   : > { %v619_v36 = vpop.f32.mrb[12].mxu0  ;;  %v699_v37 = vpop.f32.mrb[12].mxu1 }
 0x184   : > { %v754_v38 = vadd.f32 %v619_v36, %v401_v34  ;;  %v770_v39 = vadd.f32 %v699_v37, %v417_v35  ;;  %v621_v40 = vpop.f32.mrb[13].mxu0  ;;  %v701_v41 = vpop.f32.mrb[13].mxu1  ;;  %v409_v34 = vld [vmem:[#allocation2 + $0x70] sm:$0xff] }
 0x185   : > { %v425_v35 = vld [vmem:[#allocation2 + $0xf0] sm:$0xff] }
 0x186   : > { %786 = vst [vmem:[#allocation2 + $0x30] sm:$0xff] %v754_v38  ;;  %802 = vst [vmem:[#allocation2 + $0xb0] sm:$0xff] %v770_v39 }
 0x187   : > { %v624_v44 = vpop.f32.mrb[14].mxu0  ;;  %v704_v45 = vpop.f32.mrb[14].mxu1 }
 0x188   : > { %v755_v46 = vadd.f32 %v624_v44, %v402_v42  ;;  %v771_v47 = vadd.f32 %v704_v45, %v418_v43  ;;  %v626_v48 = vpop.f32.mrb[15].mxu0  ;;  %v706_v49 = vpop.f32.mrb[15].mxu1  ;;  %v410_v42 = vld [vmem:[#allocation2 + $0x78] sm:$0xff] }
 0x189   : > { %v426_v43 = vld [vmem:[#allocation2 + $0xf8] sm:$0xff] }
 0x18a   : > { %787 = vst [vmem:[#allocation2 + $0x38] sm:$0xff] %v755_v46  ;;  %803 = vst [vmem:[#allocation2 + $0xb8] sm:$0xff] %v771_v47 }
 0x18b   : > { %v629_v52 = vpop.f32.mrb[16].mxu0  ;;  %v709_v53 = vpop.f32.mrb[16].mxu1 }
 0x18c   : > { %v756_v54 = vadd.f32 %v629_v52, %v403_v50  ;;  %v772_v55 = vadd.f32 %v709_v53, %v419_v51  ;;  %v631_v56 = vpop.f32.mrb[17].mxu0  ;;  %v711_v57 = vpop.f32.mrb[17].mxu1  ;;  %v848_v50 = vld [vmem:[%s2097_s2] sm:$0xff] (!%p1227_p13)  ;;  %v849_v51 = vld [vmem:[%s2097_s2 + $0x8] sm:$0xff] (!%p1227_p13)  ;;  %v850_v52 = vld [vmem:[%s2097_s2 + $0x10] sm:$0xff] (!%p1227_p13) }
 0x18d   : > { %v1407_v53 = vpack.c.bf16 (!%p1227_p13), %v849_v51, %v848_v50  ;;  %v852_v56 = vld [vmem:[%s2097_s2 + $0x20] sm:$0xff] (!%p1227_p13)  ;;  %v853_v57 = vld [vmem:[%s2097_s2 + $0x28] sm:$0xff] (!%p1227_p13) }
 0x18e   : > { %788 = vst [vmem:[#allocation2 + $0x40] sm:$0xff] %v756_v54  ;;  %804 = vst [vmem:[#allocation2 + $0xc0] sm:$0xff] %v772_v55  ;;  %v851_v54 = vld [vmem:[%s2097_s2 + $0x18] sm:$0xff] (!%p1227_p13) }
 0x18f   : > { %v634_v60 = vpop.f32.mrb[18].mxu0  ;;  %v714_v61 = vpop.f32.mrb[18].mxu1  ;;  %v1411_v55 = vpack.c.bf16 (!%p1227_p13), %v851_v54, %v850_v52  ;;  %1408 = vmatprep.subr.bf16.mxu0 (!%p1227_p13), %v1407_v53  ;;  %1471 = vmatprep.subr.bf16.mxu1 (!%p1227_p13), %v1407_v53 }
 0x190   : > { %v757_v62 = vadd.f32 %v634_v60, %v404_v58  ;;  %v773_v63 = vadd.f32 %v714_v61, %v420_v59  ;;  %v636_v0 = vpop.f32.mrb[19].mxu0  ;;  %v716_v1 = vpop.f32.mrb[19].mxu1  ;;  %1410 = vmatpush3.bf16.msra.mxu0 (!%p1227_p13), %v1407_v53  ;;  %1479 = vmatpush3.bf16.msra.mxu1 (!%p1227_p13), %v1407_v53  ;;  %v1415_v58 = vpack.c.bf16 (!%p1227_p13), %v853_v57, %v852_v56  ;;  %v816_v59 = vld [vmem:[#allocation2] sm:$0xff] (!%p1227_p13)  ;;  %v854_v61 = vld [vmem:[%s2097_s2 + $0x30] sm:$0xff] (!%p1227_p13) }
 0x191   : > { %1412 = vmatprep.subr.bf16.mxu0 (!%p1227_p13), %v1411_v55  ;;  %1472 = vmatprep.subr.bf16.mxu1 (!%p1227_p13), %v1411_v55  ;;  %v832_v60 = vld [vmem:[#allocation2 + $0x80] sm:$0xff] (!%p1227_p13)  ;;  %v857_v1 = vld [vmem:[%s2097_s2 + $0x48] sm:$0xff] (!%p1227_p13) }
 0x192   : > { %789 = vst [vmem:[#allocation2 + $0x48] sm:$0xff] %v757_v62  ;;  %805 = vst [vmem:[#allocation2 + $0xc8] sm:$0xff] %v773_v63  ;;  %v855_v62 = vld [vmem:[%s2097_s2 + $0x38] sm:$0xff] (!%p1227_p13)  ;;  %1311 = vmatprep.mubr.f32.mxu0 (!%p1227_p13), %v816_v59  ;;  %1335 = vmatprep.mubr.f32.mxu1 (!%p1227_p13), %v832_v60  ;;  %v856_v0 = vld [vmem:[%s2097_s2 + $0x40] sm:$0xff] (!%p1227_p13) }
 0x193   : > { %v639_v4 = vpop.f32.mrb[20].mxu0  ;;  %v719_v5 = vpop.f32.mrb[20].mxu1  ;;  %v1419_v63 = vpack.c.bf16 (!%p1227_p13), %v855_v62, %v854_v61 }
 0x194   : > { %v758_v6 = vadd.f32 %v639_v4, %v405_v2  ;;  %v774_v7 = vadd.f32 %v719_v5, %v421_v3  ;;  %v641_v8 = vpop.f32.mrb[21].mxu0  ;;  %v721_v9 = vpop.f32.mrb[21].mxu1  ;;  %1414 = vmatpush3.bf16.msra.mxu0 (!%p1227_p13), %v1411_v55  ;;  %1480 = vmatpush3.bf16.msra.mxu1 (!%p1227_p13), %v1411_v55  ;;  %v1423_v2 = vpack.c.bf16 (!%p1227_p13), %v857_v1, %v856_v0  ;;  %v858_v3 = vld [vmem:[%s2097_s2 + $0x50] sm:$0xff] (!%p1227_p13)  ;;  %v859_v4 = vld [vmem:[%s2097_s2 + $0x58] sm:$0xff] (!%p1227_p13) }
 0x195   : > { %1416 = vmatprep.subr.bf16.mxu0 (!%p1227_p13), %v1415_v58  ;;  %1473 = vmatprep.subr.bf16.mxu1 (!%p1227_p13), %v1415_v58  ;;  %v1427_v5 = vpack.c.bf16 (!%p1227_p13), %v859_v4, %v858_v3  ;;  %v862_v9 = vld [vmem:[%s2097_s2 + $0x70] sm:$0xff] (!%p1227_p13) }
 0x196   : > { %790 = vst [vmem:[#allocation2 + $0x50] sm:$0xff] %v758_v6  ;;  %806 = vst [vmem:[#allocation2 + $0xd0] sm:$0xff] %v774_v7  ;;  %v860_v6 = vld [vmem:[%s2097_s2 + $0x60] sm:$0xff] (!%p1227_p13)  ;;  %v861_v7 = vld [vmem:[%s2097_s2 + $0x68] sm:$0xff] (!%p1227_p13) }
 0x197   : > { %v644_v12 = vpop.f32.mrb[22].mxu0  ;;  %v724_v13 = vpop.f32.mrb[22].mxu1  ;;  %v1431_v8 = vpack.c.bf16 (!%p1227_p13), %v861_v7, %v860_v6 }
 0x198   : > { %v759_v14 = vadd.f32 %v644_v12, %v406_v10  ;;  %v775_v15 = vadd.f32 %v724_v13, %v422_v11  ;;  %v646_v16 = vpop.f32.mrb[23].mxu0  ;;  %v726_v17 = vpop.f32.mrb[23].mxu1  ;;  %1418 = vmatpush3.bf16.msra.mxu0 (!%p1227_p13), %v1415_v58  ;;  %1481 = vmatpush3.bf16.msra.mxu1 (!%p1227_p13), %v1415_v58  ;;  %v863_v10 = vld [vmem:[%s2097_s2 + $0x78] sm:$0xff] (!%p1227_p13)  ;;  %v817_v12 = vld [vmem:[#allocation2 + $0x8] sm:$0xff] (!%p1227_p13) }
 0x199   : > { %1420 = vmatprep.subr.bf16.mxu0 (!%p1227_p13), %v1419_v63  ;;  %1474 = vmatprep.subr.bf16.mxu1 (!%p1227_p13), %v1419_v63  ;;  %v1435_v11 = vpack.c.bf16 (!%p1227_p13), %v863_v10, %v862_v9  ;;  %v833_v13 = vld [vmem:[#allocation2 + $0x88] sm:$0xff] (!%p1227_p13)  ;;  %v819_v16 = vld [vmem:[#allocation2 + $0x18] sm:$0xff] (!%p1227_p13) }
 0x19a   : > { %791 = vst [vmem:[#allocation2 + $0x58] sm:$0xff] %v759_v14  ;;  %807 = vst [vmem:[#allocation2 + $0xd8] sm:$0xff] %v775_v15  ;;  %v818_v14 = vld [vmem:[#allocation2 + $0x10] sm:$0xff] (!%p1227_p13)  ;;  %v835_v17 = vld [vmem:[#allocation2 + $0x98] sm:$0xff] (!%p1227_p13) }
 0x19b   : > { %v649_v20 = vpop.f32.mrb[24].mxu0  ;;  %v729_v21 = vpop.f32.mrb[24].mxu1  ;;  %v834_v15 = vld [vmem:[#allocation2 + $0x90] sm:$0xff] (!%p1227_p13) }
 0x19c   : > { %v760_v22 = vadd.f32 %v649_v20, %v407_v18  ;;  %v776_v23 = vadd.f32 %v729_v21, %v423_v19  ;;  %v651_v24 = vpop.f32.mrb[25].mxu0  ;;  %v731_v25 = vpop.f32.mrb[25].mxu1  ;;  %1422 = vmatpush3.bf16.msra.mxu0 (!%p1227_p13), %v1419_v63  ;;  %1482 = vmatpush3.bf16.msra.mxu1 (!%p1227_p13), %v1419_v63  ;;  %v820_v18 = vld [vmem:[#allocation2 + $0x20] sm:$0xff] (!%p1227_p13)  ;;  %v821_v20 = vld [vmem:[#allocation2 + $0x28] sm:$0xff] (!%p1227_p13) }
 0x19d   : > { %1424 = vmatprep.subr.bf16.mxu0 (!%p1227_p13), %v1423_v2  ;;  %1475 = vmatprep.subr.bf16.mxu1 (!%p1227_p13), %v1423_v2  ;;  %v836_v19 = vld [vmem:[#allocation2 + $0xa0] sm:$0xff] (!%p1227_p13)  ;;  %v837_v21 = vld [vmem:[#allocation2 + $0xa8] sm:$0xff] (!%p1227_p13)  ;;  %v823_v24 = vld [vmem:[#allocation2 + $0x38] sm:$0xff] (!%p1227_p13) }
 0x19e   : > { %792 = vst [vmem:[#allocation2 + $0x60] sm:$0xff] %v760_v22  ;;  %808 = vst [vmem:[#allocation2 + $0xe0] sm:$0xff] %v776_v23  ;;  %v822_v22 = vld [vmem:[#allocation2 + $0x30] sm:$0xff] (!%p1227_p13)  ;;  %v839_v25 = vld [vmem:[#allocation2 + $0xb8] sm:$0xff] (!%p1227_p13) }
 0x19f   : > { %v654_v28 = vpop.f32.mrb[26].mxu0  ;;  %v734_v29 = vpop.f32.mrb[26].mxu1  ;;  %v838_v23 = vld [vmem:[#allocation2 + $0xb0] sm:$0xff] (!%p1227_p13) }
 0x1a0   : > { %v761_v30 = vadd.f32 %v654_v28, %v408_v26  ;;  %v777_v31 = vadd.f32 %v734_v29, %v424_v27  ;;  %v656_v32 = vpop.f32.mrb[27].mxu0  ;;  %v736_v33 = vpop.f32.mrb[27].mxu1  ;;  %1426 = vmatpush3.bf16.msra.mxu0 (!%p1227_p13), %v1423_v2  ;;  %1483 = vmatpush3.bf16.msra.mxu1 (!%p1227_p13), %v1423_v2  ;;  %v824_v26 = vld [vmem:[#allocation2 + $0x40] sm:$0xff] (!%p1227_p13)  ;;  %v825_v28 = vld [vmem:[#allocation2 + $0x48] sm:$0xff] (!%p1227_p13) }
 0x1a1   : > { %1428 = vmatprep.subr.bf16.mxu0 (!%p1227_p13), %v1427_v5  ;;  %1476 = vmatprep.subr.bf16.mxu1 (!%p1227_p13), %v1427_v5  ;;  %v840_v27 = vld [vmem:[#allocation2 + $0xc0] sm:$0xff] (!%p1227_p13)  ;;  %v841_v29 = vld [vmem:[#allocation2 + $0xc8] sm:$0xff] (!%p1227_p13)  ;;  %v827_v32 = vld [vmem:[#allocation2 + $0x58] sm:$0xff] (!%p1227_p13) }
 0x1a2   : > { %793 = vst [vmem:[#allocation2 + $0x68] sm:$0xff] %v761_v30  ;;  %809 = vst [vmem:[#allocation2 + $0xe8] sm:$0xff] %v777_v31  ;;  %v826_v30 = vld [vmem:[#allocation2 + $0x50] sm:$0xff] (!%p1227_p13)  ;;  %v843_v33 = vld [vmem:[#allocation2 + $0xd8] sm:$0xff] (!%p1227_p13) }
 0x1a3   : > { %v659_v36 = vpop.f32.mrb[28].mxu0  ;;  %v739_v37 = vpop.f32.mrb[28].mxu1  ;;  %v842_v31 = vld [vmem:[#allocation2 + $0xd0] sm:$0xff] (!%p1227_p13) }
 0x1a4   : > { %v762_v38 = vadd.f32 %v659_v36, %v409_v34  ;;  %v778_v39 = vadd.f32 %v739_v37, %v425_v35  ;;  %v661_v40 = vpop.f32.mrb[29].mxu0  ;;  %v741_v41 = vpop.f32.mrb[29].mxu1  ;;  %815 = sbr.rel (%p1227_p13) target bundleno = 673 (0x2a1), region = 63  ;;  %1430 = vmatpush3.bf16.msra.mxu0 (!%p1227_p13), %v1427_v5  ;;  %1484 = vmatpush3.bf16.msra.mxu1 (!%p1227_p13), %v1427_v5 }
 0x1a5   : > { %1432 = vmatprep.subr.bf16.mxu0 (!%p1227_p13), %v1431_v8  ;;  %1477 = vmatprep.subr.bf16.mxu1 (!%p1227_p13), %v1431_v8  ;;  %v828_v34 = vld [vmem:[#allocation2 + $0x60] sm:$0xff] (!%p1227_p13) }
 0x1a6   : > { %794 = vst [vmem:[#allocation2 + $0x70] sm:$0xff] %v762_v38  ;;  %810 = vst [vmem:[#allocation2 + $0xf0] sm:$0xff] %v778_v39  ;;  %v844_v35 = vld [vmem:[#allocation2 + $0xe0] sm:$0xff] (!%p1227_p13) }
 0x1a7   : > { %v664_v44 = vpop.f32.mrb[30].mxu0  ;;  %v744_v45 = vpop.f32.mrb[30].mxu1 }
 0x1a8   : > { %v763_v46 = vadd.f32 %v664_v44, %v410_v42  ;;  %v779_v47 = vadd.f32 %v744_v45, %v426_v43  ;;  %v666_v48 = vpop.f32.mrb[31].mxu0  ;;  %v746_v49 = vpop.f32.mrb[31].mxu1  ;;  %1434 = vmatpush3.bf16.msra.mxu0 (!%p1227_p13), %v1431_v8  ;;  %1485 = vmatpush3.bf16.msra.mxu1 (!%p1227_p13), %v1431_v8 }
 0x1a9   : > { %1436 = vmatprep.subr.bf16.mxu0 (!%p1227_p13), %v1435_v11  ;;  %1478 = vmatprep.subr.bf16.mxu1 (!%p1227_p13), %v1435_v11  ;;  %v829_v36 = vld [vmem:[#allocation2 + $0x68] sm:$0xff] (!%p1227_p13) }
 0x1aa   : > { %795 = vst [vmem:[#allocation2 + $0x78] sm:$0xff] %v763_v46  ;;  %811 = vst [vmem:[#allocation2 + $0xf8] sm:$0xff] %v779_v47  ;;  %v845_v37 = vld [vmem:[#allocation2 + $0xe8] sm:$0xff] (!%p1227_p13) }
 0x1ac   : > { %1438 = vmatpush3.bf16.msra.mxu0 %v1435_v11  ;;  %1486 = vmatpush3.bf16.msra.mxu1 %v1435_v11 }
 0x1ad   : > { %v830_v38 = vld [vmem:[#allocation2 + $0x70] sm:$0xff] }
 0x1ae   : > { %v846_v39 = vld [vmem:[#allocation2 + $0xf0] sm:$0xff] }
 0x1af   : > { %1312 = vmatmul.mubr.f32.vlgmr.msra.gmra.mrb[0].mxu0 %v817_v12  ;;  %1336 = vmatmul.mubr.f32.vlgmr.msra.gmra.mrb[0].mxu1 %v833_v13 }
 0x1b0   : > { %1314 = vmatprep.mubr.f32.mxu0 %v818_v14  ;;  %1338 = vmatprep.mubr.f32.mxu1 %v834_v15 }
 0x1b1   : > { %v831_v40 = vld [vmem:[#allocation2 + $0x78] sm:$0xff] }
 0x1b2   : > { %v847_v41 = vld [vmem:[#allocation2 + $0xf8] sm:$0xff] }
 0x1b3   : > { %1315 = vmatmul.mubr.f32.gmra.mrb[2].mxu0 %v819_v16  ;;  %1339 = vmatmul.mubr.f32.gmra.mrb[2].mxu1 %v835_v17 }
 0x1b4   : > { %1317 = vmatprep.mubr.f32.mxu0 %v820_v18  ;;  %1341 = vmatprep.mubr.f32.mxu1 %v836_v19 }
 0x1b7   : > { %1318 = vmatmul.mubr.f32.gmra.mrb[4].mxu0 %v821_v20  ;;  %1342 = vmatmul.mubr.f32.gmra.mrb[4].mxu1 %v837_v21 }
 0x1b8   : > { %1320 = vmatprep.mubr.f32.mxu0 %v822_v22  ;;  %1344 = vmatprep.mubr.f32.mxu1 %v838_v23 }
 0x1bb   : > { %1321 = vmatmul.mubr.f32.gmra.mrb[6].mxu0 %v823_v24  ;;  %1345 = vmatmul.mubr.f32.gmra.mrb[6].mxu1 %v839_v25 }
 0x1bc   : > { %1323 = vmatprep.mubr.f32.mxu0 %v824_v26  ;;  %1347 = vmatprep.mubr.f32.mxu1 %v840_v27 }
 0x1bf   : > { %1324 = vmatmul.mubr.f32.gmra.mrb[8].mxu0 %v825_v28  ;;  %1348 = vmatmul.mubr.f32.gmra.mrb[8].mxu1 %v841_v29 }
 0x1c0   : > { %1326 = vmatprep.mubr.f32.mxu0 %v826_v30  ;;  %1350 = vmatprep.mubr.f32.mxu1 %v842_v31 }
 0x1c3   : > { %1327 = vmatmul.mubr.f32.gmra.mrb[10].mxu0 %v827_v32  ;;  %1351 = vmatmul.mubr.f32.gmra.mrb[10].mxu1 %v843_v33 }
 0x1c4   : > { %1329 = vmatprep.mubr.f32.mxu0 %v828_v34  ;;  %1353 = vmatprep.mubr.f32.mxu1 %v844_v35 }
 0x1c7   : > { %1330 = vmatmul.mubr.f32.gmra.mrb[12].mxu0 %v829_v36  ;;  %1354 = vmatmul.mubr.f32.gmra.mrb[12].mxu1 %v845_v37 }
 0x1c8   : > { %1332 = vmatprep.mubr.f32.mxu0 %v830_v38  ;;  %1356 = vmatprep.mubr.f32.mxu1 %v846_v39 }
 0x1cb   : > { %1333 = vmatmul.mubr.f32.gmra.mrb[14].mxu0 %v831_v40  ;;  %1357 = vmatmul.mubr.f32.gmra.mrb[14].mxu1 %v847_v41 }
 0x282   : > { %v1313_v42 = vpop.f32.mrb[0].mxu0  ;;  %v1337_v43 = vpop.f32.mrb[0].mxu1 }
 0x283   : > { %1091 = vst.msk [vmem:[%s1828_s30 + $0x8] sm:$0xff] %vm1089_vm0, %v1313_v42  ;;  %1107 = vst.msk [vmem:[%s1828_s30 + $0x88] sm:$0xff] %vm1089_vm0, %v1337_v43  ;;  %v930_v44 = vpop.f32.mrb[1].mxu0  ;;  %v1010_v45 = vpop.f32.mrb[1].mxu1 }
 0x284   : > { %1090 = vst.msk [vmem:[%s1828_s30] sm:$0xff] %vm1089_vm0, %v930_v44  ;;  %1106 = vst.msk [vmem:[%s1828_s30 + $0x80] sm:$0xff] %vm1089_vm0, %v1010_v45 }
 0x286   : > { %v1316_v46 = vpop.f32.mrb[2].mxu0  ;;  %v1340_v47 = vpop.f32.mrb[2].mxu1 }
 0x287   : > { %1093 = vst.msk [vmem:[%s1828_s30 + $0x18] sm:$0xff] %vm1089_vm0, %v1316_v46  ;;  %1109 = vst.msk [vmem:[%s1828_s30 + $0x98] sm:$0xff] %vm1089_vm0, %v1340_v47  ;;  %v940_v48 = vpop.f32.mrb[3].mxu0  ;;  %v1020_v49 = vpop.f32.mrb[3].mxu1 }
 0x288   : > { %1092 = vst.msk [vmem:[%s1828_s30 + $0x10] sm:$0xff] %vm1089_vm0, %v940_v48  ;;  %1108 = vst.msk [vmem:[%s1828_s30 + $0x90] sm:$0xff] %vm1089_vm0, %v1020_v49 }
 0x28a   : > { %v1319_v50 = vpop.f32.mrb[4].mxu0  ;;  %v1343_v51 = vpop.f32.mrb[4].mxu1 }
 0x28b   : > { %1095 = vst.msk [vmem:[%s1828_s30 + $0x28] sm:$0xff] %vm1089_vm0, %v1319_v50  ;;  %1111 = vst.msk [vmem:[%s1828_s30 + $0xa8] sm:$0xff] %vm1089_vm0, %v1343_v51  ;;  %v950_v52 = vpop.f32.mrb[5].mxu0  ;;  %v1030_v53 = vpop.f32.mrb[5].mxu1 }
 0x28c   : > { %1094 = vst.msk [vmem:[%s1828_s30 + $0x20] sm:$0xff] %vm1089_vm0, %v950_v52  ;;  %1110 = vst.msk [vmem:[%s1828_s30 + $0xa0] sm:$0xff] %vm1089_vm0, %v1030_v53 }
 0x28e   : > { %v1322_v54 = vpop.f32.mrb[6].mxu0  ;;  %v1346_v55 = vpop.f32.mrb[6].mxu1 }
 0x28f   : > { %1097 = vst.msk [vmem:[%s1828_s30 + $0x38] sm:$0xff] %vm1089_vm0, %v1322_v54  ;;  %1113 = vst.msk [vmem:[%s1828_s30 + $0xb8] sm:$0xff] %vm1089_vm0, %v1346_v55  ;;  %v960_v56 = vpop.f32.mrb[7].mxu0  ;;  %v1040_v57 = vpop.f32.mrb[7].mxu1 }
 0x290   : > { %1096 = vst.msk [vmem:[%s1828_s30 + $0x30] sm:$0xff] %vm1089_vm0, %v960_v56  ;;  %1112 = vst.msk [vmem:[%s1828_s30 + $0xb0] sm:$0xff] %vm1089_vm0, %v1040_v57 }
 0x292   : > { %v1325_v58 = vpop.f32.mrb[8].mxu0  ;;  %v1349_v59 = vpop.f32.mrb[8].mxu1 }
 0x293   : > { %1099 = vst.msk [vmem:[%s1828_s30 + $0x48] sm:$0xff] %vm1089_vm0, %v1325_v58  ;;  %1115 = vst.msk [vmem:[%s1828_s30 + $0xc8] sm:$0xff] %vm1089_vm0, %v1349_v59  ;;  %v970_v60 = vpop.f32.mrb[9].mxu0  ;;  %v1050_v61 = vpop.f32.mrb[9].mxu1 }
 0x294   : > { %1098 = vst.msk [vmem:[%s1828_s30 + $0x40] sm:$0xff] %vm1089_vm0, %v970_v60  ;;  %1114 = vst.msk [vmem:[%s1828_s30 + $0xc0] sm:$0xff] %vm1089_vm0, %v1050_v61 }
 0x296   : > { %v1328_v62 = vpop.f32.mrb[10].mxu0  ;;  %v1352_v63 = vpop.f32.mrb[10].mxu1 }
 0x297   : > { %1101 = vst.msk [vmem:[%s1828_s30 + $0x58] sm:$0xff] %vm1089_vm0, %v1328_v62  ;;  %1117 = vst.msk [vmem:[%s1828_s30 + $0xd8] sm:$0xff] %vm1089_vm0, %v1352_v63  ;;  %v980_v0 = vpop.f32.mrb[11].mxu0  ;;  %v1060_v1 = vpop.f32.mrb[11].mxu1 }
 0x298   : > { %1100 = vst.msk [vmem:[%s1828_s30 + $0x50] sm:$0xff] %vm1089_vm0, %v980_v0  ;;  %1116 = vst.msk [vmem:[%s1828_s30 + $0xd0] sm:$0xff] %vm1089_vm0, %v1060_v1 }
 0x29a   : > { %v1331_v2 = vpop.f32.mrb[12].mxu0  ;;  %v1355_v3 = vpop.f32.mrb[12].mxu1 }
 0x29b   : > { %1103 = vst.msk [vmem:[%s1828_s30 + $0x68] sm:$0xff] %vm1089_vm0, %v1331_v2  ;;  %1119 = vst.msk [vmem:[%s1828_s30 + $0xe8] sm:$0xff] %vm1089_vm0, %v1355_v3  ;;  %v990_v4 = vpop.f32.mrb[13].mxu0  ;;  %v1070_v5 = vpop.f32.mrb[13].mxu1 }
 0x29c   : > { %1102 = vst.msk [vmem:[%s1828_s30 + $0x60] sm:$0xff] %vm1089_vm0, %v990_v4  ;;  %1118 = vst.msk [vmem:[%s1828_s30 + $0xe0] sm:$0xff] %vm1089_vm0, %v1070_v5 }
 0x29e   : > { %v1334_v6 = vpop.f32.mrb[14].mxu0  ;;  %v1358_v7 = vpop.f32.mrb[14].mxu1 }
 0x29f   : > { %1105 = vst.msk [vmem:[%s1828_s30 + $0x78] sm:$0xff] %vm1089_vm0, %v1334_v6  ;;  %1121 = vst.msk [vmem:[%s1828_s30 + $0xf8] sm:$0xff] %vm1089_vm0, %v1358_v7  ;;  %v1000_v8 = vpop.f32.mrb[15].mxu0  ;;  %v1080_v9 = vpop.f32.mrb[15].mxu1 }
 0x2a0   : > { %1104 = vst.msk [vmem:[%s1828_s30 + $0x70] sm:$0xff] %vm1089_vm0, %v1000_v8  ;;  %1120 = vst.msk [vmem:[%s1828_s30 + $0xf0] sm:$0xff] %vm1089_vm0, %v1080_v9 }
 0x2a1 PF: > { %s13_s18 = sadd.s32 1, %s1599_s18   ;;  %s2099_s12 = smov %s1579_s13 }
 0x2a2   : > { %p10_p0 = scmp.ge.s32.totalorder %s13_s18, 6   ;;  %s2100_s13 = smov %s1674_s25 }
 0x2a3   : > { %s2101_s14 = smov %s1591_s16  ;;  %s2102_s15 = smov %s1595_s17 }
 0x2a4   : > { %s2103_s16 = smov %s2106_s19  ;;  %s2104_s17 = smov %s2110_s20 }
 0x2a5   :  { %12 = sbr.rel (!%p10_p0) target bundleno = 4 (0x4), region = 101 }

// kernel: _lambda_.26
= control target key start
LH: loop header
LB: loop body
LE: loop exit
PB: predicated region body
PF: predicated region fallthrough
CT: control target
= control target key end

     0   :  { %s1009_s9 = smov 0   ;;  %s1011_s10 = smov 0   ;;  %s1211_s0 = inlined_call_operand.vmem [shape: f32[512,128], index: 0, kind: input, shape index: {}]   ;;  %s1212_s1 = inlined_call_operand.vmem [shape: f32[512,8], index: 1, kind: input, shape index: {}]   ;;  %s1213_s2 = inlined_call_operand.vmem [shape: f32[128,8], index: 2, kind: output, shape index: {}]  }
   0x1   :  { %s1013_s11 = smov 0  }
   0x2 LB: > { %s24_s12 = sadd.s32 1, %s987_s10  ;;  %p693_p0 = scmp.ge.s32.totalorder %s991_s11, 1  ;;  %s991_s11 = sphi %s1013_s11, %s12_s11   ;;  %s987_s10 = sphi %s1011_s10, %s1215_s10   ;;  %s983_s9 = sphi %s1009_s9, %s1214_s9  }
   0x3   : > { %p25_p1 = scmp.ge.s32.totalorder %s24_s12, 2  ;;  %p155_p2 = scmp.lt.s32.totalorder %s991_s11, 3 }
   0x5   : > { %s1217_s12 = smov (%p25_p1, %s24_s12), 0  ;;  %p156_p3 = pnand %p693_p0, %p155_p2 }
   0x6   : > { %s694_s13 = sshll.u32 (!%p156_p3), %s983_s9, 5  ;;  %p698_p5 = scmp.ne.s32.totalorder (!%p156_p3), %s983_s9, 0 }
   0x7   : > { %159 = sbr.rel (%p156_p3) target bundleno = 446 (0x1be), region = 28  ;;  %p192_p4 = scmp.lt.s32.totalorder (!%p156_p3), %s694_s13, 63 }
   0xe   : > { %s1219_s13 = smov (!%p192_p4, %s694_s13), 63  ;;  %221 = sbr.rel (%p698_p5) target bundleno = 24 (0x18), region = 32 }
   0xf   : > { %s695_s14 = sshll.u32 %s1219_s13, 3  ;;  %vm222_vm0 = vcmask (!%p698_p5), 64512   ;;  %v993_v0 = vmov (!%p698_p5), 0.0  }
  0x10   : > { %s1033_s17 = scalar_lea.vmem %s1211_s0, %s695_s14  ;;  %s1038_s20 = scalar_lea.vmem %s1212_s1, %s695_s14  ;;  %223 = vst.msk [vmem:[#allocation2] sm:$0xff] (!%p698_p5), %vm222_vm0, %v993_v0  ;;  %224 = vst.msk [vmem:[#allocation2 + $0x8] sm:$0xff] (!%p698_p5), %vm222_vm0, %v993_v0 }
  0x11   : > { %225 = vst.msk [vmem:[#allocation2 + $0x10] sm:$0xff] (!%p698_p5), %vm222_vm0, %v993_v0  ;;  %226 = vst.msk [vmem:[#allocation2 + $0x18] sm:$0xff] (!%p698_p5), %vm222_vm0, %v993_v0 }
  0x12   : > { %227 = vst.msk [vmem:[#allocation2 + $0x20] sm:$0xff] (!%p698_p5), %vm222_vm0, %v993_v0  ;;  %228 = vst.msk [vmem:[#allocation2 + $0x28] sm:$0xff] (!%p698_p5), %vm222_vm0, %v993_v0 }
  0x13   : > { %229 = vst.msk [vmem:[#allocation2 + $0x30] sm:$0xff] (!%p698_p5), %vm222_vm0, %v993_v0  ;;  %230 = vst.msk [vmem:[#allocation2 + $0x38] sm:$0xff] (!%p698_p5), %vm222_vm0, %v993_v0 }
  0x14   : > { %231 = vst.msk [vmem:[#allocation2 + $0x40] sm:$0xff] (!%p698_p5), %vm222_vm0, %v993_v0  ;;  %232 = vst.msk [vmem:[#allocation2 + $0x48] sm:$0xff] (!%p698_p5), %vm222_vm0, %v993_v0 }
  0x15   : > { %233 = vst.msk [vmem:[#allocation2 + $0x50] sm:$0xff] %vm222_vm0, %v993_v0  ;;  %234 = vst.msk [vmem:[#allocation2 + $0x58] sm:$0xff] %vm222_vm0, %v993_v0 }
  0x16   : > { %235 = vst.msk [vmem:[#allocation2 + $0x60] sm:$0xff] %vm222_vm0, %v993_v0  ;;  %236 = vst.msk [vmem:[#allocation2 + $0x68] sm:$0xff] %vm222_vm0, %v993_v0 }
  0x17   : > { %237 = vst.msk [vmem:[#allocation2 + $0x70] sm:$0xff] %vm222_vm0, %v993_v0  ;;  %238 = vst.msk [vmem:[#allocation2 + $0x78] sm:$0xff] %vm222_vm0, %v993_v0 }
  0x18 PF: > { %v255_v1 = vld [vmem:[%s1033_s17] sm:$0xff]  ;;  %v256_v3 = vld [vmem:[%s1033_s17 + $0x8] sm:$0xff]  ;;  %v257_v7 = vld [vmem:[%s1033_s17 + $0x10] sm:$0xff]  ;;  %vm544_vm1 = vcmask 64512   ;;  %p699_p6 = scmp.ne.s32.totalorder %s983_s9, 1 }
  0x19   : > { %v271_v2 = vld [vmem:[%s1033_s17 + $0x80] sm:$0xff]  ;;  %v272_v5 = vld [vmem:[%s1033_s17 + $0x88] sm:$0xff]  ;;  %v273_v8 = vld [vmem:[%s1033_s17 + $0x90] sm:$0xff] }
  0x1a   : > { %v857_v4 = vpack.i.bf16 %v255_v1, %v271_v2  ;;  %v859_v6 = vpack.i.bf16 %v256_v3, %v272_v5  ;;  %v861_v9 = vpack.i.bf16 %v257_v7, %v273_v8  ;;  %v258_v10 = vld [vmem:[%s1033_s17 + $0x18] sm:$0xff]  ;;  %v259_v12 = vld [vmem:[%s1033_s17 + $0x20] sm:$0xff]  ;;  %v304_v16 = vld [vmem:[%s1038_s20 + $0x88] sm:$0xff] }
  0x1b   : > { %v274_v11 = vld [vmem:[%s1033_s17 + $0x98] sm:$0xff]  ;;  %v275_v13 = vld [vmem:[%s1033_s17 + $0xa0] sm:$0xff]  ;;  %v288_v18 = vld [vmem:[%s1038_s20 + $0x8] sm:$0xff] }
  0x1c   : > { %858 = vxpose.xlu0.b32.start [1/16] %v857_v4, 128  ;;  %v303_v14 = vld [vmem:[%s1038_s20 + $0x80] sm:$0xff]  ;;  %v863_v15 = vpack.i.bf16 %v258_v10, %v274_v11  ;;  %v305_v21 = vld [vmem:[%s1038_s20 + $0x90] sm:$0xff]  ;;  %v306_v22 = vld [vmem:[%s1038_s20 + $0x98] sm:$0xff]  ;;  %v865_v28 = vpack.i.bf16 %v259_v12, %v275_v13 }
  0x1d   : > { %v287_v17 = vld [vmem:[%s1038_s20] sm:$0xff]  ;;  %v784_v19 = vpack.c.bf16 %v304_v16, %v303_v14  ;;  %v289_v23 = vld [vmem:[%s1038_s20 + $0x10] sm:$0xff]  ;;  %v788_v24 = vpack.c.bf16 %v306_v22, %v305_v21  ;;  %v290_v25 = vld [vmem:[%s1038_s20 + $0x18] sm:$0xff] }
  0x1e   : > { %v786_v20 = vpack.c.bf16 %v288_v18, %v287_v17  ;;  %v307_v26 = vld [vmem:[%s1038_s20 + $0xa0] sm:$0xff]  ;;  %v308_v27 = vld [vmem:[%s1038_s20 + $0xa8] sm:$0xff]  ;;  %v790_v30 = vpack.c.bf16 %v290_v25, %v289_v23  ;;  %v309_v35 = vld [vmem:[%s1038_s20 + $0xb0] sm:$0xff] }
  0x1f   : > { %785 = vmatprep.subr.bf16.mxu0 %v784_v19  ;;  %816 = vmatprep.subr.bf16.mxu1 %v784_v19  ;;  %v260_v29 = vld [vmem:[%s1033_s17 + $0x28] sm:$0xff]  ;;  %v792_v32 = vpack.c.bf16 %v308_v27, %v307_v26  ;;  %v291_v33 = vld [vmem:[%s1038_s20 + $0x20] sm:$0xff]  ;;  %v310_v36 = vld [vmem:[%s1038_s20 + $0xb8] sm:$0xff] }
  0x20   : > { %860 = vxpose.xlu0.b32.cont [2/16] %v859_v6, 128  ;;  %787 = vmatpush3.bf16.msra.mxu0 %v786_v20  ;;  %v276_v31 = vld [vmem:[%s1033_s17 + $0xa8] sm:$0xff]  ;;  %v261_v38 = vld [vmem:[%s1033_s17 + $0x30] sm:$0xff]  ;;  %v796_v41 = vpack.c.bf16 %v310_v36, %v309_v35  ;;  %v294_v43 = vld [vmem:[%s1038_s20 + $0x38] sm:$0xff] }
  0x21   : > { %789 = vmatprep.subr.bf16.mxu0 %v788_v24  ;;  %v292_v34 = vld [vmem:[%s1038_s20 + $0x28] sm:$0xff]  ;;  %824 = vmatpush3.bf16.msra.mxu1 %v786_v20  ;;  %v867_v37 = vpack.i.bf16 %v260_v29, %v276_v31  ;;  %v277_v40 = vld [vmem:[%s1033_s17 + $0xb0] sm:$0xff]  ;;  %v311_v44 = vld [vmem:[%s1038_s20 + $0xc0] sm:$0xff] }
  0x22   : > { %817 = vmatprep.subr.bf16.mxu1 %v788_v24  ;;  %v794_v39 = vpack.c.bf16 %v292_v34, %v291_v33  ;;  %v293_v42 = vld [vmem:[%s1038_s20 + $0x30] sm:$0xff]  ;;  %v312_v45 = vld [vmem:[%s1038_s20 + $0xc8] sm:$0xff]  ;;  %v869_v46 = vpack.i.bf16 %v261_v38, %v277_v40  ;;  %v262_v47 = vld [vmem:[%s1033_s17 + $0x38] sm:$0xff] }
  0x23   : > { %v798_v48 = vpack.c.bf16 %v294_v43, %v293_v42  ;;  %v278_v49 = vld [vmem:[%s1033_s17 + $0xb8] sm:$0xff]  ;;  %v800_v50 = vpack.c.bf16 %v312_v45, %v311_v44  ;;  %v295_v51 = vld [vmem:[%s1038_s20 + $0x40] sm:$0xff]  ;;  %v296_v52 = vld [vmem:[%s1038_s20 + $0x48] sm:$0xff] }
  0x24   : > { %862 = vxpose.xlu0.b32.cont [3/16] %v861_v9, 128  ;;  %791 = vmatpush3.bf16.msra.mxu0 %v790_v30  ;;  %v313_v53 = vld [vmem:[%s1038_s20 + $0xd0] sm:$0xff]  ;;  %v314_v54 = vld [vmem:[%s1038_s20 + $0xd8] sm:$0xff]  ;;  %v871_v55 = vpack.i.bf16 %v262_v47, %v278_v49  ;;  %v263_v56 = vld [vmem:[%s1033_s17 + $0x40] sm:$0xff]  ;;  %v802_v57 = vpack.c.bf16 %v296_v52, %v295_v51 }
  0x25   : > { %793 = vmatprep.subr.bf16.mxu0 %v792_v32  ;;  %825 = vmatpush3.bf16.msra.mxu1 %v790_v30  ;;  %v279_v58 = vld [vmem:[%s1033_s17 + $0xc0] sm:$0xff]  ;;  %v804_v59 = vpack.c.bf16 %v314_v54, %v313_v53  ;;  %v297_v60 = vld [vmem:[%s1038_s20 + $0x50] sm:$0xff]  ;;  %v298_v61 = vld [vmem:[%s1038_s20 + $0x58] sm:$0xff] }
  0x26   : > { %818 = vmatprep.subr.bf16.mxu1 %v792_v32  ;;  %v315_v62 = vld [vmem:[%s1038_s20 + $0xe0] sm:$0xff]  ;;  %v316_v63 = vld [vmem:[%s1038_s20 + $0xe8] sm:$0xff]  ;;  %v873_v0 = vpack.i.bf16 %v263_v56, %v279_v58  ;;  %v806_v2 = vpack.c.bf16 %v298_v61, %v297_v60  ;;  %v317_v7 = vld [vmem:[%s1038_s20 + $0xf0] sm:$0xff] }
  0x27   : > { %v264_v1 = vld [vmem:[%s1033_s17 + $0x48] sm:$0xff]  ;;  %v808_v4 = vpack.c.bf16 %v316_v63, %v315_v62  ;;  %v299_v5 = vld [vmem:[%s1038_s20 + $0x60] sm:$0xff]  ;;  %v318_v8 = vld [vmem:[%s1038_s20 + $0xf8] sm:$0xff] }
  0x28   : > { %864 = vxpose.xlu0.b32.cont [4/16] %v863_v15, 128  ;;  %795 = vmatpush3.bf16.msra.mxu0 %v794_v39  ;;  %v280_v3 = vld [vmem:[%s1033_s17 + $0xc8] sm:$0xff]  ;;  %v265_v10 = vld [vmem:[%s1033_s17 + $0x50] sm:$0xff]  ;;  %v812_v13 = vpack.c.bf16 %v318_v8, %v317_v7  ;;  %v302_v15 = vld [vmem:[%s1038_s20 + $0x78] sm:$0xff] }
  0x29   : > { %797 = vmatprep.subr.bf16.mxu0 %v796_v41  ;;  %826 = vmatpush3.bf16.msra.mxu1 %v794_v39  ;;  %v300_v6 = vld [vmem:[%s1038_s20 + $0x68] sm:$0xff]  ;;  %v875_v9 = vpack.i.bf16 %v264_v1, %v280_v3  ;;  %v281_v12 = vld [vmem:[%s1033_s17 + $0xd0] sm:$0xff]  ;;  %v266_v18 = vld [vmem:[%s1033_s17 + $0x58] sm:$0xff] }
  0x2a   : > { %819 = vmatprep.subr.bf16.mxu1 %v796_v41  ;;  %v810_v11 = vpack.c.bf16 %v300_v6, %v299_v5  ;;  %v301_v14 = vld [vmem:[%s1038_s20 + $0x70] sm:$0xff]  ;;  %v877_v16 = vpack.i.bf16 %v265_v10, %v281_v12  ;;  %v282_v19 = vld [vmem:[%s1033_s17 + $0xd8] sm:$0xff]  ;;  %v267_v21 = vld [vmem:[%s1033_s17 + $0x60] sm:$0xff] }
  0x2b   : > { %v814_v17 = vpack.c.bf16 %v302_v15, %v301_v14  ;;  %v879_v20 = vpack.i.bf16 %v266_v18, %v282_v19  ;;  %v283_v22 = vld [vmem:[%s1033_s17 + $0xe0] sm:$0xff]  ;;  %v268_v24 = vld [vmem:[%s1033_s17 + $0x68] sm:$0xff]  ;;  %v269_v27 = vld [vmem:[%s1033_s17 + $0x70] sm:$0xff] }
  0x2c   : > { %866 = vxpose.xlu0.b32.cont [5/16] %v865_v28, 128  ;;  %799 = vmatpush3.bf16.msra.mxu0 %v798_v48  ;;  %v881_v23 = vpack.i.bf16 %v267_v21, %v283_v22  ;;  %v284_v25 = vld [vmem:[%s1033_s17 + $0xe8] sm:$0xff]  ;;  %v285_v28 = vld [vmem:[%s1033_s17 + $0xf0] sm:$0xff]  ;;  %v270_v30 = vld [vmem:[%s1033_s17 + $0x78] sm:$0xff] }
  0x2d   : > { %801 = vmatprep.subr.bf16.mxu0 %v800_v50  ;;  %827 = vmatpush3.bf16.msra.mxu1 %v798_v48  ;;  %v883_v26 = vpack.i.bf16 %v268_v24, %v284_v25  ;;  %v885_v29 = vpack.i.bf16 %v269_v27, %v285_v28  ;;  %v286_v31 = vld [vmem:[%s1033_s17 + $0xf8] sm:$0xff]  ;;  %v239_v18 = vld [vmem:[#allocation2] sm:$0xff]  ;;  %v241_v28 = vld [vmem:[#allocation2 + $0x10] sm:$0xff] }
  0x2e   : > { %820 = vmatprep.subr.bf16.mxu1 %v800_v50  ;;  %v887_v32 = vpack.i.bf16 %v270_v30, %v286_v31 }
  0x30   : > { %868 = vxpose.xlu0.b32.cont [6/16] %v867_v37, 128  ;;  %803 = vmatpush3.bf16.msra.mxu0 %v802_v57 }
  0x31   : > { %805 = vmatprep.subr.bf16.mxu0 %v804_v59  ;;  %828 = vmatpush3.bf16.msra.mxu1 %v802_v57 }
  0x32   : > { %821 = vmatprep.subr.bf16.mxu1 %v804_v59 }
  0x34   : > { %870 = vxpose.xlu0.b32.cont [7/16] %v869_v46, 128  ;;  %807 = vmatpush3.bf16.msra.mxu0 %v806_v2 }
  0x35   : > { %809 = vmatprep.subr.bf16.mxu0 %v808_v4  ;;  %829 = vmatpush3.bf16.msra.mxu1 %v806_v2 }
  0x36   : > { %822 = vmatprep.subr.bf16.mxu1 %v808_v4 }
  0x38   : > { %872 = vxpose.xlu0.b32.cont [8/16] %v871_v55, 128  ;;  %811 = vmatpush3.bf16.msra.mxu0 %v810_v11 }
  0x39   : > { %813 = vmatprep.subr.bf16.mxu0 %v812_v13  ;;  %830 = vmatpush3.bf16.msra.mxu1 %v810_v11 }
  0x3a   : > { %823 = vmatprep.subr.bf16.mxu1 %v812_v13 }
  0x3c   : > { %874 = vxpose.xlu0.b32.cont [9/16] %v873_v0, 128  ;;  %815 = vmatpush3.bf16.msra.mxu0 %v814_v17 }
  0x3d   : > { %831 = vmatpush3.bf16.msra.mxu1 %v814_v17 }
  0x40   : > { %876 = vxpose.xlu0.b32.cont [10/16] %v875_v9, 128 }
  0x44   : > { %878 = vxpose.xlu0.b32.cont [11/16] %v877_v16, 128 }
  0x48   : > { %880 = vxpose.xlu0.b32.cont [12/16] %v879_v20, 128 }
  0x4c   : > { %882 = vxpose.xlu0.b32.cont [13/16] %v881_v23, 128  ;;  %v240_v23 = vld [vmem:[#allocation2 + $0x8] sm:$0xff] }
  0x50   : > { %884 = vxpose.xlu0.b32.cont [14/16] %v883_v26, 128 }
  0x54   : > { %886 = vxpose.xlu0.b32.cont [15/16] %v885_v29, 128 }
  0x58   : > { %888 = vxpose.xlu0.b32.end [16/16] %v887_v32, 128 }
  0x9c   : > { %v889_v33 = vpop.trf.xlu0 }
  0x9d   : > { %v890_v34 = vunpack.i.l.bf16 %v889_v33  ;;  %v893_v35 = vunpack.i.h.bf16 %v889_v33  ;;  %v242_v33 = vld [vmem:[#allocation2 + $0x18] sm:$0xff] }
  0x9f   : > { %447 = vmatprep.mubr.f32.mxu0 %v890_v34 }
  0xa0   : > { %v894_v36 = vpop.trf.xlu0  ;;  %448 = vmatmul.mubr.f32.vlgmr.msra.gmra.mrb[0].mxu0 %v893_v35 }
  0xa1   : > { %v895_v37 = vunpack.i.l.bf16 %v894_v36  ;;  %v898_v38 = vunpack.i.h.bf16 %v894_v36 }
  0xa3   : > { %452 = vmatprep.mubr.f32.mxu0 %v895_v37 }
  0xa4   : > { %v899_v39 = vpop.trf.xlu0  ;;  %453 = vmatmul.mubr.f32.gmra.mrb[2].mxu0 %v898_v38  ;;  %v243_v38 = vld [vmem:[#allocation2 + $0x20] sm:$0xff] }
  0xa5   : > { %v900_v40 = vunpack.i.l.bf16 %v899_v39  ;;  %v903_v41 = vunpack.i.h.bf16 %v899_v39 }
  0xa7   : > { %457 = vmatprep.mubr.f32.mxu0 %v900_v40 }
  0xa8   : > { %v904_v42 = vpop.trf.xlu0  ;;  %458 = vmatmul.mubr.f32.gmra.mrb[4].mxu0 %v903_v41 }
  0xa9   : > { %v905_v43 = vunpack.i.l.bf16 %v904_v42  ;;  %v908_v44 = vunpack.i.h.bf16 %v904_v42 }
  0xab   : > { %462 = vmatprep.mubr.f32.mxu0 %v905_v43  ;;  %v244_v43 = vld [vmem:[#allocation2 + $0x28] sm:$0xff] }
  0xac   : > { %v909_v45 = vpop.trf.xlu0  ;;  %463 = vmatmul.mubr.f32.gmra.mrb[6].mxu0 %v908_v44 }
  0xad   : > { %v910_v46 = vunpack.i.l.bf16 %v909_v45  ;;  %v913_v47 = vunpack.i.h.bf16 %v909_v45 }
  0xaf   : > { %467 = vmatprep.mubr.f32.mxu0 %v910_v46 }
  0xb0   : > { %v914_v48 = vpop.trf.xlu0  ;;  %468 = vmatmul.mubr.f32.gmra.mrb[8].mxu0 %v913_v47 }
  0xb1   : > { %v915_v49 = vunpack.i.l.bf16 %v914_v48  ;;  %v918_v50 = vunpack.i.h.bf16 %v914_v48  ;;  %v245_v48 = vld [vmem:[#allocation2 + $0x30] sm:$0xff] }
  0xb3   : > { %472 = vmatprep.mubr.f32.mxu0 %v915_v49 }
  0xb4   : > { %v919_v51 = vpop.trf.xlu0  ;;  %473 = vmatmul.mubr.f32.gmra.mrb[10].mxu0 %v918_v50 }
  0xb5   : > { %v920_v52 = vunpack.i.l.bf16 %v919_v51  ;;  %v923_v53 = vunpack.i.h.bf16 %v919_v51 }
  0xb7   : > { %477 = vmatprep.mubr.f32.mxu0 %v920_v52 }
  0xb8   : > { %v924_v54 = vpop.trf.xlu0  ;;  %478 = vmatmul.mubr.f32.gmra.mrb[12].mxu0 %v923_v53  ;;  %v246_v53 = vld [vmem:[#allocation2 + $0x38] sm:$0xff] }
  0xb9   : > { %v925_v55 = vunpack.i.l.bf16 %v924_v54  ;;  %v928_v56 = vunpack.i.h.bf16 %v924_v54 }
  0xbb   : > { %482 = vmatprep.mubr.f32.mxu0 %v925_v55 }
  0xbc   : > { %v929_v57 = vpop.trf.xlu0  ;;  %483 = vmatmul.mubr.f32.gmra.mrb[14].mxu0 %v928_v56 }
  0xbd   : > { %v930_v58 = vunpack.i.l.bf16 %v929_v57  ;;  %v933_v59 = vunpack.i.h.bf16 %v929_v57 }
  0xbf   : > { %487 = vmatprep.mubr.f32.mxu1 %v930_v58  ;;  %v247_v58 = vld [vmem:[#allocation2 + $0x40] sm:$0xff] }
  0xc0   : > { %v934_v60 = vpop.trf.xlu0  ;;  %488 = vmatmul.mubr.f32.vlgmr.msra.gmra.mrb[0].mxu1 %v933_v59 }
  0xc1   : > { %v935_v61 = vunpack.i.l.bf16 %v934_v60  ;;  %v938_v62 = vunpack.i.h.bf16 %v934_v60 }
  0xc3   : > { %492 = vmatprep.mubr.f32.mxu1 %v935_v61 }
  0xc4   : > { %v939_v63 = vpop.trf.xlu0  ;;  %493 = vmatmul.mubr.f32.gmra.mrb[2].mxu1 %v938_v62 }
  0xc5   : > { %v940_v0 = vunpack.i.l.bf16 %v939_v63  ;;  %v943_v1 = vunpack.i.h.bf16 %v939_v63  ;;  %v248_v63 = vld [vmem:[#allocation2 + $0x48] sm:$0xff] }
  0xc7   : > { %497 = vmatprep.mubr.f32.mxu1 %v940_v0 }
  0xc8   : > { %v944_v2 = vpop.trf.xlu0  ;;  %498 = vmatmul.mubr.f32.gmra.mrb[4].mxu1 %v943_v1 }
  0xc9   : > { %v945_v3 = vunpack.i.l.bf16 %v944_v2  ;;  %v948_v4 = vunpack.i.h.bf16 %v944_v2 }
  0xcb   : > { %502 = vmatprep.mubr.f32.mxu1 %v945_v3 }
  0xcc   : > { %v949_v5 = vpop.trf.xlu0  ;;  %503 = vmatmul.mubr.f32.gmra.mrb[6].mxu1 %v948_v4  ;;  %v249_v4 = vld [vmem:[#allocation2 + $0x50] sm:$0xff] }
  0xcd   : > { %v950_v6 = vunpack.i.l.bf16 %v949_v5  ;;  %v953_v7 = vunpack.i.h.bf16 %v949_v5 }
  0xcf   : > { %507 = vmatprep.mubr.f32.mxu1 %v950_v6 }
  0xd0   : > { %v954_v8 = vpop.trf.xlu0  ;;  %508 = vmatmul.mubr.f32.gmra.mrb[8].mxu1 %v953_v7 }
  0xd1   : > { %v955_v9 = vunpack.i.l.bf16 %v954_v8  ;;  %v958_v10 = vunpack.i.h.bf16 %v954_v8 }
  0xd3   : > { %512 = vmatprep.mubr.f32.mxu1 %v955_v9  ;;  %v250_v9 = vld [vmem:[#allocation2 + $0x58] sm:$0xff] }
  0xd4   : > { %v959_v11 = vpop.trf.xlu0  ;;  %513 = vmatmul.mubr.f32.gmra.mrb[10].mxu1 %v958_v10 }
  0xd5   : > { %v960_v12 = vunpack.i.l.bf16 %v959_v11  ;;  %v963_v13 = vunpack.i.h.bf16 %v959_v11 }
  0xd7   : > { %517 = vmatprep.mubr.f32.mxu1 %v960_v12 }
  0xd8   : > { %v964_v14 = vpop.trf.xlu0  ;;  %518 = vmatmul.mubr.f32.gmra.mrb[12].mxu1 %v963_v13 }
  0xd9   : > { %v968_v15 = vunpack.i.h.bf16 %v964_v14  ;;  %v965_v16 = vunpack.i.l.bf16 %v964_v14  ;;  %v251_v14 = vld [vmem:[#allocation2 + $0x60] sm:$0xff] }
  0xdb   : > { %522 = vmatprep.mubr.f32.mxu1 %v965_v16 }
  0xdc   : > { %523 = vmatmul.mubr.f32.gmra.mrb[14].mxu1 %v968_v15 }
 0x173   : > { %v736_v17 = vpop.f32.mrb[0].mxu0 }
 0x174   : > { %v737_v19 = vpop.f32.mrb[1].mxu0 }
 0x175   : > { %v738_v20 = vadd.f32 %v737_v19, %v736_v17  ;;  %v252_v19 = vld [vmem:[#allocation2 + $0x68] sm:$0xff] }
 0x177   : > { %v528_v21 = vadd.f32 %v738_v20, %v239_v18  ;;  %v739_v22 = vpop.f32.mrb[2].mxu0 }
 0x178   : > { %v740_v24 = vpop.f32.mrb[3].mxu0 }
 0x179   : > { %545 = vst.msk [vmem:[#allocation2] sm:$0xff] %vm544_vm1, %v528_v21  ;;  %v741_v25 = vadd.f32 %v740_v24, %v739_v22  ;;  %v253_v24 = vld [vmem:[#allocation2 + $0x70] sm:$0xff] }
 0x17b   : > { %v529_v26 = vadd.f32 %v741_v25, %v240_v23  ;;  %v742_v27 = vpop.f32.mrb[4].mxu0 }
 0x17c   : > { %v743_v29 = vpop.f32.mrb[5].mxu0 }
 0x17d   : > { %546 = vst.msk [vmem:[#allocation2 + $0x8] sm:$0xff] %vm544_vm1, %v529_v26  ;;  %v744_v30 = vadd.f32 %v743_v29, %v742_v27  ;;  %v254_v29 = vld [vmem:[#allocation2 + $0x78] sm:$0xff] }
 0x17f   : > { %v530_v31 = vadd.f32 %v744_v30, %v241_v28  ;;  %v745_v32 = vpop.f32.mrb[6].mxu0 }
 0x180   : > { %v746_v34 = vpop.f32.mrb[7].mxu0 }
 0x181   : > { %547 = vst.msk [vmem:[#allocation2 + $0x10] sm:$0xff] %vm544_vm1, %v530_v31  ;;  %v747_v35 = vadd.f32 %v746_v34, %v745_v32 }
 0x183   : > { %v531_v36 = vadd.f32 %v747_v35, %v242_v33  ;;  %v748_v37 = vpop.f32.mrb[8].mxu0  ;;  %v565_v33 = vld [vmem:[#allocation2] sm:$0xff] (!%p699_p6) }
 0x184   : > { %v749_v39 = vpop.f32.mrb[9].mxu0  ;;  %v566_v34 = vld [vmem:[#allocation2 + $0x8] sm:$0xff] (!%p699_p6)  ;;  %581 = vst.msk [vmem:[%s1213_s2] sm:$0xff] (!%p699_p6), %vm544_vm1, %v565_v33 }
 0x185   : > { %548 = vst.msk [vmem:[#allocation2 + $0x18] sm:$0xff] %vm544_vm1, %v531_v36  ;;  %v750_v40 = vadd.f32 %v749_v39, %v748_v37  ;;  %582 = vst.msk [vmem:[%s1213_s2 + $0x8] sm:$0xff] (!%p699_p6), %vm544_vm1, %v566_v34 }
 0x187   : > { %v532_v41 = vadd.f32 %v750_v40, %v243_v38  ;;  %v751_v42 = vpop.f32.mrb[10].mxu0 }
 0x188   : > { %v752_v44 = vpop.f32.mrb[11].mxu0  ;;  %v567_v35 = vld [vmem:[#allocation2 + $0x10] sm:$0xff] (!%p699_p6) }
 0x189   : > { %549 = vst.msk [vmem:[#allocation2 + $0x20] sm:$0xff] %vm544_vm1, %v532_v41  ;;  %v753_v45 = vadd.f32 %v752_v44, %v751_v42  ;;  %583 = vst.msk [vmem:[%s1213_s2 + $0x10] sm:$0xff] (!%p699_p6), %vm544_vm1, %v567_v35 }
 0x18b   : > { %v533_v46 = vadd.f32 %v753_v45, %v244_v43  ;;  %v754_v47 = vpop.f32.mrb[12].mxu0 }
 0x18c   : > { %v755_v49 = vpop.f32.mrb[13].mxu0  ;;  %v568_v36 = vld [vmem:[#allocation2 + $0x18] sm:$0xff] (!%p699_p6) }
 0x18d   : > { %550 = vst.msk [vmem:[#allocation2 + $0x28] sm:$0xff] %vm544_vm1, %v533_v46  ;;  %v756_v50 = vadd.f32 %v755_v49, %v754_v47  ;;  %584 = vst.msk [vmem:[%s1213_s2 + $0x18] sm:$0xff] (!%p699_p6), %vm544_vm1, %v568_v36 }
 0x18f   : > { %v534_v51 = vadd.f32 %v756_v50, %v245_v48  ;;  %v757_v52 = vpop.f32.mrb[14].mxu0 }
 0x190   : > { %v758_v54 = vpop.f32.mrb[15].mxu0  ;;  %v569_v37 = vld [vmem:[#allocation2 + $0x20] sm:$0xff] (!%p699_p6) }
 0x191   : > { %551 = vst.msk [vmem:[#allocation2 + $0x30] sm:$0xff] %vm544_vm1, %v534_v51  ;;  %v759_v55 = vadd.f32 %v758_v54, %v757_v52  ;;  %585 = vst.msk [vmem:[%s1213_s2 + $0x20] sm:$0xff] (!%p699_p6), %vm544_vm1, %v569_v37 }
 0x193   : > { %v535_v56 = vadd.f32 %v759_v55, %v246_v53  ;;  %v760_v57 = vpop.f32.mrb[0].mxu1 }
 0x194   : > { %v761_v59 = vpop.f32.mrb[1].mxu1  ;;  %v570_v38 = vld [vmem:[#allocation2 + $0x28] sm:$0xff] (!%p699_p6) }
 0x195   : > { %552 = vst.msk [vmem:[#allocation2 + $0x38] sm:$0xff] %vm544_vm1, %v535_v56  ;;  %v762_v60 = vadd.f32 %v761_v59, %v760_v57  ;;  %586 = vst.msk [vmem:[%s1213_s2 + $0x28] sm:$0xff] (!%p699_p6), %vm544_vm1, %v570_v38 }
 0x197   : > { %v536_v61 = vadd.f32 %v762_v60, %v247_v58  ;;  %v763_v62 = vpop.f32.mrb[2].mxu1 }
 0x198   : > { %v764_v0 = vpop.f32.mrb[3].mxu1  ;;  %v571_v39 = vld [vmem:[#allocation2 + $0x30] sm:$0xff] (!%p699_p6) }
 0x199   : > { %553 = vst.msk [vmem:[#allocation2 + $0x40] sm:$0xff] %vm544_vm1, %v536_v61  ;;  %v765_v1 = vadd.f32 %v764_v0, %v763_v62  ;;  %587 = vst.msk [vmem:[%s1213_s2 + $0x30] sm:$0xff] (!%p699_p6), %vm544_vm1, %v571_v39 }
 0x19b   : > { %v537_v2 = vadd.f32 %v765_v1, %v248_v63  ;;  %v766_v3 = vpop.f32.mrb[4].mxu1 }
 0x19c   : > { %v767_v5 = vpop.f32.mrb[5].mxu1  ;;  %v572_v40 = vld [vmem:[#allocation2 + $0x38] sm:$0xff] (!%p699_p6) }
 0x19d   : > { %554 = vst.msk [vmem:[#allocation2 + $0x48] sm:$0xff] %vm544_vm1, %v537_v2  ;;  %v768_v6 = vadd.f32 %v767_v5, %v766_v3  ;;  %588 = vst.msk [vmem:[%s1213_s2 + $0x38] sm:$0xff] (!%p699_p6), %vm544_vm1, %v572_v40 }
 0x19f   : > { %v538_v7 = vadd.f32 %v768_v6, %v249_v4  ;;  %v769_v8 = vpop.f32.mrb[6].mxu1 }
 0x1a0   : > { %v770_v10 = vpop.f32.mrb[7].mxu1  ;;  %v573_v41 = vld [vmem:[#allocation2 + $0x40] sm:$0xff] (!%p699_p6) }
 0x1a1   : > { %555 = vst.msk [vmem:[#allocation2 + $0x50] sm:$0xff] %vm544_vm1, %v538_v7  ;;  %v771_v11 = vadd.f32 %v770_v10, %v769_v8  ;;  %589 = vst.msk [vmem:[%s1213_s2 + $0x40] sm:$0xff] (!%p699_p6), %vm544_vm1, %v573_v41 }
 0x1a3   : > { %v539_v12 = vadd.f32 %v771_v11, %v250_v9  ;;  %v772_v13 = vpop.f32.mrb[8].mxu1 }
 0x1a4   : > { %v773_v15 = vpop.f32.mrb[9].mxu1  ;;  %v574_v42 = vld [vmem:[#allocation2 + $0x48] sm:$0xff] (!%p699_p6) }
 0x1a5   : > { %556 = vst.msk [vmem:[#allocation2 + $0x58] sm:$0xff] %vm544_vm1, %v539_v12  ;;  %v774_v16 = vadd.f32 %v773_v15, %v772_v13  ;;  %590 = vst.msk [vmem:[%s1213_s2 + $0x48] sm:$0xff] (!%p699_p6), %vm544_vm1, %v574_v42 }
 0x1a7   : > { %v540_v17 = vadd.f32 %v774_v16, %v251_v14  ;;  %v775_v18 = vpop.f32.mrb[10].mxu1 }
 0x1a8   : > { %v776_v20 = vpop.f32.mrb[11].mxu1  ;;  %v575_v43 = vld [vmem:[#allocation2 + $0x50] sm:$0xff] (!%p699_p6) }
 0x1a9   : > { %557 = vst.msk [vmem:[#allocation2 + $0x60] sm:$0xff] %vm544_vm1, %v540_v17  ;;  %v777_v21 = vadd.f32 %v776_v20, %v775_v18  ;;  %591 = vst.msk [vmem:[%s1213_s2 + $0x50] sm:$0xff] (!%p699_p6), %vm544_vm1, %v575_v43 }
 0x1ab   : > { %v541_v22 = vadd.f32 %v777_v21, %v252_v19  ;;  %v778_v23 = vpop.f32.mrb[12].mxu1 }
 0x1ac   : > { %v779_v25 = vpop.f32.mrb[13].mxu1  ;;  %v576_v44 = vld [vmem:[#allocation2 + $0x58] sm:$0xff] (!%p699_p6) }
 0x1ad   : > { %558 = vst.msk [vmem:[#allocation2 + $0x68] sm:$0xff] %vm544_vm1, %v541_v22  ;;  %v780_v26 = vadd.f32 %v779_v25, %v778_v23  ;;  %592 = vst.msk [vmem:[%s1213_s2 + $0x58] sm:$0xff] (!%p699_p6), %vm544_vm1, %v576_v44 }
 0x1af   : > { %v542_v27 = vadd.f32 %v780_v26, %v253_v24  ;;  %v781_v28 = vpop.f32.mrb[14].mxu1  ;;  %564 = sbr.rel (%p699_p6) target bundleno = 446 (0x1be), region = 36 }
 0x1b0   : > { %v782_v30 = vpop.f32.mrb[15].mxu1  ;;  %v577_v45 = vld [vmem:[#allocation2 + $0x60] sm:$0xff] (!%p699_p6) }
 0x1b1   : > { %559 = vst.msk [vmem:[#allocation2 + $0x70] sm:$0xff] %vm544_vm1, %v542_v27  ;;  %v783_v31 = vadd.f32 %v782_v30, %v781_v28  ;;  %593 = vst.msk [vmem:[%s1213_s2 + $0x60] sm:$0xff] (!%p699_p6), %vm544_vm1, %v577_v45 }
 0x1b3   : > { %v543_v32 = vadd.f32 %v783_v31, %v254_v29 }
 0x1b4   : > { %v578_v46 = vld [vmem:[#allocation2 + $0x68] sm:$0xff] (!%p699_p6) }
 0x1b5   : > { %560 = vst.msk [vmem:[#allocation2 + $0x78] sm:$0xff] %vm544_vm1, %v543_v32  ;;  %594 = vst.msk [vmem:[%s1213_s2 + $0x68] sm:$0xff] (!%p699_p6), %vm544_vm1, %v578_v46 }
 0x1b8   : > { %v579_v47 = vld [vmem:[#allocation2 + $0x70] sm:$0xff] }
 0x1b9   : > { %595 = vst.msk [vmem:[%s1213_s2 + $0x70] sm:$0xff] %vm544_vm1, %v579_v47 }
 0x1bc   : > { %v580_v48 = vld [vmem:[#allocation2 + $0x78] sm:$0xff] }
 0x1bd   : > { %596 = vst.msk [vmem:[%s1213_s2 + $0x78] sm:$0xff] %vm544_vm1, %v580_v48 }
 0x1be PF: > { %s12_s11 = sadd.s32 1, %s991_s11   ;;  %s1214_s9 = smov %s987_s10 }
 0x1bf   : > { %p9_p7 = scmp.ge.s32.totalorder %s12_s11, 4   ;;  %s1215_s10 = smov %s1217_s12 }
 0x1c1   :  { %11 = sbr.rel (!%p9_p7) target bundleno = 2 (0x2), region = 69 }

// kernel: _lambda_.25
= control target key start
LH: loop header
LB: loop body
LE: loop exit
PB: predicated region body
PF: predicated region fallthrough
CT: control target
= control target key end

     0   :  { %s1217_s9 = smov 0   ;;  %s1219_s10 = smov 0   ;;  %s1705_s0 = inlined_call_operand.vmem [shape: f32[512,512], index: 0, kind: input, shape index: {}]   ;;  %s1706_s1 = inlined_call_operand.vmem [shape: f32[512,8], index: 1, kind: input, shape index: {}]   ;;  %s1707_s2 = inlined_call_operand.vmem [shape: f32[512,8], index: 2, kind: output, shape index: {}]  }
   0x1   :  { %s1221_s11 = smov 0   ;;  %s1223_s12 = smov 0  }
   0x2   :  { %s1225_s13 = smov 0   ;;  %s1227_s14 = smov 0  }
   0x3   :  { %s1229_s15 = smov 0  }
   0x4 LB: > { %s24_s16 = sadd.s32 1, %s1190_s13  ;;  %s31_s17 = sadd.s32 1, %s1194_s14  ;;  %s1198_s15 = sphi %s1229_s15, %s12_s15   ;;  %s1194_s14 = sphi %s1227_s14, %s1713_s14   ;;  %s1190_s13 = sphi %s1225_s13, %s1712_s13   ;;  %s1186_s12 = sphi %s1223_s12, %s1711_s12   ;;  %s1182_s11 = sphi %s1221_s11, %s1710_s11   ;;  %s1178_s10 = sphi %s1219_s10, %s1709_s10   ;;  %s1174_s9 = sphi %s1217_s9, %s1708_s9  }
   0x5   : > { %p25_p0 = scmp.ge.s32.totalorder %s24_s16, 2  ;;  %p47_p1 = scmp.ne.s32.totalorder %s1178_s10, %s1174_s9 }
   0x6   : > { %p48_p2 = scmp.eq.s32.totalorder %s1198_s15, 0  ;;  %s40_s21 = sadd.s32 1, %s1178_s10 }
   0x7   : > { %s1715_s16 = smov (%p25_p0, %s24_s16), 0  ;;  %s1717_s17 = smov (!%p25_p0, %s31_s17), %s1194_s14 }
   0x8   : > { %p49_p3 = por %p48_p2, %p47_p1  ;;  %p33_p4 = scmp.ge.s32.totalorder %s1717_s17, 2 }
   0x9   : > { %s36_s18 = ssub.s32 %s1190_s13, %s1715_s16  ;;  %p989_p6 = scmp.ge.s32.totalorder %s1198_s15, 4 }
   0xa   : > { %s1719_s17 = smov (%p33_p4, %s1717_s17), 0 }
   0xb   : > { %s35_s19 = ssub.s32 %s1194_s14, %s1719_s17  ;;  %129 = sbr.rel (%p989_p6) target bundleno = 57 (0x39), region = 16 }
   0xc   : > { %s37_s20 = sor.u32 %s36_s18, %s35_s19 }
   0xd   : > { %p38_p5 = scmp.eq.s32.totalorder %s37_s20, 0 }
   0xf   : > { %s1268_s22 = scalar_select %p38_p5, %s1178_s10, %s40_s21  }
  0x12   : > { %132 = sbr.rel (!%p49_p3) target bundleno = 57 (0x39), region = 20  ;;  %s134_s23 = sand.u32 (%p49_p3), 1, %s1178_s10  }
  0x13   : > { %s992_s24 = sshll.u32 (%p49_p3), %s1190_s13, 1  ;;  %s990_s25 = sshll.u32 (%p49_p3), %s134_s23, 9 }
  0x14   : > { %s1005_s26 = sshll.u32 (%p49_p3), %s1194_s14, 7  ;;  %s1282_s4 = scalar_lea.vmem (%p49_p3), [#allocation3], %s990_s25 }
  0x15   : > { %s140_s27 = sadd.s32 (%p49_p3), %s1005_s26, %s992_s24 }
  0x16   : > { %s994_s28 = sshll.u32 (%p49_p3), %s140_s27, 3 }
  0x17   : > { %s1277_s3 = scalar_lea.vmem (%p49_p3), %s1705_s0, %s994_s28 }
  0x18   : > { %v155_v0 = vld [vmem:[%s1277_s3] sm:$0xff] (%p49_p3)  ;;  %v157_v1 = vld [vmem:[%s1277_s3 + $0x8] sm:$0xff] (%p49_p3) }
  0x19   : > { %v159_v2 = vld [vmem:[%s1277_s3 + $0x20] sm:$0xff]  ;;  %156 = vst [vmem:[%s1282_s4] sm:$0xff] %v155_v0  ;;  %158 = vst [vmem:[%s1282_s4 + $0x8] sm:$0xff] %v157_v1  ;;  %v161_v3 = vld [vmem:[%s1277_s3 + $0x28] sm:$0xff] }
  0x1a   : > { %160 = vst [vmem:[%s1282_s4 + $0x10] sm:$0xff] %v159_v2  ;;  %v163_v4 = vld [vmem:[%s1277_s3 + $0x40] sm:$0xff]  ;;  %v165_v5 = vld [vmem:[%s1277_s3 + $0x48] sm:$0xff]  ;;  %162 = vst [vmem:[%s1282_s4 + $0x18] sm:$0xff] %v161_v3 }
  0x1b   : > { %164 = vst [vmem:[%s1282_s4 + $0x20] sm:$0xff] %v163_v4  ;;  %166 = vst [vmem:[%s1282_s4 + $0x28] sm:$0xff] %v165_v5  ;;  %v167_v6 = vld [vmem:[%s1277_s3 + $0x60] sm:$0xff]  ;;  %v169_v7 = vld [vmem:[%s1277_s3 + $0x68] sm:$0xff] }
  0x1c   : > { %v171_v8 = vld [vmem:[%s1277_s3 + $0x80] sm:$0xff]  ;;  %168 = vst [vmem:[%s1282_s4 + $0x30] sm:$0xff] %v167_v6  ;;  %170 = vst [vmem:[%s1282_s4 + $0x38] sm:$0xff] %v169_v7  ;;  %v173_v9 = vld [vmem:[%s1277_s3 + $0x88] sm:$0xff] }
  0x1d   : > { %172 = vst [vmem:[%s1282_s4 + $0x40] sm:$0xff] %v171_v8  ;;  %v175_v10 = vld [vmem:[%s1277_s3 + $0xa0] sm:$0xff]  ;;  %v177_v11 = vld [vmem:[%s1277_s3 + $0xa8] sm:$0xff]  ;;  %174 = vst [vmem:[%s1282_s4 + $0x48] sm:$0xff] %v173_v9 }
  0x1e   : > { %176 = vst [vmem:[%s1282_s4 + $0x50] sm:$0xff] %v175_v10  ;;  %178 = vst [vmem:[%s1282_s4 + $0x58] sm:$0xff] %v177_v11  ;;  %v179_v12 = vld [vmem:[%s1277_s3 + $0xc0] sm:$0xff]  ;;  %v181_v13 = vld [vmem:[%s1277_s3 + $0xc8] sm:$0xff] }
  0x1f   : > { %v183_v14 = vld [vmem:[%s1277_s3 + $0xe0] sm:$0xff]  ;;  %180 = vst [vmem:[%s1282_s4 + $0x60] sm:$0xff] %v179_v12  ;;  %182 = vst [vmem:[%s1282_s4 + $0x68] sm:$0xff] %v181_v13  ;;  %v185_v15 = vld [vmem:[%s1277_s3 + $0xe8] sm:$0xff] }
  0x20   : > { %184 = vst [vmem:[%s1282_s4 + $0x70] sm:$0xff] %v183_v14  ;;  %v187_v16 = vld [vmem:[%s1277_s3 + $0x100] sm:$0xff]  ;;  %v189_v17 = vld [vmem:[%s1277_s3 + $0x108] sm:$0xff]  ;;  %186 = vst [vmem:[%s1282_s4 + $0x78] sm:$0xff] %v185_v15 }
  0x21   : > { %188 = vst [vmem:[%s1282_s4 + $0x80] sm:$0xff] %v187_v16  ;;  %190 = vst [vmem:[%s1282_s4 + $0x88] sm:$0xff] %v189_v17  ;;  %v191_v18 = vld [vmem:[%s1277_s3 + $0x120] sm:$0xff]  ;;  %v193_v19 = vld [vmem:[%s1277_s3 + $0x128] sm:$0xff] }
  0x22   : > { %v195_v20 = vld [vmem:[%s1277_s3 + $0x140] sm:$0xff]  ;;  %192 = vst [vmem:[%s1282_s4 + $0x90] sm:$0xff] %v191_v18  ;;  %194 = vst [vmem:[%s1282_s4 + $0x98] sm:$0xff] %v193_v19  ;;  %v197_v21 = vld [vmem:[%s1277_s3 + $0x148] sm:$0xff] }
  0x23   : > { %196 = vst [vmem:[%s1282_s4 + $0xa0] sm:$0xff] %v195_v20  ;;  %v199_v22 = vld [vmem:[%s1277_s3 + $0x160] sm:$0xff]  ;;  %v201_v23 = vld [vmem:[%s1277_s3 + $0x168] sm:$0xff]  ;;  %198 = vst [vmem:[%s1282_s4 + $0xa8] sm:$0xff] %v197_v21 }
  0x24   : > { %200 = vst [vmem:[%s1282_s4 + $0xb0] sm:$0xff] %v199_v22  ;;  %202 = vst [vmem:[%s1282_s4 + $0xb8] sm:$0xff] %v201_v23  ;;  %v203_v24 = vld [vmem:[%s1277_s3 + $0x180] sm:$0xff]  ;;  %v205_v25 = vld [vmem:[%s1277_s3 + $0x188] sm:$0xff] }
  0x25   : > { %v207_v26 = vld [vmem:[%s1277_s3 + $0x1a0] sm:$0xff]  ;;  %204 = vst [vmem:[%s1282_s4 + $0xc0] sm:$0xff] %v203_v24  ;;  %206 = vst [vmem:[%s1282_s4 + $0xc8] sm:$0xff] %v205_v25  ;;  %v209_v27 = vld [vmem:[%s1277_s3 + $0x1a8] sm:$0xff] }
  0x26   : > { %208 = vst [vmem:[%s1282_s4 + $0xd0] sm:$0xff] %v207_v26  ;;  %v211_v28 = vld [vmem:[%s1277_s3 + $0x1c0] sm:$0xff]  ;;  %v213_v29 = vld [vmem:[%s1277_s3 + $0x1c8] sm:$0xff]  ;;  %210 = vst [vmem:[%s1282_s4 + $0xd8] sm:$0xff] %v209_v27 }
  0x27   : > { %212 = vst [vmem:[%s1282_s4 + $0xe0] sm:$0xff] %v211_v28  ;;  %214 = vst [vmem:[%s1282_s4 + $0xe8] sm:$0xff] %v213_v29  ;;  %v215_v30 = vld [vmem:[%s1277_s3 + $0x1e0] sm:$0xff]  ;;  %v217_v31 = vld [vmem:[%s1277_s3 + $0x1e8] sm:$0xff] }
  0x28   : > { %v219_v32 = vld [vmem:[%s1277_s3 + $0x200] sm:$0xff]  ;;  %216 = vst [vmem:[%s1282_s4 + $0xf0] sm:$0xff] %v215_v30  ;;  %218 = vst [vmem:[%s1282_s4 + $0xf8] sm:$0xff] %v217_v31  ;;  %v221_v33 = vld [vmem:[%s1277_s3 + $0x208] sm:$0xff] }
  0x29   : > { %220 = vst [vmem:[%s1282_s4 + $0x100] sm:$0xff] %v219_v32  ;;  %v223_v34 = vld [vmem:[%s1277_s3 + $0x220] sm:$0xff]  ;;  %v225_v35 = vld [vmem:[%s1277_s3 + $0x228] sm:$0xff]  ;;  %222 = vst [vmem:[%s1282_s4 + $0x108] sm:$0xff] %v221_v33 }
  0x2a   : > { %224 = vst [vmem:[%s1282_s4 + $0x110] sm:$0xff] %v223_v34  ;;  %226 = vst [vmem:[%s1282_s4 + $0x118] sm:$0xff] %v225_v35  ;;  %v227_v36 = vld [vmem:[%s1277_s3 + $0x240] sm:$0xff]  ;;  %v229_v37 = vld [vmem:[%s1277_s3 + $0x248] sm:$0xff] }
  0x2b   : > { %v231_v38 = vld [vmem:[%s1277_s3 + $0x260] sm:$0xff]  ;;  %228 = vst [vmem:[%s1282_s4 + $0x120] sm:$0xff] %v227_v36  ;;  %230 = vst [vmem:[%s1282_s4 + $0x128] sm:$0xff] %v229_v37  ;;  %v233_v39 = vld [vmem:[%s1277_s3 + $0x268] sm:$0xff] }
  0x2c   : > { %232 = vst [vmem:[%s1282_s4 + $0x130] sm:$0xff] %v231_v38  ;;  %v235_v40 = vld [vmem:[%s1277_s3 + $0x280] sm:$0xff]  ;;  %v237_v41 = vld [vmem:[%s1277_s3 + $0x288] sm:$0xff]  ;;  %234 = vst [vmem:[%s1282_s4 + $0x138] sm:$0xff] %v233_v39 }
  0x2d   : > { %236 = vst [vmem:[%s1282_s4 + $0x140] sm:$0xff] %v235_v40  ;;  %238 = vst [vmem:[%s1282_s4 + $0x148] sm:$0xff] %v237_v41  ;;  %v239_v42 = vld [vmem:[%s1277_s3 + $0x2a0] sm:$0xff]  ;;  %v241_v43 = vld [vmem:[%s1277_s3 + $0x2a8] sm:$0xff] }
  0x2e   : > { %v243_v44 = vld [vmem:[%s1277_s3 + $0x2c0] sm:$0xff]  ;;  %240 = vst [vmem:[%s1282_s4 + $0x150] sm:$0xff] %v239_v42  ;;  %242 = vst [vmem:[%s1282_s4 + $0x158] sm:$0xff] %v241_v43  ;;  %v245_v45 = vld [vmem:[%s1277_s3 + $0x2c8] sm:$0xff] }
  0x2f   : > { %244 = vst [vmem:[%s1282_s4 + $0x160] sm:$0xff] %v243_v44  ;;  %v247_v46 = vld [vmem:[%s1277_s3 + $0x2e0] sm:$0xff]  ;;  %v249_v47 = vld [vmem:[%s1277_s3 + $0x2e8] sm:$0xff]  ;;  %246 = vst [vmem:[%s1282_s4 + $0x168] sm:$0xff] %v245_v45 }
  0x30   : > { %248 = vst [vmem:[%s1282_s4 + $0x170] sm:$0xff] %v247_v46  ;;  %250 = vst [vmem:[%s1282_s4 + $0x178] sm:$0xff] %v249_v47  ;;  %v251_v48 = vld [vmem:[%s1277_s3 + $0x300] sm:$0xff]  ;;  %v253_v49 = vld [vmem:[%s1277_s3 + $0x308] sm:$0xff] }
  0x31   : > { %v255_v50 = vld [vmem:[%s1277_s3 + $0x320] sm:$0xff]  ;;  %252 = vst [vmem:[%s1282_s4 + $0x180] sm:$0xff] %v251_v48  ;;  %254 = vst [vmem:[%s1282_s4 + $0x188] sm:$0xff] %v253_v49  ;;  %v257_v51 = vld [vmem:[%s1277_s3 + $0x328] sm:$0xff] }
  0x32   : > { %256 = vst [vmem:[%s1282_s4 + $0x190] sm:$0xff] %v255_v50  ;;  %v259_v52 = vld [vmem:[%s1277_s3 + $0x340] sm:$0xff]  ;;  %v261_v53 = vld [vmem:[%s1277_s3 + $0x348] sm:$0xff]  ;;  %258 = vst [vmem:[%s1282_s4 + $0x198] sm:$0xff] %v257_v51 }
  0x33   : > { %260 = vst [vmem:[%s1282_s4 + $0x1a0] sm:$0xff] %v259_v52  ;;  %262 = vst [vmem:[%s1282_s4 + $0x1a8] sm:$0xff] %v261_v53  ;;  %v263_v54 = vld [vmem:[%s1277_s3 + $0x360] sm:$0xff]  ;;  %v265_v55 = vld [vmem:[%s1277_s3 + $0x368] sm:$0xff] }
  0x34   : > { %v267_v56 = vld [vmem:[%s1277_s3 + $0x380] sm:$0xff]  ;;  %264 = vst [vmem:[%s1282_s4 + $0x1b0] sm:$0xff] %v263_v54  ;;  %266 = vst [vmem:[%s1282_s4 + $0x1b8] sm:$0xff] %v265_v55  ;;  %v269_v57 = vld [vmem:[%s1277_s3 + $0x388] sm:$0xff] }
  0x35   : > { %268 = vst [vmem:[%s1282_s4 + $0x1c0] sm:$0xff] %v267_v56  ;;  %v271_v58 = vld [vmem:[%s1277_s3 + $0x3a0] sm:$0xff]  ;;  %v273_v59 = vld [vmem:[%s1277_s3 + $0x3a8] sm:$0xff]  ;;  %270 = vst [vmem:[%s1282_s4 + $0x1c8] sm:$0xff] %v269_v57 }
  0x36   : > { %272 = vst [vmem:[%s1282_s4 + $0x1d0] sm:$0xff] %v271_v58  ;;  %274 = vst [vmem:[%s1282_s4 + $0x1d8] sm:$0xff] %v273_v59  ;;  %v275_v60 = vld [vmem:[%s1277_s3 + $0x3c0] sm:$0xff]  ;;  %v277_v61 = vld [vmem:[%s1277_s3 + $0x3c8] sm:$0xff] }
  0x37   : > { %v279_v62 = vld [vmem:[%s1277_s3 + $0x3e0] sm:$0xff]  ;;  %276 = vst [vmem:[%s1282_s4 + $0x1e0] sm:$0xff] %v275_v60  ;;  %278 = vst [vmem:[%s1282_s4 + $0x1e8] sm:$0xff] %v277_v61  ;;  %v281_v63 = vld [vmem:[%s1277_s3 + $0x3e8] sm:$0xff] }
  0x38   : > { %280 = vst [vmem:[%s1282_s4 + $0x1f0] sm:$0xff] %v279_v62  ;;  %282 = vst [vmem:[%s1282_s4 + $0x1f8] sm:$0xff] %v281_v63 }
  0x39 PF: > { %p995_p7 = scmp.ge.s32.totalorder %s1198_s15, 1  ;;  %p299_p8 = scmp.lt.s32.totalorder %s1198_s15, 5 }
  0x3b   : > { %p300_p9 = pnand %p995_p7, %p299_p8 }
  0x3c   : > { %s306_s5 = sand.u32 (!%p300_p9), 1, %s1174_s9   ;;  %s997_s6 = sshll.u32 (!%p300_p9), %s1182_s11, 5 }
  0x3d   : > { %303 = sbr.rel (%p300_p9) target bundleno = 436 (0x1b4), region = 47  ;;  %s996_s7 = sshll.u32 (!%p300_p9), %s306_s5, 9 }
  0x3e   : > { %p341_p10 = scmp.lt.s32.totalorder (!%p300_p9), %s997_s6, 63  ;;  %s999_s8 = sshll.u32 (!%p300_p9), %s1186_s12, 5 }
  0x3f   : > { %p350_p11 = scmp.lt.s32.totalorder (!%p300_p9), %s999_s8, 63  ;;  %s1424_s9 = scalar_lea.vmem (!%p300_p9), [#allocation3], %s996_s7 }
  0x40   : > { %p1001_p12 = scmp.ne.s32.totalorder (!%p300_p9), %s1182_s11, 0 }
  0x44   : > { %s1721_s6 = smov (!%p341_p10, %s997_s6), 63  ;;  %s1723_s8 = smov (!%p350_p11, %s999_s8), 63 }
  0x45   : > { %s998_s18 = sshll.u32 %s1721_s6, 3  ;;  %s1000_s23 = sshll.u32 %s1723_s8, 3  ;;  %vm362_vm0 = vcmask (!%p1001_p12), 64512   ;;  %v1200_v0 = vmov (!%p1001_p12), 0.0  }
  0x46   : > { %s1417_s21 = scalar_lea.vmem %s1706_s1, %s998_s18  ;;  %s1422_s26 = scalar_lea.vmem %s1707_s2, %s1000_s23  ;;  %363 = vst.msk [vmem:[#allocation2] sm:$0xff] (!%p1001_p12), %vm362_vm0, %v1200_v0  ;;  %364 = vst.msk [vmem:[#allocation2 + $0x8] sm:$0xff] (!%p1001_p12), %vm362_vm0, %v1200_v0 }
  0x47   : > { %361 = sbr.rel (%p1001_p12) target bundleno = 86 (0x56), region = 55  ;;  %365 = vst.msk [vmem:[#allocation2 + $0x10] sm:$0xff] (!%p1001_p12), %vm362_vm0, %v1200_v0  ;;  %366 = vst.msk [vmem:[#allocation2 + $0x18] sm:$0xff] (!%p1001_p12), %vm362_vm0, %v1200_v0 }
  0x48   : > { %367 = vst.msk [vmem:[#allocation2 + $0x20] sm:$0xff] (!%p1001_p12), %vm362_vm0, %v1200_v0  ;;  %368 = vst.msk [vmem:[#allocation2 + $0x28] sm:$0xff] (!%p1001_p12), %vm362_vm0, %v1200_v0 }
  0x49   : > { %369 = vst.msk [vmem:[#allocation2 + $0x30] sm:$0xff] (!%p1001_p12), %vm362_vm0, %v1200_v0  ;;  %370 = vst.msk [vmem:[#allocation2 + $0x38] sm:$0xff] (!%p1001_p12), %vm362_vm0, %v1200_v0 }
  0x4a   : > { %371 = vst.msk [vmem:[#allocation2 + $0x40] sm:$0xff] (!%p1001_p12), %vm362_vm0, %v1200_v0  ;;  %372 = vst.msk [vmem:[#allocation2 + $0x48] sm:$0xff] (!%p1001_p12), %vm362_vm0, %v1200_v0 }
  0x4b   : > { %373 = vst.msk [vmem:[#allocation2 + $0x50] sm:$0xff] (!%p1001_p12), %vm362_vm0, %v1200_v0  ;;  %374 = vst.msk [vmem:[#allocation2 + $0x58] sm:$0xff] (!%p1001_p12), %vm362_vm0, %v1200_v0 }
  0x4c   : > { %375 = vst.msk [vmem:[#allocation2 + $0x60] sm:$0xff] (!%p1001_p12), %vm362_vm0, %v1200_v0  ;;  %376 = vst.msk [vmem:[#allocation2 + $0x68] sm:$0xff] (!%p1001_p12), %vm362_vm0, %v1200_v0 }
  0x4d   : > { %377 = vst.msk [vmem:[#allocation2 + $0x70] sm:$0xff] (!%p1001_p12), %vm362_vm0, %v1200_v0  ;;  %378 = vst.msk [vmem:[#allocation2 + $0x78] sm:$0xff] (!%p1001_p12), %vm362_vm0, %v1200_v0 }
  0x4e   : > { %379 = vst.msk [vmem:[#allocation2 + $0x80] sm:$0xff] %vm362_vm0, %v1200_v0  ;;  %380 = vst.msk [vmem:[#allocation2 + $0x88] sm:$0xff] %vm362_vm0, %v1200_v0 }
  0x4f   : > { %381 = vst.msk [vmem:[#allocation2 + $0x90] sm:$0xff] %vm362_vm0, %v1200_v0  ;;  %382 = vst.msk [vmem:[#allocation2 + $0x98] sm:$0xff] %vm362_vm0, %v1200_v0 }
  0x50   : > { %383 = vst.msk [vmem:[#allocation2 + $0xa0] sm:$0xff] %vm362_vm0, %v1200_v0  ;;  %384 = vst.msk [vmem:[#allocation2 + $0xa8] sm:$0xff] %vm362_vm0, %v1200_v0 }
  0x51   : > { %385 = vst.msk [vmem:[#allocation2 + $0xb0] sm:$0xff] %vm362_vm0, %v1200_v0  ;;  %386 = vst.msk [vmem:[#allocation2 + $0xb8] sm:$0xff] %vm362_vm0, %v1200_v0 }
  0x52   : > { %387 = vst.msk [vmem:[#allocation2 + $0xc0] sm:$0xff] %vm362_vm0, %v1200_v0  ;;  %388 = vst.msk [vmem:[#allocation2 + $0xc8] sm:$0xff] %vm362_vm0, %v1200_v0 }
  0x53   : > { %389 = vst.msk [vmem:[#allocation2 + $0xd0] sm:$0xff] %vm362_vm0, %v1200_v0  ;;  %390 = vst.msk [vmem:[#allocation2 + $0xd8] sm:$0xff] %vm362_vm0, %v1200_v0 }
  0x54   : > { %391 = vst.msk [vmem:[#allocation2 + $0xe0] sm:$0xff] %vm362_vm0, %v1200_v0  ;;  %392 = vst.msk [vmem:[#allocation2 + $0xe8] sm:$0xff] %vm362_vm0, %v1200_v0 }
  0x55   : > { %393 = vst.msk [vmem:[#allocation2 + $0xf0] sm:$0xff] %vm362_vm0, %v1200_v0  ;;  %394 = vst.msk [vmem:[#allocation2 + $0xf8] sm:$0xff] %vm362_vm0, %v1200_v0 }
  0x56 PF: > { %v491_v1 = vld [vmem:[%s1417_s21] sm:$0xff]  ;;  %v492_v2 = vld [vmem:[%s1417_s21 + $0x8] sm:$0xff]  ;;  %v493_v3 = vld [vmem:[%s1417_s21 + $0x10] sm:$0xff]  ;;  %v1201_v4 = vmov 0.0|0.0   ;;  %vm780_vm1 = vcmask 64512   ;;  %p1002_p13 = scmp.ne.s32.totalorder %s1182_s11, 1 }
  0x57   : > { %1006 = vmatprep.subr.bf16.mxu0 %v1201_v4  ;;  %1054 = vmatprep.subr.bf16.mxu1 %v1201_v4  ;;  %v1007_v5 = vpack.c.bf16 %v492_v2, %v491_v1  ;;  %v494_v6 = vld [vmem:[%s1417_s21 + $0x18] sm:$0xff]  ;;  %v495_v8 = vld [vmem:[%s1417_s21 + $0x20] sm:$0xff]  ;;  %v496_v9 = vld [vmem:[%s1417_s21 + $0x28] sm:$0xff] }
  0x58   : > { %v1010_v7 = vpack.c.bf16 %v494_v6, %v493_v3  ;;  %v1013_v10 = vpack.c.bf16 %v496_v9, %v495_v8  ;;  %v497_v11 = vld [vmem:[%s1417_s21 + $0x30] sm:$0xff]  ;;  %v498_v12 = vld [vmem:[%s1417_s21 + $0x38] sm:$0xff]  ;;  %v428_v13 = vld [vmem:[%s1424_s9 + $0x8] sm:$0xff] }
  0x59   : > { %1008 = vmatpush1.bf16.msra.mxu0 %v1007_v5  ;;  %1070 = vmatpush1.bf16.msra.mxu1 %v1007_v5  ;;  %v1016_v14 = vpack.c.bf16 %v498_v12, %v497_v11  ;;  %v460_v15 = vld [vmem:[%s1424_s9 + $0x108] sm:$0xff]  ;;  %v499_v16 = vld [vmem:[%s1417_s21 + $0x40] sm:$0xff]  ;;  %v501_v19 = vld [vmem:[%s1417_s21 + $0x50] sm:$0xff] }
  0x5a   : > { %1009 = vmatprep.subr.bf16.mxu0 %v1201_v4  ;;  %1055 = vmatprep.subr.bf16.mxu1 %v1201_v4  ;;  %v500_v17 = vld [vmem:[%s1417_s21 + $0x48] sm:$0xff]  ;;  %v502_v20 = vld [vmem:[%s1417_s21 + $0x58] sm:$0xff]  ;;  %v503_v22 = vld [vmem:[%s1417_s21 + $0x60] sm:$0xff] }
  0x5b   : > { %587 = vmatprep.mubr.f32.mxu0 %v428_v13  ;;  %667 = vmatprep.mubr.f32.mxu1 %v460_v15  ;;  %v1019_v18 = vpack.c.bf16 %v500_v17, %v499_v16  ;;  %v1022_v21 = vpack.c.bf16 %v502_v20, %v501_v19  ;;  %v504_v23 = vld [vmem:[%s1417_s21 + $0x68] sm:$0xff]  ;;  %v505_v25 = vld [vmem:[%s1417_s21 + $0x70] sm:$0xff]  ;;  %v506_v26 = vld [vmem:[%s1417_s21 + $0x78] sm:$0xff] }
  0x5c   : > { %v1025_v24 = vpack.c.bf16 %v504_v23, %v503_v22  ;;  %v1028_v27 = vpack.c.bf16 %v506_v26, %v505_v25  ;;  %v507_v28 = vld [vmem:[%s1417_s21 + $0x80] sm:$0xff]  ;;  %v508_v29 = vld [vmem:[%s1417_s21 + $0x88] sm:$0xff]  ;;  %v509_v31 = vld [vmem:[%s1417_s21 + $0x90] sm:$0xff] }
  0x5d   : > { %1011 = vmatpush1.bf16.msra.mxu0 %v1010_v7  ;;  %1071 = vmatpush1.bf16.msra.mxu1 %v1010_v7  ;;  %v1031_v30 = vpack.c.bf16 %v508_v29, %v507_v28  ;;  %v510_v32 = vld [vmem:[%s1417_s21 + $0x98] sm:$0xff]  ;;  %v511_v34 = vld [vmem:[%s1417_s21 + $0xa0] sm:$0xff]  ;;  %v512_v35 = vld [vmem:[%s1417_s21 + $0xa8] sm:$0xff] }
  0x5e   : > { %1012 = vmatprep.subr.bf16.mxu0 %v1201_v4  ;;  %1056 = vmatprep.subr.bf16.mxu1 %v1201_v4  ;;  %v1034_v33 = vpack.c.bf16 %v510_v32, %v509_v31  ;;  %v1037_v36 = vpack.c.bf16 %v512_v35, %v511_v34  ;;  %v513_v37 = vld [vmem:[%s1417_s21 + $0xb0] sm:$0xff]  ;;  %v514_v38 = vld [vmem:[%s1417_s21 + $0xb8] sm:$0xff]  ;;  %v515_v40 = vld [vmem:[%s1417_s21 + $0xc0] sm:$0xff] }
  0x5f   : > { %v1040_v39 = vpack.c.bf16 %v514_v38, %v513_v37  ;;  %v516_v41 = vld [vmem:[%s1417_s21 + $0xc8] sm:$0xff]  ;;  %v517_v43 = vld [vmem:[%s1417_s21 + $0xd0] sm:$0xff]  ;;  %v518_v44 = vld [vmem:[%s1417_s21 + $0xd8] sm:$0xff] }
  0x60   : > { %v1043_v42 = vpack.c.bf16 %v516_v41, %v515_v40  ;;  %v1046_v45 = vpack.c.bf16 %v518_v44, %v517_v43  ;;  %v519_v46 = vld [vmem:[%s1417_s21 + $0xe0] sm:$0xff]  ;;  %v520_v47 = vld [vmem:[%s1417_s21 + $0xe8] sm:$0xff]  ;;  %v521_v49 = vld [vmem:[%s1417_s21 + $0xf0] sm:$0xff] }
  0x61   : > { %1014 = vmatpush1.bf16.msra.mxu0 %v1013_v10  ;;  %1072 = vmatpush1.bf16.msra.mxu1 %v1013_v10  ;;  %v1049_v48 = vpack.c.bf16 %v520_v47, %v519_v46  ;;  %v522_v50 = vld [vmem:[%s1417_s21 + $0xf8] sm:$0xff]  ;;  %v427_v52 = vld [vmem:[%s1424_s9] sm:$0xff]  ;;  %v429_v56 = vld [vmem:[%s1424_s9 + $0x10] sm:$0xff] }
  0x62   : > { %1015 = vmatprep.subr.bf16.mxu0 %v1201_v4  ;;  %1057 = vmatprep.subr.bf16.mxu1 %v1201_v4  ;;  %v1052_v51 = vpack.c.bf16 %v522_v50, %v521_v49  ;;  %v459_v53 = vld [vmem:[%s1424_s9 + $0x100] sm:$0xff]  ;;  %v430_v54 = vld [vmem:[%s1424_s9 + $0x18] sm:$0xff]  ;;  %v461_v57 = vld [vmem:[%s1424_s9 + $0x110] sm:$0xff] }
  0x63   : > { %v462_v55 = vld [vmem:[%s1424_s9 + $0x118] sm:$0xff]  ;;  %v432_v58 = vld [vmem:[%s1424_s9 + $0x28] sm:$0xff]  ;;  %v431_v60 = vld [vmem:[%s1424_s9 + $0x20] sm:$0xff] }
  0x64   : > { %v464_v59 = vld [vmem:[%s1424_s9 + $0x128] sm:$0xff]  ;;  %v463_v61 = vld [vmem:[%s1424_s9 + $0x120] sm:$0xff]  ;;  %v434_v62 = vld [vmem:[%s1424_s9 + $0x38] sm:$0xff] }
  0x65   : > { %1017 = vmatpush1.bf16.msra.mxu0 %v1016_v14  ;;  %1073 = vmatpush1.bf16.msra.mxu1 %v1016_v14  ;;  %v466_v63 = vld [vmem:[%s1424_s9 + $0x138] sm:$0xff]  ;;  %v433_v0 = vld [vmem:[%s1424_s9 + $0x30] sm:$0xff]  ;;  %v436_v2 = vld [vmem:[%s1424_s9 + $0x48] sm:$0xff] }
  0x66   : > { %1018 = vmatprep.subr.bf16.mxu0 %v1201_v4  ;;  %1058 = vmatprep.subr.bf16.mxu1 %v1201_v4  ;;  %v465_v1 = vld [vmem:[%s1424_s9 + $0x130] sm:$0xff]  ;;  %v468_v3 = vld [vmem:[%s1424_s9 + $0x148] sm:$0xff]  ;;  %v467_v5 = vld [vmem:[%s1424_s9 + $0x140] sm:$0xff] }
  0x67   : > { %v438_v6 = vld [vmem:[%s1424_s9 + $0x58] sm:$0xff]  ;;  %v437_v8 = vld [vmem:[%s1424_s9 + $0x50] sm:$0xff]  ;;  %v440_v10 = vld [vmem:[%s1424_s9 + $0x68] sm:$0xff] }
  0x68   : > { %v470_v7 = vld [vmem:[%s1424_s9 + $0x158] sm:$0xff]  ;;  %v469_v9 = vld [vmem:[%s1424_s9 + $0x150] sm:$0xff]  ;;  %v472_v11 = vld [vmem:[%s1424_s9 + $0x168] sm:$0xff] }
  0x69   : > { %1020 = vmatpush1.bf16.msra.mxu0 %v1019_v18  ;;  %1074 = vmatpush1.bf16.msra.mxu1 %v1019_v18  ;;  %v439_v12 = vld [vmem:[%s1424_s9 + $0x60] sm:$0xff]  ;;  %v442_v14 = vld [vmem:[%s1424_s9 + $0x78] sm:$0xff]  ;;  %v441_v16 = vld [vmem:[%s1424_s9 + $0x70] sm:$0xff] }
  0x6a   : > { %1021 = vmatprep.subr.bf16.mxu0 %v1201_v4  ;;  %1059 = vmatprep.subr.bf16.mxu1 %v1201_v4  ;;  %v471_v13 = vld [vmem:[%s1424_s9 + $0x160] sm:$0xff]  ;;  %v474_v15 = vld [vmem:[%s1424_s9 + $0x178] sm:$0xff]  ;;  %v473_v17 = vld [vmem:[%s1424_s9 + $0x170] sm:$0xff] }
  0x6b   : > { %v444_v18 = vld [vmem:[%s1424_s9 + $0x88] sm:$0xff]  ;;  %v443_v20 = vld [vmem:[%s1424_s9 + $0x80] sm:$0xff]  ;;  %v446_v22 = vld [vmem:[%s1424_s9 + $0x98] sm:$0xff] }
  0x6c   : > { %v476_v19 = vld [vmem:[%s1424_s9 + $0x188] sm:$0xff]  ;;  %v478_v23 = vld [vmem:[%s1424_s9 + $0x198] sm:$0xff]  ;;  %v477_v25 = vld [vmem:[%s1424_s9 + $0x190] sm:$0xff] }
  0x6d   : > { %1023 = vmatpush1.bf16.msra.mxu0 %v1022_v21  ;;  %1075 = vmatpush1.bf16.msra.mxu1 %v1022_v21  ;;  %v475_v21 = vld [vmem:[%s1424_s9 + $0x180] sm:$0xff]  ;;  %v448_v26 = vld [vmem:[%s1424_s9 + $0xa8] sm:$0xff]  ;;  %v482_v31 = vld [vmem:[%s1424_s9 + $0x1b8] sm:$0xff] }
  0x6e   : > { %1024 = vmatprep.subr.bf16.mxu0 %v1201_v4  ;;  %1060 = vmatprep.subr.bf16.mxu1 %v1201_v4  ;;  %v447_v28 = vld [vmem:[%s1424_s9 + $0xa0] sm:$0xff]  ;;  %v449_v32 = vld [vmem:[%s1424_s9 + $0xb0] sm:$0xff]  ;;  %v452_v34 = vld [vmem:[%s1424_s9 + $0xc8] sm:$0xff] }
  0x6f   : > { %v479_v29 = vld [vmem:[%s1424_s9 + $0x1a0] sm:$0xff]  ;;  %v484_v35 = vld [vmem:[%s1424_s9 + $0x1c8] sm:$0xff]  ;;  %v454_v38 = vld [vmem:[%s1424_s9 + $0xd8] sm:$0xff] }
  0x70   : > { %v483_v37 = vld [vmem:[%s1424_s9 + $0x1c0] sm:$0xff]  ;;  %v453_v40 = vld [vmem:[%s1424_s9 + $0xd0] sm:$0xff]  ;;  %v488_v43 = vld [vmem:[%s1424_s9 + $0x1e8] sm:$0xff] }
  0x71   : > { %1026 = vmatpush1.bf16.msra.mxu0 %v1025_v24  ;;  %1076 = vmatpush1.bf16.msra.mxu1 %v1025_v24  ;;  %v445_v24 = vld [vmem:[%s1424_s9 + $0x90] sm:$0xff]  ;;  %v455_v44 = vld [vmem:[%s1424_s9 + $0xe0] sm:$0xff]  ;;  %v458_v46 = vld [vmem:[%s1424_s9 + $0xf8] sm:$0xff] }
  0x72   : > { %1027 = vmatprep.subr.bf16.mxu0 %v1201_v4  ;;  %1061 = vmatprep.subr.bf16.mxu1 %v1201_v4  ;;  %v485_v41 = vld [vmem:[%s1424_s9 + $0x1d0] sm:$0xff]  ;;  %v490_v47 = vld [vmem:[%s1424_s9 + $0x1f8] sm:$0xff]  ;;  %v395_v50 = vld [vmem:[#allocation2] sm:$0xff] }
  0x73   : > { %v489_v49 = vld [vmem:[%s1424_s9 + $0x1f0] sm:$0xff] }
  0x75   : > { %1029 = vmatpush1.bf16.msra.mxu0 %v1028_v27  ;;  %1077 = vmatpush1.bf16.msra.mxu1 %v1028_v27  ;;  %v480_v27 = vld [vmem:[%s1424_s9 + $0x1a8] sm:$0xff] }
  0x76   : > { %1030 = vmatprep.subr.bf16.mxu0 %v1201_v4  ;;  %1062 = vmatprep.subr.bf16.mxu1 %v1201_v4 }
  0x79   : > { %1032 = vmatpush1.bf16.msra.mxu0 %v1031_v30  ;;  %1078 = vmatpush1.bf16.msra.mxu1 %v1031_v30  ;;  %v450_v30 = vld [vmem:[%s1424_s9 + $0xb8] sm:$0xff] }
  0x7a   : > { %1033 = vmatprep.subr.bf16.mxu0 %v1201_v4  ;;  %1063 = vmatprep.subr.bf16.mxu1 %v1201_v4 }
  0x7d   : > { %1035 = vmatpush1.bf16.msra.mxu0 %v1034_v33  ;;  %1079 = vmatpush1.bf16.msra.mxu1 %v1034_v33  ;;  %v481_v33 = vld [vmem:[%s1424_s9 + $0x1b0] sm:$0xff] }
  0x7e   : > { %1036 = vmatprep.subr.bf16.mxu0 %v1201_v4  ;;  %1064 = vmatprep.subr.bf16.mxu1 %v1201_v4 }
  0x81   : > { %1038 = vmatpush1.bf16.msra.mxu0 %v1037_v36  ;;  %1080 = vmatpush1.bf16.msra.mxu1 %v1037_v36  ;;  %v451_v36 = vld [vmem:[%s1424_s9 + $0xc0] sm:$0xff] }
  0x82   : > { %1039 = vmatprep.subr.bf16.mxu0 %v1201_v4  ;;  %1065 = vmatprep.subr.bf16.mxu1 %v1201_v4 }
  0x85   : > { %1041 = vmatpush1.bf16.msra.mxu0 %v1040_v39  ;;  %1081 = vmatpush1.bf16.msra.mxu1 %v1040_v39  ;;  %v486_v39 = vld [vmem:[%s1424_s9 + $0x1d8] sm:$0xff] }
  0x86   : > { %1042 = vmatprep.subr.bf16.mxu0 %v1201_v4  ;;  %1066 = vmatprep.subr.bf16.mxu1 %v1201_v4 }
  0x89   : > { %1044 = vmatpush1.bf16.msra.mxu0 %v1043_v42  ;;  %1082 = vmatpush1.bf16.msra.mxu1 %v1043_v42  ;;  %v456_v42 = vld [vmem:[%s1424_s9 + $0xe8] sm:$0xff] }
  0x8a   : > { %1045 = vmatprep.subr.bf16.mxu0 %v1201_v4  ;;  %1067 = vmatprep.subr.bf16.mxu1 %v1201_v4 }
  0x8d   : > { %1047 = vmatpush1.bf16.msra.mxu0 %v1046_v45  ;;  %1083 = vmatpush1.bf16.msra.mxu1 %v1046_v45  ;;  %v487_v45 = vld [vmem:[%s1424_s9 + $0x1e0] sm:$0xff] }
  0x8e   : > { %1048 = vmatprep.subr.bf16.mxu0 %v1201_v4  ;;  %1068 = vmatprep.subr.bf16.mxu1 %v1201_v4 }
  0x91   : > { %1050 = vmatpush1.bf16.msra.mxu0 %v1049_v48  ;;  %1084 = vmatpush1.bf16.msra.mxu1 %v1049_v48  ;;  %v457_v48 = vld [vmem:[%s1424_s9 + $0xf0] sm:$0xff] }
  0x92   : > { %1051 = vmatprep.subr.bf16.mxu0 %v1201_v4  ;;  %1069 = vmatprep.subr.bf16.mxu1 %v1201_v4  ;;  %v435_v4 = vld [vmem:[%s1424_s9 + $0x40] sm:$0xff] }
  0x95   : > { %1053 = vmatpush1.bf16.msra.mxu0 %v1052_v51  ;;  %1085 = vmatpush1.bf16.msra.mxu1 %v1052_v51  ;;  %v411_v51 = vld [vmem:[#allocation2 + $0x80] sm:$0xff] }
  0x98   : > { %588 = vmatmul.mubr.f32.vlgmr.msra.gmra.mrb[0].mxu0 %v427_v52  ;;  %668 = vmatmul.mubr.f32.vlgmr.msra.gmra.mrb[0].mxu1 %v459_v53 }
  0x99   : > { %592 = vmatprep.mubr.f32.mxu0 %v430_v54  ;;  %672 = vmatprep.mubr.f32.mxu1 %v462_v55 }
  0x9c   : > { %593 = vmatmul.mubr.f32.gmra.mrb[2].mxu0 %v429_v56  ;;  %673 = vmatmul.mubr.f32.gmra.mrb[2].mxu1 %v461_v57 }
  0x9d   : > { %597 = vmatprep.mubr.f32.mxu0 %v432_v58  ;;  %677 = vmatprep.mubr.f32.mxu1 %v464_v59  ;;  %v396_v58 = vld [vmem:[#allocation2 + $0x8] sm:$0xff] }
  0x9e   : > { %v412_v59 = vld [vmem:[#allocation2 + $0x88] sm:$0xff] }
  0xa0   : > { %598 = vmatmul.mubr.f32.gmra.mrb[4].mxu0 %v431_v60  ;;  %678 = vmatmul.mubr.f32.gmra.mrb[4].mxu1 %v463_v61 }
  0xa1   : > { %602 = vmatprep.mubr.f32.mxu0 %v434_v62  ;;  %682 = vmatprep.mubr.f32.mxu1 %v466_v63 }
  0xa4   : > { %603 = vmatmul.mubr.f32.gmra.mrb[6].mxu0 %v433_v0  ;;  %683 = vmatmul.mubr.f32.gmra.mrb[6].mxu1 %v465_v1 }
  0xa5   : > { %607 = vmatprep.mubr.f32.mxu0 %v436_v2  ;;  %687 = vmatprep.mubr.f32.mxu1 %v468_v3  ;;  %v397_v2 = vld [vmem:[#allocation2 + $0x10] sm:$0xff] }
  0xa6   : > { %v413_v3 = vld [vmem:[#allocation2 + $0x90] sm:$0xff] }
  0xa8   : > { %608 = vmatmul.mubr.f32.gmra.mrb[8].mxu0 %v435_v4  ;;  %688 = vmatmul.mubr.f32.gmra.mrb[8].mxu1 %v467_v5 }
  0xa9   : > { %612 = vmatprep.mubr.f32.mxu0 %v438_v6  ;;  %692 = vmatprep.mubr.f32.mxu1 %v470_v7 }
  0xac   : > { %613 = vmatmul.mubr.f32.gmra.mrb[10].mxu0 %v437_v8  ;;  %693 = vmatmul.mubr.f32.gmra.mrb[10].mxu1 %v469_v9 }
  0xad   : > { %617 = vmatprep.mubr.f32.mxu0 %v440_v10  ;;  %697 = vmatprep.mubr.f32.mxu1 %v472_v11  ;;  %v398_v10 = vld [vmem:[#allocation2 + $0x18] sm:$0xff] }
  0xae   : > { %v414_v11 = vld [vmem:[#allocation2 + $0x98] sm:$0xff] }
  0xb0   : > { %618 = vmatmul.mubr.f32.gmra.mrb[12].mxu0 %v439_v12  ;;  %698 = vmatmul.mubr.f32.gmra.mrb[12].mxu1 %v471_v13 }
  0xb1   : > { %622 = vmatprep.mubr.f32.mxu0 %v442_v14  ;;  %702 = vmatprep.mubr.f32.mxu1 %v474_v15 }
  0xb4   : > { %623 = vmatmul.mubr.f32.gmra.mrb[14].mxu0 %v441_v16  ;;  %703 = vmatmul.mubr.f32.gmra.mrb[14].mxu1 %v473_v17 }
  0xb5   : > { %627 = vmatprep.mubr.f32.mxu0 %v444_v18  ;;  %707 = vmatprep.mubr.f32.mxu1 %v476_v19  ;;  %v399_v18 = vld [vmem:[#allocation2 + $0x20] sm:$0xff] }
  0xb6   : > { %v415_v19 = vld [vmem:[#allocation2 + $0xa0] sm:$0xff] }
  0xb8   : > { %628 = vmatmul.mubr.f32.gmra.mrb[16].mxu0 %v443_v20  ;;  %708 = vmatmul.mubr.f32.gmra.mrb[16].mxu1 %v475_v21 }
  0xb9   : > { %632 = vmatprep.mubr.f32.mxu0 %v446_v22  ;;  %712 = vmatprep.mubr.f32.mxu1 %v478_v23 }
  0xbc   : > { %633 = vmatmul.mubr.f32.gmra.mrb[18].mxu0 %v445_v24  ;;  %713 = vmatmul.mubr.f32.gmra.mrb[18].mxu1 %v477_v25 }
  0xbd   : > { %637 = vmatprep.mubr.f32.mxu0 %v448_v26  ;;  %717 = vmatprep.mubr.f32.mxu1 %v480_v27  ;;  %v400_v26 = vld [vmem:[#allocation2 + $0x28] sm:$0xff] }
  0xbe   : > { %v416_v27 = vld [vmem:[#allocation2 + $0xa8] sm:$0xff] }
  0xc0   : > { %638 = vmatmul.mubr.f32.gmra.mrb[20].mxu0 %v447_v28  ;;  %718 = vmatmul.mubr.f32.gmra.mrb[20].mxu1 %v479_v29 }
  0xc1   : > { %642 = vmatprep.mubr.f32.mxu0 %v450_v30  ;;  %722 = vmatprep.mubr.f32.mxu1 %v482_v31 }
  0xc4   : > { %643 = vmatmul.mubr.f32.gmra.mrb[22].mxu0 %v449_v32  ;;  %723 = vmatmul.mubr.f32.gmra.mrb[22].mxu1 %v481_v33 }
  0xc5   : > { %647 = vmatprep.mubr.f32.mxu0 %v452_v34  ;;  %727 = vmatprep.mubr.f32.mxu1 %v484_v35  ;;  %v401_v34 = vld [vmem:[#allocation2 + $0x30] sm:$0xff] }
  0xc6   : > { %v417_v35 = vld [vmem:[#allocation2 + $0xb0] sm:$0xff] }
  0xc8   : > { %648 = vmatmul.mubr.f32.gmra.mrb[24].mxu0 %v451_v36  ;;  %728 = vmatmul.mubr.f32.gmra.mrb[24].mxu1 %v483_v37 }
  0xc9   : > { %652 = vmatprep.mubr.f32.mxu0 %v454_v38  ;;  %732 = vmatprep.mubr.f32.mxu1 %v486_v39 }
  0xcc   : > { %653 = vmatmul.mubr.f32.gmra.mrb[26].mxu0 %v453_v40  ;;  %733 = vmatmul.mubr.f32.gmra.mrb[26].mxu1 %v485_v41 }
  0xcd   : > { %657 = vmatprep.mubr.f32.mxu0 %v456_v42  ;;  %737 = vmatprep.mubr.f32.mxu1 %v488_v43  ;;  %v402_v42 = vld [vmem:[#allocation2 + $0x38] sm:$0xff] }
  0xce   : > { %v418_v43 = vld [vmem:[#allocation2 + $0xb8] sm:$0xff] }
  0xd0   : > { %658 = vmatmul.mubr.f32.gmra.mrb[28].mxu0 %v455_v44  ;;  %738 = vmatmul.mubr.f32.gmra.mrb[28].mxu1 %v487_v45 }
  0xd1   : > { %662 = vmatprep.mubr.f32.mxu0 %v458_v46  ;;  %742 = vmatprep.mubr.f32.mxu1 %v490_v47 }
  0xd4   : > { %663 = vmatmul.mubr.f32.gmra.mrb[30].mxu0 %v457_v48  ;;  %743 = vmatmul.mubr.f32.gmra.mrb[30].mxu1 %v489_v49 }
 0x16b   : > { %v589_v52 = vpop.f32.mrb[0].mxu0  ;;  %v669_v53 = vpop.f32.mrb[0].mxu1 }
 0x16c   : > { %v748_v54 = vadd.f32 %v589_v52, %v395_v50  ;;  %v764_v55 = vadd.f32 %v669_v53, %v411_v51  ;;  %v591_v56 = vpop.f32.mrb[1].mxu0  ;;  %v671_v57 = vpop.f32.mrb[1].mxu1  ;;  %v403_v50 = vld [vmem:[#allocation2 + $0x40] sm:$0xff] }
 0x16d   : > { %v419_v51 = vld [vmem:[#allocation2 + $0xc0] sm:$0xff] }
 0x16e   : > { %781 = vst.msk [vmem:[#allocation2] sm:$0xff] %vm780_vm1, %v748_v54  ;;  %797 = vst.msk [vmem:[#allocation2 + $0x80] sm:$0xff] %vm780_vm1, %v764_v55 }
 0x16f   : > { %v594_v60 = vpop.f32.mrb[2].mxu0  ;;  %v674_v61 = vpop.f32.mrb[2].mxu1 }
 0x170   : > { %v749_v62 = vadd.f32 %v594_v60, %v396_v58  ;;  %v765_v63 = vadd.f32 %v674_v61, %v412_v59  ;;  %v596_v0 = vpop.f32.mrb[3].mxu0  ;;  %v676_v1 = vpop.f32.mrb[3].mxu1  ;;  %v404_v58 = vld [vmem:[#allocation2 + $0x48] sm:$0xff] }
 0x171   : > { %v420_v59 = vld [vmem:[#allocation2 + $0xc8] sm:$0xff] }
 0x172   : > { %782 = vst.msk [vmem:[#allocation2 + $0x8] sm:$0xff] %vm780_vm1, %v749_v62  ;;  %798 = vst.msk [vmem:[#allocation2 + $0x88] sm:$0xff] %vm780_vm1, %v765_v63 }
 0x173   : > { %v599_v4 = vpop.f32.mrb[4].mxu0  ;;  %v679_v5 = vpop.f32.mrb[4].mxu1 }
 0x174   : > { %v750_v6 = vadd.f32 %v599_v4, %v397_v2  ;;  %v766_v7 = vadd.f32 %v679_v5, %v413_v3  ;;  %v601_v8 = vpop.f32.mrb[5].mxu0  ;;  %v681_v9 = vpop.f32.mrb[5].mxu1  ;;  %v405_v2 = vld [vmem:[#allocation2 + $0x50] sm:$0xff] }
 0x175   : > { %v421_v3 = vld [vmem:[#allocation2 + $0xd0] sm:$0xff] }
 0x176   : > { %783 = vst.msk [vmem:[#allocation2 + $0x10] sm:$0xff] %vm780_vm1, %v750_v6  ;;  %799 = vst.msk [vmem:[#allocation2 + $0x90] sm:$0xff] %vm780_vm1, %v766_v7 }
 0x177   : > { %v604_v12 = vpop.f32.mrb[6].mxu0  ;;  %v684_v13 = vpop.f32.mrb[6].mxu1 }
 0x178   : > { %v751_v14 = vadd.f32 %v604_v12, %v398_v10  ;;  %v767_v15 = vadd.f32 %v684_v13, %v414_v11  ;;  %v606_v16 = vpop.f32.mrb[7].mxu0  ;;  %v686_v17 = vpop.f32.mrb[7].mxu1  ;;  %v406_v10 = vld [vmem:[#allocation2 + $0x58] sm:$0xff] }
 0x179   : > { %v422_v11 = vld [vmem:[#allocation2 + $0xd8] sm:$0xff] }
 0x17a   : > { %784 = vst.msk [vmem:[#allocation2 + $0x18] sm:$0xff] %vm780_vm1, %v751_v14  ;;  %800 = vst.msk [vmem:[#allocation2 + $0x98] sm:$0xff] %vm780_vm1, %v767_v15 }
 0x17b   : > { %v609_v20 = vpop.f32.mrb[8].mxu0  ;;  %v689_v21 = vpop.f32.mrb[8].mxu1 }
 0x17c   : > { %v752_v22 = vadd.f32 %v609_v20, %v399_v18  ;;  %v768_v23 = vadd.f32 %v689_v21, %v415_v19  ;;  %v611_v24 = vpop.f32.mrb[9].mxu0  ;;  %v691_v25 = vpop.f32.mrb[9].mxu1  ;;  %v407_v18 = vld [vmem:[#allocation2 + $0x60] sm:$0xff] }
 0x17d   : > { %v423_v19 = vld [vmem:[#allocation2 + $0xe0] sm:$0xff] }
 0x17e   : > { %785 = vst.msk [vmem:[#allocation2 + $0x20] sm:$0xff] %vm780_vm1, %v752_v22  ;;  %801 = vst.msk [vmem:[#allocation2 + $0xa0] sm:$0xff] %vm780_vm1, %v768_v23 }
 0x17f   : > { %v614_v28 = vpop.f32.mrb[10].mxu0  ;;  %v694_v29 = vpop.f32.mrb[10].mxu1 }
 0x180   : > { %v753_v30 = vadd.f32 %v614_v28, %v400_v26  ;;  %v769_v31 = vadd.f32 %v694_v29, %v416_v27  ;;  %v616_v32 = vpop.f32.mrb[11].mxu0  ;;  %v696_v33 = vpop.f32.mrb[11].mxu1  ;;  %v408_v26 = vld [vmem:[#allocation2 + $0x68] sm:$0xff] }
 0x181   : > { %v424_v27 = vld [vmem:[#allocation2 + $0xe8] sm:$0xff] }
 0x182   : > { %786 = vst.msk [vmem:[#allocation2 + $0x28] sm:$0xff] %vm780_vm1, %v753_v30  ;;  %802 = vst.msk [vmem:[#allocation2 + $0xa8] sm:$0xff] %vm780_vm1, %v769_v31 }
 0x183   : > { %v619_v36 = vpop.f32.mrb[12].mxu0  ;;  %v699_v37 = vpop.f32.mrb[12].mxu1 }
 0x184   : > { %v754_v38 = vadd.f32 %v619_v36, %v401_v34  ;;  %v770_v39 = vadd.f32 %v699_v37, %v417_v35  ;;  %v621_v40 = vpop.f32.mrb[13].mxu0  ;;  %v701_v41 = vpop.f32.mrb[13].mxu1  ;;  %v409_v34 = vld [vmem:[#allocation2 + $0x70] sm:$0xff] }
 0x185   : > { %v425_v35 = vld [vmem:[#allocation2 + $0xf0] sm:$0xff] }
 0x186   : > { %787 = vst.msk [vmem:[#allocation2 + $0x30] sm:$0xff] %vm780_vm1, %v754_v38  ;;  %803 = vst.msk [vmem:[#allocation2 + $0xb0] sm:$0xff] %vm780_vm1, %v770_v39 }
 0x187   : > { %v624_v44 = vpop.f32.mrb[14].mxu0  ;;  %v704_v45 = vpop.f32.mrb[14].mxu1 }
 0x188   : > { %v755_v46 = vadd.f32 %v624_v44, %v402_v42  ;;  %v771_v47 = vadd.f32 %v704_v45, %v418_v43  ;;  %v626_v48 = vpop.f32.mrb[15].mxu0  ;;  %v706_v49 = vpop.f32.mrb[15].mxu1  ;;  %v410_v42 = vld [vmem:[#allocation2 + $0x78] sm:$0xff] }
 0x189   : > { %v426_v43 = vld [vmem:[#allocation2 + $0xf8] sm:$0xff] }
 0x18a   : > { %788 = vst.msk [vmem:[#allocation2 + $0x38] sm:$0xff] %vm780_vm1, %v755_v46  ;;  %804 = vst.msk [vmem:[#allocation2 + $0xb8] sm:$0xff] %vm780_vm1, %v771_v47 }
 0x18b   : > { %v629_v52 = vpop.f32.mrb[16].mxu0  ;;  %v709_v53 = vpop.f32.mrb[16].mxu1 }
 0x18c   : > { %v756_v54 = vadd.f32 %v629_v52, %v403_v50  ;;  %v772_v55 = vadd.f32 %v709_v53, %v419_v51  ;;  %v631_v56 = vpop.f32.mrb[17].mxu0  ;;  %v711_v57 = vpop.f32.mrb[17].mxu1  ;;  %v817_v50 = vld [vmem:[#allocation2] sm:$0xff] (!%p1002_p13)  ;;  %v818_v51 = vld [vmem:[#allocation2 + $0x8] sm:$0xff] (!%p1002_p13)  ;;  %v819_v52 = vld [vmem:[#allocation2 + $0x10] sm:$0xff] (!%p1002_p13) }
 0x18d   : > { %849 = vst.msk [vmem:[%s1422_s26] sm:$0xff] (!%p1002_p13), %vm780_vm1, %v817_v50  ;;  %850 = vst.msk [vmem:[%s1422_s26 + $0x8] sm:$0xff] (!%p1002_p13), %vm780_vm1, %v818_v51  ;;  %v820_v53 = vld [vmem:[#allocation2 + $0x18] sm:$0xff] (!%p1002_p13)  ;;  %v823_v56 = vld [vmem:[#allocation2 + $0x30] sm:$0xff] (!%p1002_p13) }
 0x18e   : > { %789 = vst.msk [vmem:[#allocation2 + $0x40] sm:$0xff] %vm780_vm1, %v756_v54  ;;  %805 = vst.msk [vmem:[#allocation2 + $0xc0] sm:$0xff] %vm780_vm1, %v772_v55  ;;  %v821_v54 = vld [vmem:[#allocation2 + $0x20] sm:$0xff] (!%p1002_p13)  ;;  %v822_v55 = vld [vmem:[#allocation2 + $0x28] sm:$0xff] (!%p1002_p13) }
 0x18f   : > { %v634_v60 = vpop.f32.mrb[18].mxu0  ;;  %v714_v61 = vpop.f32.mrb[18].mxu1  ;;  %851 = vst.msk [vmem:[%s1422_s26 + $0x10] sm:$0xff] (!%p1002_p13), %vm780_vm1, %v819_v52  ;;  %852 = vst.msk [vmem:[%s1422_s26 + $0x18] sm:$0xff] (!%p1002_p13), %vm780_vm1, %v820_v53 }
 0x190   : > { %v757_v62 = vadd.f32 %v634_v60, %v404_v58  ;;  %v773_v63 = vadd.f32 %v714_v61, %v420_v59  ;;  %v636_v0 = vpop.f32.mrb[19].mxu0  ;;  %v716_v1 = vpop.f32.mrb[19].mxu1  ;;  %853 = vst.msk [vmem:[%s1422_s26 + $0x20] sm:$0xff] (!%p1002_p13), %vm780_vm1, %v821_v54  ;;  %854 = vst.msk [vmem:[%s1422_s26 + $0x28] sm:$0xff] (!%p1002_p13), %vm780_vm1, %v822_v55 }
 0x191   : > { %v824_v57 = vld [vmem:[#allocation2 + $0x38] sm:$0xff] (!%p1002_p13)  ;;  %855 = vst.msk [vmem:[%s1422_s26 + $0x30] sm:$0xff] (!%p1002_p13), %vm780_vm1, %v823_v56 }
 0x192   : > { %790 = vst.msk [vmem:[#allocation2 + $0x48] sm:$0xff] %vm780_vm1, %v757_v62  ;;  %806 = vst.msk [vmem:[#allocation2 + $0xc8] sm:$0xff] %vm780_vm1, %v773_v63 }
 0x193   : > { %v639_v4 = vpop.f32.mrb[20].mxu0  ;;  %v719_v5 = vpop.f32.mrb[20].mxu1  ;;  %856 = vst.msk [vmem:[%s1422_s26 + $0x38] sm:$0xff] (!%p1002_p13), %vm780_vm1, %v824_v57 }
 0x194   : > { %v758_v6 = vadd.f32 %v639_v4, %v405_v2  ;;  %v774_v7 = vadd.f32 %v719_v5, %v421_v3  ;;  %v641_v8 = vpop.f32.mrb[21].mxu0  ;;  %v721_v9 = vpop.f32.mrb[21].mxu1  ;;  %v833_v2 = vld [vmem:[#allocation2 + $0x80] sm:$0xff] (!%p1002_p13)  ;;  %v834_v3 = vld [vmem:[#allocation2 + $0x88] sm:$0xff] (!%p1002_p13)  ;;  %v835_v4 = vld [vmem:[#allocation2 + $0x90] sm:$0xff] (!%p1002_p13) }
 0x195   : > { %v825_v58 = vld [vmem:[#allocation2 + $0x40] sm:$0xff] (!%p1002_p13)  ;;  %865 = vst.msk [vmem:[%s1422_s26 + $0x80] sm:$0xff] (!%p1002_p13), %vm780_vm1, %v833_v2  ;;  %866 = vst.msk [vmem:[%s1422_s26 + $0x88] sm:$0xff] (!%p1002_p13), %vm780_vm1, %v834_v3  ;;  %v836_v5 = vld [vmem:[#allocation2 + $0x98] sm:$0xff] (!%p1002_p13) }
 0x196   : > { %791 = vst.msk [vmem:[#allocation2 + $0x50] sm:$0xff] %vm780_vm1, %v758_v6  ;;  %807 = vst.msk [vmem:[#allocation2 + $0xd0] sm:$0xff] %vm780_vm1, %v774_v7  ;;  %v837_v6 = vld [vmem:[#allocation2 + $0xa0] sm:$0xff] (!%p1002_p13)  ;;  %v838_v7 = vld [vmem:[#allocation2 + $0xa8] sm:$0xff] (!%p1002_p13) }
 0x197   : > { %v644_v12 = vpop.f32.mrb[22].mxu0  ;;  %v724_v13 = vpop.f32.mrb[22].mxu1  ;;  %857 = vst.msk [vmem:[%s1422_s26 + $0x40] sm:$0xff] (!%p1002_p13), %vm780_vm1, %v825_v58  ;;  %867 = vst.msk [vmem:[%s1422_s26 + $0x90] sm:$0xff] (!%p1002_p13), %vm780_vm1, %v835_v4  ;;  %v839_v8 = vld [vmem:[#allocation2 + $0xb0] sm:$0xff] (!%p1002_p13)  ;;  %v840_v9 = vld [vmem:[#allocation2 + $0xb8] sm:$0xff] (!%p1002_p13) }
 0x198   : > { %v759_v14 = vadd.f32 %v644_v12, %v406_v10  ;;  %v775_v15 = vadd.f32 %v724_v13, %v422_v11  ;;  %v646_v16 = vpop.f32.mrb[23].mxu0  ;;  %v726_v17 = vpop.f32.mrb[23].mxu1  ;;  %868 = vst.msk [vmem:[%s1422_s26 + $0x98] sm:$0xff] (!%p1002_p13), %vm780_vm1, %v836_v5  ;;  %869 = vst.msk [vmem:[%s1422_s26 + $0xa0] sm:$0xff] (!%p1002_p13), %vm780_vm1, %v837_v6  ;;  %v841_v10 = vld [vmem:[#allocation2 + $0xc0] sm:$0xff] (!%p1002_p13) }
 0x199   : > { %v826_v59 = vld [vmem:[#allocation2 + $0x48] sm:$0xff] (!%p1002_p13)  ;;  %870 = vst.msk [vmem:[%s1422_s26 + $0xa8] sm:$0xff] (!%p1002_p13), %vm780_vm1, %v838_v7  ;;  %871 = vst.msk [vmem:[%s1422_s26 + $0xb0] sm:$0xff] (!%p1002_p13), %vm780_vm1, %v839_v8 }
 0x19a   : > { %792 = vst.msk [vmem:[#allocation2 + $0x58] sm:$0xff] %vm780_vm1, %v759_v14  ;;  %808 = vst.msk [vmem:[#allocation2 + $0xd8] sm:$0xff] %vm780_vm1, %v775_v15  ;;  %v842_v11 = vld [vmem:[#allocation2 + $0xc8] sm:$0xff] (!%p1002_p13) }
 0x19b   : > { %v649_v20 = vpop.f32.mrb[24].mxu0  ;;  %v729_v21 = vpop.f32.mrb[24].mxu1  ;;  %858 = vst.msk [vmem:[%s1422_s26 + $0x48] sm:$0xff] (!%p1002_p13), %vm780_vm1, %v826_v59  ;;  %872 = vst.msk [vmem:[%s1422_s26 + $0xb8] sm:$0xff] (!%p1002_p13), %vm780_vm1, %v840_v9 }
 0x19c   : > { %v760_v22 = vadd.f32 %v649_v20, %v407_v18  ;;  %v776_v23 = vadd.f32 %v729_v21, %v423_v19  ;;  %v651_v24 = vpop.f32.mrb[25].mxu0  ;;  %v731_v25 = vpop.f32.mrb[25].mxu1  ;;  %873 = vst.msk [vmem:[%s1422_s26 + $0xc0] sm:$0xff] (!%p1002_p13), %vm780_vm1, %v841_v10  ;;  %874 = vst.msk [vmem:[%s1422_s26 + $0xc8] sm:$0xff] (!%p1002_p13), %vm780_vm1, %v842_v11 }
 0x19d   : > { %v827_v60 = vld [vmem:[#allocation2 + $0x50] sm:$0xff] (!%p1002_p13) }
 0x19e   : > { %793 = vst.msk [vmem:[#allocation2 + $0x60] sm:$0xff] %vm780_vm1, %v760_v22  ;;  %809 = vst.msk [vmem:[#allocation2 + $0xe0] sm:$0xff] %vm780_vm1, %v776_v23  ;;  %v843_v12 = vld [vmem:[#allocation2 + $0xd0] sm:$0xff] (!%p1002_p13) }
 0x19f   : > { %v654_v28 = vpop.f32.mrb[26].mxu0  ;;  %v734_v29 = vpop.f32.mrb[26].mxu1  ;;  %859 = vst.msk [vmem:[%s1422_s26 + $0x50] sm:$0xff] (!%p1002_p13), %vm780_vm1, %v827_v60  ;;  %875 = vst.msk [vmem:[%s1422_s26 + $0xd0] sm:$0xff] (!%p1002_p13), %vm780_vm1, %v843_v12 }
 0x1a0   : > { %v761_v30 = vadd.f32 %v654_v28, %v408_v26  ;;  %v777_v31 = vadd.f32 %v734_v29, %v424_v27  ;;  %v656_v32 = vpop.f32.mrb[27].mxu0  ;;  %v736_v33 = vpop.f32.mrb[27].mxu1 }
 0x1a1   : > { %v828_v61 = vld [vmem:[#allocation2 + $0x58] sm:$0xff] (!%p1002_p13) }
 0x1a2   : > { %794 = vst.msk [vmem:[#allocation2 + $0x68] sm:$0xff] %vm780_vm1, %v761_v30  ;;  %810 = vst.msk [vmem:[#allocation2 + $0xe8] sm:$0xff] %vm780_vm1, %v777_v31  ;;  %v844_v13 = vld [vmem:[#allocation2 + $0xd8] sm:$0xff] (!%p1002_p13) }
 0x1a3   : > { %v659_v36 = vpop.f32.mrb[28].mxu0  ;;  %v739_v37 = vpop.f32.mrb[28].mxu1  ;;  %860 = vst.msk [vmem:[%s1422_s26 + $0x58] sm:$0xff] (!%p1002_p13), %vm780_vm1, %v828_v61  ;;  %876 = vst.msk [vmem:[%s1422_s26 + $0xd8] sm:$0xff] (!%p1002_p13), %vm780_vm1, %v844_v13 }
 0x1a4   : > { %v762_v38 = vadd.f32 %v659_v36, %v409_v34  ;;  %v778_v39 = vadd.f32 %v739_v37, %v425_v35  ;;  %v661_v40 = vpop.f32.mrb[29].mxu0  ;;  %v741_v41 = vpop.f32.mrb[29].mxu1  ;;  %816 = sbr.rel (%p1002_p13) target bundleno = 436 (0x1b4), region = 59 }
 0x1a5   : > { %v829_v62 = vld [vmem:[#allocation2 + $0x60] sm:$0xff] (!%p1002_p13) }
 0x1a6   : > { %795 = vst.msk [vmem:[#allocation2 + $0x70] sm:$0xff] %vm780_vm1, %v762_v38  ;;  %811 = vst.msk [vmem:[#allocation2 + $0xf0] sm:$0xff] %vm780_vm1, %v778_v39  ;;  %v845_v14 = vld [vmem:[#allocation2 + $0xe0] sm:$0xff] (!%p1002_p13) }
 0x1a7   : > { %v664_v44 = vpop.f32.mrb[30].mxu0  ;;  %v744_v45 = vpop.f32.mrb[30].mxu1  ;;  %861 = vst.msk [vmem:[%s1422_s26 + $0x60] sm:$0xff] (!%p1002_p13), %vm780_vm1, %v829_v62  ;;  %877 = vst.msk [vmem:[%s1422_s26 + $0xe0] sm:$0xff] (!%p1002_p13), %vm780_vm1, %v845_v14 }
 0x1a8   : > { %v763_v46 = vadd.f32 %v664_v44, %v410_v42  ;;  %v779_v47 = vadd.f32 %v744_v45, %v426_v43  ;;  %v666_v48 = vpop.f32.mrb[31].mxu0  ;;  %v746_v49 = vpop.f32.mrb[31].mxu1 }
 0x1a9   : > { %v830_v63 = vld [vmem:[#allocation2 + $0x68] sm:$0xff] (!%p1002_p13) }
 0x1aa   : > { %796 = vst.msk [vmem:[#allocation2 + $0x78] sm:$0xff] %vm780_vm1, %v763_v46  ;;  %812 = vst.msk [vmem:[#allocation2 + $0xf8] sm:$0xff] %vm780_vm1, %v779_v47  ;;  %v846_v15 = vld [vmem:[#allocation2 + $0xe8] sm:$0xff] (!%p1002_p13) }
 0x1ab   : > { %862 = vst.msk [vmem:[%s1422_s26 + $0x68] sm:$0xff] %vm780_vm1, %v830_v63  ;;  %878 = vst.msk [vmem:[%s1422_s26 + $0xe8] sm:$0xff] %vm780_vm1, %v846_v15 }
 0x1ad   : > { %v831_v0 = vld [vmem:[#allocation2 + $0x70] sm:$0xff] }
 0x1ae   : > { %863 = vst.msk [vmem:[%s1422_s26 + $0x70] sm:$0xff] %vm780_vm1, %v831_v0  ;;  %v847_v16 = vld [vmem:[#allocation2 + $0xf0] sm:$0xff] }
 0x1af   : > { %879 = vst.msk [vmem:[%s1422_s26 + $0xf0] sm:$0xff] %vm780_vm1, %v847_v16 }
 0x1b1   : > { %v832_v1 = vld [vmem:[#allocation2 + $0x78] sm:$0xff] }
 0x1b2   : > { %864 = vst.msk [vmem:[%s1422_s26 + $0x78] sm:$0xff] %vm780_vm1, %v832_v1  ;;  %v848_v17 = vld [vmem:[#allocation2 + $0xf8] sm:$0xff] }
 0x1b3   : > { %880 = vst.msk [vmem:[%s1422_s26 + $0xf8] sm:$0xff] %vm780_vm1, %v848_v17 }
 0x1b4 PF: > { %s12_s15 = sadd.s32 1, %s1198_s15   ;;  %s1708_s9 = smov %s1178_s10 }
 0x1b5   : > { %p9_p0 = scmp.ge.s32.totalorder %s12_s15, 6   ;;  %s1709_s10 = smov %s1268_s22 }
 0x1b6   : > { %s1710_s11 = smov %s1190_s13  ;;  %s1711_s12 = smov %s1194_s14 }
 0x1b7   : > { %s1712_s13 = smov %s1715_s16  ;;  %s1713_s14 = smov %s1719_s17 }
 0x1b8   :  { %11 = sbr.rel (!%p9_p0) target bundleno = 4 (0x4), region = 97 }

// kernel: _lambda_.27
= control target key start
LH: loop header
LB: loop body
LE: loop exit
PB: predicated region body
PF: predicated region fallthrough
CT: control target
= control target key end

     0   :  { %s1249_s9 = smov 0   ;;  %s1251_s10 = smov 0   ;;  %s1507_s0 = inlined_call_operand.vmem [shape: f32[512,8], index: 0, kind: input, shape index: {}]   ;;  %s1508_s1 = inlined_call_operand.vmem [shape: f32[128,8], index: 1, kind: input, shape index: {}]   ;;  %s1509_s2 = inlined_call_operand.vmem [shape: f32[512,128], index: 2, kind: output, shape index: {}]  }
   0x1   :  { %s1253_s11 = smov 0  }
   0x2 LB: > { %s31_s12 = sadd.s32 1, %s1228_s10  ;;  %p939_p0 = scmp.ge.s32.totalorder %s1232_s11, 1  ;;  %s1232_s11 = sphi %s1253_s11, %s12_s11   ;;  %s1228_s10 = sphi %s1251_s10, %s1513_s10   ;;  %s1224_s9 = sphi %s1249_s9, %s1512_s9  }
   0x3   : > { %p33_p1 = scmp.ge.s32.totalorder %s31_s12, 2  ;;  %p155_p2 = scmp.lt.s32.totalorder %s1232_s11, 3 }
   0x5   : > { %s1515_s12 = smov (%p33_p1, %s31_s12), 0  ;;  %p156_p3 = pnand %p939_p0, %p155_p2 }
   0x6   : > { %v318_v0 = vld [vmem:[%s1508_s1] sm:$0xff] (!%p156_p3)  ;;  %v319_v1 = vld [vmem:[%s1508_s1 + $0x8] sm:$0xff] (!%p156_p3)  ;;  %vm334_vm0 = vcmask (!%p156_p3), 64512   ;;  %v320_v2 = vld [vmem:[%s1508_s1 + $0x10] sm:$0xff] (!%p156_p3)  ;;  %s940_s19 = sshll.u32 (!%p156_p3), %s1224_s9, 5 }
   0x7   : > { %159 = sbr.rel (%p156_p3) target bundleno = 316 (0x13c), region = 28  ;;  %v1122_v3 = vpack.c.bf16 (!%p156_p3), %v319_v1, %v318_v0  ;;  %vm1278_vm1 = vmpackc.low (!%p156_p3), %vm334_vm0, %vm334_vm0  ;;  %v321_v5 = vld [vmem:[%s1508_s1 + $0x18] sm:$0xff] (!%p156_p3)  ;;  %p192_p4 = scmp.lt.s32.totalorder (!%p156_p3), %s940_s19, 63  ;;  %v322_v7 = vld [vmem:[%s1508_s1 + $0x20] sm:$0xff] (!%p156_p3) }
   0x8   : > { %v1128_v6 = vpack.c.bf16 (!%p156_p3), %v321_v5, %v320_v2  ;;  %v323_v8 = vld [vmem:[%s1508_s1 + $0x28] sm:$0xff] (!%p156_p3)  ;;  %v324_v12 = vld [vmem:[%s1508_s1 + $0x30] sm:$0xff] (!%p156_p3)  ;;  %v325_v13 = vld [vmem:[%s1508_s1 + $0x38] sm:$0xff] (!%p156_p3) }
   0x9   : > { %1124 = vmatprep.subr.msk.bf16.mxu0 (!%p156_p3), %vm1278_vm1, %v1122_v3  ;;  %1170 = vmatprep.subr.msk.bf16.mxu1 (!%p156_p3), %vm1278_vm1, %v1122_v3  ;;  %v1134_v11 = vpack.c.bf16 (!%p156_p3), %v323_v8, %v322_v7  ;;  %v1140_v14 = vpack.c.bf16 (!%p156_p3), %v325_v13, %v324_v12  ;;  %v326_v15 = vld [vmem:[%s1508_s1 + $0x40] sm:$0xff] (!%p156_p3)  ;;  %v327_v16 = vld [vmem:[%s1508_s1 + $0x48] sm:$0xff] (!%p156_p3)  ;;  %v328_v18 = vld [vmem:[%s1508_s1 + $0x50] sm:$0xff] (!%p156_p3) }
   0xa   : > { %1127 = vmatpush3.bf16.xpose.msk.msra.mxu0 (!%p156_p3), %vm1278_vm1, %v1122_v3  ;;  %1178 = vmatpush3.bf16.xpose.msk.msra.mxu1 (!%p156_p3), %vm1278_vm1, %v1122_v3  ;;  %v1146_v17 = vpack.c.bf16 (!%p156_p3), %v327_v16, %v326_v15  ;;  %v329_v19 = vld [vmem:[%s1508_s1 + $0x58] sm:$0xff] (!%p156_p3)  ;;  %v330_v21 = vld [vmem:[%s1508_s1 + $0x60] sm:$0xff] (!%p156_p3)  ;;  %v331_v22 = vld [vmem:[%s1508_s1 + $0x68] sm:$0xff] (!%p156_p3) }
   0xb   : > { %1130 = vmatprep.subr.msk.bf16.mxu0 (!%p156_p3), %vm1278_vm1, %v1128_v6  ;;  %1171 = vmatprep.subr.msk.bf16.mxu1 (!%p156_p3), %vm1278_vm1, %v1128_v6  ;;  %v1152_v20 = vpack.c.bf16 (!%p156_p3), %v329_v19, %v328_v18  ;;  %v1158_v23 = vpack.c.bf16 (!%p156_p3), %v331_v22, %v330_v21  ;;  %v332_v24 = vld [vmem:[%s1508_s1 + $0x70] sm:$0xff] (!%p156_p3)  ;;  %v333_v25 = vld [vmem:[%s1508_s1 + $0x78] sm:$0xff] (!%p156_p3) }
   0xc   : > { %v1164_v26 = vpack.c.bf16 (!%p156_p3), %v333_v25, %v332_v24 }
   0xe   : > { %s1517_s19 = smov (!%p192_p4, %s940_s19), 63 }
   0xf   : > { %s941_s22 = sshll.u32 %s1517_s19, 3 }
  0x10   : > { %s1311_s29 = scalar_lea.vmem %s1507_s0, %s941_s22  ;;  %s1464_s30 = scalar_lea.vmem %s1509_s2, %s941_s22 }
  0x11   : > { %v286_v9 = vld [vmem:[%s1311_s29] sm:$0xff]  ;;  %v287_v27 = vld [vmem:[%s1311_s29 + $0x8] sm:$0xff]  ;;  %v288_v29 = vld [vmem:[%s1311_s29 + $0x10] sm:$0xff] }
  0x12   : > { %v302_v10 = vld [vmem:[%s1311_s29 + $0x80] sm:$0xff]  ;;  %1074 = vmatprep.mubr.msk.f32.mxu0 %vm334_vm0, %v286_v9  ;;  %1133 = vmatpush3.bf16.xpose.msk.msra.mxu0 %vm1278_vm1, %v1128_v6  ;;  %v303_v28 = vld [vmem:[%s1311_s29 + $0x88] sm:$0xff]  ;;  %v304_v30 = vld [vmem:[%s1311_s29 + $0x90] sm:$0xff] }
  0x13   : > { %1098 = vmatprep.mubr.msk.f32.mxu1 %vm334_vm0, %v302_v10  ;;  %1179 = vmatpush3.bf16.xpose.msk.msra.mxu1 %vm1278_vm1, %v1128_v6  ;;  %v289_v31 = vld [vmem:[%s1311_s29 + $0x18] sm:$0xff]  ;;  %v290_v33 = vld [vmem:[%s1311_s29 + $0x20] sm:$0xff]  ;;  %v291_v35 = vld [vmem:[%s1311_s29 + $0x28] sm:$0xff] }
  0x14   : > { %1136 = vmatprep.subr.msk.bf16.mxu0 %vm1278_vm1, %v1134_v11  ;;  %1172 = vmatprep.subr.msk.bf16.mxu1 %vm1278_vm1, %v1134_v11  ;;  %v305_v32 = vld [vmem:[%s1311_s29 + $0x98] sm:$0xff]  ;;  %v306_v34 = vld [vmem:[%s1311_s29 + $0xa0] sm:$0xff]  ;;  %v307_v36 = vld [vmem:[%s1311_s29 + $0xa8] sm:$0xff] }
  0x15   : > { %v292_v37 = vld [vmem:[%s1311_s29 + $0x30] sm:$0xff]  ;;  %v293_v39 = vld [vmem:[%s1311_s29 + $0x38] sm:$0xff]  ;;  %v294_v41 = vld [vmem:[%s1311_s29 + $0x40] sm:$0xff] }
  0x16   : > { %v308_v38 = vld [vmem:[%s1311_s29 + $0xb0] sm:$0xff]  ;;  %v309_v40 = vld [vmem:[%s1311_s29 + $0xb8] sm:$0xff]  ;;  %v310_v42 = vld [vmem:[%s1311_s29 + $0xc0] sm:$0xff] }
  0x17   : > { %v295_v43 = vld [vmem:[%s1311_s29 + $0x48] sm:$0xff]  ;;  %v296_v45 = vld [vmem:[%s1311_s29 + $0x50] sm:$0xff]  ;;  %v297_v47 = vld [vmem:[%s1311_s29 + $0x58] sm:$0xff] }
  0x18   : > { %v311_v44 = vld [vmem:[%s1311_s29 + $0xc8] sm:$0xff]  ;;  %v312_v46 = vld [vmem:[%s1311_s29 + $0xd0] sm:$0xff]  ;;  %v313_v48 = vld [vmem:[%s1311_s29 + $0xd8] sm:$0xff] }
  0x19   : > { %v298_v49 = vld [vmem:[%s1311_s29 + $0x60] sm:$0xff]  ;;  %v299_v51 = vld [vmem:[%s1311_s29 + $0x68] sm:$0xff]  ;;  %v300_v53 = vld [vmem:[%s1311_s29 + $0x70] sm:$0xff] }
  0x1a   : > { %1139 = vmatpush3.bf16.xpose.msk.msra.mxu0 %vm1278_vm1, %v1134_v11  ;;  %v314_v50 = vld [vmem:[%s1311_s29 + $0xe0] sm:$0xff]  ;;  %v315_v52 = vld [vmem:[%s1311_s29 + $0xe8] sm:$0xff]  ;;  %v316_v54 = vld [vmem:[%s1311_s29 + $0xf0] sm:$0xff] }
  0x1b   : > { %1180 = vmatpush3.bf16.xpose.msk.msra.mxu1 %vm1278_vm1, %v1134_v11  ;;  %1142 = vmatprep.subr.msk.bf16.mxu0 %vm1278_vm1, %v1140_v14  ;;  %v301_v55 = vld [vmem:[%s1311_s29 + $0x78] sm:$0xff] }
  0x1c   : > { %1173 = vmatprep.subr.msk.bf16.mxu1 %vm1278_vm1, %v1140_v14  ;;  %v317_v56 = vld [vmem:[%s1311_s29 + $0xf8] sm:$0xff] }
  0x22   : > { %1145 = vmatpush3.bf16.xpose.msk.msra.mxu0 %vm1278_vm1, %v1140_v14 }
  0x23   : > { %1181 = vmatpush3.bf16.xpose.msk.msra.mxu1 %vm1278_vm1, %v1140_v14  ;;  %1148 = vmatprep.subr.msk.bf16.mxu0 %vm1278_vm1, %v1146_v17 }
  0x24   : > { %1174 = vmatprep.subr.msk.bf16.mxu1 %vm1278_vm1, %v1146_v17 }
  0x2a   : > { %1151 = vmatpush3.bf16.xpose.msk.msra.mxu0 %vm1278_vm1, %v1146_v17 }
  0x2b   : > { %1182 = vmatpush3.bf16.xpose.msk.msra.mxu1 %vm1278_vm1, %v1146_v17  ;;  %1154 = vmatprep.subr.msk.bf16.mxu0 %vm1278_vm1, %v1152_v20 }
  0x2c   : > { %1175 = vmatprep.subr.msk.bf16.mxu1 %vm1278_vm1, %v1152_v20 }
  0x32   : > { %1157 = vmatpush3.bf16.xpose.msk.msra.mxu0 %vm1278_vm1, %v1152_v20 }
  0x33   : > { %1183 = vmatpush3.bf16.xpose.msk.msra.mxu1 %vm1278_vm1, %v1152_v20  ;;  %1160 = vmatprep.subr.msk.bf16.mxu0 %vm1278_vm1, %v1158_v23 }
  0x34   : > { %1176 = vmatprep.subr.msk.bf16.mxu1 %vm1278_vm1, %v1158_v23 }
  0x3a   : > { %1163 = vmatpush3.bf16.xpose.msk.msra.mxu0 %vm1278_vm1, %v1158_v23 }
  0x3b   : > { %1184 = vmatpush3.bf16.xpose.msk.msra.mxu1 %vm1278_vm1, %v1158_v23  ;;  %1166 = vmatprep.subr.msk.bf16.mxu0 %vm1278_vm1, %v1164_v26 }
  0x3c   : > { %1177 = vmatprep.subr.msk.bf16.mxu1 %vm1278_vm1, %v1164_v26 }
  0x42   : > { %1169 = vmatpush3.bf16.xpose.msk.msra.mxu0 %vm1278_vm1, %v1164_v26 }
  0x43   : > { %1185 = vmatpush3.bf16.xpose.msk.msra.mxu1 %vm1278_vm1, %v1164_v26 }
  0x49   : > { %1075 = vmatmul.mubr.msk.f32.vlgmr.msra.gmra.mrb[0].mxu0 %vm334_vm0, %v287_v27 }
  0x4a   : > { %1099 = vmatmul.mubr.msk.f32.vlgmr.msra.gmra.mrb[0].mxu1 %vm334_vm0, %v303_v28  ;;  %1077 = vmatprep.mubr.msk.f32.mxu0 %vm334_vm0, %v288_v29 }
  0x4b   : > { %1101 = vmatprep.mubr.msk.f32.mxu1 %vm334_vm0, %v304_v30 }
  0x4d   : > { %1078 = vmatmul.mubr.msk.f32.gmra.mrb[2].mxu0 %vm334_vm0, %v289_v31 }
  0x4e   : > { %1102 = vmatmul.mubr.msk.f32.gmra.mrb[2].mxu1 %vm334_vm0, %v305_v32  ;;  %1080 = vmatprep.mubr.msk.f32.mxu0 %vm334_vm0, %v290_v33 }
  0x4f   : > { %1104 = vmatprep.mubr.msk.f32.mxu1 %vm334_vm0, %v306_v34 }
  0x51   : > { %1081 = vmatmul.mubr.msk.f32.gmra.mrb[4].mxu0 %vm334_vm0, %v291_v35 }
  0x52   : > { %1105 = vmatmul.mubr.msk.f32.gmra.mrb[4].mxu1 %vm334_vm0, %v307_v36  ;;  %1083 = vmatprep.mubr.msk.f32.mxu0 %vm334_vm0, %v292_v37 }
  0x53   : > { %1107 = vmatprep.mubr.msk.f32.mxu1 %vm334_vm0, %v308_v38 }
  0x55   : > { %1084 = vmatmul.mubr.msk.f32.gmra.mrb[6].mxu0 %vm334_vm0, %v293_v39 }
  0x56   : > { %1108 = vmatmul.mubr.msk.f32.gmra.mrb[6].mxu1 %vm334_vm0, %v309_v40  ;;  %1086 = vmatprep.mubr.msk.f32.mxu0 %vm334_vm0, %v294_v41 }
  0x57   : > { %1110 = vmatprep.mubr.msk.f32.mxu1 %vm334_vm0, %v310_v42 }
  0x59   : > { %1087 = vmatmul.mubr.msk.f32.gmra.mrb[8].mxu0 %vm334_vm0, %v295_v43 }
  0x5a   : > { %1111 = vmatmul.mubr.msk.f32.gmra.mrb[8].mxu1 %vm334_vm0, %v311_v44  ;;  %1089 = vmatprep.mubr.msk.f32.mxu0 %vm334_vm0, %v296_v45 }
  0x5b   : > { %1113 = vmatprep.mubr.msk.f32.mxu1 %vm334_vm0, %v312_v46 }
  0x5d   : > { %1090 = vmatmul.mubr.msk.f32.gmra.mrb[10].mxu0 %vm334_vm0, %v297_v47 }
  0x5e   : > { %1114 = vmatmul.mubr.msk.f32.gmra.mrb[10].mxu1 %vm334_vm0, %v313_v48  ;;  %1092 = vmatprep.mubr.msk.f32.mxu0 %vm334_vm0, %v298_v49 }
  0x5f   : > { %1116 = vmatprep.mubr.msk.f32.mxu1 %vm334_vm0, %v314_v50 }
  0x61   : > { %1093 = vmatmul.mubr.msk.f32.gmra.mrb[12].mxu0 %vm334_vm0, %v299_v51 }
  0x62   : > { %1117 = vmatmul.mubr.msk.f32.gmra.mrb[12].mxu1 %vm334_vm0, %v315_v52  ;;  %1095 = vmatprep.mubr.msk.f32.mxu0 %vm334_vm0, %v300_v53 }
  0x63   : > { %1119 = vmatprep.mubr.msk.f32.mxu1 %vm334_vm0, %v316_v54 }
  0x65   : > { %1096 = vmatmul.mubr.msk.f32.gmra.mrb[14].mxu0 %vm334_vm0, %v301_v55 }
  0x66   : > { %1120 = vmatmul.mubr.msk.f32.gmra.mrb[14].mxu1 %vm334_vm0, %v317_v56 }
 0x11c   : > { %v1076_v57 = vpop.f32.mrb[0].mxu0 }
 0x11d   : > { %v1100_v58 = vpop.f32.mrb[0].mxu1  ;;  %804 = vst [vmem:[%s1464_s30 + $0x8] sm:$0xff] %v1076_v57  ;;  %v545_v59 = vpop.f32.mrb[1].mxu0 }
 0x11e   : > { %820 = vst [vmem:[%s1464_s30 + $0x88] sm:$0xff] %v1100_v58  ;;  %v625_v60 = vpop.f32.mrb[1].mxu1  ;;  %803 = vst [vmem:[%s1464_s30] sm:$0xff] %v545_v59 }
 0x11f   : > { %819 = vst [vmem:[%s1464_s30 + $0x80] sm:$0xff] %v625_v60 }
 0x120   : > { %v1079_v61 = vpop.f32.mrb[2].mxu0 }
 0x121   : > { %v1103_v62 = vpop.f32.mrb[2].mxu1  ;;  %806 = vst [vmem:[%s1464_s30 + $0x18] sm:$0xff] %v1079_v61  ;;  %v555_v63 = vpop.f32.mrb[3].mxu0 }
 0x122   : > { %822 = vst [vmem:[%s1464_s30 + $0x98] sm:$0xff] %v1103_v62  ;;  %v635_v0 = vpop.f32.mrb[3].mxu1  ;;  %805 = vst [vmem:[%s1464_s30 + $0x10] sm:$0xff] %v555_v63 }
 0x123   : > { %821 = vst [vmem:[%s1464_s30 + $0x90] sm:$0xff] %v635_v0 }
 0x124   : > { %v1082_v1 = vpop.f32.mrb[4].mxu0 }
 0x125   : > { %v1106_v2 = vpop.f32.mrb[4].mxu1  ;;  %808 = vst [vmem:[%s1464_s30 + $0x28] sm:$0xff] %v1082_v1  ;;  %v565_v3 = vpop.f32.mrb[5].mxu0 }
 0x126   : > { %824 = vst [vmem:[%s1464_s30 + $0xa8] sm:$0xff] %v1106_v2  ;;  %v645_v4 = vpop.f32.mrb[5].mxu1  ;;  %807 = vst [vmem:[%s1464_s30 + $0x20] sm:$0xff] %v565_v3 }
 0x127   : > { %823 = vst [vmem:[%s1464_s30 + $0xa0] sm:$0xff] %v645_v4 }
 0x128   : > { %v1085_v5 = vpop.f32.mrb[6].mxu0 }
 0x129   : > { %v1109_v6 = vpop.f32.mrb[6].mxu1  ;;  %810 = vst [vmem:[%s1464_s30 + $0x38] sm:$0xff] %v1085_v5  ;;  %v575_v7 = vpop.f32.mrb[7].mxu0 }
 0x12a   : > { %826 = vst [vmem:[%s1464_s30 + $0xb8] sm:$0xff] %v1109_v6  ;;  %v655_v8 = vpop.f32.mrb[7].mxu1  ;;  %809 = vst [vmem:[%s1464_s30 + $0x30] sm:$0xff] %v575_v7 }
 0x12b   : > { %825 = vst [vmem:[%s1464_s30 + $0xb0] sm:$0xff] %v655_v8 }
 0x12c   : > { %v1088_v9 = vpop.f32.mrb[8].mxu0 }
 0x12d   : > { %v1112_v10 = vpop.f32.mrb[8].mxu1  ;;  %812 = vst [vmem:[%s1464_s30 + $0x48] sm:$0xff] %v1088_v9  ;;  %v585_v11 = vpop.f32.mrb[9].mxu0 }
 0x12e   : > { %828 = vst [vmem:[%s1464_s30 + $0xc8] sm:$0xff] %v1112_v10  ;;  %v665_v12 = vpop.f32.mrb[9].mxu1  ;;  %811 = vst [vmem:[%s1464_s30 + $0x40] sm:$0xff] %v585_v11 }
 0x12f   : > { %827 = vst [vmem:[%s1464_s30 + $0xc0] sm:$0xff] %v665_v12 }
 0x130   : > { %v1091_v13 = vpop.f32.mrb[10].mxu0 }
 0x131   : > { %v1115_v14 = vpop.f32.mrb[10].mxu1  ;;  %814 = vst [vmem:[%s1464_s30 + $0x58] sm:$0xff] %v1091_v13  ;;  %v595_v15 = vpop.f32.mrb[11].mxu0 }
 0x132   : > { %830 = vst [vmem:[%s1464_s30 + $0xd8] sm:$0xff] %v1115_v14  ;;  %v675_v16 = vpop.f32.mrb[11].mxu1  ;;  %813 = vst [vmem:[%s1464_s30 + $0x50] sm:$0xff] %v595_v15 }
 0x133   : > { %829 = vst [vmem:[%s1464_s30 + $0xd0] sm:$0xff] %v675_v16 }
 0x134   : > { %v1094_v17 = vpop.f32.mrb[12].mxu0 }
 0x135   : > { %v1118_v18 = vpop.f32.mrb[12].mxu1  ;;  %816 = vst [vmem:[%s1464_s30 + $0x68] sm:$0xff] %v1094_v17  ;;  %v605_v19 = vpop.f32.mrb[13].mxu0 }
 0x136   : > { %832 = vst [vmem:[%s1464_s30 + $0xe8] sm:$0xff] %v1118_v18  ;;  %v685_v20 = vpop.f32.mrb[13].mxu1  ;;  %815 = vst [vmem:[%s1464_s30 + $0x60] sm:$0xff] %v605_v19 }
 0x137   : > { %831 = vst [vmem:[%s1464_s30 + $0xe0] sm:$0xff] %v685_v20 }
 0x138   : > { %v1097_v21 = vpop.f32.mrb[14].mxu0 }
 0x139   : > { %v1121_v22 = vpop.f32.mrb[14].mxu1  ;;  %818 = vst [vmem:[%s1464_s30 + $0x78] sm:$0xff] %v1097_v21  ;;  %v615_v23 = vpop.f32.mrb[15].mxu0 }
 0x13a   : > { %834 = vst [vmem:[%s1464_s30 + $0xf8] sm:$0xff] %v1121_v22  ;;  %v695_v24 = vpop.f32.mrb[15].mxu1  ;;  %817 = vst [vmem:[%s1464_s30 + $0x70] sm:$0xff] %v615_v23 }
 0x13b   : > { %833 = vst [vmem:[%s1464_s30 + $0xf0] sm:$0xff] %v695_v24 }
 0x13c PF: > { %s12_s11 = sadd.s32 1, %s1232_s11   ;;  %s1512_s9 = smov %s1228_s10 }
 0x13d   : > { %p9_p5 = scmp.ge.s32.totalorder %s12_s11, 4   ;;  %s1513_s10 = smov %s1515_s12 }
 0x13f   :  { %11 = sbr.rel (!%p9_p5) target bundleno = 2 (0x2), region = 69 }

// kernel: _lambda_.28
= control target key start
LH: loop header
LB: loop body
LE: loop exit
PB: predicated region body
PF: predicated region fallthrough
CT: control target
= control target key end

     0   :  { %s1215_s9 = smov 0   ;;  %s1217_s10 = smov 0   ;;  %s1607_s0 = inlined_call_operand.vmem [shape: f32[512,512], index: 0, kind: input, shape index: {}]   ;;  %s1608_s1 = inlined_call_operand.vmem [shape: f32[512,128], index: 1, kind: input, shape index: {}]   ;;  %s1609_s2 = inlined_call_operand.vmem [shape: f32[512,128], index: 2, kind: output, shape index: {}]  }
   0x1   :  { %s1219_s11 = smov 0   ;;  %s1221_s12 = smov 0  }
   0x2   :  { %s1223_s13 = smov 0   ;;  %s1225_s14 = smov 0  }
   0x3   :  { %s1227_s15 = smov 0  }
   0x4 LB: > { %s24_s16 = sadd.s32 1, %s1188_s13  ;;  %s31_s17 = sadd.s32 1, %s1192_s14  ;;  %s1196_s15 = sphi %s1227_s15, %s12_s15   ;;  %s1192_s14 = sphi %s1225_s14, %s1615_s14   ;;  %s1188_s13 = sphi %s1223_s13, %s1614_s13   ;;  %s1184_s12 = sphi %s1221_s12, %s1613_s12   ;;  %s1180_s11 = sphi %s1219_s11, %s1612_s11   ;;  %s1176_s10 = sphi %s1217_s10, %s1611_s10   ;;  %s1172_s9 = sphi %s1215_s9, %s1610_s9  }
   0x5   : > { %p25_p0 = scmp.ge.s32.totalorder %s24_s16, 2  ;;  %p47_p1 = scmp.ne.s32.totalorder %s1176_s10, %s1172_s9 }
   0x6   : > { %p48_p2 = scmp.eq.s32.totalorder %s1196_s15, 0  ;;  %s40_s21 = sadd.s32 1, %s1176_s10 }
   0x7   : > { %s1617_s16 = smov (%p25_p0, %s24_s16), 0  ;;  %s1619_s17 = smov (!%p25_p0, %s31_s17), %s1192_s14 }
   0x8   : > { %p49_p3 = por %p48_p2, %p47_p1  ;;  %p33_p4 = scmp.ge.s32.totalorder %s1619_s17, 2 }
   0x9   : > { %s36_s18 = ssub.s32 %s1188_s13, %s1617_s16  ;;  %p987_p6 = scmp.ge.s32.totalorder %s1196_s15, 4 }
   0xa   : > { %s1621_s17 = smov (%p33_p4, %s1619_s17), 0 }
   0xb   : > { %s35_s19 = ssub.s32 %s1192_s14, %s1621_s17  ;;  %129 = sbr.rel (%p987_p6) target bundleno = 57 (0x39), region = 16 }
   0xc   : > { %s37_s20 = sor.u32 %s36_s18, %s35_s19 }
   0xd   : > { %p38_p5 = scmp.eq.s32.totalorder %s37_s20, 0 }
   0xf   : > { %s1266_s22 = scalar_select %p38_p5, %s1176_s10, %s40_s21  }
  0x12   : > { %132 = sbr.rel (!%p49_p3) target bundleno = 57 (0x39), region = 20  ;;  %s134_s23 = sand.u32 (%p49_p3), 1, %s1176_s10  }
  0x13   : > { %s990_s24 = sshll.u32 (%p49_p3), %s1188_s13, 1  ;;  %s988_s25 = sshll.u32 (%p49_p3), %s134_s23, 9 }
  0x14   : > { %s1003_s26 = sshll.u32 (%p49_p3), %s1192_s14, 7  ;;  %s1280_s4 = scalar_lea.vmem (%p49_p3), [#allocation3], %s988_s25 }
  0x15   : > { %s140_s27 = sadd.s32 (%p49_p3), %s1003_s26, %s990_s24 }
  0x16   : > { %s992_s28 = sshll.u32 (%p49_p3), %s140_s27, 3 }
  0x17   : > { %s1275_s3 = scalar_lea.vmem (%p49_p3), %s1607_s0, %s992_s28 }
  0x18   : > { %v155_v0 = vld [vmem:[%s1275_s3] sm:$0xff] (%p49_p3)  ;;  %v157_v1 = vld [vmem:[%s1275_s3 + $0x8] sm:$0xff] (%p49_p3) }
  0x19   : > { %v159_v2 = vld [vmem:[%s1275_s3 + $0x20] sm:$0xff]  ;;  %156 = vst [vmem:[%s1280_s4] sm:$0xff] %v155_v0  ;;  %158 = vst [vmem:[%s1280_s4 + $0x8] sm:$0xff] %v157_v1  ;;  %v161_v3 = vld [vmem:[%s1275_s3 + $0x28] sm:$0xff] }
  0x1a   : > { %160 = vst [vmem:[%s1280_s4 + $0x10] sm:$0xff] %v159_v2  ;;  %v163_v4 = vld [vmem:[%s1275_s3 + $0x40] sm:$0xff]  ;;  %v165_v5 = vld [vmem:[%s1275_s3 + $0x48] sm:$0xff]  ;;  %162 = vst [vmem:[%s1280_s4 + $0x18] sm:$0xff] %v161_v3 }
  0x1b   : > { %164 = vst [vmem:[%s1280_s4 + $0x20] sm:$0xff] %v163_v4  ;;  %166 = vst [vmem:[%s1280_s4 + $0x28] sm:$0xff] %v165_v5  ;;  %v167_v6 = vld [vmem:[%s1275_s3 + $0x60] sm:$0xff]  ;;  %v169_v7 = vld [vmem:[%s1275_s3 + $0x68] sm:$0xff] }
  0x1c   : > { %v171_v8 = vld [vmem:[%s1275_s3 + $0x80] sm:$0xff]  ;;  %168 = vst [vmem:[%s1280_s4 + $0x30] sm:$0xff] %v167_v6  ;;  %170 = vst [vmem:[%s1280_s4 + $0x38] sm:$0xff] %v169_v7  ;;  %v173_v9 = vld [vmem:[%s1275_s3 + $0x88] sm:$0xff] }
  0x1d   : > { %172 = vst [vmem:[%s1280_s4 + $0x40] sm:$0xff] %v171_v8  ;;  %v175_v10 = vld [vmem:[%s1275_s3 + $0xa0] sm:$0xff]  ;;  %v177_v11 = vld [vmem:[%s1275_s3 + $0xa8] sm:$0xff]  ;;  %174 = vst [vmem:[%s1280_s4 + $0x48] sm:$0xff] %v173_v9 }
  0x1e   : > { %176 = vst [vmem:[%s1280_s4 + $0x50] sm:$0xff] %v175_v10  ;;  %178 = vst [vmem:[%s1280_s4 + $0x58] sm:$0xff] %v177_v11  ;;  %v179_v12 = vld [vmem:[%s1275_s3 + $0xc0] sm:$0xff]  ;;  %v181_v13 = vld [vmem:[%s1275_s3 + $0xc8] sm:$0xff] }
  0x1f   : > { %v183_v14 = vld [vmem:[%s1275_s3 + $0xe0] sm:$0xff]  ;;  %180 = vst [vmem:[%s1280_s4 + $0x60] sm:$0xff] %v179_v12  ;;  %182 = vst [vmem:[%s1280_s4 + $0x68] sm:$0xff] %v181_v13  ;;  %v185_v15 = vld [vmem:[%s1275_s3 + $0xe8] sm:$0xff] }
  0x20   : > { %184 = vst [vmem:[%s1280_s4 + $0x70] sm:$0xff] %v183_v14  ;;  %v187_v16 = vld [vmem:[%s1275_s3 + $0x100] sm:$0xff]  ;;  %v189_v17 = vld [vmem:[%s1275_s3 + $0x108] sm:$0xff]  ;;  %186 = vst [vmem:[%s1280_s4 + $0x78] sm:$0xff] %v185_v15 }
  0x21   : > { %188 = vst [vmem:[%s1280_s4 + $0x80] sm:$0xff] %v187_v16  ;;  %190 = vst [vmem:[%s1280_s4 + $0x88] sm:$0xff] %v189_v17  ;;  %v191_v18 = vld [vmem:[%s1275_s3 + $0x120] sm:$0xff]  ;;  %v193_v19 = vld [vmem:[%s1275_s3 + $0x128] sm:$0xff] }
  0x22   : > { %v195_v20 = vld [vmem:[%s1275_s3 + $0x140] sm:$0xff]  ;;  %192 = vst [vmem:[%s1280_s4 + $0x90] sm:$0xff] %v191_v18  ;;  %194 = vst [vmem:[%s1280_s4 + $0x98] sm:$0xff] %v193_v19  ;;  %v197_v21 = vld [vmem:[%s1275_s3 + $0x148] sm:$0xff] }
  0x23   : > { %196 = vst [vmem:[%s1280_s4 + $0xa0] sm:$0xff] %v195_v20  ;;  %v199_v22 = vld [vmem:[%s1275_s3 + $0x160] sm:$0xff]  ;;  %v201_v23 = vld [vmem:[%s1275_s3 + $0x168] sm:$0xff]  ;;  %198 = vst [vmem:[%s1280_s4 + $0xa8] sm:$0xff] %v197_v21 }
  0x24   : > { %200 = vst [vmem:[%s1280_s4 + $0xb0] sm:$0xff] %v199_v22  ;;  %202 = vst [vmem:[%s1280_s4 + $0xb8] sm:$0xff] %v201_v23  ;;  %v203_v24 = vld [vmem:[%s1275_s3 + $0x180] sm:$0xff]  ;;  %v205_v25 = vld [vmem:[%s1275_s3 + $0x188] sm:$0xff] }
  0x25   : > { %v207_v26 = vld [vmem:[%s1275_s3 + $0x1a0] sm:$0xff]  ;;  %204 = vst [vmem:[%s1280_s4 + $0xc0] sm:$0xff] %v203_v24  ;;  %206 = vst [vmem:[%s1280_s4 + $0xc8] sm:$0xff] %v205_v25  ;;  %v209_v27 = vld [vmem:[%s1275_s3 + $0x1a8] sm:$0xff] }
  0x26   : > { %208 = vst [vmem:[%s1280_s4 + $0xd0] sm:$0xff] %v207_v26  ;;  %v211_v28 = vld [vmem:[%s1275_s3 + $0x1c0] sm:$0xff]  ;;  %v213_v29 = vld [vmem:[%s1275_s3 + $0x1c8] sm:$0xff]  ;;  %210 = vst [vmem:[%s1280_s4 + $0xd8] sm:$0xff] %v209_v27 }
  0x27   : > { %212 = vst [vmem:[%s1280_s4 + $0xe0] sm:$0xff] %v211_v28  ;;  %214 = vst [vmem:[%s1280_s4 + $0xe8] sm:$0xff] %v213_v29  ;;  %v215_v30 = vld [vmem:[%s1275_s3 + $0x1e0] sm:$0xff]  ;;  %v217_v31 = vld [vmem:[%s1275_s3 + $0x1e8] sm:$0xff] }
  0x28   : > { %v219_v32 = vld [vmem:[%s1275_s3 + $0x200] sm:$0xff]  ;;  %216 = vst [vmem:[%s1280_s4 + $0xf0] sm:$0xff] %v215_v30  ;;  %218 = vst [vmem:[%s1280_s4 + $0xf8] sm:$0xff] %v217_v31  ;;  %v221_v33 = vld [vmem:[%s1275_s3 + $0x208] sm:$0xff] }
  0x29   : > { %220 = vst [vmem:[%s1280_s4 + $0x100] sm:$0xff] %v219_v32  ;;  %v223_v34 = vld [vmem:[%s1275_s3 + $0x220] sm:$0xff]  ;;  %v225_v35 = vld [vmem:[%s1275_s3 + $0x228] sm:$0xff]  ;;  %222 = vst [vmem:[%s1280_s4 + $0x108] sm:$0xff] %v221_v33 }
  0x2a   : > { %224 = vst [vmem:[%s1280_s4 + $0x110] sm:$0xff] %v223_v34  ;;  %226 = vst [vmem:[%s1280_s4 + $0x118] sm:$0xff] %v225_v35  ;;  %v227_v36 = vld [vmem:[%s1275_s3 + $0x240] sm:$0xff]  ;;  %v229_v37 = vld [vmem:[%s1275_s3 + $0x248] sm:$0xff] }
  0x2b   : > { %v231_v38 = vld [vmem:[%s1275_s3 + $0x260] sm:$0xff]  ;;  %228 = vst [vmem:[%s1280_s4 + $0x120] sm:$0xff] %v227_v36  ;;  %230 = vst [vmem:[%s1280_s4 + $0x128] sm:$0xff] %v229_v37  ;;  %v233_v39 = vld [vmem:[%s1275_s3 + $0x268] sm:$0xff] }
  0x2c   : > { %232 = vst [vmem:[%s1280_s4 + $0x130] sm:$0xff] %v231_v38  ;;  %v235_v40 = vld [vmem:[%s1275_s3 + $0x280] sm:$0xff]  ;;  %v237_v41 = vld [vmem:[%s1275_s3 + $0x288] sm:$0xff]  ;;  %234 = vst [vmem:[%s1280_s4 + $0x138] sm:$0xff] %v233_v39 }
  0x2d   : > { %236 = vst [vmem:[%s1280_s4 + $0x140] sm:$0xff] %v235_v40  ;;  %238 = vst [vmem:[%s1280_s4 + $0x148] sm:$0xff] %v237_v41  ;;  %v239_v42 = vld [vmem:[%s1275_s3 + $0x2a0] sm:$0xff]  ;;  %v241_v43 = vld [vmem:[%s1275_s3 + $0x2a8] sm:$0xff] }
  0x2e   : > { %v243_v44 = vld [vmem:[%s1275_s3 + $0x2c0] sm:$0xff]  ;;  %240 = vst [vmem:[%s1280_s4 + $0x150] sm:$0xff] %v239_v42  ;;  %242 = vst [vmem:[%s1280_s4 + $0x158] sm:$0xff] %v241_v43  ;;  %v245_v45 = vld [vmem:[%s1275_s3 + $0x2c8] sm:$0xff] }
  0x2f   : > { %244 = vst [vmem:[%s1280_s4 + $0x160] sm:$0xff] %v243_v44  ;;  %v247_v46 = vld [vmem:[%s1275_s3 + $0x2e0] sm:$0xff]  ;;  %v249_v47 = vld [vmem:[%s1275_s3 + $0x2e8] sm:$0xff]  ;;  %246 = vst [vmem:[%s1280_s4 + $0x168] sm:$0xff] %v245_v45 }
  0x30   : > { %248 = vst [vmem:[%s1280_s4 + $0x170] sm:$0xff] %v247_v46  ;;  %250 = vst [vmem:[%s1280_s4 + $0x178] sm:$0xff] %v249_v47  ;;  %v251_v48 = vld [vmem:[%s1275_s3 + $0x300] sm:$0xff]  ;;  %v253_v49 = vld [vmem:[%s1275_s3 + $0x308] sm:$0xff] }
  0x31   : > { %v255_v50 = vld [vmem:[%s1275_s3 + $0x320] sm:$0xff]  ;;  %252 = vst [vmem:[%s1280_s4 + $0x180] sm:$0xff] %v251_v48  ;;  %254 = vst [vmem:[%s1280_s4 + $0x188] sm:$0xff] %v253_v49  ;;  %v257_v51 = vld [vmem:[%s1275_s3 + $0x328] sm:$0xff] }
  0x32   : > { %256 = vst [vmem:[%s1280_s4 + $0x190] sm:$0xff] %v255_v50  ;;  %v259_v52 = vld [vmem:[%s1275_s3 + $0x340] sm:$0xff]  ;;  %v261_v53 = vld [vmem:[%s1275_s3 + $0x348] sm:$0xff]  ;;  %258 = vst [vmem:[%s1280_s4 + $0x198] sm:$0xff] %v257_v51 }
  0x33   : > { %260 = vst [vmem:[%s1280_s4 + $0x1a0] sm:$0xff] %v259_v52  ;;  %262 = vst [vmem:[%s1280_s4 + $0x1a8] sm:$0xff] %v261_v53  ;;  %v263_v54 = vld [vmem:[%s1275_s3 + $0x360] sm:$0xff]  ;;  %v265_v55 = vld [vmem:[%s1275_s3 + $0x368] sm:$0xff] }
  0x34   : > { %v267_v56 = vld [vmem:[%s1275_s3 + $0x380] sm:$0xff]  ;;  %264 = vst [vmem:[%s1280_s4 + $0x1b0] sm:$0xff] %v263_v54  ;;  %266 = vst [vmem:[%s1280_s4 + $0x1b8] sm:$0xff] %v265_v55  ;;  %v269_v57 = vld [vmem:[%s1275_s3 + $0x388] sm:$0xff] }
  0x35   : > { %268 = vst [vmem:[%s1280_s4 + $0x1c0] sm:$0xff] %v267_v56  ;;  %v271_v58 = vld [vmem:[%s1275_s3 + $0x3a0] sm:$0xff]  ;;  %v273_v59 = vld [vmem:[%s1275_s3 + $0x3a8] sm:$0xff]  ;;  %270 = vst [vmem:[%s1280_s4 + $0x1c8] sm:$0xff] %v269_v57 }
  0x36   : > { %272 = vst [vmem:[%s1280_s4 + $0x1d0] sm:$0xff] %v271_v58  ;;  %274 = vst [vmem:[%s1280_s4 + $0x1d8] sm:$0xff] %v273_v59  ;;  %v275_v60 = vld [vmem:[%s1275_s3 + $0x3c0] sm:$0xff]  ;;  %v277_v61 = vld [vmem:[%s1275_s3 + $0x3c8] sm:$0xff] }
  0x37   : > { %v279_v62 = vld [vmem:[%s1275_s3 + $0x3e0] sm:$0xff]  ;;  %276 = vst [vmem:[%s1280_s4 + $0x1e0] sm:$0xff] %v275_v60  ;;  %278 = vst [vmem:[%s1280_s4 + $0x1e8] sm:$0xff] %v277_v61  ;;  %v281_v63 = vld [vmem:[%s1275_s3 + $0x3e8] sm:$0xff] }
  0x38   : > { %280 = vst [vmem:[%s1280_s4 + $0x1f0] sm:$0xff] %v279_v62  ;;  %282 = vst [vmem:[%s1280_s4 + $0x1f8] sm:$0xff] %v281_v63 }
  0x39 PF: > { %p993_p7 = scmp.ge.s32.totalorder %s1196_s15, 1  ;;  %p299_p8 = scmp.lt.s32.totalorder %s1196_s15, 5 }
  0x3b   : > { %p300_p9 = pnand %p993_p7, %p299_p8 }
  0x3c   : > { %s306_s5 = sand.u32 (!%p300_p9), 1, %s1172_s9   ;;  %s995_s6 = sshll.u32 (!%p300_p9), %s1180_s11, 5 }
  0x3d   : > { %303 = sbr.rel (%p300_p9) target bundleno = 436 (0x1b4), region = 47  ;;  %s994_s7 = sshll.u32 (!%p300_p9), %s306_s5, 9 }
  0x3e   : > { %p341_p10 = scmp.lt.s32.totalorder (!%p300_p9), %s995_s6, 63  ;;  %s997_s8 = sshll.u32 (!%p300_p9), %s1184_s12, 5 }
  0x3f   : > { %p350_p11 = scmp.lt.s32.totalorder (!%p300_p9), %s997_s8, 63  ;;  %s1422_s9 = scalar_lea.vmem (!%p300_p9), [#allocation3], %s994_s7 }
  0x40   : > { %p999_p12 = scmp.ne.s32.totalorder (!%p300_p9), %s1180_s11, 0 }
  0x44   : > { %s1623_s6 = smov (!%p341_p10, %s995_s6), 63  ;;  %s1625_s8 = smov (!%p350_p11, %s997_s8), 63 }
  0x45   : > { %s996_s18 = sshll.u32 %s1623_s6, 3  ;;  %s998_s23 = sshll.u32 %s1625_s8, 3  ;;  %v1198_v0 = vmov (!%p999_p12), 0.0  }
  0x46   : > { %s1415_s21 = scalar_lea.vmem %s1608_s1, %s996_s18  ;;  %s1420_s26 = scalar_lea.vmem %s1609_s2, %s998_s23  ;;  %362 = vst [vmem:[#allocation2] sm:$0xff] (!%p999_p12), %v1198_v0  ;;  %363 = vst [vmem:[#allocation2 + $0x8] sm:$0xff] (!%p999_p12), %v1198_v0 }
  0x47   : > { %361 = sbr.rel (%p999_p12) target bundleno = 86 (0x56), region = 55  ;;  %364 = vst [vmem:[#allocation2 + $0x10] sm:$0xff] (!%p999_p12), %v1198_v0  ;;  %365 = vst [vmem:[#allocation2 + $0x18] sm:$0xff] (!%p999_p12), %v1198_v0 }
  0x48   : > { %366 = vst [vmem:[#allocation2 + $0x20] sm:$0xff] (!%p999_p12), %v1198_v0  ;;  %367 = vst [vmem:[#allocation2 + $0x28] sm:$0xff] (!%p999_p12), %v1198_v0 }
  0x49   : > { %368 = vst [vmem:[#allocation2 + $0x30] sm:$0xff] (!%p999_p12), %v1198_v0  ;;  %369 = vst [vmem:[#allocation2 + $0x38] sm:$0xff] (!%p999_p12), %v1198_v0 }
  0x4a   : > { %370 = vst [vmem:[#allocation2 + $0x40] sm:$0xff] (!%p999_p12), %v1198_v0  ;;  %371 = vst [vmem:[#allocation2 + $0x48] sm:$0xff] (!%p999_p12), %v1198_v0 }
  0x4b   : > { %372 = vst [vmem:[#allocation2 + $0x50] sm:$0xff] (!%p999_p12), %v1198_v0  ;;  %373 = vst [vmem:[#allocation2 + $0x58] sm:$0xff] (!%p999_p12), %v1198_v0 }
  0x4c   : > { %374 = vst [vmem:[#allocation2 + $0x60] sm:$0xff] (!%p999_p12), %v1198_v0  ;;  %375 = vst [vmem:[#allocation2 + $0x68] sm:$0xff] (!%p999_p12), %v1198_v0 }
  0x4d   : > { %376 = vst [vmem:[#allocation2 + $0x70] sm:$0xff] (!%p999_p12), %v1198_v0  ;;  %377 = vst [vmem:[#allocation2 + $0x78] sm:$0xff] (!%p999_p12), %v1198_v0 }
  0x4e   : > { %378 = vst [vmem:[#allocation2 + $0x80] sm:$0xff] %v1198_v0  ;;  %379 = vst [vmem:[#allocation2 + $0x88] sm:$0xff] %v1198_v0 }
  0x4f   : > { %380 = vst [vmem:[#allocation2 + $0x90] sm:$0xff] %v1198_v0  ;;  %381 = vst [vmem:[#allocation2 + $0x98] sm:$0xff] %v1198_v0 }
  0x50   : > { %382 = vst [vmem:[#allocation2 + $0xa0] sm:$0xff] %v1198_v0  ;;  %383 = vst [vmem:[#allocation2 + $0xa8] sm:$0xff] %v1198_v0 }
  0x51   : > { %384 = vst [vmem:[#allocation2 + $0xb0] sm:$0xff] %v1198_v0  ;;  %385 = vst [vmem:[#allocation2 + $0xb8] sm:$0xff] %v1198_v0 }
  0x52   : > { %386 = vst [vmem:[#allocation2 + $0xc0] sm:$0xff] %v1198_v0  ;;  %387 = vst [vmem:[#allocation2 + $0xc8] sm:$0xff] %v1198_v0 }
  0x53   : > { %388 = vst [vmem:[#allocation2 + $0xd0] sm:$0xff] %v1198_v0  ;;  %389 = vst [vmem:[#allocation2 + $0xd8] sm:$0xff] %v1198_v0 }
  0x54   : > { %390 = vst [vmem:[#allocation2 + $0xe0] sm:$0xff] %v1198_v0  ;;  %391 = vst [vmem:[#allocation2 + $0xe8] sm:$0xff] %v1198_v0 }
  0x55   : > { %392 = vst [vmem:[#allocation2 + $0xf0] sm:$0xff] %v1198_v0  ;;  %393 = vst [vmem:[#allocation2 + $0xf8] sm:$0xff] %v1198_v0 }
  0x56 PF: > { %v490_v1 = vld [vmem:[%s1415_s21] sm:$0xff]  ;;  %v491_v2 = vld [vmem:[%s1415_s21 + $0x8] sm:$0xff]  ;;  %v492_v3 = vld [vmem:[%s1415_s21 + $0x10] sm:$0xff]  ;;  %v1199_v4 = vmov 0.0|0.0   ;;  %p1000_p13 = scmp.ne.s32.totalorder %s1180_s11, 1 }
  0x57   : > { %1004 = vmatprep.subr.bf16.mxu0 %v1199_v4  ;;  %1052 = vmatprep.subr.bf16.mxu1 %v1199_v4  ;;  %v1005_v5 = vpack.c.bf16 %v491_v2, %v490_v1  ;;  %v493_v6 = vld [vmem:[%s1415_s21 + $0x18] sm:$0xff]  ;;  %v494_v8 = vld [vmem:[%s1415_s21 + $0x20] sm:$0xff]  ;;  %v495_v9 = vld [vmem:[%s1415_s21 + $0x28] sm:$0xff] }
  0x58   : > { %v1008_v7 = vpack.c.bf16 %v493_v6, %v492_v3  ;;  %v1011_v10 = vpack.c.bf16 %v495_v9, %v494_v8  ;;  %v496_v11 = vld [vmem:[%s1415_s21 + $0x30] sm:$0xff]  ;;  %v497_v12 = vld [vmem:[%s1415_s21 + $0x38] sm:$0xff]  ;;  %v427_v13 = vld [vmem:[%s1422_s9 + $0x8] sm:$0xff] }
  0x59   : > { %1006 = vmatpush1.bf16.msra.mxu0 %v1005_v5  ;;  %1068 = vmatpush1.bf16.msra.mxu1 %v1005_v5  ;;  %v1014_v14 = vpack.c.bf16 %v497_v12, %v496_v11  ;;  %v459_v15 = vld [vmem:[%s1422_s9 + $0x108] sm:$0xff]  ;;  %v498_v16 = vld [vmem:[%s1415_s21 + $0x40] sm:$0xff]  ;;  %v500_v19 = vld [vmem:[%s1415_s21 + $0x50] sm:$0xff] }
  0x5a   : > { %1007 = vmatprep.subr.bf16.mxu0 %v1199_v4  ;;  %1053 = vmatprep.subr.bf16.mxu1 %v1199_v4  ;;  %v499_v17 = vld [vmem:[%s1415_s21 + $0x48] sm:$0xff]  ;;  %v501_v20 = vld [vmem:[%s1415_s21 + $0x58] sm:$0xff]  ;;  %v502_v22 = vld [vmem:[%s1415_s21 + $0x60] sm:$0xff] }
  0x5b   : > { %586 = vmatprep.mubr.f32.mxu0 %v427_v13  ;;  %666 = vmatprep.mubr.f32.mxu1 %v459_v15  ;;  %v1017_v18 = vpack.c.bf16 %v499_v17, %v498_v16  ;;  %v1020_v21 = vpack.c.bf16 %v501_v20, %v500_v19  ;;  %v503_v23 = vld [vmem:[%s1415_s21 + $0x68] sm:$0xff]  ;;  %v504_v25 = vld [vmem:[%s1415_s21 + $0x70] sm:$0xff]  ;;  %v505_v26 = vld [vmem:[%s1415_s21 + $0x78] sm:$0xff] }
  0x5c   : > { %v1023_v24 = vpack.c.bf16 %v503_v23, %v502_v22  ;;  %v1026_v27 = vpack.c.bf16 %v505_v26, %v504_v25  ;;  %v506_v28 = vld [vmem:[%s1415_s21 + $0x80] sm:$0xff]  ;;  %v507_v29 = vld [vmem:[%s1415_s21 + $0x88] sm:$0xff]  ;;  %v508_v31 = vld [vmem:[%s1415_s21 + $0x90] sm:$0xff] }
  0x5d   : > { %1009 = vmatpush1.bf16.msra.mxu0 %v1008_v7  ;;  %1069 = vmatpush1.bf16.msra.mxu1 %v1008_v7  ;;  %v1029_v30 = vpack.c.bf16 %v507_v29, %v506_v28  ;;  %v509_v32 = vld [vmem:[%s1415_s21 + $0x98] sm:$0xff]  ;;  %v510_v34 = vld [vmem:[%s1415_s21 + $0xa0] sm:$0xff]  ;;  %v511_v35 = vld [vmem:[%s1415_s21 + $0xa8] sm:$0xff] }
  0x5e   : > { %1010 = vmatprep.subr.bf16.mxu0 %v1199_v4  ;;  %1054 = vmatprep.subr.bf16.mxu1 %v1199_v4  ;;  %v1032_v33 = vpack.c.bf16 %v509_v32, %v508_v31  ;;  %v1035_v36 = vpack.c.bf16 %v511_v35, %v510_v34  ;;  %v512_v37 = vld [vmem:[%s1415_s21 + $0xb0] sm:$0xff]  ;;  %v513_v38 = vld [vmem:[%s1415_s21 + $0xb8] sm:$0xff]  ;;  %v514_v40 = vld [vmem:[%s1415_s21 + $0xc0] sm:$0xff] }
  0x5f   : > { %v1038_v39 = vpack.c.bf16 %v513_v38, %v512_v37  ;;  %v515_v41 = vld [vmem:[%s1415_s21 + $0xc8] sm:$0xff]  ;;  %v516_v43 = vld [vmem:[%s1415_s21 + $0xd0] sm:$0xff]  ;;  %v517_v44 = vld [vmem:[%s1415_s21 + $0xd8] sm:$0xff] }
  0x60   : > { %v1041_v42 = vpack.c.bf16 %v515_v41, %v514_v40  ;;  %v1044_v45 = vpack.c.bf16 %v517_v44, %v516_v43  ;;  %v518_v46 = vld [vmem:[%s1415_s21 + $0xe0] sm:$0xff]  ;;  %v519_v47 = vld [vmem:[%s1415_s21 + $0xe8] sm:$0xff]  ;;  %v520_v49 = vld [vmem:[%s1415_s21 + $0xf0] sm:$0xff] }
  0x61   : > { %1012 = vmatpush1.bf16.msra.mxu0 %v1011_v10  ;;  %1070 = vmatpush1.bf16.msra.mxu1 %v1011_v10  ;;  %v1047_v48 = vpack.c.bf16 %v519_v47, %v518_v46  ;;  %v521_v50 = vld [vmem:[%s1415_s21 + $0xf8] sm:$0xff]  ;;  %v426_v52 = vld [vmem:[%s1422_s9] sm:$0xff]  ;;  %v428_v56 = vld [vmem:[%s1422_s9 + $0x10] sm:$0xff] }
  0x62   : > { %1013 = vmatprep.subr.bf16.mxu0 %v1199_v4  ;;  %1055 = vmatprep.subr.bf16.mxu1 %v1199_v4  ;;  %v1050_v51 = vpack.c.bf16 %v521_v50, %v520_v49  ;;  %v458_v53 = vld [vmem:[%s1422_s9 + $0x100] sm:$0xff]  ;;  %v429_v54 = vld [vmem:[%s1422_s9 + $0x18] sm:$0xff]  ;;  %v460_v57 = vld [vmem:[%s1422_s9 + $0x110] sm:$0xff] }
  0x63   : > { %v461_v55 = vld [vmem:[%s1422_s9 + $0x118] sm:$0xff]  ;;  %v431_v58 = vld [vmem:[%s1422_s9 + $0x28] sm:$0xff]  ;;  %v430_v60 = vld [vmem:[%s1422_s9 + $0x20] sm:$0xff] }
  0x64   : > { %v463_v59 = vld [vmem:[%s1422_s9 + $0x128] sm:$0xff]  ;;  %v462_v61 = vld [vmem:[%s1422_s9 + $0x120] sm:$0xff]  ;;  %v433_v62 = vld [vmem:[%s1422_s9 + $0x38] sm:$0xff] }
  0x65   : > { %1015 = vmatpush1.bf16.msra.mxu0 %v1014_v14  ;;  %1071 = vmatpush1.bf16.msra.mxu1 %v1014_v14  ;;  %v465_v63 = vld [vmem:[%s1422_s9 + $0x138] sm:$0xff]  ;;  %v432_v0 = vld [vmem:[%s1422_s9 + $0x30] sm:$0xff]  ;;  %v435_v2 = vld [vmem:[%s1422_s9 + $0x48] sm:$0xff] }
  0x66   : > { %1016 = vmatprep.subr.bf16.mxu0 %v1199_v4  ;;  %1056 = vmatprep.subr.bf16.mxu1 %v1199_v4  ;;  %v464_v1 = vld [vmem:[%s1422_s9 + $0x130] sm:$0xff]  ;;  %v467_v3 = vld [vmem:[%s1422_s9 + $0x148] sm:$0xff]  ;;  %v466_v5 = vld [vmem:[%s1422_s9 + $0x140] sm:$0xff] }
  0x67   : > { %v437_v6 = vld [vmem:[%s1422_s9 + $0x58] sm:$0xff]  ;;  %v436_v8 = vld [vmem:[%s1422_s9 + $0x50] sm:$0xff]  ;;  %v439_v10 = vld [vmem:[%s1422_s9 + $0x68] sm:$0xff] }
  0x68   : > { %v469_v7 = vld [vmem:[%s1422_s9 + $0x158] sm:$0xff]  ;;  %v468_v9 = vld [vmem:[%s1422_s9 + $0x150] sm:$0xff]  ;;  %v471_v11 = vld [vmem:[%s1422_s9 + $0x168] sm:$0xff] }
  0x69   : > { %1018 = vmatpush1.bf16.msra.mxu0 %v1017_v18  ;;  %1072 = vmatpush1.bf16.msra.mxu1 %v1017_v18  ;;  %v438_v12 = vld [vmem:[%s1422_s9 + $0x60] sm:$0xff]  ;;  %v441_v14 = vld [vmem:[%s1422_s9 + $0x78] sm:$0xff]  ;;  %v440_v16 = vld [vmem:[%s1422_s9 + $0x70] sm:$0xff] }
  0x6a   : > { %1019 = vmatprep.subr.bf16.mxu0 %v1199_v4  ;;  %1057 = vmatprep.subr.bf16.mxu1 %v1199_v4  ;;  %v470_v13 = vld [vmem:[%s1422_s9 + $0x160] sm:$0xff]  ;;  %v473_v15 = vld [vmem:[%s1422_s9 + $0x178] sm:$0xff]  ;;  %v472_v17 = vld [vmem:[%s1422_s9 + $0x170] sm:$0xff] }
  0x6b   : > { %v443_v18 = vld [vmem:[%s1422_s9 + $0x88] sm:$0xff]  ;;  %v442_v20 = vld [vmem:[%s1422_s9 + $0x80] sm:$0xff]  ;;  %v445_v22 = vld [vmem:[%s1422_s9 + $0x98] sm:$0xff] }
  0x6c   : > { %v475_v19 = vld [vmem:[%s1422_s9 + $0x188] sm:$0xff]  ;;  %v477_v23 = vld [vmem:[%s1422_s9 + $0x198] sm:$0xff]  ;;  %v476_v25 = vld [vmem:[%s1422_s9 + $0x190] sm:$0xff] }
  0x6d   : > { %1021 = vmatpush1.bf16.msra.mxu0 %v1020_v21  ;;  %1073 = vmatpush1.bf16.msra.mxu1 %v1020_v21  ;;  %v474_v21 = vld [vmem:[%s1422_s9 + $0x180] sm:$0xff]  ;;  %v447_v26 = vld [vmem:[%s1422_s9 + $0xa8] sm:$0xff]  ;;  %v481_v31 = vld [vmem:[%s1422_s9 + $0x1b8] sm:$0xff] }
  0x6e   : > { %1022 = vmatprep.subr.bf16.mxu0 %v1199_v4  ;;  %1058 = vmatprep.subr.bf16.mxu1 %v1199_v4  ;;  %v446_v28 = vld [vmem:[%s1422_s9 + $0xa0] sm:$0xff]  ;;  %v448_v32 = vld [vmem:[%s1422_s9 + $0xb0] sm:$0xff]  ;;  %v451_v34 = vld [vmem:[%s1422_s9 + $0xc8] sm:$0xff] }
  0x6f   : > { %v478_v29 = vld [vmem:[%s1422_s9 + $0x1a0] sm:$0xff]  ;;  %v483_v35 = vld [vmem:[%s1422_s9 + $0x1c8] sm:$0xff]  ;;  %v453_v38 = vld [vmem:[%s1422_s9 + $0xd8] sm:$0xff] }
  0x70   : > { %v482_v37 = vld [vmem:[%s1422_s9 + $0x1c0] sm:$0xff]  ;;  %v452_v40 = vld [vmem:[%s1422_s9 + $0xd0] sm:$0xff]  ;;  %v487_v43 = vld [vmem:[%s1422_s9 + $0x1e8] sm:$0xff] }
  0x71   : > { %1024 = vmatpush1.bf16.msra.mxu0 %v1023_v24  ;;  %1074 = vmatpush1.bf16.msra.mxu1 %v1023_v24  ;;  %v444_v24 = vld [vmem:[%s1422_s9 + $0x90] sm:$0xff]  ;;  %v454_v44 = vld [vmem:[%s1422_s9 + $0xe0] sm:$0xff]  ;;  %v457_v46 = vld [vmem:[%s1422_s9 + $0xf8] sm:$0xff] }
  0x72   : > { %1025 = vmatprep.subr.bf16.mxu0 %v1199_v4  ;;  %1059 = vmatprep.subr.bf16.mxu1 %v1199_v4  ;;  %v484_v41 = vld [vmem:[%s1422_s9 + $0x1d0] sm:$0xff]  ;;  %v489_v47 = vld [vmem:[%s1422_s9 + $0x1f8] sm:$0xff]  ;;  %v394_v50 = vld [vmem:[#allocation2] sm:$0xff] }
  0x73   : > { %v488_v49 = vld [vmem:[%s1422_s9 + $0x1f0] sm:$0xff] }
  0x75   : > { %1027 = vmatpush1.bf16.msra.mxu0 %v1026_v27  ;;  %1075 = vmatpush1.bf16.msra.mxu1 %v1026_v27  ;;  %v479_v27 = vld [vmem:[%s1422_s9 + $0x1a8] sm:$0xff] }
  0x76   : > { %1028 = vmatprep.subr.bf16.mxu0 %v1199_v4  ;;  %1060 = vmatprep.subr.bf16.mxu1 %v1199_v4 }
  0x79   : > { %1030 = vmatpush1.bf16.msra.mxu0 %v1029_v30  ;;  %1076 = vmatpush1.bf16.msra.mxu1 %v1029_v30  ;;  %v449_v30 = vld [vmem:[%s1422_s9 + $0xb8] sm:$0xff] }
  0x7a   : > { %1031 = vmatprep.subr.bf16.mxu0 %v1199_v4  ;;  %1061 = vmatprep.subr.bf16.mxu1 %v1199_v4 }
  0x7d   : > { %1033 = vmatpush1.bf16.msra.mxu0 %v1032_v33  ;;  %1077 = vmatpush1.bf16.msra.mxu1 %v1032_v33  ;;  %v480_v33 = vld [vmem:[%s1422_s9 + $0x1b0] sm:$0xff] }
  0x7e   : > { %1034 = vmatprep.subr.bf16.mxu0 %v1199_v4  ;;  %1062 = vmatprep.subr.bf16.mxu1 %v1199_v4 }
  0x81   : > { %1036 = vmatpush1.bf16.msra.mxu0 %v1035_v36  ;;  %1078 = vmatpush1.bf16.msra.mxu1 %v1035_v36  ;;  %v450_v36 = vld [vmem:[%s1422_s9 + $0xc0] sm:$0xff] }
  0x82   : > { %1037 = vmatprep.subr.bf16.mxu0 %v1199_v4  ;;  %1063 = vmatprep.subr.bf16.mxu1 %v1199_v4 }
  0x85   : > { %1039 = vmatpush1.bf16.msra.mxu0 %v1038_v39  ;;  %1079 = vmatpush1.bf16.msra.mxu1 %v1038_v39  ;;  %v485_v39 = vld [vmem:[%s1422_s9 + $0x1d8] sm:$0xff] }
  0x86   : > { %1040 = vmatprep.subr.bf16.mxu0 %v1199_v4  ;;  %1064 = vmatprep.subr.bf16.mxu1 %v1199_v4 }
  0x89   : > { %1042 = vmatpush1.bf16.msra.mxu0 %v1041_v42  ;;  %1080 = vmatpush1.bf16.msra.mxu1 %v1041_v42  ;;  %v455_v42 = vld [vmem:[%s1422_s9 + $0xe8] sm:$0xff] }
  0x8a   : > { %1043 = vmatprep.subr.bf16.mxu0 %v1199_v4  ;;  %1065 = vmatprep.subr.bf16.mxu1 %v1199_v4 }
  0x8d   : > { %1045 = vmatpush1.bf16.msra.mxu0 %v1044_v45  ;;  %1081 = vmatpush1.bf16.msra.mxu1 %v1044_v45  ;;  %v486_v45 = vld [vmem:[%s1422_s9 + $0x1e0] sm:$0xff] }
  0x8e   : > { %1046 = vmatprep.subr.bf16.mxu0 %v1199_v4  ;;  %1066 = vmatprep.subr.bf16.mxu1 %v1199_v4 }
  0x91   : > { %1048 = vmatpush1.bf16.msra.mxu0 %v1047_v48  ;;  %1082 = vmatpush1.bf16.msra.mxu1 %v1047_v48  ;;  %v456_v48 = vld [vmem:[%s1422_s9 + $0xf0] sm:$0xff] }
  0x92   : > { %1049 = vmatprep.subr.bf16.mxu0 %v1199_v4  ;;  %1067 = vmatprep.subr.bf16.mxu1 %v1199_v4  ;;  %v434_v4 = vld [vmem:[%s1422_s9 + $0x40] sm:$0xff] }
  0x95   : > { %1051 = vmatpush1.bf16.msra.mxu0 %v1050_v51  ;;  %1083 = vmatpush1.bf16.msra.mxu1 %v1050_v51  ;;  %v410_v51 = vld [vmem:[#allocation2 + $0x80] sm:$0xff] }
  0x98   : > { %587 = vmatmul.mubr.f32.vlgmr.msra.gmra.mrb[0].mxu0 %v426_v52  ;;  %667 = vmatmul.mubr.f32.vlgmr.msra.gmra.mrb[0].mxu1 %v458_v53 }
  0x99   : > { %591 = vmatprep.mubr.f32.mxu0 %v429_v54  ;;  %671 = vmatprep.mubr.f32.mxu1 %v461_v55 }
  0x9c   : > { %592 = vmatmul.mubr.f32.gmra.mrb[2].mxu0 %v428_v56  ;;  %672 = vmatmul.mubr.f32.gmra.mrb[2].mxu1 %v460_v57 }
  0x9d   : > { %596 = vmatprep.mubr.f32.mxu0 %v431_v58  ;;  %676 = vmatprep.mubr.f32.mxu1 %v463_v59  ;;  %v395_v58 = vld [vmem:[#allocation2 + $0x8] sm:$0xff] }
  0x9e   : > { %v411_v59 = vld [vmem:[#allocation2 + $0x88] sm:$0xff] }
  0xa0   : > { %597 = vmatmul.mubr.f32.gmra.mrb[4].mxu0 %v430_v60  ;;  %677 = vmatmul.mubr.f32.gmra.mrb[4].mxu1 %v462_v61 }
  0xa1   : > { %601 = vmatprep.mubr.f32.mxu0 %v433_v62  ;;  %681 = vmatprep.mubr.f32.mxu1 %v465_v63 }
  0xa4   : > { %602 = vmatmul.mubr.f32.gmra.mrb[6].mxu0 %v432_v0  ;;  %682 = vmatmul.mubr.f32.gmra.mrb[6].mxu1 %v464_v1 }
  0xa5   : > { %606 = vmatprep.mubr.f32.mxu0 %v435_v2  ;;  %686 = vmatprep.mubr.f32.mxu1 %v467_v3  ;;  %v396_v2 = vld [vmem:[#allocation2 + $0x10] sm:$0xff] }
  0xa6   : > { %v412_v3 = vld [vmem:[#allocation2 + $0x90] sm:$0xff] }
  0xa8   : > { %607 = vmatmul.mubr.f32.gmra.mrb[8].mxu0 %v434_v4  ;;  %687 = vmatmul.mubr.f32.gmra.mrb[8].mxu1 %v466_v5 }
  0xa9   : > { %611 = vmatprep.mubr.f32.mxu0 %v437_v6  ;;  %691 = vmatprep.mubr.f32.mxu1 %v469_v7 }
  0xac   : > { %612 = vmatmul.mubr.f32.gmra.mrb[10].mxu0 %v436_v8  ;;  %692 = vmatmul.mubr.f32.gmra.mrb[10].mxu1 %v468_v9 }
  0xad   : > { %616 = vmatprep.mubr.f32.mxu0 %v439_v10  ;;  %696 = vmatprep.mubr.f32.mxu1 %v471_v11  ;;  %v397_v10 = vld [vmem:[#allocation2 + $0x18] sm:$0xff] }
  0xae   : > { %v413_v11 = vld [vmem:[#allocation2 + $0x98] sm:$0xff] }
  0xb0   : > { %617 = vmatmul.mubr.f32.gmra.mrb[12].mxu0 %v438_v12  ;;  %697 = vmatmul.mubr.f32.gmra.mrb[12].mxu1 %v470_v13 }
  0xb1   : > { %621 = vmatprep.mubr.f32.mxu0 %v441_v14  ;;  %701 = vmatprep.mubr.f32.mxu1 %v473_v15 }
  0xb4   : > { %622 = vmatmul.mubr.f32.gmra.mrb[14].mxu0 %v440_v16  ;;  %702 = vmatmul.mubr.f32.gmra.mrb[14].mxu1 %v472_v17 }
  0xb5   : > { %626 = vmatprep.mubr.f32.mxu0 %v443_v18  ;;  %706 = vmatprep.mubr.f32.mxu1 %v475_v19  ;;  %v398_v18 = vld [vmem:[#allocation2 + $0x20] sm:$0xff] }
  0xb6   : > { %v414_v19 = vld [vmem:[#allocation2 + $0xa0] sm:$0xff] }
  0xb8   : > { %627 = vmatmul.mubr.f32.gmra.mrb[16].mxu0 %v442_v20  ;;  %707 = vmatmul.mubr.f32.gmra.mrb[16].mxu1 %v474_v21 }
  0xb9   : > { %631 = vmatprep.mubr.f32.mxu0 %v445_v22  ;;  %711 = vmatprep.mubr.f32.mxu1 %v477_v23 }
  0xbc   : > { %632 = vmatmul.mubr.f32.gmra.mrb[18].mxu0 %v444_v24  ;;  %712 = vmatmul.mubr.f32.gmra.mrb[18].mxu1 %v476_v25 }
  0xbd   : > { %636 = vmatprep.mubr.f32.mxu0 %v447_v26  ;;  %716 = vmatprep.mubr.f32.mxu1 %v479_v27  ;;  %v399_v26 = vld [vmem:[#allocation2 + $0x28] sm:$0xff] }
  0xbe   : > { %v415_v27 = vld [vmem:[#allocation2 + $0xa8] sm:$0xff] }
  0xc0   : > { %637 = vmatmul.mubr.f32.gmra.mrb[20].mxu0 %v446_v28  ;;  %717 = vmatmul.mubr.f32.gmra.mrb[20].mxu1 %v478_v29 }
  0xc1   : > { %641 = vmatprep.mubr.f32.mxu0 %v449_v30  ;;  %721 = vmatprep.mubr.f32.mxu1 %v481_v31 }
  0xc4   : > { %642 = vmatmul.mubr.f32.gmra.mrb[22].mxu0 %v448_v32  ;;  %722 = vmatmul.mubr.f32.gmra.mrb[22].mxu1 %v480_v33 }
  0xc5   : > { %646 = vmatprep.mubr.f32.mxu0 %v451_v34  ;;  %726 = vmatprep.mubr.f32.mxu1 %v483_v35  ;;  %v400_v34 = vld [vmem:[#allocation2 + $0x30] sm:$0xff] }
  0xc6   : > { %v416_v35 = vld [vmem:[#allocation2 + $0xb0] sm:$0xff] }
  0xc8   : > { %647 = vmatmul.mubr.f32.gmra.mrb[24].mxu0 %v450_v36  ;;  %727 = vmatmul.mubr.f32.gmra.mrb[24].mxu1 %v482_v37 }
  0xc9   : > { %651 = vmatprep.mubr.f32.mxu0 %v453_v38  ;;  %731 = vmatprep.mubr.f32.mxu1 %v485_v39 }
  0xcc   : > { %652 = vmatmul.mubr.f32.gmra.mrb[26].mxu0 %v452_v40  ;;  %732 = vmatmul.mubr.f32.gmra.mrb[26].mxu1 %v484_v41 }
  0xcd   : > { %656 = vmatprep.mubr.f32.mxu0 %v455_v42  ;;  %736 = vmatprep.mubr.f32.mxu1 %v487_v43  ;;  %v401_v42 = vld [vmem:[#allocation2 + $0x38] sm:$0xff] }
  0xce   : > { %v417_v43 = vld [vmem:[#allocation2 + $0xb8] sm:$0xff] }
  0xd0   : > { %657 = vmatmul.mubr.f32.gmra.mrb[28].mxu0 %v454_v44  ;;  %737 = vmatmul.mubr.f32.gmra.mrb[28].mxu1 %v486_v45 }
  0xd1   : > { %661 = vmatprep.mubr.f32.mxu0 %v457_v46  ;;  %741 = vmatprep.mubr.f32.mxu1 %v489_v47 }
  0xd4   : > { %662 = vmatmul.mubr.f32.gmra.mrb[30].mxu0 %v456_v48  ;;  %742 = vmatmul.mubr.f32.gmra.mrb[30].mxu1 %v488_v49 }
 0x16b   : > { %v588_v52 = vpop.f32.mrb[0].mxu0  ;;  %v668_v53 = vpop.f32.mrb[0].mxu1 }
 0x16c   : > { %v747_v54 = vadd.f32 %v588_v52, %v394_v50  ;;  %v763_v55 = vadd.f32 %v668_v53, %v410_v51  ;;  %v590_v56 = vpop.f32.mrb[1].mxu0  ;;  %v670_v57 = vpop.f32.mrb[1].mxu1  ;;  %v402_v50 = vld [vmem:[#allocation2 + $0x40] sm:$0xff] }
 0x16d   : > { %v418_v51 = vld [vmem:[#allocation2 + $0xc0] sm:$0xff] }
 0x16e   : > { %779 = vst [vmem:[#allocation2] sm:$0xff] %v747_v54  ;;  %795 = vst [vmem:[#allocation2 + $0x80] sm:$0xff] %v763_v55 }
 0x16f   : > { %v593_v60 = vpop.f32.mrb[2].mxu0  ;;  %v673_v61 = vpop.f32.mrb[2].mxu1 }
 0x170   : > { %v748_v62 = vadd.f32 %v593_v60, %v395_v58  ;;  %v764_v63 = vadd.f32 %v673_v61, %v411_v59  ;;  %v595_v0 = vpop.f32.mrb[3].mxu0  ;;  %v675_v1 = vpop.f32.mrb[3].mxu1  ;;  %v403_v58 = vld [vmem:[#allocation2 + $0x48] sm:$0xff] }
 0x171   : > { %v419_v59 = vld [vmem:[#allocation2 + $0xc8] sm:$0xff] }
 0x172   : > { %780 = vst [vmem:[#allocation2 + $0x8] sm:$0xff] %v748_v62  ;;  %796 = vst [vmem:[#allocation2 + $0x88] sm:$0xff] %v764_v63 }
 0x173   : > { %v598_v4 = vpop.f32.mrb[4].mxu0  ;;  %v678_v5 = vpop.f32.mrb[4].mxu1 }
 0x174   : > { %v749_v6 = vadd.f32 %v598_v4, %v396_v2  ;;  %v765_v7 = vadd.f32 %v678_v5, %v412_v3  ;;  %v600_v8 = vpop.f32.mrb[5].mxu0  ;;  %v680_v9 = vpop.f32.mrb[5].mxu1  ;;  %v404_v2 = vld [vmem:[#allocation2 + $0x50] sm:$0xff] }
 0x175   : > { %v420_v3 = vld [vmem:[#allocation2 + $0xd0] sm:$0xff] }
 0x176   : > { %781 = vst [vmem:[#allocation2 + $0x10] sm:$0xff] %v749_v6  ;;  %797 = vst [vmem:[#allocation2 + $0x90] sm:$0xff] %v765_v7 }
 0x177   : > { %v603_v12 = vpop.f32.mrb[6].mxu0  ;;  %v683_v13 = vpop.f32.mrb[6].mxu1 }
 0x178   : > { %v750_v14 = vadd.f32 %v603_v12, %v397_v10  ;;  %v766_v15 = vadd.f32 %v683_v13, %v413_v11  ;;  %v605_v16 = vpop.f32.mrb[7].mxu0  ;;  %v685_v17 = vpop.f32.mrb[7].mxu1  ;;  %v405_v10 = vld [vmem:[#allocation2 + $0x58] sm:$0xff] }
 0x179   : > { %v421_v11 = vld [vmem:[#allocation2 + $0xd8] sm:$0xff] }
 0x17a   : > { %782 = vst [vmem:[#allocation2 + $0x18] sm:$0xff] %v750_v14  ;;  %798 = vst [vmem:[#allocation2 + $0x98] sm:$0xff] %v766_v15 }
 0x17b   : > { %v608_v20 = vpop.f32.mrb[8].mxu0  ;;  %v688_v21 = vpop.f32.mrb[8].mxu1 }
 0x17c   : > { %v751_v22 = vadd.f32 %v608_v20, %v398_v18  ;;  %v767_v23 = vadd.f32 %v688_v21, %v414_v19  ;;  %v610_v24 = vpop.f32.mrb[9].mxu0  ;;  %v690_v25 = vpop.f32.mrb[9].mxu1  ;;  %v406_v18 = vld [vmem:[#allocation2 + $0x60] sm:$0xff] }
 0x17d   : > { %v422_v19 = vld [vmem:[#allocation2 + $0xe0] sm:$0xff] }
 0x17e   : > { %783 = vst [vmem:[#allocation2 + $0x20] sm:$0xff] %v751_v22  ;;  %799 = vst [vmem:[#allocation2 + $0xa0] sm:$0xff] %v767_v23 }
 0x17f   : > { %v613_v28 = vpop.f32.mrb[10].mxu0  ;;  %v693_v29 = vpop.f32.mrb[10].mxu1 }
 0x180   : > { %v752_v30 = vadd.f32 %v613_v28, %v399_v26  ;;  %v768_v31 = vadd.f32 %v693_v29, %v415_v27  ;;  %v615_v32 = vpop.f32.mrb[11].mxu0  ;;  %v695_v33 = vpop.f32.mrb[11].mxu1  ;;  %v407_v26 = vld [vmem:[#allocation2 + $0x68] sm:$0xff] }
 0x181   : > { %v423_v27 = vld [vmem:[#allocation2 + $0xe8] sm:$0xff] }
 0x182   : > { %784 = vst [vmem:[#allocation2 + $0x28] sm:$0xff] %v752_v30  ;;  %800 = vst [vmem:[#allocation2 + $0xa8] sm:$0xff] %v768_v31 }
 0x183   : > { %v618_v36 = vpop.f32.mrb[12].mxu0  ;;  %v698_v37 = vpop.f32.mrb[12].mxu1 }
 0x184   : > { %v753_v38 = vadd.f32 %v618_v36, %v400_v34  ;;  %v769_v39 = vadd.f32 %v698_v37, %v416_v35  ;;  %v620_v40 = vpop.f32.mrb[13].mxu0  ;;  %v700_v41 = vpop.f32.mrb[13].mxu1  ;;  %v408_v34 = vld [vmem:[#allocation2 + $0x70] sm:$0xff] }
 0x185   : > { %v424_v35 = vld [vmem:[#allocation2 + $0xf0] sm:$0xff] }
 0x186   : > { %785 = vst [vmem:[#allocation2 + $0x30] sm:$0xff] %v753_v38  ;;  %801 = vst [vmem:[#allocation2 + $0xb0] sm:$0xff] %v769_v39 }
 0x187   : > { %v623_v44 = vpop.f32.mrb[14].mxu0  ;;  %v703_v45 = vpop.f32.mrb[14].mxu1 }
 0x188   : > { %v754_v46 = vadd.f32 %v623_v44, %v401_v42  ;;  %v770_v47 = vadd.f32 %v703_v45, %v417_v43  ;;  %v625_v48 = vpop.f32.mrb[15].mxu0  ;;  %v705_v49 = vpop.f32.mrb[15].mxu1  ;;  %v409_v42 = vld [vmem:[#allocation2 + $0x78] sm:$0xff] }
 0x189   : > { %v425_v43 = vld [vmem:[#allocation2 + $0xf8] sm:$0xff] }
 0x18a   : > { %786 = vst [vmem:[#allocation2 + $0x38] sm:$0xff] %v754_v46  ;;  %802 = vst [vmem:[#allocation2 + $0xb8] sm:$0xff] %v770_v47 }
 0x18b   : > { %v628_v52 = vpop.f32.mrb[16].mxu0  ;;  %v708_v53 = vpop.f32.mrb[16].mxu1 }
 0x18c   : > { %v755_v54 = vadd.f32 %v628_v52, %v402_v50  ;;  %v771_v55 = vadd.f32 %v708_v53, %v418_v51  ;;  %v630_v56 = vpop.f32.mrb[17].mxu0  ;;  %v710_v57 = vpop.f32.mrb[17].mxu1  ;;  %v815_v50 = vld [vmem:[#allocation2] sm:$0xff] (!%p1000_p13)  ;;  %v816_v51 = vld [vmem:[#allocation2 + $0x8] sm:$0xff] (!%p1000_p13)  ;;  %v817_v52 = vld [vmem:[#allocation2 + $0x10] sm:$0xff] (!%p1000_p13) }
 0x18d   : > { %847 = vst [vmem:[%s1420_s26] sm:$0xff] (!%p1000_p13), %v815_v50  ;;  %848 = vst [vmem:[%s1420_s26 + $0x8] sm:$0xff] (!%p1000_p13), %v816_v51  ;;  %v818_v53 = vld [vmem:[#allocation2 + $0x18] sm:$0xff] (!%p1000_p13)  ;;  %v821_v56 = vld [vmem:[#allocation2 + $0x30] sm:$0xff] (!%p1000_p13) }
 0x18e   : > { %787 = vst [vmem:[#allocation2 + $0x40] sm:$0xff] %v755_v54  ;;  %803 = vst [vmem:[#allocation2 + $0xc0] sm:$0xff] %v771_v55  ;;  %v819_v54 = vld [vmem:[#allocation2 + $0x20] sm:$0xff] (!%p1000_p13)  ;;  %v820_v55 = vld [vmem:[#allocation2 + $0x28] sm:$0xff] (!%p1000_p13) }
 0x18f   : > { %v633_v60 = vpop.f32.mrb[18].mxu0  ;;  %v713_v61 = vpop.f32.mrb[18].mxu1  ;;  %849 = vst [vmem:[%s1420_s26 + $0x10] sm:$0xff] (!%p1000_p13), %v817_v52  ;;  %850 = vst [vmem:[%s1420_s26 + $0x18] sm:$0xff] (!%p1000_p13), %v818_v53 }
 0x190   : > { %v756_v62 = vadd.f32 %v633_v60, %v403_v58  ;;  %v772_v63 = vadd.f32 %v713_v61, %v419_v59  ;;  %v635_v0 = vpop.f32.mrb[19].mxu0  ;;  %v715_v1 = vpop.f32.mrb[19].mxu1  ;;  %851 = vst [vmem:[%s1420_s26 + $0x20] sm:$0xff] (!%p1000_p13), %v819_v54  ;;  %852 = vst [vmem:[%s1420_s26 + $0x28] sm:$0xff] (!%p1000_p13), %v820_v55 }
 0x191   : > { %v822_v57 = vld [vmem:[#allocation2 + $0x38] sm:$0xff] (!%p1000_p13)  ;;  %853 = vst [vmem:[%s1420_s26 + $0x30] sm:$0xff] (!%p1000_p13), %v821_v56 }
 0x192   : > { %788 = vst [vmem:[#allocation2 + $0x48] sm:$0xff] %v756_v62  ;;  %804 = vst [vmem:[#allocation2 + $0xc8] sm:$0xff] %v772_v63 }
 0x193   : > { %v638_v4 = vpop.f32.mrb[20].mxu0  ;;  %v718_v5 = vpop.f32.mrb[20].mxu1  ;;  %854 = vst [vmem:[%s1420_s26 + $0x38] sm:$0xff] (!%p1000_p13), %v822_v57 }
 0x194   : > { %v757_v6 = vadd.f32 %v638_v4, %v404_v2  ;;  %v773_v7 = vadd.f32 %v718_v5, %v420_v3  ;;  %v640_v8 = vpop.f32.mrb[21].mxu0  ;;  %v720_v9 = vpop.f32.mrb[21].mxu1  ;;  %v831_v2 = vld [vmem:[#allocation2 + $0x80] sm:$0xff] (!%p1000_p13)  ;;  %v832_v3 = vld [vmem:[#allocation2 + $0x88] sm:$0xff] (!%p1000_p13)  ;;  %v833_v4 = vld [vmem:[#allocation2 + $0x90] sm:$0xff] (!%p1000_p13) }
 0x195   : > { %v823_v58 = vld [vmem:[#allocation2 + $0x40] sm:$0xff] (!%p1000_p13)  ;;  %863 = vst [vmem:[%s1420_s26 + $0x80] sm:$0xff] (!%p1000_p13), %v831_v2  ;;  %864 = vst [vmem:[%s1420_s26 + $0x88] sm:$0xff] (!%p1000_p13), %v832_v3  ;;  %v834_v5 = vld [vmem:[#allocation2 + $0x98] sm:$0xff] (!%p1000_p13) }
 0x196   : > { %789 = vst [vmem:[#allocation2 + $0x50] sm:$0xff] %v757_v6  ;;  %805 = vst [vmem:[#allocation2 + $0xd0] sm:$0xff] %v773_v7  ;;  %v835_v6 = vld [vmem:[#allocation2 + $0xa0] sm:$0xff] (!%p1000_p13)  ;;  %v836_v7 = vld [vmem:[#allocation2 + $0xa8] sm:$0xff] (!%p1000_p13) }
 0x197   : > { %v643_v12 = vpop.f32.mrb[22].mxu0  ;;  %v723_v13 = vpop.f32.mrb[22].mxu1  ;;  %855 = vst [vmem:[%s1420_s26 + $0x40] sm:$0xff] (!%p1000_p13), %v823_v58  ;;  %865 = vst [vmem:[%s1420_s26 + $0x90] sm:$0xff] (!%p1000_p13), %v833_v4  ;;  %v837_v8 = vld [vmem:[#allocation2 + $0xb0] sm:$0xff] (!%p1000_p13)  ;;  %v838_v9 = vld [vmem:[#allocation2 + $0xb8] sm:$0xff] (!%p1000_p13) }
 0x198   : > { %v758_v14 = vadd.f32 %v643_v12, %v405_v10  ;;  %v774_v15 = vadd.f32 %v723_v13, %v421_v11  ;;  %v645_v16 = vpop.f32.mrb[23].mxu0  ;;  %v725_v17 = vpop.f32.mrb[23].mxu1  ;;  %866 = vst [vmem:[%s1420_s26 + $0x98] sm:$0xff] (!%p1000_p13), %v834_v5  ;;  %867 = vst [vmem:[%s1420_s26 + $0xa0] sm:$0xff] (!%p1000_p13), %v835_v6  ;;  %v839_v10 = vld [vmem:[#allocation2 + $0xc0] sm:$0xff] (!%p1000_p13) }
 0x199   : > { %v824_v59 = vld [vmem:[#allocation2 + $0x48] sm:$0xff] (!%p1000_p13)  ;;  %868 = vst [vmem:[%s1420_s26 + $0xa8] sm:$0xff] (!%p1000_p13), %v836_v7  ;;  %869 = vst [vmem:[%s1420_s26 + $0xb0] sm:$0xff] (!%p1000_p13), %v837_v8 }
 0x19a   : > { %790 = vst [vmem:[#allocation2 + $0x58] sm:$0xff] %v758_v14  ;;  %806 = vst [vmem:[#allocation2 + $0xd8] sm:$0xff] %v774_v15  ;;  %v840_v11 = vld [vmem:[#allocation2 + $0xc8] sm:$0xff] (!%p1000_p13) }
 0x19b   : > { %v648_v20 = vpop.f32.mrb[24].mxu0  ;;  %v728_v21 = vpop.f32.mrb[24].mxu1  ;;  %856 = vst [vmem:[%s1420_s26 + $0x48] sm:$0xff] (!%p1000_p13), %v824_v59  ;;  %870 = vst [vmem:[%s1420_s26 + $0xb8] sm:$0xff] (!%p1000_p13), %v838_v9 }
 0x19c   : > { %v759_v22 = vadd.f32 %v648_v20, %v406_v18  ;;  %v775_v23 = vadd.f32 %v728_v21, %v422_v19  ;;  %v650_v24 = vpop.f32.mrb[25].mxu0  ;;  %v730_v25 = vpop.f32.mrb[25].mxu1  ;;  %871 = vst [vmem:[%s1420_s26 + $0xc0] sm:$0xff] (!%p1000_p13), %v839_v10  ;;  %872 = vst [vmem:[%s1420_s26 + $0xc8] sm:$0xff] (!%p1000_p13), %v840_v11 }
 0x19d   : > { %v825_v60 = vld [vmem:[#allocation2 + $0x50] sm:$0xff] (!%p1000_p13) }
 0x19e   : > { %791 = vst [vmem:[#allocation2 + $0x60] sm:$0xff] %v759_v22  ;;  %807 = vst [vmem:[#allocation2 + $0xe0] sm:$0xff] %v775_v23  ;;  %v841_v12 = vld [vmem:[#allocation2 + $0xd0] sm:$0xff] (!%p1000_p13) }
 0x19f   : > { %v653_v28 = vpop.f32.mrb[26].mxu0  ;;  %v733_v29 = vpop.f32.mrb[26].mxu1  ;;  %857 = vst [vmem:[%s1420_s26 + $0x50] sm:$0xff] (!%p1000_p13), %v825_v60  ;;  %873 = vst [vmem:[%s1420_s26 + $0xd0] sm:$0xff] (!%p1000_p13), %v841_v12 }
 0x1a0   : > { %v760_v30 = vadd.f32 %v653_v28, %v407_v26  ;;  %v776_v31 = vadd.f32 %v733_v29, %v423_v27  ;;  %v655_v32 = vpop.f32.mrb[27].mxu0  ;;  %v735_v33 = vpop.f32.mrb[27].mxu1 }
 0x1a1   : > { %v826_v61 = vld [vmem:[#allocation2 + $0x58] sm:$0xff] (!%p1000_p13) }
 0x1a2   : > { %792 = vst [vmem:[#allocation2 + $0x68] sm:$0xff] %v760_v30  ;;  %808 = vst [vmem:[#allocation2 + $0xe8] sm:$0xff] %v776_v31  ;;  %v842_v13 = vld [vmem:[#allocation2 + $0xd8] sm:$0xff] (!%p1000_p13) }
 0x1a3   : > { %v658_v36 = vpop.f32.mrb[28].mxu0  ;;  %v738_v37 = vpop.f32.mrb[28].mxu1  ;;  %858 = vst [vmem:[%s1420_s26 + $0x58] sm:$0xff] (!%p1000_p13), %v826_v61  ;;  %874 = vst [vmem:[%s1420_s26 + $0xd8] sm:$0xff] (!%p1000_p13), %v842_v13 }
 0x1a4   : > { %v761_v38 = vadd.f32 %v658_v36, %v408_v34  ;;  %v777_v39 = vadd.f32 %v738_v37, %v424_v35  ;;  %v660_v40 = vpop.f32.mrb[29].mxu0  ;;  %v740_v41 = vpop.f32.mrb[29].mxu1  ;;  %814 = sbr.rel (%p1000_p13) target bundleno = 436 (0x1b4), region = 59 }
 0x1a5   : > { %v827_v62 = vld [vmem:[#allocation2 + $0x60] sm:$0xff] (!%p1000_p13) }
 0x1a6   : > { %793 = vst [vmem:[#allocation2 + $0x70] sm:$0xff] %v761_v38  ;;  %809 = vst [vmem:[#allocation2 + $0xf0] sm:$0xff] %v777_v39  ;;  %v843_v14 = vld [vmem:[#allocation2 + $0xe0] sm:$0xff] (!%p1000_p13) }
 0x1a7   : > { %v663_v44 = vpop.f32.mrb[30].mxu0  ;;  %v743_v45 = vpop.f32.mrb[30].mxu1  ;;  %859 = vst [vmem:[%s1420_s26 + $0x60] sm:$0xff] (!%p1000_p13), %v827_v62  ;;  %875 = vst [vmem:[%s1420_s26 + $0xe0] sm:$0xff] (!%p1000_p13), %v843_v14 }
 0x1a8   : > { %v762_v46 = vadd.f32 %v663_v44, %v409_v42  ;;  %v778_v47 = vadd.f32 %v743_v45, %v425_v43  ;;  %v665_v48 = vpop.f32.mrb[31].mxu0  ;;  %v745_v49 = vpop.f32.mrb[31].mxu1 }
 0x1a9   : > { %v828_v63 = vld [vmem:[#allocation2 + $0x68] sm:$0xff] (!%p1000_p13) }
 0x1aa   : > { %794 = vst [vmem:[#allocation2 + $0x78] sm:$0xff] %v762_v46  ;;  %810 = vst [vmem:[#allocation2 + $0xf8] sm:$0xff] %v778_v47  ;;  %v844_v15 = vld [vmem:[#allocation2 + $0xe8] sm:$0xff] (!%p1000_p13) }
 0x1ab   : > { %860 = vst [vmem:[%s1420_s26 + $0x68] sm:$0xff] %v828_v63  ;;  %876 = vst [vmem:[%s1420_s26 + $0xe8] sm:$0xff] %v844_v15 }
 0x1ad   : > { %v829_v0 = vld [vmem:[#allocation2 + $0x70] sm:$0xff] }
 0x1ae   : > { %861 = vst [vmem:[%s1420_s26 + $0x70] sm:$0xff] %v829_v0  ;;  %v845_v16 = vld [vmem:[#allocation2 + $0xf0] sm:$0xff] }
 0x1af   : > { %877 = vst [vmem:[%s1420_s26 + $0xf0] sm:$0xff] %v845_v16 }
 0x1b1   : > { %v830_v1 = vld [vmem:[#allocation2 + $0x78] sm:$0xff] }
 0x1b2   : > { %862 = vst [vmem:[%s1420_s26 + $0x78] sm:$0xff] %v830_v1  ;;  %v846_v17 = vld [vmem:[#allocation2 + $0xf8] sm:$0xff] }
 0x1b3   : > { %878 = vst [vmem:[%s1420_s26 + $0xf8] sm:$0xff] %v846_v17 }
 0x1b4 PF: > { %s12_s15 = sadd.s32 1, %s1196_s15   ;;  %s1610_s9 = smov %s1176_s10 }
 0x1b5   : > { %p9_p0 = scmp.ge.s32.totalorder %s12_s15, 6   ;;  %s1611_s10 = smov %s1266_s22 }
 0x1b6   : > { %s1612_s11 = smov %s1188_s13  ;;  %s1613_s12 = smov %s1192_s14 }
 0x1b7   : > { %s1614_s13 = smov %s1617_s16  ;;  %s1615_s14 = smov %s1621_s17 }
 0x1b8   :  { %11 = sbr.rel (!%p9_p0) target bundleno = 4 (0x4), region = 97 }

// kernel: _lambda_.29
= control target key start
LH: loop header
LB: loop body
LE: loop exit
PB: predicated region body
PF: predicated region fallthrough
CT: control target
= control target key end

     0   :  { %s1007_s9 = smov 0   ;;  %s1009_s10 = smov 0   ;;  %s1161_s0 = inlined_call_operand.vmem [shape: f32[512,128], index: 0, kind: input, shape index: {}]   ;;  %s1162_s1 = inlined_call_operand.vmem [shape: f32[512,128], index: 1, kind: input, shape index: {}]   ;;  %s1163_s2 = inlined_call_operand.vmem [shape: f32[128,128], index: 2, kind: output, shape index: {}]  }
   0x1   :  { %s1011_s11 = smov 0  }
   0x2 LB: > { %s24_s12 = sadd.s32 1, %s985_s10  ;;  %p691_p0 = scmp.ge.s32.totalorder %s989_s11, 1  ;;  %s989_s11 = sphi %s1011_s11, %s12_s11   ;;  %s985_s10 = sphi %s1009_s10, %s1165_s10   ;;  %s981_s9 = sphi %s1007_s9, %s1164_s9  }
   0x3   : > { %p25_p1 = scmp.ge.s32.totalorder %s24_s12, 2  ;;  %p155_p2 = scmp.lt.s32.totalorder %s989_s11, 3 }
   0x5   : > { %s1167_s12 = smov (%p25_p1, %s24_s12), 0  ;;  %p156_p3 = pnand %p691_p0, %p155_p2 }
   0x6   : > { %s692_s13 = sshll.u32 (!%p156_p3), %s981_s9, 5  ;;  %p696_p5 = scmp.ne.s32.totalorder (!%p156_p3), %s981_s9, 0 }
   0x7   : > { %159 = sbr.rel (%p156_p3) target bundleno = 446 (0x1be), region = 28  ;;  %p192_p4 = scmp.lt.s32.totalorder (!%p156_p3), %s692_s13, 63 }
   0xe   : > { %s1169_s13 = smov (!%p192_p4, %s692_s13), 63  ;;  %221 = sbr.rel (%p696_p5) target bundleno = 24 (0x18), region = 32 }
   0xf   : > { %s693_s14 = sshll.u32 %s1169_s13, 3  ;;  %v991_v0 = vmov (!%p696_p5), 0.0  }
  0x10   : > { %s1031_s17 = scalar_lea.vmem %s1161_s0, %s693_s14  ;;  %s1036_s20 = scalar_lea.vmem %s1162_s1, %s693_s14  ;;  %222 = vst [vmem:[#allocation2] sm:$0xff] (!%p696_p5), %v991_v0  ;;  %223 = vst [vmem:[#allocation2 + $0x8] sm:$0xff] (!%p696_p5), %v991_v0 }
  0x11   : > { %224 = vst [vmem:[#allocation2 + $0x10] sm:$0xff] (!%p696_p5), %v991_v0  ;;  %225 = vst [vmem:[#allocation2 + $0x18] sm:$0xff] (!%p696_p5), %v991_v0 }
  0x12   : > { %226 = vst [vmem:[#allocation2 + $0x20] sm:$0xff] (!%p696_p5), %v991_v0  ;;  %227 = vst [vmem:[#allocation2 + $0x28] sm:$0xff] (!%p696_p5), %v991_v0 }
  0x13   : > { %228 = vst [vmem:[#allocation2 + $0x30] sm:$0xff] (!%p696_p5), %v991_v0  ;;  %229 = vst [vmem:[#allocation2 + $0x38] sm:$0xff] (!%p696_p5), %v991_v0 }
  0x14   : > { %230 = vst [vmem:[#allocation2 + $0x40] sm:$0xff] (!%p696_p5), %v991_v0  ;;  %231 = vst [vmem:[#allocation2 + $0x48] sm:$0xff] (!%p696_p5), %v991_v0 }
  0x15   : > { %232 = vst [vmem:[#allocation2 + $0x50] sm:$0xff] %v991_v0  ;;  %233 = vst [vmem:[#allocation2 + $0x58] sm:$0xff] %v991_v0 }
  0x16   : > { %234 = vst [vmem:[#allocation2 + $0x60] sm:$0xff] %v991_v0  ;;  %235 = vst [vmem:[#allocation2 + $0x68] sm:$0xff] %v991_v0 }
  0x17   : > { %236 = vst [vmem:[#allocation2 + $0x70] sm:$0xff] %v991_v0  ;;  %237 = vst [vmem:[#allocation2 + $0x78] sm:$0xff] %v991_v0 }
  0x18 PF: > { %v254_v1 = vld [vmem:[%s1031_s17] sm:$0xff]  ;;  %v255_v3 = vld [vmem:[%s1031_s17 + $0x8] sm:$0xff]  ;;  %v256_v7 = vld [vmem:[%s1031_s17 + $0x10] sm:$0xff]  ;;  %p697_p6 = scmp.ne.s32.totalorder %s981_s9, 1 }
  0x19   : > { %v270_v2 = vld [vmem:[%s1031_s17 + $0x80] sm:$0xff]  ;;  %v271_v5 = vld [vmem:[%s1031_s17 + $0x88] sm:$0xff]  ;;  %v272_v8 = vld [vmem:[%s1031_s17 + $0x90] sm:$0xff] }
  0x1a   : > { %v855_v4 = vpack.i.bf16 %v254_v1, %v270_v2  ;;  %v857_v6 = vpack.i.bf16 %v255_v3, %v271_v5  ;;  %v859_v9 = vpack.i.bf16 %v256_v7, %v272_v8  ;;  %v257_v10 = vld [vmem:[%s1031_s17 + $0x18] sm:$0xff]  ;;  %v258_v12 = vld [vmem:[%s1031_s17 + $0x20] sm:$0xff]  ;;  %v303_v16 = vld [vmem:[%s1036_s20 + $0x88] sm:$0xff] }
  0x1b   : > { %v273_v11 = vld [vmem:[%s1031_s17 + $0x98] sm:$0xff]  ;;  %v274_v13 = vld [vmem:[%s1031_s17 + $0xa0] sm:$0xff]  ;;  %v287_v18 = vld [vmem:[%s1036_s20 + $0x8] sm:$0xff] }
  0x1c   : > { %856 = vxpose.xlu0.b32.start [1/16] %v855_v4, 128  ;;  %v302_v14 = vld [vmem:[%s1036_s20 + $0x80] sm:$0xff]  ;;  %v861_v15 = vpack.i.bf16 %v257_v10, %v273_v11  ;;  %v304_v21 = vld [vmem:[%s1036_s20 + $0x90] sm:$0xff]  ;;  %v305_v22 = vld [vmem:[%s1036_s20 + $0x98] sm:$0xff]  ;;  %v863_v28 = vpack.i.bf16 %v258_v12, %v274_v13 }
  0x1d   : > { %v286_v17 = vld [vmem:[%s1036_s20] sm:$0xff]  ;;  %v782_v19 = vpack.c.bf16 %v303_v16, %v302_v14  ;;  %v288_v23 = vld [vmem:[%s1036_s20 + $0x10] sm:$0xff]  ;;  %v786_v24 = vpack.c.bf16 %v305_v22, %v304_v21  ;;  %v289_v25 = vld [vmem:[%s1036_s20 + $0x18] sm:$0xff] }
  0x1e   : > { %v784_v20 = vpack.c.bf16 %v287_v18, %v286_v17  ;;  %v306_v26 = vld [vmem:[%s1036_s20 + $0xa0] sm:$0xff]  ;;  %v307_v27 = vld [vmem:[%s1036_s20 + $0xa8] sm:$0xff]  ;;  %v788_v30 = vpack.c.bf16 %v289_v25, %v288_v23  ;;  %v308_v35 = vld [vmem:[%s1036_s20 + $0xb0] sm:$0xff] }
  0x1f   : > { %783 = vmatprep.subr.bf16.mxu0 %v782_v19  ;;  %814 = vmatprep.subr.bf16.mxu1 %v782_v19  ;;  %v259_v29 = vld [vmem:[%s1031_s17 + $0x28] sm:$0xff]  ;;  %v790_v32 = vpack.c.bf16 %v307_v27, %v306_v26  ;;  %v290_v33 = vld [vmem:[%s1036_s20 + $0x20] sm:$0xff]  ;;  %v309_v36 = vld [vmem:[%s1036_s20 + $0xb8] sm:$0xff] }
  0x20   : > { %858 = vxpose.xlu0.b32.cont [2/16] %v857_v6, 128  ;;  %785 = vmatpush3.bf16.msra.mxu0 %v784_v20  ;;  %v275_v31 = vld [vmem:[%s1031_s17 + $0xa8] sm:$0xff]  ;;  %v260_v38 = vld [vmem:[%s1031_s17 + $0x30] sm:$0xff]  ;;  %v794_v41 = vpack.c.bf16 %v309_v36, %v308_v35  ;;  %v293_v43 = vld [vmem:[%s1036_s20 + $0x38] sm:$0xff] }
  0x21   : > { %787 = vmatprep.subr.bf16.mxu0 %v786_v24  ;;  %v291_v34 = vld [vmem:[%s1036_s20 + $0x28] sm:$0xff]  ;;  %822 = vmatpush3.bf16.msra.mxu1 %v784_v20  ;;  %v865_v37 = vpack.i.bf16 %v259_v29, %v275_v31  ;;  %v276_v40 = vld [vmem:[%s1031_s17 + $0xb0] sm:$0xff]  ;;  %v310_v44 = vld [vmem:[%s1036_s20 + $0xc0] sm:$0xff] }
  0x22   : > { %815 = vmatprep.subr.bf16.mxu1 %v786_v24  ;;  %v792_v39 = vpack.c.bf16 %v291_v34, %v290_v33  ;;  %v292_v42 = vld [vmem:[%s1036_s20 + $0x30] sm:$0xff]  ;;  %v311_v45 = vld [vmem:[%s1036_s20 + $0xc8] sm:$0xff]  ;;  %v867_v46 = vpack.i.bf16 %v260_v38, %v276_v40  ;;  %v261_v47 = vld [vmem:[%s1031_s17 + $0x38] sm:$0xff] }
  0x23   : > { %v796_v48 = vpack.c.bf16 %v293_v43, %v292_v42  ;;  %v277_v49 = vld [vmem:[%s1031_s17 + $0xb8] sm:$0xff]  ;;  %v798_v50 = vpack.c.bf16 %v311_v45, %v310_v44  ;;  %v294_v51 = vld [vmem:[%s1036_s20 + $0x40] sm:$0xff]  ;;  %v295_v52 = vld [vmem:[%s1036_s20 + $0x48] sm:$0xff] }
  0x24   : > { %860 = vxpose.xlu0.b32.cont [3/16] %v859_v9, 128  ;;  %789 = vmatpush3.bf16.msra.mxu0 %v788_v30  ;;  %v312_v53 = vld [vmem:[%s1036_s20 + $0xd0] sm:$0xff]  ;;  %v313_v54 = vld [vmem:[%s1036_s20 + $0xd8] sm:$0xff]  ;;  %v869_v55 = vpack.i.bf16 %v261_v47, %v277_v49  ;;  %v262_v56 = vld [vmem:[%s1031_s17 + $0x40] sm:$0xff]  ;;  %v800_v57 = vpack.c.bf16 %v295_v52, %v294_v51 }
  0x25   : > { %791 = vmatprep.subr.bf16.mxu0 %v790_v32  ;;  %823 = vmatpush3.bf16.msra.mxu1 %v788_v30  ;;  %v278_v58 = vld [vmem:[%s1031_s17 + $0xc0] sm:$0xff]  ;;  %v802_v59 = vpack.c.bf16 %v313_v54, %v312_v53  ;;  %v296_v60 = vld [vmem:[%s1036_s20 + $0x50] sm:$0xff]  ;;  %v297_v61 = vld [vmem:[%s1036_s20 + $0x58] sm:$0xff] }
  0x26   : > { %816 = vmatprep.subr.bf16.mxu1 %v790_v32  ;;  %v314_v62 = vld [vmem:[%s1036_s20 + $0xe0] sm:$0xff]  ;;  %v315_v63 = vld [vmem:[%s1036_s20 + $0xe8] sm:$0xff]  ;;  %v871_v0 = vpack.i.bf16 %v262_v56, %v278_v58  ;;  %v804_v2 = vpack.c.bf16 %v297_v61, %v296_v60  ;;  %v316_v7 = vld [vmem:[%s1036_s20 + $0xf0] sm:$0xff] }
  0x27   : > { %v263_v1 = vld [vmem:[%s1031_s17 + $0x48] sm:$0xff]  ;;  %v806_v4 = vpack.c.bf16 %v315_v63, %v314_v62  ;;  %v298_v5 = vld [vmem:[%s1036_s20 + $0x60] sm:$0xff]  ;;  %v317_v8 = vld [vmem:[%s1036_s20 + $0xf8] sm:$0xff] }
  0x28   : > { %862 = vxpose.xlu0.b32.cont [4/16] %v861_v15, 128  ;;  %793 = vmatpush3.bf16.msra.mxu0 %v792_v39  ;;  %v279_v3 = vld [vmem:[%s1031_s17 + $0xc8] sm:$0xff]  ;;  %v264_v10 = vld [vmem:[%s1031_s17 + $0x50] sm:$0xff]  ;;  %v810_v13 = vpack.c.bf16 %v317_v8, %v316_v7  ;;  %v301_v15 = vld [vmem:[%s1036_s20 + $0x78] sm:$0xff] }
  0x29   : > { %795 = vmatprep.subr.bf16.mxu0 %v794_v41  ;;  %824 = vmatpush3.bf16.msra.mxu1 %v792_v39  ;;  %v299_v6 = vld [vmem:[%s1036_s20 + $0x68] sm:$0xff]  ;;  %v873_v9 = vpack.i.bf16 %v263_v1, %v279_v3  ;;  %v280_v12 = vld [vmem:[%s1031_s17 + $0xd0] sm:$0xff]  ;;  %v265_v18 = vld [vmem:[%s1031_s17 + $0x58] sm:$0xff] }
  0x2a   : > { %817 = vmatprep.subr.bf16.mxu1 %v794_v41  ;;  %v808_v11 = vpack.c.bf16 %v299_v6, %v298_v5  ;;  %v300_v14 = vld [vmem:[%s1036_s20 + $0x70] sm:$0xff]  ;;  %v875_v16 = vpack.i.bf16 %v264_v10, %v280_v12  ;;  %v281_v19 = vld [vmem:[%s1031_s17 + $0xd8] sm:$0xff]  ;;  %v266_v21 = vld [vmem:[%s1031_s17 + $0x60] sm:$0xff] }
  0x2b   : > { %v812_v17 = vpack.c.bf16 %v301_v15, %v300_v14  ;;  %v877_v20 = vpack.i.bf16 %v265_v18, %v281_v19  ;;  %v282_v22 = vld [vmem:[%s1031_s17 + $0xe0] sm:$0xff]  ;;  %v267_v24 = vld [vmem:[%s1031_s17 + $0x68] sm:$0xff]  ;;  %v268_v27 = vld [vmem:[%s1031_s17 + $0x70] sm:$0xff] }
  0x2c   : > { %864 = vxpose.xlu0.b32.cont [5/16] %v863_v28, 128  ;;  %797 = vmatpush3.bf16.msra.mxu0 %v796_v48  ;;  %v879_v23 = vpack.i.bf16 %v266_v21, %v282_v22  ;;  %v283_v25 = vld [vmem:[%s1031_s17 + $0xe8] sm:$0xff]  ;;  %v284_v28 = vld [vmem:[%s1031_s17 + $0xf0] sm:$0xff]  ;;  %v269_v30 = vld [vmem:[%s1031_s17 + $0x78] sm:$0xff] }
  0x2d   : > { %799 = vmatprep.subr.bf16.mxu0 %v798_v50  ;;  %825 = vmatpush3.bf16.msra.mxu1 %v796_v48  ;;  %v881_v26 = vpack.i.bf16 %v267_v24, %v283_v25  ;;  %v883_v29 = vpack.i.bf16 %v268_v27, %v284_v28  ;;  %v285_v31 = vld [vmem:[%s1031_s17 + $0xf8] sm:$0xff]  ;;  %v238_v18 = vld [vmem:[#allocation2] sm:$0xff]  ;;  %v240_v28 = vld [vmem:[#allocation2 + $0x10] sm:$0xff] }
  0x2e   : > { %818 = vmatprep.subr.bf16.mxu1 %v798_v50  ;;  %v885_v32 = vpack.i.bf16 %v269_v30, %v285_v31 }
  0x30   : > { %866 = vxpose.xlu0.b32.cont [6/16] %v865_v37, 128  ;;  %801 = vmatpush3.bf16.msra.mxu0 %v800_v57 }
  0x31   : > { %803 = vmatprep.subr.bf16.mxu0 %v802_v59  ;;  %826 = vmatpush3.bf16.msra.mxu1 %v800_v57 }
  0x32   : > { %819 = vmatprep.subr.bf16.mxu1 %v802_v59 }
  0x34   : > { %868 = vxpose.xlu0.b32.cont [7/16] %v867_v46, 128  ;;  %805 = vmatpush3.bf16.msra.mxu0 %v804_v2 }
  0x35   : > { %807 = vmatprep.subr.bf16.mxu0 %v806_v4  ;;  %827 = vmatpush3.bf16.msra.mxu1 %v804_v2 }
  0x36   : > { %820 = vmatprep.subr.bf16.mxu1 %v806_v4 }
  0x38   : > { %870 = vxpose.xlu0.b32.cont [8/16] %v869_v55, 128  ;;  %809 = vmatpush3.bf16.msra.mxu0 %v808_v11 }
  0x39   : > { %811 = vmatprep.subr.bf16.mxu0 %v810_v13  ;;  %828 = vmatpush3.bf16.msra.mxu1 %v808_v11 }
  0x3a   : > { %821 = vmatprep.subr.bf16.mxu1 %v810_v13 }
  0x3c   : > { %872 = vxpose.xlu0.b32.cont [9/16] %v871_v0, 128  ;;  %813 = vmatpush3.bf16.msra.mxu0 %v812_v17 }
  0x3d   : > { %829 = vmatpush3.bf16.msra.mxu1 %v812_v17 }
  0x40   : > { %874 = vxpose.xlu0.b32.cont [10/16] %v873_v9, 128 }
  0x44   : > { %876 = vxpose.xlu0.b32.cont [11/16] %v875_v16, 128 }
  0x48   : > { %878 = vxpose.xlu0.b32.cont [12/16] %v877_v20, 128 }
  0x4c   : > { %880 = vxpose.xlu0.b32.cont [13/16] %v879_v23, 128  ;;  %v239_v23 = vld [vmem:[#allocation2 + $0x8] sm:$0xff] }
  0x50   : > { %882 = vxpose.xlu0.b32.cont [14/16] %v881_v26, 128 }
  0x54   : > { %884 = vxpose.xlu0.b32.cont [15/16] %v883_v29, 128 }
  0x58   : > { %886 = vxpose.xlu0.b32.end [16/16] %v885_v32, 128 }
  0x9c   : > { %v887_v33 = vpop.trf.xlu0 }
  0x9d   : > { %v888_v34 = vunpack.i.l.bf16 %v887_v33  ;;  %v891_v35 = vunpack.i.h.bf16 %v887_v33  ;;  %v241_v33 = vld [vmem:[#allocation2 + $0x18] sm:$0xff] }
  0x9f   : > { %446 = vmatprep.mubr.f32.mxu0 %v888_v34 }
  0xa0   : > { %v892_v36 = vpop.trf.xlu0  ;;  %447 = vmatmul.mubr.f32.vlgmr.msra.gmra.mrb[0].mxu0 %v891_v35 }
  0xa1   : > { %v893_v37 = vunpack.i.l.bf16 %v892_v36  ;;  %v896_v38 = vunpack.i.h.bf16 %v892_v36 }
  0xa3   : > { %451 = vmatprep.mubr.f32.mxu0 %v893_v37 }
  0xa4   : > { %v897_v39 = vpop.trf.xlu0  ;;  %452 = vmatmul.mubr.f32.gmra.mrb[2].mxu0 %v896_v38  ;;  %v242_v38 = vld [vmem:[#allocation2 + $0x20] sm:$0xff] }
  0xa5   : > { %v898_v40 = vunpack.i.l.bf16 %v897_v39  ;;  %v901_v41 = vunpack.i.h.bf16 %v897_v39 }
  0xa7   : > { %456 = vmatprep.mubr.f32.mxu0 %v898_v40 }
  0xa8   : > { %v902_v42 = vpop.trf.xlu0  ;;  %457 = vmatmul.mubr.f32.gmra.mrb[4].mxu0 %v901_v41 }
  0xa9   : > { %v903_v43 = vunpack.i.l.bf16 %v902_v42  ;;  %v906_v44 = vunpack.i.h.bf16 %v902_v42 }
  0xab   : > { %461 = vmatprep.mubr.f32.mxu0 %v903_v43  ;;  %v243_v43 = vld [vmem:[#allocation2 + $0x28] sm:$0xff] }
  0xac   : > { %v907_v45 = vpop.trf.xlu0  ;;  %462 = vmatmul.mubr.f32.gmra.mrb[6].mxu0 %v906_v44 }
  0xad   : > { %v908_v46 = vunpack.i.l.bf16 %v907_v45  ;;  %v911_v47 = vunpack.i.h.bf16 %v907_v45 }
  0xaf   : > { %466 = vmatprep.mubr.f32.mxu0 %v908_v46 }
  0xb0   : > { %v912_v48 = vpop.trf.xlu0  ;;  %467 = vmatmul.mubr.f32.gmra.mrb[8].mxu0 %v911_v47 }
  0xb1   : > { %v913_v49 = vunpack.i.l.bf16 %v912_v48  ;;  %v916_v50 = vunpack.i.h.bf16 %v912_v48  ;;  %v244_v48 = vld [vmem:[#allocation2 + $0x30] sm:$0xff] }
  0xb3   : > { %471 = vmatprep.mubr.f32.mxu0 %v913_v49 }
  0xb4   : > { %v917_v51 = vpop.trf.xlu0  ;;  %472 = vmatmul.mubr.f32.gmra.mrb[10].mxu0 %v916_v50 }
  0xb5   : > { %v918_v52 = vunpack.i.l.bf16 %v917_v51  ;;  %v921_v53 = vunpack.i.h.bf16 %v917_v51 }
  0xb7   : > { %476 = vmatprep.mubr.f32.mxu0 %v918_v52 }
  0xb8   : > { %v922_v54 = vpop.trf.xlu0  ;;  %477 = vmatmul.mubr.f32.gmra.mrb[12].mxu0 %v921_v53  ;;  %v245_v53 = vld [vmem:[#allocation2 + $0x38] sm:$0xff] }
  0xb9   : > { %v923_v55 = vunpack.i.l.bf16 %v922_v54  ;;  %v926_v56 = vunpack.i.h.bf16 %v922_v54 }
  0xbb   : > { %481 = vmatprep.mubr.f32.mxu0 %v923_v55 }
  0xbc   : > { %v927_v57 = vpop.trf.xlu0  ;;  %482 = vmatmul.mubr.f32.gmra.mrb[14].mxu0 %v926_v56 }
  0xbd   : > { %v928_v58 = vunpack.i.l.bf16 %v927_v57  ;;  %v931_v59 = vunpack.i.h.bf16 %v927_v57 }
  0xbf   : > { %486 = vmatprep.mubr.f32.mxu1 %v928_v58  ;;  %v246_v58 = vld [vmem:[#allocation2 + $0x40] sm:$0xff] }
  0xc0   : > { %v932_v60 = vpop.trf.xlu0  ;;  %487 = vmatmul.mubr.f32.vlgmr.msra.gmra.mrb[0].mxu1 %v931_v59 }
  0xc1   : > { %v933_v61 = vunpack.i.l.bf16 %v932_v60  ;;  %v936_v62 = vunpack.i.h.bf16 %v932_v60 }
  0xc3   : > { %491 = vmatprep.mubr.f32.mxu1 %v933_v61 }
  0xc4   : > { %v937_v63 = vpop.trf.xlu0  ;;  %492 = vmatmul.mubr.f32.gmra.mrb[2].mxu1 %v936_v62 }
  0xc5   : > { %v938_v0 = vunpack.i.l.bf16 %v937_v63  ;;  %v941_v1 = vunpack.i.h.bf16 %v937_v63  ;;  %v247_v63 = vld [vmem:[#allocation2 + $0x48] sm:$0xff] }
  0xc7   : > { %496 = vmatprep.mubr.f32.mxu1 %v938_v0 }
  0xc8   : > { %v942_v2 = vpop.trf.xlu0  ;;  %497 = vmatmul.mubr.f32.gmra.mrb[4].mxu1 %v941_v1 }
  0xc9   : > { %v943_v3 = vunpack.i.l.bf16 %v942_v2  ;;  %v946_v4 = vunpack.i.h.bf16 %v942_v2 }
  0xcb   : > { %501 = vmatprep.mubr.f32.mxu1 %v943_v3 }
  0xcc   : > { %v947_v5 = vpop.trf.xlu0  ;;  %502 = vmatmul.mubr.f32.gmra.mrb[6].mxu1 %v946_v4  ;;  %v248_v4 = vld [vmem:[#allocation2 + $0x50] sm:$0xff] }
  0xcd   : > { %v948_v6 = vunpack.i.l.bf16 %v947_v5  ;;  %v951_v7 = vunpack.i.h.bf16 %v947_v5 }
  0xcf   : > { %506 = vmatprep.mubr.f32.mxu1 %v948_v6 }
  0xd0   : > { %v952_v8 = vpop.trf.xlu0  ;;  %507 = vmatmul.mubr.f32.gmra.mrb[8].mxu1 %v951_v7 }
  0xd1   : > { %v953_v9 = vunpack.i.l.bf16 %v952_v8  ;;  %v956_v10 = vunpack.i.h.bf16 %v952_v8 }
  0xd3   : > { %511 = vmatprep.mubr.f32.mxu1 %v953_v9  ;;  %v249_v9 = vld [vmem:[#allocation2 + $0x58] sm:$0xff] }
  0xd4   : > { %v957_v11 = vpop.trf.xlu0  ;;  %512 = vmatmul.mubr.f32.gmra.mrb[10].mxu1 %v956_v10 }
  0xd5   : > { %v958_v12 = vunpack.i.l.bf16 %v957_v11  ;;  %v961_v13 = vunpack.i.h.bf16 %v957_v11 }
  0xd7   : > { %516 = vmatprep.mubr.f32.mxu1 %v958_v12 }
  0xd8   : > { %v962_v14 = vpop.trf.xlu0  ;;  %517 = vmatmul.mubr.f32.gmra.mrb[12].mxu1 %v961_v13 }
  0xd9   : > { %v966_v15 = vunpack.i.h.bf16 %v962_v14  ;;  %v963_v16 = vunpack.i.l.bf16 %v962_v14  ;;  %v250_v14 = vld [vmem:[#allocation2 + $0x60] sm:$0xff] }
  0xdb   : > { %521 = vmatprep.mubr.f32.mxu1 %v963_v16 }
  0xdc   : > { %522 = vmatmul.mubr.f32.gmra.mrb[14].mxu1 %v966_v15 }
 0x173   : > { %v734_v17 = vpop.f32.mrb[0].mxu0 }
 0x174   : > { %v735_v19 = vpop.f32.mrb[1].mxu0 }
 0x175   : > { %v736_v20 = vadd.f32 %v735_v19, %v734_v17  ;;  %v251_v19 = vld [vmem:[#allocation2 + $0x68] sm:$0xff] }
 0x177   : > { %v527_v21 = vadd.f32 %v736_v20, %v238_v18  ;;  %v737_v22 = vpop.f32.mrb[2].mxu0 }
 0x178   : > { %v738_v24 = vpop.f32.mrb[3].mxu0 }
 0x179   : > { %543 = vst [vmem:[#allocation2] sm:$0xff] %v527_v21  ;;  %v739_v25 = vadd.f32 %v738_v24, %v737_v22  ;;  %v252_v24 = vld [vmem:[#allocation2 + $0x70] sm:$0xff] }
 0x17b   : > { %v528_v26 = vadd.f32 %v739_v25, %v239_v23  ;;  %v740_v27 = vpop.f32.mrb[4].mxu0 }
 0x17c   : > { %v741_v29 = vpop.f32.mrb[5].mxu0 }
 0x17d   : > { %544 = vst [vmem:[#allocation2 + $0x8] sm:$0xff] %v528_v26  ;;  %v742_v30 = vadd.f32 %v741_v29, %v740_v27  ;;  %v253_v29 = vld [vmem:[#allocation2 + $0x78] sm:$0xff] }
 0x17f   : > { %v529_v31 = vadd.f32 %v742_v30, %v240_v28  ;;  %v743_v32 = vpop.f32.mrb[6].mxu0 }
 0x180   : > { %v744_v34 = vpop.f32.mrb[7].mxu0 }
 0x181   : > { %545 = vst [vmem:[#allocation2 + $0x10] sm:$0xff] %v529_v31  ;;  %v745_v35 = vadd.f32 %v744_v34, %v743_v32 }
 0x183   : > { %v530_v36 = vadd.f32 %v745_v35, %v241_v33  ;;  %v746_v37 = vpop.f32.mrb[8].mxu0  ;;  %v563_v33 = vld [vmem:[#allocation2] sm:$0xff] (!%p697_p6) }
 0x184   : > { %v747_v39 = vpop.f32.mrb[9].mxu0  ;;  %v564_v34 = vld [vmem:[#allocation2 + $0x8] sm:$0xff] (!%p697_p6)  ;;  %579 = vst [vmem:[%s1163_s2] sm:$0xff] (!%p697_p6), %v563_v33 }
 0x185   : > { %546 = vst [vmem:[#allocation2 + $0x18] sm:$0xff] %v530_v36  ;;  %v748_v40 = vadd.f32 %v747_v39, %v746_v37  ;;  %580 = vst [vmem:[%s1163_s2 + $0x8] sm:$0xff] (!%p697_p6), %v564_v34 }
 0x187   : > { %v531_v41 = vadd.f32 %v748_v40, %v242_v38  ;;  %v749_v42 = vpop.f32.mrb[10].mxu0 }
 0x188   : > { %v750_v44 = vpop.f32.mrb[11].mxu0  ;;  %v565_v35 = vld [vmem:[#allocation2 + $0x10] sm:$0xff] (!%p697_p6) }
 0x189   : > { %547 = vst [vmem:[#allocation2 + $0x20] sm:$0xff] %v531_v41  ;;  %v751_v45 = vadd.f32 %v750_v44, %v749_v42  ;;  %581 = vst [vmem:[%s1163_s2 + $0x10] sm:$0xff] (!%p697_p6), %v565_v35 }
 0x18b   : > { %v532_v46 = vadd.f32 %v751_v45, %v243_v43  ;;  %v752_v47 = vpop.f32.mrb[12].mxu0 }
 0x18c   : > { %v753_v49 = vpop.f32.mrb[13].mxu0  ;;  %v566_v36 = vld [vmem:[#allocation2 + $0x18] sm:$0xff] (!%p697_p6) }
 0x18d   : > { %548 = vst [vmem:[#allocation2 + $0x28] sm:$0xff] %v532_v46  ;;  %v754_v50 = vadd.f32 %v753_v49, %v752_v47  ;;  %582 = vst [vmem:[%s1163_s2 + $0x18] sm:$0xff] (!%p697_p6), %v566_v36 }
 0x18f   : > { %v533_v51 = vadd.f32 %v754_v50, %v244_v48  ;;  %v755_v52 = vpop.f32.mrb[14].mxu0 }
 0x190   : > { %v756_v54 = vpop.f32.mrb[15].mxu0  ;;  %v567_v37 = vld [vmem:[#allocation2 + $0x20] sm:$0xff] (!%p697_p6) }
 0x191   : > { %549 = vst [vmem:[#allocation2 + $0x30] sm:$0xff] %v533_v51  ;;  %v757_v55 = vadd.f32 %v756_v54, %v755_v52  ;;  %583 = vst [vmem:[%s1163_s2 + $0x20] sm:$0xff] (!%p697_p6), %v567_v37 }
 0x193   : > { %v534_v56 = vadd.f32 %v757_v55, %v245_v53  ;;  %v758_v57 = vpop.f32.mrb[0].mxu1 }
 0x194   : > { %v759_v59 = vpop.f32.mrb[1].mxu1  ;;  %v568_v38 = vld [vmem:[#allocation2 + $0x28] sm:$0xff] (!%p697_p6) }
 0x195   : > { %550 = vst [vmem:[#allocation2 + $0x38] sm:$0xff] %v534_v56  ;;  %v760_v60 = vadd.f32 %v759_v59, %v758_v57  ;;  %584 = vst [vmem:[%s1163_s2 + $0x28] sm:$0xff] (!%p697_p6), %v568_v38 }
 0x197   : > { %v535_v61 = vadd.f32 %v760_v60, %v246_v58  ;;  %v761_v62 = vpop.f32.mrb[2].mxu1 }
 0x198   : > { %v762_v0 = vpop.f32.mrb[3].mxu1  ;;  %v569_v39 = vld [vmem:[#allocation2 + $0x30] sm:$0xff] (!%p697_p6) }
 0x199   : > { %551 = vst [vmem:[#allocation2 + $0x40] sm:$0xff] %v535_v61  ;;  %v763_v1 = vadd.f32 %v762_v0, %v761_v62  ;;  %585 = vst [vmem:[%s1163_s2 + $0x30] sm:$0xff] (!%p697_p6), %v569_v39 }
 0x19b   : > { %v536_v2 = vadd.f32 %v763_v1, %v247_v63  ;;  %v764_v3 = vpop.f32.mrb[4].mxu1 }
 0x19c   : > { %v765_v5 = vpop.f32.mrb[5].mxu1  ;;  %v570_v40 = vld [vmem:[#allocation2 + $0x38] sm:$0xff] (!%p697_p6) }
 0x19d   : > { %552 = vst [vmem:[#allocation2 + $0x48] sm:$0xff] %v536_v2  ;;  %v766_v6 = vadd.f32 %v765_v5, %v764_v3  ;;  %586 = vst [vmem:[%s1163_s2 + $0x38] sm:$0xff] (!%p697_p6), %v570_v40 }
 0x19f   : > { %v537_v7 = vadd.f32 %v766_v6, %v248_v4  ;;  %v767_v8 = vpop.f32.mrb[6].mxu1 }
 0x1a0   : > { %v768_v10 = vpop.f32.mrb[7].mxu1  ;;  %v571_v41 = vld [vmem:[#allocation2 + $0x40] sm:$0xff] (!%p697_p6) }
 0x1a1   : > { %553 = vst [vmem:[#allocation2 + $0x50] sm:$0xff] %v537_v7  ;;  %v769_v11 = vadd.f32 %v768_v10, %v767_v8  ;;  %587 = vst [vmem:[%s1163_s2 + $0x40] sm:$0xff] (!%p697_p6), %v571_v41 }
 0x1a3   : > { %v538_v12 = vadd.f32 %v769_v11, %v249_v9  ;;  %v770_v13 = vpop.f32.mrb[8].mxu1 }
 0x1a4   : > { %v771_v15 = vpop.f32.mrb[9].mxu1  ;;  %v572_v42 = vld [vmem:[#allocation2 + $0x48] sm:$0xff] (!%p697_p6) }
 0x1a5   : > { %554 = vst [vmem:[#allocation2 + $0x58] sm:$0xff] %v538_v12  ;;  %v772_v16 = vadd.f32 %v771_v15, %v770_v13  ;;  %588 = vst [vmem:[%s1163_s2 + $0x48] sm:$0xff] (!%p697_p6), %v572_v42 }
 0x1a7   : > { %v539_v17 = vadd.f32 %v772_v16, %v250_v14  ;;  %v773_v18 = vpop.f32.mrb[10].mxu1 }
 0x1a8   : > { %v774_v20 = vpop.f32.mrb[11].mxu1  ;;  %v573_v43 = vld [vmem:[#allocation2 + $0x50] sm:$0xff] (!%p697_p6) }
 0x1a9   : > { %555 = vst [vmem:[#allocation2 + $0x60] sm:$0xff] %v539_v17  ;;  %v775_v21 = vadd.f32 %v774_v20, %v773_v18  ;;  %589 = vst [vmem:[%s1163_s2 + $0x50] sm:$0xff] (!%p697_p6), %v573_v43 }
 0x1ab   : > { %v540_v22 = vadd.f32 %v775_v21, %v251_v19  ;;  %v776_v23 = vpop.f32.mrb[12].mxu1 }
 0x1ac   : > { %v777_v25 = vpop.f32.mrb[13].mxu1  ;;  %v574_v44 = vld [vmem:[#allocation2 + $0x58] sm:$0xff] (!%p697_p6) }
 0x1ad   : > { %556 = vst [vmem:[#allocation2 + $0x68] sm:$0xff] %v540_v22  ;;  %v778_v26 = vadd.f32 %v777_v25, %v776_v23  ;;  %590 = vst [vmem:[%s1163_s2 + $0x58] sm:$0xff] (!%p697_p6), %v574_v44 }
 0x1af   : > { %v541_v27 = vadd.f32 %v778_v26, %v252_v24  ;;  %v779_v28 = vpop.f32.mrb[14].mxu1  ;;  %562 = sbr.rel (%p697_p6) target bundleno = 446 (0x1be), region = 36 }
 0x1b0   : > { %v780_v30 = vpop.f32.mrb[15].mxu1  ;;  %v575_v45 = vld [vmem:[#allocation2 + $0x60] sm:$0xff] (!%p697_p6) }
 0x1b1   : > { %557 = vst [vmem:[#allocation2 + $0x70] sm:$0xff] %v541_v27  ;;  %v781_v31 = vadd.f32 %v780_v30, %v779_v28  ;;  %591 = vst [vmem:[%s1163_s2 + $0x60] sm:$0xff] (!%p697_p6), %v575_v45 }
 0x1b3   : > { %v542_v32 = vadd.f32 %v781_v31, %v253_v29 }
 0x1b4   : > { %v576_v46 = vld [vmem:[#allocation2 + $0x68] sm:$0xff] (!%p697_p6) }
 0x1b5   : > { %558 = vst [vmem:[#allocation2 + $0x78] sm:$0xff] %v542_v32  ;;  %592 = vst [vmem:[%s1163_s2 + $0x68] sm:$0xff] (!%p697_p6), %v576_v46 }
 0x1b8   : > { %v577_v47 = vld [vmem:[#allocation2 + $0x70] sm:$0xff] }
 0x1b9   : > { %593 = vst [vmem:[%s1163_s2 + $0x70] sm:$0xff] %v577_v47 }
 0x1bc   : > { %v578_v48 = vld [vmem:[#allocation2 + $0x78] sm:$0xff] }
 0x1bd   : > { %594 = vst [vmem:[%s1163_s2 + $0x78] sm:$0xff] %v578_v48 }
 0x1be PF: > { %s12_s11 = sadd.s32 1, %s989_s11   ;;  %s1164_s9 = smov %s985_s10 }
 0x1bf   : > { %p9_p7 = scmp.ge.s32.totalorder %s12_s11, 4   ;;  %s1165_s10 = smov %s1167_s12 }
 0x1c1   :  { %11 = sbr.rel (!%p9_p7) target bundleno = 2 (0x2), region = 69 }

</bundles_post_ra>
